<compile_context>
chip_gen: v6e
topology: v6e:2x2x1
jax: 0.10.0
libtpu: 0.0.40
codegen_flags: <defaults>
</compile_context>

<pallas_src>
import functools
import math

import jax
import jax.numpy as jnp
from jax.experimental import pallas as pl
from jax.experimental.pallas import tpu as pltpu  # noqa: F401  (TPU backend)

# Keep reference & interpret-mode kernel matmuls at full f32 accuracy.
jax.config.update("jax_default_matmul_precision", "highest")


# --------------------------------------------------------------------------- #
# Pallas kernel: folded-QK attention + folded-VO projection + residual + LN.
# --------------------------------------------------------------------------- #
def _cross_attn_kernel(tgt_ref, mem_ref, qpos_ref, kpos_ref, w_ref, vec_ref,
                       out_ref, *, nhead):
    """Shapes:
      tgt_ref, qpos_ref : (L, B, D)   seq-first native layout
      mem_ref, kpos_ref : (S, B, D)
      w_ref             : (D, 2*H*D)  [A_pack | Wvo_pack]
      vec_ref           : (H+3, D)    [ab (H rows); bconst; gamma; beta]
      out_ref           : (L, B, D)
    """
    f32 = jnp.float32
    L, B, D = tgt_ref.shape
    S = mem_ref.shape[0]
    H = nhead
    HD = H * D

    # If activations become bf16, keep these casts only for softmax/LayerNorm;
    # matmul operands may stay bf16 with preferred_element_type=f32.
    x = tgt_ref[...].astype(f32)                       # (L, B, D) residual
    q_in = x + qpos_ref[...].astype(f32)               # (L, B, D)
    mem = mem_ref[...].astype(f32)                     # (S, B, D)
    k_in = mem + kpos_ref[...].astype(f32)             # (S, B, D)

    a_pack = w_ref[:, 0:HD]                            # (D, H*D), 128-aligned slice
    wvo_pack = w_ref[:, HD:2 * HD]                     # (D, H*D)
    ab = vec_ref[0:H, :]                               # (H, D)
    bconst = vec_ref[H:H + 1, :]                       # (1, D)
    gamma = vec_ref[H + 1:H + 2, :]                    # (1, D)
    beta = vec_ref[H + 2:H + 3, :]                     # (1, D)

    # ---- folded Q path: t[l,b,h,:] = q_in[l,b] @ (scale*Wq_h^T Wk_h) + ab_h
    qf = q_in.reshape(L * B, D)
    t = jnp.dot(qf, a_pack, preferred_element_type=f32)         # (L*B, H*D), K=D
    t = t.reshape(L * B, H, D) + ab
    tq = jnp.transpose(t.reshape(L, B, H, D), (1, 2, 0, 3))     # (B, H, L, D)
    tq = tq.reshape(B * H, L, D)

    # ---- keys, broadcast across heads on the merged (B*H) leading dim
    kb = jnp.transpose(k_in, (1, 0, 2))                         # (B, S, D)
    kg = jnp.broadcast_to(kb[:, None], (B, H, S, D)).reshape(B * H, S, D)

    # ---- scores + per-head softmax (exact normalization)
    s = jnp.einsum('gld,gsd->gls', tq, kg, preferred_element_type=f32)
    s = s - jnp.max(s, axis=-1, keepdims=True)
    p = jnp.exp(s)
    p = p / jnp.sum(p, axis=-1, keepdims=True)                  # (B*H, L, S)

    # ---- folded V/O path: vp[s,b,h,:] = memory[s,b] @ (Wv_h^T Wo_cols_h^T)
    vf = mem.reshape(S * B, D)
    vp = jnp.dot(vf, wvo_pack, preferred_element_type=f32)      # (S*B, H*D), K=D
    vg = jnp.transpose(vp.reshape(S, B, H, D), (1, 2, 0, 3)).reshape(B * H, S, D)

    o = jnp.einsum('gls,gsd->gld', p, vg, preferred_element_type=f32)
    tgt2 = o.reshape(B, H, L, D).sum(axis=1) + bconst           # (B, L, D)

    # ---- residual (dropout=0) + LayerNorm (two-pass variance)
    y = jnp.transpose(x, (1, 0, 2)) + tgt2                      # (B, L, D)
    mean = jnp.mean(y, axis=-1, keepdims=True)
    yc = y - mean
    var = jnp.mean(yc * yc, axis=-1, keepdims=True)
    out = yc * jax.lax.rsqrt(var + 1e-5) * gamma + beta

    out_ref[...] = jnp.transpose(out, (1, 0, 2)).astype(out_ref.dtype)


# --------------------------------------------------------------------------- #
# One-time parameter folding / packing (cacheable across calls in real use).
# --------------------------------------------------------------------------- #
def fold_params(params, nhead):
    """Fold PyTorch (out,in) projection weights into per-head bilinear forms
    and pack everything the kernel needs into exactly two arrays."""
    wq, wk, wv, bq, bk, bv, wo, bo, gamma, beta = params
    D = wq.shape[0]
    assert D % nhead == 0
    dh = D // nhead
    scale = 1.0 / math.sqrt(dh)
    hp = jax.lax.Precision.HIGHEST

    bqf, bvf, bof = bq.reshape(-1), bv.reshape(-1), bo.reshape(-1)
    del bk  # key-projection bias provably cancels in the per-row softmax

    a_blocks, wvo_blocks, ab_rows = [], [], []
    bconst = bof
    for h in range(nhead):
        sl = slice(h * dh, (h + 1) * dh)
        wq_h, wk_h, wv_h = wq[sl, :], wk[sl, :], wv[sl, :]           # (dh, D)
        wot_h = wo[:, sl].T                                          # (dh, D)
        a_blocks.append(scale * jnp.dot(wq_h.T, wk_h, precision=hp))   # (D, D)
        ab_rows.append(scale * jnp.dot(bqf[sl], wk_h, precision=hp))   # (D,)
        wvo_blocks.append(jnp.dot(wv_h.T, wot_h, precision=hp))        # (D, D)
        bconst = bconst + jnp.dot(bvf[sl], wot_h, precision=hp)

    w_packed = jnp.concatenate(
        [jnp.concatenate(a_blocks, axis=1),
         jnp.concatenate(wvo_blocks, axis=1)], axis=1)               # (D, 2*H*D)
    vec_packed = jnp.concatenate(
        [jnp.stack(ab_rows, axis=0), bconst[None, :],
         gamma.reshape(1, D), beta.reshape(1, D)], axis=0)           # (H+3, D)
    return w_packed, vec_packed


# --------------------------------------------------------------------------- #
# Wrapper
# --------------------------------------------------------------------------- #
@functools.partial(jax.jit, static_argnames=("nhead",))
def cross_attention_layer(tgt, memory, query_pos, pos, params, *, nhead):
    """tgt/query_pos: (L, B, D); memory/pos: (S, B, D); params in PyTorch layout."""
    L, B, D = tgt.shape
    S = memory.shape[0]

    # One-time weight fold (would be precomputed/cached in a real deployment).
    w_packed, vec_packed = fold_params(params, nhead)

    full = lambda i: (0, 0, 0)
    mat2 = lambda i: (0, 0)

    # Single grid step: v5e/v6e are single-TC, so extra steps are pure overhead.
    # TODO(synk): on v7x a CORE_PARALLEL split of the batch axis could use the
    #             second TensorCore; at B=2 it does not pay for itself.
    return pl.pallas_call(
        functools.partial(_cross_attn_kernel, nhead=nhead),
        out_shape=jax.ShapeDtypeStruct((L, B, D), tgt.dtype),
        grid=(1,),
        in_specs=[
            pl.BlockSpec((L, B, D), full),               # tgt
            pl.BlockSpec((S, B, D), full),               # memory
            pl.BlockSpec((L, B, D), full),               # query_pos
            pl.BlockSpec((S, B, D), full),               # pos
            pl.BlockSpec((D, 2 * nhead * D), mat2),      # packed folded weights
            pl.BlockSpec((nhead + 3, D), mat2),          # packed bias/LN vectors
        ],
        out_specs=pl.BlockSpec((L, B, D), full),
    )(tgt, memory, query_pos, pos, w_packed, vec_packed)


# --------------------------------------------------------------------------- #
# Pure-JAX reference (PyTorch MultiheadAttention semantics), HIGHEST precision.
# --------------------------------------------------------------------------- #
def _reference(tgt, memory, query_pos, pos, params, *, nhead):
    wq, wk, wv, bq, bk, bv, wo, bo, gamma, beta = params
    L, B, D = tgt.shape
    S = memory.shape[0]
    dh = D // nhead
    hp = jax.lax.Precision.HIGHEST

    def proj(x, w, b):  # x: (T,B,D); w: (out,in) PyTorch layout -> x @ w^T + b
        return jnp.einsum("tbd,ed->tbe", x, w, precision=hp) + b[0]

    q = proj(tgt + query_pos, wq, bq)
    k = proj(memory + pos, wk, bk)
    v = proj(memory, wv, bv)

    def split(x, T):
        return x.reshape(T, B, nhead, dh).transpose(1, 2, 0, 3)  # (B,H,T,dh)

    qh, kh, vh = split(q, L), split(k, S), split(v, S)
    s = jnp.einsum("bhld,bhsd->bhls", qh, kh, precision=hp) / math.sqrt(dh)
    p = jax.nn.softmax(s, axis=-1)
    o = jnp.einsum("bhls,bhsd->bhld", p, vh, precision=hp)       # (B,H,L,dh)
    o = o.transpose(2, 0, 1, 3).reshape(L, B, D)
    tgt2 = jnp.einsum("lbd,ed->lbe", o, wo, precision=hp) + bo[0]

    y = tgt + tgt2
    mean = jnp.mean(y, axis=-1, keepdims=True)
    var = jnp.mean((y - mean) ** 2, axis=-1, keepdims=True)
    return (y - mean) * jax.lax.rsqrt(var + 1e-5) * gamma[0] + beta[0]


# --------------------------------------------------------------------------- #
# Deterministic synthetic parameters (non-zero biases exercise all fold paths).
# --------------------------------------------------------------------------- #
def _make_params(key, d_model):
    def xavier(k, shape):
        fan_out, fan_in = shape
        bound = math.sqrt(6.0 / (fan_in + fan_out))
        return jax.random.uniform(k, shape, jnp.float32, -bound, bound)

    ks = jax.random.split(key, 9)
    wq = xavier(ks[0], (d_model, d_model))
    wk = xavier(ks[1], (d_model, d_model))
    wv = xavier(ks[2], (d_model, d_model))
    wo = xavier(ks[3], (d_model, d_model))
    bq = 0.1 * jax.random.normal(ks[4], (1, d_model), jnp.float32)
    bk = 0.1 * jax.random.normal(ks[5], (1, d_model), jnp.float32)
    bv = 0.1 * jax.random.normal(ks[6], (1, d_model), jnp.float32)
    bo = 0.1 * jax.random.normal(ks[7], (1, d_model), jnp.float32)
    gamma = 1.0 + 0.1 * jax.random.normal(ks[8], (1, d_model), jnp.float32)
    beta = 0.05 * jnp.ones((1, d_model), jnp.float32)
    return (wq, wk, wv, bq, bk, bv, wo, bo, gamma, beta)


if __name__ == "__main__":
    d_model, nhead = 32, 4
    L, S, B = 8, 64, 2   # num queries, flattened 8x8 memory feature map, batch

    key = jax.random.PRNGKey(0)
    k_tgt, k_mem, k_qp, k_kp, k_par = jax.random.split(key, 5)

    tgt = jax.random.normal(k_tgt, (L, B, d_model), jnp.float32)
    memory = jax.random.normal(k_mem, (S, B, d_model), jnp.float32)
    query_pos = jax.random.normal(k_qp, (L, B, d_model), jnp.float32)
    pos = jax.random.normal(k_kp, (S, B, d_model), jnp.float32)

    params = _make_params(k_par, d_model)

    out = cross_attention_layer(tgt, memory, query_pos, pos, params, nhead=nhead)
    out = jax.block_until_ready(out)

    ref = _reference(tgt, memory, query_pos, pos, params, nhead=nhead)
    assert out.shape == (L, B, d_model)
    max_err = float(jnp.max(jnp.abs(out - ref)))
    assert jnp.allclose(out, ref, atol=2e-3, rtol=2e-3), (
        f"mismatch vs reference (max abs err = {max_err:.3e})")

    print("KERNEL_OK")
</pallas_src>

<mosaic_0001>
module attributes {stable_mosaic.version = 11 : i64} {
  func.func @_cross_attn_kernel(%arg0: i32, %arg1: memref<8x2x32xf32, #tpu.memory_space<vmem>>, %arg2: memref<64x2x32xf32, #tpu.memory_space<vmem>>, %arg3: memref<8x2x32xf32, #tpu.memory_space<vmem>>, %arg4: memref<64x2x32xf32, #tpu.memory_space<vmem>>, %arg5: memref<32x256xf32, #tpu.memory_space<vmem>>, %arg6: memref<7x32xf32, #tpu.memory_space<vmem>>, %arg7: memref<8x2x32xf32, #tpu.memory_space<vmem>>) attributes {dimension_semantics = [#tpu.dimension_semantics<arbitrary>], iteration_bounds = array<i64: 1>, scalar_prefetch = 0 : i64, scratch_operands = 0 : i64, tpu.core_type = #tpu.core_type<tc>, window_params = [{pipeline_mode = #tpu.pipeline_mode<synchronous>, transform_indices = @transform_0, window_bounds = array<i64: 8, 2, 32>}, {pipeline_mode = #tpu.pipeline_mode<synchronous>, transform_indices = @transform_1, window_bounds = array<i64: 64, 2, 32>}, {pipeline_mode = #tpu.pipeline_mode<synchronous>, transform_indices = @transform_2, window_bounds = array<i64: 8, 2, 32>}, {pipeline_mode = #tpu.pipeline_mode<synchronous>, transform_indices = @transform_3, window_bounds = array<i64: 64, 2, 32>}, {pipeline_mode = #tpu.pipeline_mode<synchronous>, transform_indices = @transform_4, window_bounds = array<i64: 32, 256>}, {pipeline_mode = #tpu.pipeline_mode<synchronous>, transform_indices = @transform_5, window_bounds = array<i64: 7, 32>}, {pipeline_mode = #tpu.pipeline_mode<synchronous>, transform_indices = @transform_6, window_bounds = array<i64: 8, 2, 32>}]} {
    %c0 = arith.constant 0 : index
    %c0_0 = arith.constant 0 : index
    %c0_1 = arith.constant 0 : index
    %0 = vector.load %arg1[%c0, %c0_0, %c0_1] : memref<8x2x32xf32, #tpu.memory_space<vmem>>, vector<8x2x32xf32>
    %c0_2 = arith.constant 0 : index
    %c0_3 = arith.constant 0 : index
    %c0_4 = arith.constant 0 : index
    %1 = vector.load %arg3[%c0_2, %c0_3, %c0_4] : memref<8x2x32xf32, #tpu.memory_space<vmem>>, vector<8x2x32xf32>
    %2 = arith.addf %0, %1 : vector<8x2x32xf32>
    %c0_5 = arith.constant 0 : index
    %c0_6 = arith.constant 0 : index
    %c0_7 = arith.constant 0 : index
    %3 = vector.load %arg2[%c0_5, %c0_6, %c0_7] : memref<64x2x32xf32, #tpu.memory_space<vmem>>, vector<64x2x32xf32>
    %c0_8 = arith.constant 0 : index
    %c0_9 = arith.constant 0 : index
    %c0_10 = arith.constant 0 : index
    %4 = vector.load %arg4[%c0_8, %c0_9, %c0_10] : memref<64x2x32xf32, #tpu.memory_space<vmem>>, vector<64x2x32xf32>
    %5 = arith.addf %3, %4 : vector<64x2x32xf32>
    %c0_11 = arith.constant 0 : index
    %c0_12 = arith.constant 0 : index
    %6 = vector.load %arg5[%c0_11, %c0_12] : memref<32x256xf32, #tpu.memory_space<vmem>>, vector<32x128xf32>
    %c0_13 = arith.constant 0 : index
    %c128 = arith.constant 128 : index
    %7 = vector.load %arg5[%c0_13, %c128] : memref<32x256xf32, #tpu.memory_space<vmem>>, vector<32x128xf32>
    %c0_14 = arith.constant 0 : index
    %c0_15 = arith.constant 0 : index
    %8 = vector.load %arg6[%c0_14, %c0_15] : memref<7x32xf32, #tpu.memory_space<vmem>>, vector<4x32xf32>
    %c4 = arith.constant 4 : index
    %c0_16 = arith.constant 0 : index
    %9 = vector.load %arg6[%c4, %c0_16] : memref<7x32xf32, #tpu.memory_space<vmem>>, vector<1x32xf32>
    %c5 = arith.constant 5 : index
    %c0_17 = arith.constant 0 : index
    %10 = vector.load %arg6[%c5, %c0_17] : memref<7x32xf32, #tpu.memory_space<vmem>>, vector<1x32xf32>
    %c6 = arith.constant 6 : index
    %c0_18 = arith.constant 0 : index
    %11 = vector.load %arg6[%c6, %c0_18] : memref<7x32xf32, #tpu.memory_space<vmem>>, vector<1x32xf32>
    %12 = vector.shape_cast %2 : vector<8x2x32xf32> to vector<16x32xf32>
    %cst = arith.constant dense<0.000000e+00> : vector<16x128xf32>
    %13 = tpu.matmul %12, %6, %cst {dimension_numbers = #tpu.dot_dimension_numbers<[1], [0], [0], [1], [0, 0, 1, 1], [], []>, precision = #tpu.contract_precision<fp32>} : vector<16x32xf32>, vector<32x128xf32>, vector<16x128xf32> -> vector<16x128xf32>
    %14 = vector.shape_cast %13 : vector<16x128xf32> to vector<16x4x32xf32>
    %15 = vector.shape_cast %8 : vector<4x32xf32> to vector<1x4x32xf32>
    %16 = vector.broadcast %15 : vector<1x4x32xf32> to vector<16x4x32xf32>
    %17 = arith.addf %14, %16 : vector<16x4x32xf32>
    %18 = vector.shape_cast %17 : vector<16x4x32xf32> to vector<8x2x4x32xf32>
    %19 = tpu.transpose %18, [1, 2, 0, 3] : vector<8x2x4x32xf32> -> vector<2x4x8x32xf32>
    %20 = vector.shape_cast %19 : vector<2x4x8x32xf32> to vector<8x8x32xf32>
    %21 = tpu.transpose %5, [1, 0, 2] : vector<64x2x32xf32> -> vector<2x64x32xf32>
    %22 = vector.shape_cast %21 : vector<2x64x32xf32> to vector<2x1x64x32xf32>
    %23 = vector.shape_cast %22 : vector<2x1x64x32xf32> to vector<2x1x64x32xf32>
    %24 = vector.broadcast %23 : vector<2x1x64x32xf32> to vector<2x4x64x32xf32>
    %25 = vector.shape_cast %24 : vector<2x4x64x32xf32> to vector<8x64x32xf32>
    "tpu.trace_start"() <{level = 10 : i32, message = "gld,gsd->gls"}> : () -> ()
    %cst_19 = arith.constant dense<0.000000e+00> : vector<8x8x64xf32>
    %26 = tpu.matmul %20, %25, %cst_19 {dimension_numbers = #tpu.dot_dimension_numbers<[2], [2], [1], [1], [0, 0, 0, 1, 1, 1], [0], [0]>, precision = #tpu.contract_precision<fp32>} : vector<8x8x32xf32>, vector<8x64x32xf32>, vector<8x8x64xf32> -> vector<8x8x64xf32>
    "tpu.trace_stop"() : () -> ()
    %cst_20 = arith.constant dense<0xFF800000> : vector<8x8xf32>
    %27 = vector.multi_reduction <maximumf>, %26, %cst_20 [2] : vector<8x8x64xf32> to vector<8x8xf32>
    %28 = vector.shape_cast %27 : vector<8x8xf32> to vector<8x8x1xf32>
    %29 = vector.broadcast %28 : vector<8x8x1xf32> to vector<8x8x64xf32>
    %30 = arith.subf %26, %29 : vector<8x8x64xf32>
    %31 = math.exp %30 : vector<8x8x64xf32>
    %cst_21 = arith.constant dense<0.000000e+00> : vector<8x8xf32>
    %32 = vector.multi_reduction <add>, %31, %cst_21 [2] : vector<8x8x64xf32> to vector<8x8xf32>
    %33 = vector.shape_cast %32 : vector<8x8xf32> to vector<8x8x1xf32>
    %34 = vector.broadcast %33 : vector<8x8x1xf32> to vector<8x8x64xf32>
    %35 = arith.divf %31, %34 : vector<8x8x64xf32>
    %36 = vector.shape_cast %3 : vector<64x2x32xf32> to vector<128x32xf32>
    %cst_22 = arith.constant dense<0.000000e+00> : vector<128x128xf32>
    %37 = tpu.matmul %36, %7, %cst_22 {dimension_numbers = #tpu.dot_dimension_numbers<[1], [0], [0], [1], [0, 0, 1, 1], [], []>, precision = #tpu.contract_precision<fp32>} : vector<128x32xf32>, vector<32x128xf32>, vector<128x128xf32> -> vector<128x128xf32>
    %38 = vector.shape_cast %37 : vector<128x128xf32> to vector<64x2x4x32xf32>
    %39 = tpu.transpose %38, [1, 2, 0, 3] : vector<64x2x4x32xf32> -> vector<2x4x64x32xf32>
    %40 = vector.shape_cast %39 : vector<2x4x64x32xf32> to vector<8x64x32xf32>
    "tpu.trace_start"() <{level = 10 : i32, message = "gls,gsd->gld"}> : () -> ()
    %cst_23 = arith.constant dense<0.000000e+00> : vector<8x8x32xf32>
    %41 = tpu.matmul %35, %40, %cst_23 {dimension_numbers = #tpu.dot_dimension_numbers<[2], [1], [1], [2], [0, 0, 0, 1, 1, 2], [0], [0]>, precision = #tpu.contract_precision<fp32>} : vector<8x8x64xf32>, vector<8x64x32xf32>, vector<8x8x32xf32> -> vector<8x8x32xf32>
    "tpu.trace_stop"() : () -> ()
    %42 = vector.shape_cast %41 : vector<8x8x32xf32> to vector<2x4x8x32xf32>
    %cst_24 = arith.constant dense<0.000000e+00> : vector<2x8x32xf32>
    %43 = vector.multi_reduction <add>, %42, %cst_24 [1] : vector<2x4x8x32xf32> to vector<2x8x32xf32>
    %44 = vector.shape_cast %9 : vector<1x32xf32> to vector<1x1x32xf32>
    %45 = vector.broadcast %44 : vector<1x1x32xf32> to vector<2x8x32xf32>
    %46 = arith.addf %43, %45 : vector<2x8x32xf32>
    %47 = tpu.transpose %0, [1, 0, 2] : vector<8x2x32xf32> -> vector<2x8x32xf32>
    %48 = arith.addf %47, %46 : vector<2x8x32xf32>
    %cst_25 = arith.constant dense<0.000000e+00> : vector<2x8xf32>
    %49 = vector.multi_reduction <add>, %48, %cst_25 [2] : vector<2x8x32xf32> to vector<2x8xf32>
    %50 = vector.shape_cast %49 : vector<2x8xf32> to vector<2x8x1xf32>
    %cst_26 = arith.constant 3.200000e+01 : f32
    %51 = vector.broadcast %cst_26 : f32 to vector<2x8x1xf32>
    %52 = arith.divf %50, %51 : vector<2x8x1xf32>
    %53 = vector.broadcast %52 : vector<2x8x1xf32> to vector<2x8x32xf32>
    %54 = arith.subf %48, %53 : vector<2x8x32xf32>
    %55 = arith.mulf %54, %54 : vector<2x8x32xf32>
    %cst_27 = arith.constant dense<0.000000e+00> : vector<2x8xf32>
    %56 = vector.multi_reduction <add>, %55, %cst_27 [2] : vector<2x8x32xf32> to vector<2x8xf32>
    %57 = vector.shape_cast %56 : vector<2x8xf32> to vector<2x8x1xf32>
    %cst_28 = arith.constant 3.200000e+01 : f32
    %58 = vector.broadcast %cst_28 : f32 to vector<2x8x1xf32>
    %59 = arith.divf %57, %58 : vector<2x8x1xf32>
    %cst_29 = arith.constant 9.99999974E-6 : f32
    %60 = vector.broadcast %cst_29 : f32 to vector<2x8x1xf32>
    %61 = arith.addf %59, %60 : vector<2x8x1xf32>
    %62 = math.rsqrt %61 : vector<2x8x1xf32>
    %63 = vector.broadcast %62 : vector<2x8x1xf32> to vector<2x8x32xf32>
    %64 = arith.mulf %54, %63 : vector<2x8x32xf32>
    %65 = vector.shape_cast %10 : vector<1x32xf32> to vector<1x1x32xf32>
    %66 = vector.broadcast %65 : vector<1x1x32xf32> to vector<2x8x32xf32>
    %67 = arith.mulf %64, %66 : vector<2x8x32xf32>
    %68 = vector.shape_cast %11 : vector<1x32xf32> to vector<1x1x32xf32>
    %69 = vector.broadcast %68 : vector<1x1x32xf32> to vector<2x8x32xf32>
    %70 = arith.addf %67, %69 : vector<2x8x32xf32>
    %71 = tpu.transpose %70, [1, 0, 2] : vector<2x8x32xf32> -> vector<8x2x32xf32>
    %c0_30 = arith.constant 0 : index
    %c0_31 = arith.constant 0 : index
    %c0_32 = arith.constant 0 : index
    %72 = vector.load %arg7[%c0_30, %c0_31, %c0_32] : memref<8x2x32xf32, #tpu.memory_space<vmem>>, vector<8x2x32xf32>
    tpu.vector_store %arg7[%c0_30, %c0_31, %c0_32], %71 {strides = array<i32>} : memref<8x2x32xf32, #tpu.memory_space<vmem>>, vector<8x2x32xf32>,
    return
  }
  func.func @transform_0(%arg0: i32) -> (i32, i32, i32) {
    %c0_i32 = arith.constant 0 : i32
    %c0_i32_0 = arith.constant 0 : i32
    %c0_i32_1 = arith.constant 0 : i32
    %c0_i32_2 = arith.constant 0 : i32
    return %c0_i32, %c0_i32_0, %c0_i32_1 : i32, i32, i32
  }
  func.func @transform_1(%arg0: i32) -> (i32, i32, i32) {
    %c0_i32 = arith.constant 0 : i32
    %c0_i32_0 = arith.constant 0 : i32
    %c0_i32_1 = arith.constant 0 : i32
    %c0_i32_2 = arith.constant 0 : i32
    return %c0_i32, %c0_i32_0, %c0_i32_1 : i32, i32, i32
  }
  func.func @transform_2(%arg0: i32) -> (i32, i32, i32) {
    %c0_i32 = arith.constant 0 : i32
    %c0_i32_0 = arith.constant 0 : i32
    %c0_i32_1 = arith.constant 0 : i32
    %c0_i32_2 = arith.constant 0 : i32
    return %c0_i32, %c0_i32_0, %c0_i32_1 : i32, i32, i32
  }
  func.func @transform_3(%arg0: i32) -> (i32, i32, i32) {
    %c0_i32 = arith.constant 0 : i32
    %c0_i32_0 = arith.constant 0 : i32
    %c0_i32_1 = arith.constant 0 : i32
    %c0_i32_2 = arith.constant 0 : i32
    return %c0_i32, %c0_i32_0, %c0_i32_1 : i32, i32, i32
  }
  func.func @transform_4(%arg0: i32) -> (i32, i32) {
    %c0_i32 = arith.constant 0 : i32
    %c0_i32_0 = arith.constant 0 : i32
    %c0_i32_1 = arith.constant 0 : i32
    return %c0_i32, %c0_i32_0 : i32, i32
  }
  func.func @transform_5(%arg0: i32) -> (i32, i32) {
    %c0_i32 = arith.constant 0 : i32
    %c0_i32_0 = arith.constant 0 : i32
    %c0_i32_1 = arith.constant 0 : i32
    return %c0_i32, %c0_i32_0 : i32, i32
  }
  func.func @transform_6(%arg0: i32) -> (i32, i32, i32) {
    %c0_i32 = arith.constant 0 : i32
    %c0_i32_0 = arith.constant 0 : i32
    %c0_i32_1 = arith.constant 0 : i32
    %c0_i32_2 = arith.constant 0 : i32
    return %c0_i32, %c0_i32_0, %c0_i32_1 : i32, i32, i32
  }
}

</mosaic_0001>

<bundles_post_ra>
// kernel: cross_attention_layer.1
= control target key start
LH: loop header
LB: loop body
LE: loop exit
PB: predicated region body
PF: predicated region fallthrough
CT: control target
= control target key end

     0   :  { %v265_v3 = vlaneseq  ;;  %v17628_v9 = vmov 1983009808   ;;  %s23399_s0 = inlined_call_operand.vmem [shape: f32[8,2,32], index: 0, kind: input, shape index: {}]   ;;  %s23400_s1 = inlined_call_operand.vmem [shape: f32[64,2,32], index: 1, kind: input, shape index: {}]   ;;  %s23401_s2 = inlined_call_operand.vmem [shape: f32[8,2,32], index: 2, kind: input, shape index: {}]   ;;  %s23402_s3 = inlined_call_operand.vmem [shape: f32[64,2,32], index: 3, kind: input, shape index: {}]   ;;  %s23403_s4 = inlined_call_operand.vmem [shape: f32[32,256], index: 4, kind: input, shape index: {}]   ;;  %s23404_s5 = inlined_call_operand.vmem [shape: f32[7,32], index: 5, kind: input, shape index: {}]   ;;  %s23405_s6 = inlined_call_operand.hbm [shape: f32[8,2,32], index: 6, kind: output, shape index: {}]  }
   0x1   :  { %v243_v0 = vld [vmem:[%s23403_s4 + $0x30] sm:$0xff]  ;;  %v242_v1 = vld [vmem:[%s23403_s4 + $0x20] sm:$0xff]  ;;  %v263_v10 = vunpack.c.l.s4 %v17628_v9  ;;  %v28_v27 = vld [vmem:[%s23399_s0 + $0x8] sm:$0x3] }
   0x2   :  { %v241_v2 = vld [vmem:[%s23403_s4 + $0x10] sm:$0xff]  ;;  %v17681_v4 = vand.u32 4294901760, %v243_v0  ;;  %v17683_v5 = vand.u32 4294901760, %v242_v1  ;;  %v240_v7 = vld [vmem:[%s23403_s4] sm:$0xff]  ;;  %v17701_v14 = vshrl.u32 %v265_v3, 7 }
   0x3   :  { %v17685_v6 = vand.u32 4294901760, %v241_v2  ;;  %v24_v8 = vld [vmem:[%s23399_s0] sm:$0x3]  ;;  %v17693_v11 = vand.u32 4294901760, %v240_v7  ;;  %v25_v12 = vld [vmem:[%s23399_s0 + $0x2] sm:$0x3]  ;;  %v264_v21 = vunpack.c.0.s8 %v263_v10 }
   0x4   :  { %v26_v13 = vld [vmem:[%s23399_s0 + $0x4] sm:$0x3]  ;;  %15403 = vmatprep.subr.mxu0 %v17681_v4  ;;  %v17705_v15 = vsub.f32 %v243_v0, %v17681_v4  ;;  %v17708_v16 = vsub.f32 %v242_v1, %v17683_v5  ;;  %v27_v18 = vld [vmem:[%s23399_s0 + $0x6] sm:$0x3]  ;;  %v32_v19 = vld [vmem:[%s23401_s2] sm:$0x3] }
   0x5   :  { %v17711_v17 = vsub.f32 %v241_v2, %v17685_v6  ;;  %v33_v20 = vld [vmem:[%s23401_s2 + $0x2] sm:$0x3]  ;;  %15404 = vmatpush3.msra.mxu0 %v17681_v4  ;;  %v17724_v22 = vsub.f32 %v240_v7, %v17693_v11  ;;  %v34_v23 = vld [vmem:[%s23401_s2 + $0x4] sm:$0x3]  ;;  %v35_v24 = vld [vmem:[%s23401_s2 + $0x6] sm:$0x3]  ;;  %v40_v25 = vadd.f32 %v32_v19, %v24_v8  ;;  %v17753_v36 = vsub.s32 %v264_v21, %v17701_v14 }
   0x6   :  { %v41_v26 = vadd.f32 %v33_v20, %v25_v12  ;;  %v17736_v28 = vand.u32 4294901760, %v17705_v15  ;;  %15405 = vmatprep.subr.mxu0 %v17683_v5  ;;  %v17740_v29 = vand.u32 4294901760, %v17708_v16  ;;  %v42_v31 = vadd.f32 %v34_v23, %v26_v13  ;;  %v29_v32 = vld [vmem:[%s23399_s0 + $0xa] sm:$0x3]  ;;  %v30_v37 = vld [vmem:[%s23399_s0 + $0xc] sm:$0x3] }
   0x7   :  { %v17743_v30 = vand.u32 4294901760, %v17711_v17  ;;  %15406 = vmatpush3.msra.mxu0 %v17683_v5  ;;  %v17750_v33 = vand.u32 4294901760, %v17724_v22  ;;  %v43_v34 = vadd.f32 %v35_v24, %v27_v18  ;;  %23579 = vst [vmem:[#allocation5_spill] sm:$0xff] %v17753_v36  ;;  %v31_v38 = vld [vmem:[%s23399_s0 + $0xe] sm:$0x3] }
   0x8   :  { %v260_v35 = vcombine.low %v40_v25, %v41_v26  ;;  %v416_v39 = vsub.f32 %v17705_v15, %v17736_v28  ;;  %v423_v40 = vsub.f32 %v17708_v16, %v17740_v29  ;;  %15407 = vmatprep.subr.mxu0 %v17685_v6  ;;  %v36_v42 = vld [vmem:[%s23401_s2 + $0x8] sm:$0x3]  ;;  %v37_v43 = vld [vmem:[%s23401_s2 + $0xa] sm:$0x3]  ;;  %v38_v44 = vld [vmem:[%s23401_s2 + $0xc] sm:$0x3] }
   0x9   :  { %v430_v41 = vsub.f32 %v17711_v17, %v17743_v30  ;;  %15408 = vmatpush3.msra.mxu0 %v17685_v6  ;;  %v261_v45 = vcombine.low %v42_v31, %v43_v34  ;;  %v39_v47 = vld [vmem:[%s23401_s2 + $0xe] sm:$0x3]  ;;  %v44_v48 = vadd.f32 %v36_v42, %v28_v27 }
   0xa   :  { %v268_v46 = vrot.slane %v260_v35, %v17753_v36 }
   0xb   :  { %11 = vsyncpa [#allocation3], 0  ;;  %v417_v49 = vand.u32 4294901760, %v416_v39  ;;  %v424_v50 = vand.u32 4294901760, %v423_v40  ;;  %15409 = vmatprep.subr.mxu0 %v17693_v11  ;;  %v437_v51 = vsub.f32 %v17724_v22, %v17750_v33  ;;  %v45_v52 = vadd.f32 %v37_v43, %v29_v32  ;;  %v110_v20 = vld [vmem:[%s23400_s1 + $0x7c] sm:$0x3] }
   0xc   :  { %15410 = vmatpush3.msra.mxu0 %v17693_v11  ;;  %v275_v53 = vrot.slane %v261_v45, %v17753_v36  ;;  %v46_v54 = vadd.f32 %v38_v44, %v30_v37  ;;  %v47_v55 = vadd.f32 %v39_v47, %v31_v38  ;;  %v431_v56 = vand.u32 4294901760, %v430_v41  ;;  %v111_v21 = vld [vmem:[%s23400_s1 + $0x7e] sm:$0x3]  ;;  %v169_v23 = vld [vmem:[%s23402_s3 + $0x72] sm:$0x3]  ;;  %s17631_s25 = smov 64  }
   0xd   :  { %15414 = vmatprep.subr.mxu1 %v417_v49  ;;  %vm294_vm0 = vcmask 261120   ;;  %15425 = vmatprep.subr.mxu0 %v17705_v15  ;;  %v277_v57 = vcombine.low %v44_v48, %v45_v52  ;;  %v438_v60 = vand.u32 4294901760, %v437_v51  ;;  %v170_v24 = vld [vmem:[%s23402_s3 + $0x74] sm:$0x3]  ;;  %v171_v25 = vld [vmem:[%s23402_s3 + $0x76] sm:$0x3] }
   0xe   :  { %15415 = vmatpush3.msra.mxu1 %v417_v49  ;;  %v276_v58 = vcombine.low %v268_v46, %v275_v53  ;;  %v278_v59 = vcombine.low %v46_v54, %v47_v55  ;;  %v172_v26 = vld [vmem:[%s23402_s3 + $0x78] sm:$0x3]  ;;  %v173_v27 = vld [vmem:[%s23402_s3 + $0x7a] sm:$0x3]  ;;  %v174_v31 = vld [vmem:[%s23402_s3 + $0x7c] sm:$0x3] }
   0xf   :  { %15416 = vmatprep.subr.mxu1 %v424_v50  ;;  %v285_v61 = vrot.slane %v277_v57, %v17753_v36  ;;  %v175_v32 = vld [vmem:[%s23402_s3 + $0x7e] sm:$0x3]  ;;  %v238_v37 = vadd.f32 %v174_v31, %v110_v20  ;;  %v17630_v39 = vmov 1934713408   ;;  %v93_v31 = vld [vmem:[%s23400_s1 + $0x5a] sm:$0x3] }
  0x10   :  { %15417 = vmatpush3.msra.mxu1 %v424_v50  ;;  %v295_v62 = vsel %vm294_vm0, %v276_v58, 0  ;;  %v292_v63 = vrot.slane %v278_v59, %v17753_v36  ;;  %v239_v38 = vadd.f32 %v175_v32, %v111_v21  ;;  %v882_v40 = vunpack.c.l.s4 %v17630_v39  ;;  %v94_v32 = vld [vmem:[%s23400_s1 + $0x5c] sm:$0x3]  ;;  %v153_v39 = vld [vmem:[%s23402_s3 + $0x52] sm:$0x3]  ;;  %s17632_s26 = smov 96  }
  0x11   :  { %15418 = vmatprep.subr.mxu1 %v431_v56  ;;  %v368_v0 = vand.u32 4294901760, %v295_v62  ;;  %s17633_s15 = smov 32   ;;  %vm17634_vm1 = vmmov 0   ;;  %vm5903_vm2 = vcmask 523264   ;;  %vm14323_vm3 = vcmask 254976  }
  0x12   :  { %15419 = vmatpush3.msra.mxu1 %v431_v56  ;;  %v293_v1 = vcombine.low %v285_v61, %v292_v63  ;;  %v883_v43 = vunpack.c.0.s8 %v882_v40  ;;  %v96_v61 = vld [vmem:[%s23400_s1 + $0x60] sm:$0x3]  ;;  %v98_v63 = vld [vmem:[%s23400_s1 + $0x64] sm:$0x3]  ;;  %v154_v40 = vld [vmem:[%s23402_s3 + $0x54] sm:$0x3] }
  0x13   :  { %15420 = vmatprep.subr.mxu1 %v438_v60  ;;  %v369_v2 = vsub.f32 %v295_v62, %v368_v0  ;;  %15422 = vmatprep.mubr.f32.mxu1 %v368_v0  ;;  %v97_v62 = vld [vmem:[%s23400_s1 + $0x62] sm:$0x3] }
  0x14   :  { %15421 = vmatpush3.msra.mxu1 %v438_v60  ;;  %v297_v3 = vsel %vm294_vm0, %v293_v1, 0  ;;  %v17876_v48 = vsub.s32 %v883_v43, %v17701_v14  ;;  %v100_v1 = vld [vmem:[%s23400_s1 + $0x68] sm:$0x3]  ;;  %v156_v43 = vld [vmem:[%s23402_s3 + $0x58] sm:$0x3] }
  0x15   :  { %v370_v7 = vand.u32 4294901760, %v369_v2  ;;  %15436 = vmatprep.subr.mxu1 %v17681_v4  ;;  %v378_v8 = vand.u32 4294901760, %v297_v3 }
  0x17   :  { %v371_v9 = vsub.f32 %v369_v2, %v370_v7  ;;  %v379_v10 = vsub.f32 %v297_v3, %v378_v8  ;;  %15423 = vmatmul.mubr.f32.vlgmr.msra.gmra.mxu1 %v378_v8  ;;  %v102_v3 = vld [vmem:[%s23400_s1 + $0x6c] sm:$0x3] }
  0x18   :  { %15437 = vmatpush3.msra.mxu1 %v17681_v4  ;;  %15444 = vmatprep.mubr.f32.mxu1 %v370_v7  ;;  %v103_v7 = vld [vmem:[%s23400_s1 + $0x6e] sm:$0x3] }
  0x19   :  { %v372_v12 = vand.u32 4294901760, %v371_v9  ;;  %v380_v13 = vand.u32 4294901760, %v379_v10  ;;  %15438 = vmatprep.subr.mxu1 %v17683_v5  ;;  %v161_v9 = vld [vmem:[%s23402_s3 + $0x62] sm:$0x3] }
  0x1a   :  { %15439 = vmatpush3.msra.mxu1 %v17683_v5 }
  0x1b   :  { %15411 = vmatprep.mubr.f32.mxu0 %v372_v12  ;;  %v381_v18 = vsub.f32 %v379_v10, %v380_v13  ;;  %15440 = vmatprep.subr.mxu1 %v17685_v6  ;;  %v163_v12 = vld [vmem:[%s23402_s3 + $0x66] sm:$0x3] }
  0x1c   :  { %15441 = vmatpush3.msra.mxu1 %v17685_v6 }
  0x1d   :  { %v382_v19 = vand.u32 4294901760, %v381_v18  ;;  %15442 = vmatprep.subr.mxu1 %v17693_v11  ;;  %v164_v18 = vld [vmem:[%s23402_s3 + $0x68] sm:$0x3] }
  0x1e   :  { %15443 = vmatpush3.msra.mxu1 %v17693_v11 }
  0x1f   :  { %15412 = vmatmul.mubr.f32.vlgmr.msra.gmra.mxu0 %v382_v19  ;;  %15458 = vmatprep.subr.mxu1 %v17681_v4  ;;  %v165_v19 = vld [vmem:[%s23402_s3 + $0x6a] sm:$0x3] }
  0x20   :  { %15426 = vmatpush3.msra.mxu0 %v17705_v15  ;;  %15433 = vmatprep.mubr.f32.mxu0 %v369_v2  ;;  %v107_v15 = vld [vmem:[%s23400_s1 + $0x76] sm:$0x3]  ;;  %v101_v2 = vld [vmem:[%s23400_s1 + $0x6a] sm:$0x3] }
  0x21   :  { %15427 = vmatprep.subr.mxu0 %v17708_v16  ;;  %15445 = vmatmul.mubr.f32.vlgmr.msra.gmra.mxu1 %v380_v13  ;;  %v229_v20 = vadd.f32 %v165_v19, %v101_v2 }
  0x22   :  { %15428 = vmatpush3.msra.mxu0 %v17708_v16  ;;  %15459 = vmatpush3.msra.mxu1 %v17681_v4  ;;  %v104_v4 = vld [vmem:[%s23400_s1 + $0x70] sm:$0x3]  ;;  %v108_v16 = vld [vmem:[%s23400_s1 + $0x78] sm:$0x3] }
  0x23   :  { %15429 = vmatprep.subr.mxu0 %v17711_v17  ;;  %15460 = vmatprep.subr.mxu1 %v17683_v5  ;;  %v236_v34 = vadd.f32 %v172_v26, %v108_v16  ;;  %v167_v16 = vld [vmem:[%s23402_s3 + $0x6e] sm:$0x3] }
  0x24   :  { %15430 = vmatpush3.msra.mxu0 %v17711_v17  ;;  %15461 = vmatpush3.msra.mxu1 %v17683_v5  ;;  %v105_v5 = vld [vmem:[%s23400_s1 + $0x72] sm:$0x3]  ;;  %v109_v17 = vld [vmem:[%s23400_s1 + $0x7a] sm:$0x3] }
  0x25   :  { %15431 = vmatprep.subr.mxu0 %v17724_v22  ;;  %15462 = vmatprep.subr.mxu1 %v17685_v6  ;;  %v237_v35 = vadd.f32 %v173_v27, %v109_v17  ;;  %v1501_v45 = vcombine.low %v236_v34, %v238_v37  ;;  %v228_v17 = vadd.f32 %v164_v18, %v100_v1  ;;  %v90_v27 = vld [vmem:[%s23400_s1 + $0x54] sm:$0x3] }
  0x26   :  { %15432 = vmatpush3.msra.mxu0 %v17724_v22  ;;  %15463 = vmatpush3.msra.mxu1 %v17685_v6  ;;  %v23406_v6 = vmov 0.0   ;;  %v168_v22 = vld [vmem:[%s23402_s3 + $0x70] sm:$0x3] }
  0x27   :  { %15434 = vmatmul.mubr.f32.vlgmr.msra.gmra.mxu0 %v379_v10  ;;  %15447 = vmatprep.subr.mxu0 %v17736_v28  ;;  %v1509_v46 = vcombine.low %v237_v35, %v239_v38  ;;  %v1508_v49 = vrot.slane %v1501_v45, %v17753_v36  ;;  %v162_v10 = vld [vmem:[%s23402_s3 + $0x64] sm:$0x3]  ;;  %v152_v38 = vld [vmem:[%s23402_s3 + $0x50] sm:$0x3] }
  0x28   :  { %15448 = vmatpush3.msra.mxu0 %v17736_v28  ;;  %15464 = vmatprep.subr.mxu1 %v17693_v11  ;;  %v232_v28 = vadd.f32 %v168_v22, %v104_v4  ;;  %v166_v4 = vld [vmem:[%s23402_s3 + $0x6c] sm:$0x3]  ;;  %v88_v22 = vld [vmem:[%s23400_s1 + $0x50] sm:$0x3] }
  0x29   :  { %15449 = vmatprep.subr.mxu0 %v17740_v29  ;;  %15455 = vmatprep.mubr.f32.mxu0 %v368_v0  ;;  %v1516_v50 = vrot.slane %v1509_v46, %v17753_v36  ;;  %v230_v21 = vadd.f32 %v166_v4, %v102_v3  ;;  %v216_v45 = vadd.f32 %v152_v38, %v88_v22  ;;  %v80_v4 = vld [vmem:[%s23400_s1 + $0x40] sm:$0x3]  ;;  %v148_v38 = vld [vmem:[%s23402_s3 + $0x48] sm:$0x3] }
  0x2a   :  { %15450 = vmatpush3.msra.mxu0 %v17740_v29  ;;  %15465 = vmatpush3.msra.mxu1 %v17693_v11  ;;  %v106_v11 = vld [vmem:[%s23400_s1 + $0x74] sm:$0x3]  ;;  %v233_v29 = vadd.f32 %v169_v23, %v105_v5  ;;  %v225_v5 = vadd.f32 %v161_v9, %v97_v62  ;;  %v89_v23 = vld [vmem:[%s23400_s1 + $0x52] sm:$0x3] }
  0x2b   :  { %15451 = vmatprep.subr.mxu0 %v17743_v30  ;;  %15466 = vmatprep.mubr.f32.mxu1 %v368_v0  ;;  %v1525_v52 = vcombine.low %v1508_v49, %v1516_v50  ;;  %v99_v0 = vld [vmem:[%s23400_s1 + $0x66] sm:$0x3]  ;;  %v217_v46 = vadd.f32 %v153_v39, %v89_v23 }
  0x2c   :  { %15452 = vmatpush3.msra.mxu0 %v17743_v30  ;;  %15467 = vmatmul.mubr.f32.vlgmr.msra.gmra.mxu1 %v378_v8  ;;  %v234_v30 = vadd.f32 %v170_v24, %v106_v11  ;;  %v226_v11 = vadd.f32 %v162_v10, %v98_v63  ;;  %v231_v24 = vadd.f32 %v167_v16, %v103_v7 }
  0x2d   :  { %15453 = vmatprep.subr.mxu0 %v17750_v33  ;;  %15488 = vmatprep.subr.mxu1 %v23406_v6  ;;  %v17884_v54 = vrot.slane %v1525_v52, %v17876_v48  ;;  %v159_v52 = vld [vmem:[%s23402_s3 + $0x5e] sm:$0x3] }
  0x2e   :  { %15454 = vmatpush3.msra.mxu0 %v17750_v33  ;;  %v235_v33 = vadd.f32 %v171_v25, %v107_v15  ;;  %v1485_v41 = vcombine.low %v232_v28, %v234_v30  ;;  %v227_v15 = vadd.f32 %v163_v12, %v99_v0  ;;  %v91_v28 = vld [vmem:[%s23400_s1 + $0x56] sm:$0x3]  ;;  %v1451_v30 = vcombine.low %v228_v17, %v230_v21  ;;  %v83_v17 = vld [vmem:[%s23400_s1 + $0x46] sm:$0x3]  ;;  %v85_v21 = vld [vmem:[%s23400_s1 + $0x4a] sm:$0x3] }
  0x2f   :  { %15456 = vmatmul.mubr.f32.vlgmr.msra.gmra.mxu0 %v378_v8  ;;  %15469 = vmatprep.subr.mxu0 %v23406_v6  ;;  %23581 = vst [vmem:[#allocation7_spill] sm:$0xff] %v17884_v54  ;;  %v160_v8 = vld [vmem:[%s23402_s3 + $0x60] sm:$0x3]  ;;  %v1459_v37 = vcombine.low %v229_v20, %v231_v24  ;;  %v84_v20 = vld [vmem:[%s23400_s1 + $0x48] sm:$0x3] }
  0x30   :  { %v1493_v42 = vcombine.low %v233_v29, %v235_v33  ;;  %v1492_v44 = vrot.slane %v1485_v41, %v17753_v36  ;;  %v224_v13 = vadd.f32 %v160_v8, %v96_v61  ;;  %v1443_v26 = vcombine.low %v225_v5, %v227_v15  ;;  %v92_v29 = vld [vmem:[%s23400_s1 + $0x58] sm:$0x3]  ;;  %v95_v33 = vld [vmem:[%s23400_s1 + $0x5e] sm:$0x3]  ;;  %v81_v5 = vld [vmem:[%s23400_s1 + $0x42] sm:$0x3] }
  0x31   :  { %v1458_v41 = vrot.slane %v1451_v30, %v17753_v36  ;;  %v1466_v49 = vrot.slane %v1459_v37, %v17753_v36  ;;  %v223_v62 = vadd.f32 %v159_v52, %v95_v33  ;;  %v145_v30 = vld [vmem:[%s23402_s3 + $0x42] sm:$0x3]  ;;  %v147_v37 = vld [vmem:[%s23402_s3 + $0x46] sm:$0x3] }
  0x32   :  { %v1500_v47 = vrot.slane %v1493_v42, %v17753_v36  ;;  %v1435_v25 = vcombine.low %v224_v13, %v226_v11  ;;  %v1450_v35 = vrot.slane %v1443_v26, %v17753_v36  ;;  %v155_v42 = vld [vmem:[%s23402_s3 + $0x56] sm:$0x3]  ;;  %v82_v11 = vld [vmem:[%s23400_s1 + $0x44] sm:$0x3]  ;;  %v87_v26 = vld [vmem:[%s23400_s1 + $0x4e] sm:$0x3]  ;;  %v209_v39 = vadd.f32 %v145_v30, %v81_v5 }
  0x33   :  { %v1475_v1 = vcombine.low %v1458_v41, %v1466_v49 }
  0x34   :  { %v1517_v51 = vcombine.low %v1492_v44, %v1500_v47  ;;  %v1442_v34 = vrot.slane %v1435_v25, %v17753_v36  ;;  %v157_v44 = vld [vmem:[%s23402_s3 + $0x5a] sm:$0x3]  ;;  %v218_v47 = vadd.f32 %v154_v40, %v90_v27  ;;  %v86_v25 = vld [vmem:[%s23400_s1 + $0x4c] sm:$0x3]  ;;  %v144_v27 = vld [vmem:[%s23402_s3 + $0x40] sm:$0x3] }
  0x35   :  { %v18010_v12 = vrot.slane %v1475_v1, %v17876_v48  ;;  %v73_v1 = vld [vmem:[%s23400_s1 + $0x32] sm:$0x3] }
  0x36   :  { %v17881_v53 = vrot.slane %v1517_v51, %v17876_v48  ;;  %v1467_v50 = vcombine.low %v1442_v34, %v1450_v35  ;;  %v158_v51 = vld [vmem:[%s23402_s3 + $0x5c] sm:$0x3]  ;;  %v1385_v63 = vcombine.low %v216_v45, %v218_v47  ;;  %v151_v45 = vld [vmem:[%s23402_s3 + $0x4e] sm:$0x3]  ;;  %v212_v47 = vadd.f32 %v148_v38, %v84_v20  ;;  %v136_v20 = vld [vmem:[%s23402_s3 + $0x30] sm:$0x3] }
  0x37   :  { %v222_v61 = vadd.f32 %v158_v51, %v94_v32  ;;  %23583 = vst [vmem:[#allocation9_spill] sm:$0xff] %v18010_v12  ;;  %v208_v32 = vadd.f32 %v144_v27, %v80_v4  ;;  %v139_v27 = vld [vmem:[%s23402_s3 + $0x36] sm:$0x3] }
  0x38   :  { %23580 = vst [vmem:[#allocation6_spill] sm:$0xff] %v17881_v53  ;;  %v1533_v55 = vcombine.low %v17881_v53, %v17884_v54  ;;  %v18006_v0 = vrot.slane %v1467_v50, %v17876_v48  ;;  %v1392_v8 = vrot.slane %v1385_v63, %v17753_v36  ;;  %v72_v63 = vld [vmem:[%s23400_s1 + $0x30] sm:$0x3] }
  0x39   :  { %v200_v38 = vadd.f32 %v136_v20, %v72_v63 }
  0x3a   :  { %v1560_v56 = vsel %vm294_vm0, %v1533_v55, 0  ;;  %v219_v55 = vadd.f32 %v155_v42, %v91_v28  ;;  %23582 = vst [vmem:[#allocation8_spill] sm:$0xff] %v18006_v0  ;;  %v1483_v15 = vcombine.low %v18006_v0, %v18010_v12 }
  0x3b   :  { %v17889_v57 = vand.u32 4294901760, %v1560_v56 }
  0x3c   :  { %v1393_v2 = vcombine.low %v217_v46, %v219_v55  ;;  %v1557_v28 = vsel %vm294_vm0, %v1483_v15, 0  ;;  %v211_v46 = vadd.f32 %v147_v37, %v83_v17  ;;  %v79_v17 = vld [vmem:[%s23400_s1 + $0x3e] sm:$0x3] }
  0x3d   :  { %v17892_v14 = vsub.f32 %v1560_v56, %v17889_v57  ;;  %15470 = vmatpush3.xpose.msra.mxu0 %v17889_v57  ;;  %v220_v56 = vadd.f32 %v156_v43, %v92_v29  ;;  %v18054_v34 = vand.u32 4294901760, %v1557_v28  ;;  %v149_v43 = vld [vmem:[%s23402_s3 + $0x4a] sm:$0x3]  ;;  %v143_v37 = vld [vmem:[%s23402_s3 + $0x3e] sm:$0x3] }
  0x3e   :  { %15471 = vmatprep.subr.mxu0 %v23406_v6  ;;  %v1400_v13 = vrot.slane %v1393_v2, %v17753_v36  ;;  %v213_v52 = vadd.f32 %v149_v43, %v85_v21  ;;  %v74_v2 = vld [vmem:[%s23400_s1 + $0x34] sm:$0x3]  ;;  %v137_v21 = vld [vmem:[%s23402_s3 + $0x32] sm:$0x3] }
  0x3f   :  { %v17897_v58 = vand.u32 4294901760, %v17892_v14  ;;  %v1401_v9 = vcombine.low %v220_v56, %v222_v61  ;;  %v18075_v50 = vsub.f32 %v1557_v28, %v18054_v34  ;;  %v140_v28 = vld [vmem:[%s23402_s3 + $0x38] sm:$0x3] }
  0x40   :  { %v1417_v16 = vcombine.low %v1392_v8, %v1400_v13  ;;  %v75_v13 = vld [vmem:[%s23400_s1 + $0x36] sm:$0x3] }
  0x41   :  { %v1665_v59 = vsub.f32 %v17892_v14, %v17897_v58  ;;  %v1408_v18 = vrot.slane %v1401_v9, %v17753_v36  ;;  %15472 = vmatpush3.xpose.msra.mxu0 %v18054_v34  ;;  %v18091_v8 = vand.u32 4294901760, %v18075_v50 }
  0x42   :  { %v18046_v29 = vrot.slane %v1417_v16, %v17876_v48  ;;  %15473 = vmatprep.subr.mxu0 %v23406_v6  ;;  %v78_v16 = vld [vmem:[%s23400_s1 + $0x3c] sm:$0x3] }
  0x43   :  { %v17901_v60 = vand.u32 4294901760, %v1665_v59  ;;  %v221_v59 = vadd.f32 %v157_v44, %v93_v31  ;;  %v146_v31 = vld [vmem:[%s23402_s3 + $0x44] sm:$0x3]  ;;  %v150_v44 = vld [vmem:[%s23402_s3 + $0x4c] sm:$0x3] }
  0x44   :  { %23584 = vst [vmem:[#allocation10_spill] sm:$0xff] %v18046_v29  ;;  %v210_v40 = vadd.f32 %v146_v31, %v82_v11  ;;  %v214_v55 = vadd.f32 %v150_v44, %v86_v25 }
  0x45   :  { %15489 = vmatpush3.xpose.msra.mxu1 %v17901_v60  ;;  %v1409_v10 = vcombine.low %v221_v59, %v223_v62  ;;  %v215_v59 = vadd.f32 %v151_v45, %v87_v26  ;;  %v1343_v62 = vcombine.low %v209_v39, %v211_v46  ;;  %v138_v26 = vld [vmem:[%s23402_s3 + $0x34] sm:$0x3]  ;;  %v201_v39 = vadd.f32 %v137_v21, %v73_v1 }
  0x46   :  { %15490 = vmatprep.subr.mxu1 %v23406_v6  ;;  %v1335_v61 = vcombine.low %v208_v32, %v210_v40  ;;  %v141_v32 = vld [vmem:[%s23402_s3 + $0x3a] sm:$0x3]  ;;  %v202_v43 = vadd.f32 %v138_v26, %v74_v2  ;;  %v203_v45 = vadd.f32 %v139_v27, %v75_v13  ;;  %v131_v26 = vld [vmem:[%s23402_s3 + $0x26] sm:$0x3] }
  0x47   :  { %v1416_v19 = vrot.slane %v1409_v10, %v17753_v36  ;;  %v1351_v10 = vcombine.low %v212_v47, %v214_v55  ;;  %v1359_v25 = vcombine.low %v213_v52, %v215_v59 }
  0x48   :  { %v1342_v15 = vrot.slane %v1335_v61, %v17753_v36  ;;  %v207_v61 = vadd.f32 %v143_v37, %v79_v17  ;;  %v1285_v2 = vcombine.low %v200_v38, %v202_v43  ;;  %v130_v17 = vld [vmem:[%s23402_s3 + $0x24] sm:$0x3]  ;;  %v132_v37 = vld [vmem:[%s23402_s3 + $0x28] sm:$0x3]  ;;  %v133_v38 = vld [vmem:[%s23402_s3 + $0x2a] sm:$0x3] }
  0x49   :  { %v1425_v24 = vcombine.low %v1408_v18, %v1416_v19  ;;  %v76_v18 = vld [vmem:[%s23400_s1 + $0x38] sm:$0x3]  ;;  %v77_v19 = vld [vmem:[%s23400_s1 + $0x3a] sm:$0x3]  ;;  %v135_v43 = vld [vmem:[%s23402_s3 + $0x2e] sm:$0x3] }
  0x4a   :  { %v204_v46 = vadd.f32 %v140_v28, %v76_v18  ;;  %v205_v47 = vadd.f32 %v141_v32, %v77_v19 }
  0x4b   :  { %v18057_v35 = vrot.slane %v1425_v24, %v17876_v48  ;;  %v1358_v24 = vrot.slane %v1351_v10, %v17753_v36  ;;  %v128_v10 = vld [vmem:[%s23402_s3 + $0x20] sm:$0x3] }
  0x4d   :  { %23585 = vst [vmem:[#allocation11_spill] sm:$0xff] %v18057_v35  ;;  %v1433_v51 = vcombine.low %v18046_v29, %v18057_v35 }
  0x4f   :  { %v1554_v9 = vsel %vm294_vm0, %v1433_v51, 0 }
  0x50   :  { %v18103_v11 = vand.u32 4294901760, %v1554_v9 }
  0x52   :  { %v18132_v31 = vsub.f32 %v1554_v9, %v18103_v11  ;;  %15474 = vmatpush3.xpose.msra.mxu0 %v18103_v11  ;;  %v67_v9 = vld [vmem:[%s23400_s1 + $0x26] sm:$0x3] }
  0x53   :  { %15475 = vmatprep.subr.mxu0 %v23406_v6 }
  0x54   :  { %v18149_v44 = vand.u32 4294901760, %v18132_v31 }
  0x56   :  { %v1679_v1 = vsub.f32 %v18132_v31, %v18149_v44 }
  0xd7   :  { %v15424_v7 = vpop.f32.mrf.mxu1 }
  0xd9   :  { %v475_v23 = vpop.f32.mrf.mxu1 }
  0xdf   :  { %v15413_v3 = vpop.f32.mrf.mxu0 }
  0xe0   :  { %v482_v41 = vadd.f32 %v15424_v7, %v15413_v3 }
  0xe1   :  { %v374_v22 = vpop.f32.mrf.mxu0  ;;  %v15446_v33 = vpop.f32.mrf.mxu1 }
  0xe2   :  { %v476_v42 = vadd.f32 %v475_v23, %v374_v22  ;;  %v1672_v22 = vsub.f32 %v18075_v50, %v18091_v8  ;;  %v1350_v23 = vrot.slane %v1343_v62, %v17753_v36  ;;  %v65_v62 = vld [vmem:[%s23400_s1 + $0x22] sm:$0x3] }
  0xe3   :  { %v645_v7 = vpop.f32.mrf.mxu1 }
  0xe4   :  { %v18144_v40 = vand.u32 4294901760, %v1672_v22 }
  0xe6   :  { %15491 = vmatpush3.xpose.msra.mxu1 %v18144_v40 }
  0xe7   :  { %v15435_v49 = vpop.f32.mrf.mxu0  ;;  %15492 = vmatprep.subr.mxu1 %v23406_v6 }
  0xe8   :  { %v569_v56 = vadd.f32 %v15435_v49, %v482_v41  ;;  %v1366_v41 = vrot.slane %v1359_v25, %v17753_v36  ;;  %v64_v49 = vld [vmem:[%s23400_s1 + $0x20] sm:$0x3]  ;;  %v70_v25 = vld [vmem:[%s23400_s1 + $0x2c] sm:$0x3] }
  0xe9   :  { %v561_v3 = vpop.f32.mrf.mxu0  ;;  %v192_v20 = vadd.f32 %v128_v10, %v64_v49 }
  0xea   :  { %v654_v4 = vadd.f32 %v15446_v33, %v569_v56  ;;  %v562_v5 = vadd.f32 %v561_v3, %v476_v42  ;;  %v142_v33 = vld [vmem:[%s23402_s3 + $0x3c] sm:$0x3]  ;;  %v1367_v42 = vcombine.low %v1342_v15, %v1350_v23  ;;  %v1375_v56 = vcombine.low %v1358_v24, %v1366_v41  ;;  %v69_v15 = vld [vmem:[%s23400_s1 + $0x2a] sm:$0x3] }
  0xeb   :  { %v206_v59 = vadd.f32 %v142_v33, %v78_v16  ;;  %v1293_v3 = vcombine.low %v201_v39, %v203_v45  ;;  %v129_v16 = vld [vmem:[%s23402_s3 + $0x22] sm:$0x3]  ;;  %v18190_v23 = vand.u32 4294901760, %v1679_v1  ;;  %v1292_v24 = vrot.slane %v1285_v2, %v17753_v36  ;;  %v134_v39 = vld [vmem:[%s23402_s3 + $0x2c] sm:$0x3] }
  0xec   :  { %v646_v30 = vadd.f32 %v645_v7, %v562_v5  ;;  %v15468_v52 = vpop.f32.mrf.mxu1  ;;  %v18156_v55 = vrot.slane %v1367_v42, %v17876_v48  ;;  %v66_v7 = vld [vmem:[%s23400_s1 + $0x24] sm:$0x3]  ;;  %v18174_v18 = vrot.slane %v1375_v56, %v17876_v48  ;;  %v68_v5 = vld [vmem:[%s23400_s1 + $0x28] sm:$0x3]  ;;  %v71_v42 = vld [vmem:[%s23400_s1 + $0x2e] sm:$0x3]  ;;  %v193_v45 = vadd.f32 %v129_v16, %v65_v62 }
  0xed   :  { %v1301_v19 = vcombine.low %v204_v46, %v206_v59  ;;  %v1300_v32 = vrot.slane %v1293_v3, %v17753_v36  ;;  %v194_v46 = vadd.f32 %v130_v17, %v66_v7  ;;  %15493 = vmatpush3.xpose.msra.mxu1 %v18190_v23  ;;  %v56_v56 = vld [vmem:[%s23400_s1 + $0x10] sm:$0x3]  ;;  %v57_v59 = vld [vmem:[%s23400_s1 + $0x12] sm:$0x3]  ;;  %v196_v62 = vadd.f32 %v132_v37, %v68_v5  ;;  %v58_v2 = vld [vmem:[%s23400_s1 + $0x14] sm:$0x3] }
  0xee   :  { %23586 = vst [vmem:[#allocation12_spill] sm:$0xff] %v18156_v55  ;;  %23587 = vst [vmem:[#allocation13_spill] sm:$0xff] %v18174_v18  ;;  %v817_v27 = vpop.f32.mrf.mxu1  ;;  %v1383_v28 = vcombine.low %v18156_v55, %v18174_v18  ;;  %15494 = vmatprep.subr.mxu1 %v23406_v6  ;;  %v198_v1 = vadd.f32 %v134_v39, %v70_v25  ;;  %v59_v3 = vld [vmem:[%s23400_s1 + $0x16] sm:$0x3]  ;;  %v199_v10 = vadd.f32 %v135_v43, %v71_v42  ;;  %v121_v5 = vld [vmem:[%s23402_s3 + $0x12] sm:$0x3] }
  0xef   :  { %v15457_v51 = vpop.f32.mrf.mxu0  ;;  %v1317_v49 = vcombine.low %v1292_v24, %v1300_v32  ;;  %v122_v24 = vld [vmem:[%s23402_s3 + $0x14] sm:$0x3]  ;;  %v123_v25 = vld [vmem:[%s23402_s3 + $0x16] sm:$0x3]  ;;  %v63_v32 = vld [vmem:[%s23400_s1 + $0x1e] sm:$0x3] }
  0xf0   :  { %v743_v63 = vadd.f32 %v15457_v51, %v654_v4  ;;  %v1309_v4 = vcombine.low %v205_v47, %v207_v61  ;;  %v1551_v47 = vsel %vm294_vm0, %v1383_v28, 0  ;;  %v1251_v17 = vcombine.low %v196_v62, %v198_v1  ;;  %v126_v43 = vld [vmem:[%s23402_s3 + $0x1c] sm:$0x3]  ;;  %v48_v1 = vld [vmem:[%s23400_s1] sm:$0x3] }
  0xf1   :  { %v736_v13 = vpop.f32.mrf.mxu0  ;;  %v18234_v61 = vand.u32 4294901760, %v1551_v47  ;;  %v18243_v7 = vrot.slane %v1317_v49, %v17876_v48 }
  0xf2   :  { %v18188_v21 = vadd.f32 %v15468_v52, %v743_v63  ;;  %v737_v22 = vadd.f32 %v736_v13, %v646_v30  ;;  %v1308_v30 = vrot.slane %v1301_v19, %v17753_v36  ;;  %v1316_v33 = vrot.slane %v1309_v4, %v17753_v36  ;;  %v60_v19 = vld [vmem:[%s23400_s1 + $0x18] sm:$0x3]  ;;  %v120_v4 = vld [vmem:[%s23402_s3 + $0x10] sm:$0x3] }
  0xf3   :  { %v195_v52 = vadd.f32 %v131_v26, %v67_v9  ;;  %v197_v63 = vadd.f32 %v133_v38, %v69_v15  ;;  %23588 = vst [vmem:[#allocation14_spill] sm:$0xff] %v18243_v7  ;;  %v1235_v13 = vcombine.low %v192_v20, %v194_v46  ;;  %v18262_v15 = vsub.f32 %v1551_v47, %v18234_v61  ;;  %v61_v20 = vld [vmem:[%s23400_s1 + $0x1a] sm:$0x3] }
  0xf4   :  { %v18213_v41 = vadd.f32 %v817_v27, %v737_v22  ;;  %837 = vrot.lane.b32.xlu1 %v18188_v21, %s17631_s25  ;;  %831 = vrot.lane.b32.xlu0 %v18188_v21, %s17632_s26  ;;  %v1325_v51 = vcombine.low %v1308_v30, %v1316_v33  ;;  %v62_v22 = vld [vmem:[%s23400_s1 + $0x1c] sm:$0x3]  ;;  %v124_v30 = vld [vmem:[%s23402_s3 + $0x18] sm:$0x3]  ;;  %v184_v37 = vadd.f32 %v120_v4, %v56_v56 }
  0xf5   :  { %v1243_v16 = vcombine.low %v193_v45, %v195_v52  ;;  %15476 = vmatpush3.xpose.msra.mxu0 %v18234_v61  ;;  %v1242_v27 = vrot.slane %v1235_v13, %v17753_v36  ;;  %v1259_v28 = vcombine.low %v197_v63, %v199_v10  ;;  %v125_v33 = vld [vmem:[%s23402_s3 + $0x1a] sm:$0x3]  ;;  %v18290_v38 = vand.u32 4294901760, %v18262_v15  ;;  %v127_v45 = vld [vmem:[%s23402_s3 + $0x1e] sm:$0x3] }
  0xf6   :  { %v18246_v9 = vrot.slane %v1325_v51, %v17876_v48  ;;  %v1258_v42 = vrot.slane %v1251_v17, %v17753_v36  ;;  %15477 = vmatprep.subr.mxu0 %v23406_v6  ;;  %v185_v46 = vadd.f32 %v121_v5, %v57_v59  ;;  %v186_v51 = vadd.f32 %v122_v24, %v58_v2  ;;  %v49_v2 = vld [vmem:[%s23400_s1 + $0x2] sm:$0x3]  ;;  %v50_v5 = vld [vmem:[%s23400_s1 + $0x4] sm:$0x3] }
  0xf7   :  { %v1250_v39 = vrot.slane %v1243_v16, %v17753_v36  ;;  %v1266_v49 = vrot.slane %v1259_v28, %v17753_v36  ;;  %v187_v52 = vadd.f32 %v123_v25, %v59_v3  ;;  %v1686_v56 = vsub.f32 %v18262_v15, %v18290_v38  ;;  %v52_v16 = vld [vmem:[%s23400_s1 + $0x8] sm:$0x3]  ;;  %v53_v25 = vld [vmem:[%s23400_s1 + $0xa] sm:$0x3] }
  0xf8   :  { %23589 = vst [vmem:[#allocation15_spill] sm:$0xff] %v18246_v9  ;;  %835 = vrot.lane.b32.xlu1 %v18213_v41, %s17631_s25  ;;  %829 = vrot.lane.b32.xlu0 %v18213_v41, %s17632_s26  ;;  %v1333_v26 = vcombine.low %v18243_v7, %v18246_v9  ;;  %v188_v59 = vadd.f32 %v124_v30, %v60_v19  ;;  %v51_v19 = vld [vmem:[%s23400_s1 + $0x6] sm:$0x3] }
  0xf9   :  { %v1267_v63 = vcombine.low %v1242_v27, %v1250_v39  ;;  %v1275_v3 = vcombine.low %v1258_v42, %v1266_v49  ;;  %v189_v10 = vadd.f32 %v125_v33, %v61_v20  ;;  %v190_v13 = vadd.f32 %v126_v43, %v62_v22  ;;  %v113_v27 = vld [vmem:[%s23402_s3 + $0x2] sm:$0x3]  ;;  %v115_v39 = vld [vmem:[%s23402_s3 + $0x6] sm:$0x3]  ;;  %v116_v42 = vld [vmem:[%s23402_s3 + $0x8] sm:$0x3] }
  0xfa   :  { %v1548_v47 = vsel %vm294_vm0, %v1333_v26, 0  ;;  %v191_v4 = vadd.f32 %v127_v45, %v63_v32  ;;  %v18326_v17 = vand.u32 4294901760, %v1686_v56  ;;  %v1185_v22 = vcombine.low %v184_v37, %v186_v51  ;;  %v112_v26 = vld [vmem:[%s23402_s3] sm:$0x3]  ;;  %v114_v37 = vld [vmem:[%s23402_s3 + $0x4] sm:$0x3] }
  0xfb   :  { %v18309_v62 = vand.u32 4294901760, %v1548_v47  ;;  %v18332_v20 = vrot.slane %v1267_v63, %v17876_v48  ;;  %v18345_v28 = vrot.slane %v1275_v3, %v17876_v48  ;;  %v1193_v32 = vcombine.low %v185_v46, %v187_v52  ;;  %v54_v46 = vld [vmem:[%s23400_s1 + $0xc] sm:$0x3]  ;;  %v55_v3 = vld [vmem:[%s23400_s1 + $0xe] sm:$0x3] }
  0xfc   :  { %843 = vrot.lane.b32.xlu1 %v18188_v21, %s17633_s15  ;;  %841 = vrot.lane.b32.xlu0 %v18213_v41, %s17633_s15  ;;  %v1201_v30 = vcombine.low %v188_v59, %v190_v13  ;;  %v1209_v33 = vcombine.low %v189_v10, %v191_v4  ;;  %v1192_v45 = vrot.slane %v1185_v22, %v17753_v36 }
  0xfd   :  { %v18329_v24 = vsub.f32 %v1548_v47, %v18309_v62  ;;  %23590 = vst [vmem:[#allocation16_spill] sm:$0xff] %v18332_v20  ;;  %15478 = vmatpush3.xpose.msra.mxu0 %v18309_v62  ;;  %23591 = vst [vmem:[#allocation17_spill] sm:$0xff] %v18345_v28  ;;  %15495 = vmatpush3.xpose.msra.mxu1 %v18326_v17  ;;  %v117_v47 = vld [vmem:[%s23402_s3 + $0xa] sm:$0x3]  ;;  %v176_v49 = vadd.f32 %v112_v26, %v48_v1  ;;  %v118_v1 = vld [vmem:[%s23402_s3 + $0xc] sm:$0x3] }
  0xfe   :  { %15479 = vmatprep.subr.mxu0 %v23406_v6  ;;  %v177_v51 = vadd.f32 %v113_v27, %v49_v2  ;;  %15496 = vmatprep.subr.mxu1 %v23406_v6  ;;  %v1283_v52 = vcombine.low %v18332_v20, %v18345_v28  ;;  %v1200_v56 = vrot.slane %v1193_v32, %v17753_v36  ;;  %v119_v2 = vld [vmem:[%s23402_s3 + $0xe] sm:$0x3] }
  0xff   :  { %v18359_v43 = vand.u32 4294901760, %v18329_v24  ;;  %v1208_v63 = vrot.slane %v1201_v30, %v17753_v36  ;;  %v1216_v59 = vrot.slane %v1209_v33, %v17753_v36  ;;  %v178_v13 = vadd.f32 %v114_v37, %v50_v5 }
 0x100   :  { %v179_v4 = vadd.f32 %v115_v39, %v51_v19  ;;  %v180_v22 = vadd.f32 %v116_v42, %v52_v16  ;;  %v1545_v26 = vsel %vm294_vm0, %v1283_v52, 0  ;;  %v1217_v27 = vcombine.low %v1192_v45, %v1200_v56 }
 0x101   :  { %v1693_v10 = vsub.f32 %v18329_v24, %v18359_v43  ;;  %v1225_v32 = vcombine.low %v1208_v63, %v1216_v59  ;;  %v181_v30 = vadd.f32 %v117_v47, %v53_v25  ;;  %v18388_v6 = vand.u32 4294901760, %v1545_v26 }
 0x102   :  { %v182_v20 = vadd.f32 %v118_v1, %v54_v46  ;;  %v183_v28 = vadd.f32 %v119_v2, %v55_v3  ;;  %v18391_v7 = vrot.slane %v1217_v27, %v17876_v48  ;;  %v1135_v5 = vcombine.low %v176_v49, %v178_v13 }
 0x103   :  { %v18386_v33 = vand.u32 4294901760, %v1693_v10  ;;  %v18394_v9 = vrot.slane %v1225_v32, %v17876_v48  ;;  %v1143_v19 = vcombine.low %v177_v51, %v179_v4  ;;  %v18398_v16 = vsub.f32 %v1545_v26, %v18388_v6  ;;  %15480 = vmatpush3.xpose.msra.mxu0 %v18388_v6 }
 0x104   :  { %23592 = vst [vmem:[#allocation18_spill] sm:$0xff] %v18391_v7  ;;  %v1151_v25 = vcombine.low %v180_v22, %v182_v20  ;;  %v1159_v37 = vcombine.low %v181_v30, %v183_v28  ;;  %v23594_v39 = vmov 0.0   ;;  %v1142_v45 = vrot.slane %v1135_v5, %v17753_v36 }
 0x105   :  { %23593 = vst [vmem:[#allocation19_spill] sm:$0xff] %v18394_v9  ;;  %15497 = vmatpush3.xpose.msra.mxu1 %v18386_v33  ;;  %v1233_v42 = vcombine.low %v18391_v7, %v18394_v9  ;;  %v1150_v46 = vrot.slane %v1143_v19, %v17753_v36  ;;  %15481 = vmatprep.subr.mxu0 %v23594_v39  ;;  %v18408_v47 = vand.u32 4294901760, %v18398_v16 }
 0x106   :  { %15498 = vmatprep.subr.mxu1 %v23594_v39  ;;  %v1158_v49 = vrot.slane %v1151_v25, %v17753_v36  ;;  %v1166_v51 = vrot.slane %v1159_v37, %v17753_v36  ;;  %15504 = vmatprep.mubr.msk.f32.mxu1 %vm17634_vm1, %v23594_v39 }
 0x107   :  { %15485 = vmatprep.mubr.msk.f32.mxu0 %vm17634_vm1, %v23594_v39  ;;  %v1542_v20 = vsel %vm294_vm0, %v1233_v42, 0  ;;  %v1167_v28 = vcombine.low %v1142_v45, %v1150_v46  ;;  %v1700_v52 = vsub.f32 %v18398_v16, %v18408_v47 }
 0x108   :  { %v18419_v56 = vand.u32 4294901760, %v1542_v20  ;;  %v1175_v63 = vcombine.low %v1158_v49, %v1166_v51 }
 0x109   :  { %v18422_v59 = vrot.slane %v1167_v28, %v17876_v48  ;;  %v18424_v3 = vand.u32 4294901760, %v1700_v52 }
 0x10a   :  { %v18427_v1 = vsub.f32 %v1542_v20, %v18419_v56  ;;  %v18430_v2 = vrot.slane %v1175_v63, %v17876_v48  ;;  %15482 = vmatpush3.xpose.msra.mxu0 %v18419_v56 }
 0x10b   :  { %23595 = vst [vmem:[#allocation20_spill] sm:$0xff] %v18422_v59  ;;  %15483 = vmatprep.subr.mxu0 %v23594_v39  ;;  %15499 = vmatpush3.xpose.msra.mxu1 %v18424_v3 }
 0x10c   :  { %23596 = vst [vmem:[#allocation21_spill] sm:$0xff] %v18430_v2  ;;  %v18436_v10 = vand.u32 4294901760, %v18427_v1  ;;  %v1183_v13 = vcombine.low %v18422_v59, %v18430_v2  ;;  %15500 = vmatprep.subr.mxu1 %v23594_v39 }
 0x10e   :  { %v1707_v4 = vsub.f32 %v18427_v1, %v18436_v10  ;;  %v1539_v22 = vsel %vm294_vm0, %v1183_v13, 0 }
 0x10f   :  { %v18444_v26 = vand.u32 4294901760, %v1539_v22 }
 0x110   :  { %v18446_v27 = vand.u32 4294901760, %v1707_v4 }
 0x111   :  { %v18449_v32 = vsub.f32 %v1539_v22, %v18444_v26  ;;  %15484 = vmatpush3.xpose.msra.mxu0 %v18444_v26 }
 0x112   :  { %23597 = vst [vmem:[#allocation22_spill] sm:$0xff] %v18446_v27  ;;  %15501 = vmatpush3.xpose.msra.mxu1 %v18446_v27  ;;  %15507 = vmatprep.subr.mxu0 %v23594_v39 }
 0x113   :  { %15502 = vmatprep.subr.mxu1 %v23594_v39  ;;  %v18456_v30 = vand.u32 4294901760, %v18449_v32 }
 0x115   :  { %v1714_v5 = vsub.f32 %v18449_v32, %v18456_v30 }
 0x117   :  { %v18460_v19 = vand.u32 4294901760, %v1714_v5 }
 0x119   :  { %23598 = vst [vmem:[#allocation23_spill] sm:$0xff] %v18460_v19  ;;  %15503 = vmatpush3.xpose.msra.mxu1 %v18460_v19 }
 0x11a   :  { %15526 = vmatprep.subr.mxu1 %v23594_v39 }
 0x166   :  { %v838_v25 = vpop.permute.xlu1 %837  ;;  %v832_v37 = vpop.permute.xlu0 %831 }
 0x167   :  { %v915_v46 = vcombine.low %v18188_v21, %v838_v25  ;;  %v916_v49 = vcombine.high %v18188_v21, %v838_v25 }
 0x169   :  { %v923_v5 = vrot.slane %v915_v46, %v17753_v36  ;;  %v930_v59 = vrot.slane %v916_v49, %v17753_v36 }
 0x16a   :  { %v836_v42 = vpop.permute.xlu1 %835  ;;  %v830_v45 = vpop.permute.xlu0 %829 }
 0x16b   :  { %v847_v51 = vcombine.low %v18213_v41, %v836_v42  ;;  %v848_v20 = vcombine.high %v18213_v41, %v836_v42 }
 0x16d   :  { %v855_v41 = vrot.slane %v847_v51, %v17753_v36  ;;  %v862_v42 = vrot.slane %v848_v20, %v17753_v36 }
 0x16e   :  { %v844_v28 = vpop.permute.xlu1 %843  ;;  %v842_v52 = vpop.permute.xlu0 %841 }
 0x16f   :  { %v931_v63 = vcombine.low %v832_v37, %v844_v28  ;;  %v932_v13 = vcombine.high %v832_v37, %v844_v28  ;;  %v863_v4 = vcombine.low %v830_v45, %v842_v52  ;;  %v864_v22 = vcombine.high %v830_v45, %v842_v52 }
 0x171   :  { %v939_v2 = vrot.slane %v931_v63, %v17753_v36  ;;  %v946_v7 = vrot.slane %v932_v13, %v17753_v36  ;;  %v871_v21 = vrot.slane %v863_v4, %v17753_v36  ;;  %v878_v25 = vrot.slane %v864_v22, %v17753_v36  ;;  %v248_v63 = vld [vmem:[%s23404_s5] sm:$0xf] }
 0x173   :  { %v947_v9 = vcombine.low %v923_v5, %v939_v2  ;;  %v948_v37 = vcombine.high %v923_v5, %v939_v2  ;;  %v963_v28 = vcombine.low %v930_v59, %v946_v7  ;;  %v964_v45 = vcombine.high %v930_v59, %v946_v7 }
 0x174   :  { %v879_v52 = vcombine.low %v855_v41, %v871_v21  ;;  %v880_v46 = vcombine.high %v855_v41, %v871_v21  ;;  %v895_v55 = vcombine.low %v862_v42, %v878_v25  ;;  %v896_v49 = vcombine.high %v862_v42, %v878_v25 }
 0x175   :  { %v955_v13 = vrot.slane %v947_v9, %v17876_v48  ;;  %v962_v4 = vrot.slane %v948_v37, %v17876_v48  ;;  %v971_v51 = vrot.slane %v963_v28, %v17876_v48  ;;  %v978_v20 = vrot.slane %v964_v45, %v17876_v48 }
 0x176   :  { %v887_v2 = vrot.slane %v879_v52, %v17876_v48  ;;  %v894_v7 = vrot.slane %v880_v46, %v17876_v48  ;;  %v903_v59 = vrot.slane %v895_v55, %v17876_v48  ;;  %v910_v22 = vrot.slane %v896_v49, %v17876_v48 }
 0x177   :  { %v979_v5 = vcombine.high %v955_v13, %v23594_v39  ;;  %v980_v21 = vcombine.high %v962_v4, %v23594_v39  ;;  %v981_v9 = vcombine.high %v971_v51, %v23594_v39  ;;  %v982_v25 = vcombine.high %v978_v20, %v23594_v39 }
 0x178   :  { %v991_v41 = vadd.f32 %v955_v13, %v248_v63  ;;  %v993_v42 = vadd.f32 %v962_v4, %v248_v63  ;;  %v995_v37 = vadd.f32 %v971_v51, %v248_v63  ;;  %v997_v28 = vadd.f32 %v978_v20, %v248_v63 }
 0x179   :  { %v992_v45 = vadd.f32 %v979_v5, %v248_v63  ;;  %v994_v52 = vadd.f32 %v980_v21, %v248_v63  ;;  %v996_v18 = vadd.f32 %v981_v9, %v248_v63  ;;  %v998_v46 = vadd.f32 %v982_v25, %v248_v63 }
 0x17a   :  { %v1015_v29 = vcombine.low %v991_v41, %v995_v37  ;;  %v1023_v55 = vcombine.low %v993_v42, %v997_v28  ;;  %v911_v49 = vcombine.high %v887_v2, %v23594_v39  ;;  %v912_v35 = vcombine.high %v894_v7, %v23594_v39 }
 0x17b   :  { %v1083_v0 = vcombine.low %v992_v45, %v996_v18  ;;  %v1091_v12 = vcombine.low %v994_v52, %v998_v46  ;;  %v913_v53 = vcombine.high %v903_v59, %v23594_v39  ;;  %v914_v54 = vcombine.high %v910_v22, %v23594_v39 }
 0x17c   :  { %v1022_v13 = vrot.slane %v1015_v29, %v17753_v36  ;;  %v1030_v4 = vrot.slane %v1023_v55, %v17753_v36  ;;  %v983_v51 = vadd.f32 %v887_v2, %v248_v63  ;;  %v984_v20 = vadd.f32 %v911_v49, %v248_v63 }
 0x17d   :  { %v1090_v5 = vrot.slane %v1083_v0, %v17753_v36  ;;  %v1098_v21 = vrot.slane %v1091_v12, %v17753_v36  ;;  %v985_v9 = vadd.f32 %v894_v7, %v248_v63  ;;  %v986_v25 = vadd.f32 %v912_v35, %v248_v63 }
 0x17e   :  { %v987_v41 = vadd.f32 %v903_v59, %v248_v63  ;;  %v988_v42 = vadd.f32 %v913_v53, %v248_v63  ;;  %v989_v18 = vadd.f32 %v910_v22, %v248_v63  ;;  %v990_v37 = vadd.f32 %v914_v54, %v248_v63 }
 0x17f   :  { %v1047_v28 = vcombine.low %v1022_v13, %v1030_v4  ;;  %v1048_v45 = vcombine.high %v1022_v13, %v1030_v4  ;;  %v1115_v52 = vcombine.low %v1090_v5, %v1098_v21  ;;  %v1116_v46 = vcombine.high %v1090_v5, %v1098_v21 }
 0x180   :  { %v999_v19 = vcombine.low %v983_v51, %v987_v41  ;;  %v1007_v29 = vcombine.low %v985_v9, %v989_v18  ;;  %v1067_v27 = vcombine.low %v984_v20, %v988_v42  ;;  %v1075_v55 = vcombine.low %v986_v25, %v990_v37 }
 0x181   :  { %v18504_v53 = vrot.slane %v1047_v28, %v17876_v48  ;;  %v18507_v54 = vrot.slane %v1048_v45, %v17876_v48  ;;  %v18510_v49 = vrot.slane %v1115_v52, %v17876_v48 }
 0x182   :  { %v1006_v2 = vrot.slane %v999_v19, %v17753_v36  ;;  %v1014_v0 = vrot.slane %v1007_v29, %v17753_v36  ;;  %v1074_v12 = vrot.slane %v1067_v27, %v17753_v36  ;;  %v1082_v35 = vrot.slane %v1075_v55, %v17753_v36 }
 0x183   :  { %v18513_v19 = vrot.slane %v1116_v46, %v17876_v48 }
 0x184   :  { %v1031_v63 = vcombine.low %v1006_v2, %v1014_v0  ;;  %v1032_v7 = vcombine.high %v1006_v2, %v1014_v0  ;;  %v1099_v59 = vcombine.low %v1074_v12, %v1082_v35  ;;  %v1100_v22 = vcombine.high %v1074_v12, %v1082_v35  ;;  %v23599_v0 = vld [vmem:[#allocation22_spill] sm:$0xff]  ;;  %v23600_v35 = vld [vmem:[#allocation23_spill] sm:$0xff] }
 0x186   :  { %v18516_v27 = vrot.slane %v1031_v63, %v17876_v48  ;;  %v18519_v13 = vrot.slane %v1032_v7, %v17876_v48  ;;  %v18522_v4 = vrot.slane %v1099_v59, %v17876_v48  ;;  %v18525_v51 = vrot.slane %v1100_v22, %v17876_v48 }
 0x188   :  { %v1063_v20 = vcombine.low %v18516_v27, %v18504_v53  ;;  %v1064_v5 = vcombine.high %v18516_v27, %v18504_v53  ;;  %v1065_v21 = vcombine.low %v18519_v13, %v18507_v54  ;;  %v1066_v9 = vcombine.high %v18519_v13, %v18507_v54 }
 0x189   :  { %v1131_v25 = vcombine.low %v18522_v4, %v18510_v49  ;;  %v1132_v41 = vcombine.high %v18522_v4, %v18510_v49  ;;  %v1133_v42 = vcombine.low %v18525_v51, %v18513_v19  ;;  %v1134_v18 = vcombine.high %v18525_v51, %v18513_v19 }
 0x18a   :  { %v1536_v37 = vsel %vm294_vm0, %v1063_v20, 0  ;;  %v2100_v55 = vsel %vm294_vm0, %v1064_v5, 0  ;;  %v2640_v59 = vsel %vm294_vm0, %v1065_v21, 0 }
 0x18b   :  { %v18544_v28 = vand.u32 4294901760, %v1536_v37  ;;  %v18650_v2 = vand.u32 4294901760, %v2100_v55  ;;  %v18768_v22 = vand.u32 4294901760, %v2640_v59 }
 0x18d   :  { %v1636_v45 = vsub.f32 %v1536_v37, %v18544_v28  ;;  %15505 = vmatmul.mubr.f32.vlgmr.msra.gmra.mxu1 %v18544_v28  ;;  %v2176_v12 = vsub.f32 %v2100_v55, %v18650_v2  ;;  %v2716_v27 = vsub.f32 %v2640_v59, %v18768_v22 }
 0x18e   :  { %15527 = vmatpush3.xpose.msra.mxu1 %v17889_v57  ;;  %15542 = vmatprep.mubr.msk.f32.mxu1 %vm17634_vm1, %v23594_v39 }
 0x18f   :  { %15528 = vmatprep.subr.mxu1 %v23594_v39  ;;  %v1637_v52 = vand.u32 4294901760, %v1636_v45  ;;  %v2177_v53 = vand.u32 4294901760, %v2176_v12  ;;  %v2717_v20 = vand.u32 4294901760, %v2716_v27 }
 0x191   :  { %v1638_v46 = vsub.f32 %v1636_v45, %v1637_v52  ;;  %v2178_v63 = vsub.f32 %v2176_v12, %v2177_v53  ;;  %v2718_v37 = vsub.f32 %v2716_v27, %v2717_v20 }
 0x192   :  { %15529 = vmatpush3.xpose.msra.mxu1 %v18054_v34 }
 0x193   :  { %15530 = vmatprep.subr.mxu1 %v23594_v39  ;;  %v1639_v29 = vand.u32 4294901760, %v1638_v46  ;;  %v2179_v7 = vand.u32 4294901760, %v2178_v63 }
 0x195   :  { %15486 = vmatmul.mubr.f32.vlgmr.msra.gmra.mxu0 %v1639_v29 }
 0x196   :  { %15508 = vmatpush3.xpose.msra.mxu0 %v17892_v14  ;;  %15531 = vmatpush3.xpose.msra.mxu1 %v18103_v11 }
 0x197   :  { %15509 = vmatprep.subr.mxu0 %v23594_v39  ;;  %15532 = vmatprep.subr.mxu1 %v23594_v39 }
 0x198   :  { %15523 = vmatprep.mubr.msk.f32.mxu0 %vm17634_vm1, %v23594_v39 }
 0x19a   :  { %15510 = vmatpush3.xpose.msra.mxu0 %v18075_v50  ;;  %15533 = vmatpush3.xpose.msra.mxu1 %v18234_v61 }
 0x19b   :  { %15511 = vmatprep.subr.mxu0 %v23594_v39  ;;  %15534 = vmatprep.subr.mxu1 %v23594_v39 }
 0x19e   :  { %15512 = vmatpush3.xpose.msra.mxu0 %v18132_v31  ;;  %15535 = vmatpush3.xpose.msra.mxu1 %v18309_v62 }
 0x19f   :  { %15513 = vmatprep.subr.mxu0 %v23594_v39  ;;  %15536 = vmatprep.subr.mxu1 %v23594_v39 }
 0x1a2   :  { %15514 = vmatpush3.xpose.msra.mxu0 %v18262_v15  ;;  %15537 = vmatpush3.xpose.msra.mxu1 %v18388_v6 }
 0x1a3   :  { %15515 = vmatprep.subr.mxu0 %v23594_v39  ;;  %15538 = vmatprep.subr.mxu1 %v23594_v39 }
 0x1a6   :  { %15516 = vmatpush3.xpose.msra.mxu0 %v18329_v24  ;;  %15539 = vmatpush3.xpose.msra.mxu1 %v18419_v56 }
 0x1a7   :  { %15517 = vmatprep.subr.mxu0 %v23594_v39  ;;  %15540 = vmatprep.subr.mxu1 %v23594_v39 }
 0x1aa   :  { %15518 = vmatpush3.xpose.msra.mxu0 %v18398_v16  ;;  %15541 = vmatpush3.xpose.msra.mxu1 %v18444_v26 }
 0x1ab   :  { %15519 = vmatprep.subr.mxu0 %v23594_v39  ;;  %15564 = vmatprep.subr.mxu1 %v23594_v39 }
 0x1ad   :  { %15543 = vmatmul.mubr.f32.vlgmr.msra.gmra.mxu1 %v1637_v52 }
 0x1ae   :  { %15520 = vmatpush3.xpose.msra.mxu0 %v18427_v1  ;;  %15565 = vmatpush3.xpose.msra.mxu1 %v17889_v57 }
 0x1af   :  { %15521 = vmatprep.subr.mxu0 %v23594_v39  ;;  %15566 = vmatprep.subr.mxu1 %v23594_v39 }
 0x1b0   :  { %15580 = vmatprep.mubr.msk.f32.mxu1 %vm17634_vm1, %v23594_v39 }
 0x1b2   :  { %15522 = vmatpush3.xpose.msra.mxu0 %v18449_v32  ;;  %15567 = vmatpush3.xpose.msra.mxu1 %v18054_v34 }
 0x1b3   :  { %15545 = vmatprep.subr.mxu0 %v23594_v39  ;;  %15568 = vmatprep.subr.mxu1 %v23594_v39 }
 0x1b5   :  { %15524 = vmatmul.mubr.f32.vlgmr.msra.gmra.mxu0 %v1636_v45 }
 0x1b6   :  { %15546 = vmatpush3.xpose.msra.mxu0 %v17897_v58  ;;  %15569 = vmatpush3.xpose.msra.mxu1 %v18103_v11 }
 0x1b7   :  { %15547 = vmatprep.subr.mxu0 %v23594_v39  ;;  %15570 = vmatprep.subr.mxu1 %v23594_v39 }
 0x1b8   :  { %15561 = vmatprep.mubr.msk.f32.mxu0 %vm17634_vm1, %v23594_v39 }
 0x1ba   :  { %15548 = vmatpush3.xpose.msra.mxu0 %v18091_v8  ;;  %15571 = vmatpush3.xpose.msra.mxu1 %v18234_v61 }
 0x1bb   :  { %15549 = vmatprep.subr.mxu0 %v23594_v39  ;;  %15572 = vmatprep.subr.mxu1 %v23594_v39 }
 0x1be   :  { %15550 = vmatpush3.xpose.msra.mxu0 %v18149_v44  ;;  %15573 = vmatpush3.xpose.msra.mxu1 %v18309_v62 }
 0x1bf   :  { %15551 = vmatprep.subr.mxu0 %v23594_v39  ;;  %15574 = vmatprep.subr.mxu1 %v23594_v39 }
 0x1c2   :  { %15552 = vmatpush3.xpose.msra.mxu0 %v18290_v38  ;;  %15575 = vmatpush3.xpose.msra.mxu1 %v18388_v6 }
 0x1c3   :  { %15553 = vmatprep.subr.mxu0 %v23594_v39  ;;  %15576 = vmatprep.subr.mxu1 %v23594_v39 }
 0x1c6   :  { %15554 = vmatpush3.xpose.msra.mxu0 %v18359_v43  ;;  %15577 = vmatpush3.xpose.msra.mxu1 %v18419_v56 }
 0x1c7   :  { %15555 = vmatprep.subr.mxu0 %v23594_v39  ;;  %15578 = vmatprep.subr.mxu1 %v23594_v39 }
 0x1ca   :  { %15556 = vmatpush3.xpose.msra.mxu0 %v18408_v47  ;;  %15579 = vmatpush3.xpose.msra.mxu1 %v18444_v26 }
 0x1cb   :  { %15557 = vmatprep.subr.mxu0 %v23594_v39  ;;  %15602 = vmatprep.subr.mxu1 %v23594_v39 }
 0x1cd   :  { %15581 = vmatmul.mubr.f32.vlgmr.msra.gmra.mxu1 %v18544_v28 }
 0x1ce   :  { %15558 = vmatpush3.xpose.msra.mxu0 %v18436_v10  ;;  %15603 = vmatpush3.xpose.msra.mxu1 %v17901_v60 }
 0x1cf   :  { %15559 = vmatprep.subr.mxu0 %v23594_v39  ;;  %15604 = vmatprep.subr.mxu1 %v23594_v39 }
 0x1d0   :  { %15618 = vmatprep.mubr.msk.f32.mxu1 %vm17634_vm1, %v23594_v39 }
 0x1d2   :  { %15560 = vmatpush3.xpose.msra.mxu0 %v18456_v30  ;;  %15605 = vmatpush3.xpose.msra.mxu1 %v18144_v40 }
 0x1d3   :  { %15583 = vmatprep.subr.mxu0 %v23594_v39  ;;  %15606 = vmatprep.subr.mxu1 %v23594_v39 }
 0x1d5   :  { %15562 = vmatmul.mubr.f32.vlgmr.msra.gmra.mxu0 %v18544_v28  ;;  %v2719_v28 = vand.u32 4294901760, %v2718_v37 }
 0x1d6   :  { %15584 = vmatpush3.xpose.msra.mxu0 %v17889_v57  ;;  %15607 = vmatpush3.xpose.msra.mxu1 %v18190_v23 }
 0x1d7   :  { %15585 = vmatprep.subr.mxu0 %v23594_v39  ;;  %15608 = vmatprep.subr.mxu1 %v23594_v39 }
 0x1d8   :  { %15599 = vmatprep.mubr.msk.f32.mxu0 %vm17634_vm1, %v23594_v39 }
 0x1da   :  { %15586 = vmatpush3.xpose.msra.mxu0 %v18054_v34  ;;  %15609 = vmatpush3.xpose.msra.mxu1 %v18326_v17 }
 0x1db   :  { %15587 = vmatprep.subr.mxu0 %v23594_v39  ;;  %15610 = vmatprep.subr.mxu1 %v23594_v39 }
 0x1de   :  { %15588 = vmatpush3.xpose.msra.mxu0 %v18103_v11  ;;  %15611 = vmatpush3.xpose.msra.mxu1 %v18386_v33 }
 0x1df   :  { %15589 = vmatprep.subr.mxu0 %v23594_v39  ;;  %15612 = vmatprep.subr.mxu1 %v23594_v39 }
 0x1e2   :  { %15590 = vmatpush3.xpose.msra.mxu0 %v18234_v61  ;;  %15613 = vmatpush3.xpose.msra.mxu1 %v18424_v3 }
 0x1e3   :  { %15591 = vmatprep.subr.mxu0 %v23594_v39  ;;  %15614 = vmatprep.subr.mxu1 %v23594_v39 }
 0x1e6   :  { %15592 = vmatpush3.xpose.msra.mxu0 %v18309_v62  ;;  %15615 = vmatpush3.xpose.msra.mxu1 %v23599_v0 }
 0x1e7   :  { %15593 = vmatprep.subr.mxu0 %v23594_v39  ;;  %15616 = vmatprep.subr.mxu1 %v23594_v39 }
 0x1ea   :  { %15594 = vmatpush3.xpose.msra.mxu0 %v18388_v6  ;;  %15617 = vmatpush3.xpose.msra.mxu1 %v23600_v35 }
 0x1eb   :  { %15595 = vmatprep.subr.mxu0 %v23594_v39  ;;  %15640 = vmatprep.subr.mxu1 %v23594_v39 }
 0x1ed   :  { %15619 = vmatmul.mubr.f32.vlgmr.msra.gmra.mxu1 %v18650_v2 }
 0x1ee   :  { %15596 = vmatpush3.xpose.msra.mxu0 %v18419_v56  ;;  %15641 = vmatpush3.xpose.msra.mxu1 %v17889_v57 }
 0x1ef   :  { %15597 = vmatprep.subr.mxu0 %v23594_v39  ;;  %15642 = vmatprep.subr.mxu1 %v23594_v39 }
 0x1f0   :  { %15656 = vmatprep.mubr.msk.f32.mxu1 %vm17634_vm1, %v23594_v39 }
 0x1f2   :  { %15598 = vmatpush3.xpose.msra.mxu0 %v18444_v26  ;;  %15643 = vmatpush3.xpose.msra.mxu1 %v18054_v34 }
 0x1f3   :  { %15621 = vmatprep.subr.mxu0 %v23594_v39  ;;  %15644 = vmatprep.subr.mxu1 %v23594_v39 }
 0x1f5   :  { %15600 = vmatmul.mubr.f32.vlgmr.msra.gmra.mxu0 %v2179_v7 }
 0x1f6   :  { %15622 = vmatpush3.xpose.msra.mxu0 %v17892_v14  ;;  %15645 = vmatpush3.xpose.msra.mxu1 %v18103_v11 }
 0x1f7   :  { %15623 = vmatprep.subr.mxu0 %v23594_v39  ;;  %15646 = vmatprep.subr.mxu1 %v23594_v39 }
 0x1f8   :  { %15637 = vmatprep.mubr.msk.f32.mxu0 %vm17634_vm1, %v23594_v39 }
 0x1fa   :  { %15624 = vmatpush3.xpose.msra.mxu0 %v18075_v50  ;;  %15647 = vmatpush3.xpose.msra.mxu1 %v18234_v61 }
 0x1fb   :  { %15625 = vmatprep.subr.mxu0 %v23594_v39  ;;  %15648 = vmatprep.subr.mxu1 %v23594_v39 }
 0x1fe   :  { %15626 = vmatpush3.xpose.msra.mxu0 %v18132_v31  ;;  %15649 = vmatpush3.xpose.msra.mxu1 %v18309_v62 }
 0x1ff   :  { %15627 = vmatprep.subr.mxu0 %v23594_v39  ;;  %15650 = vmatprep.subr.mxu1 %v23594_v39 }
 0x202   :  { %15628 = vmatpush3.xpose.msra.mxu0 %v18262_v15  ;;  %15651 = vmatpush3.xpose.msra.mxu1 %v18388_v6 }
 0x203   :  { %15629 = vmatprep.subr.mxu0 %v23594_v39  ;;  %15652 = vmatprep.subr.mxu1 %v23594_v39 }
 0x206   :  { %15630 = vmatpush3.xpose.msra.mxu0 %v18329_v24  ;;  %15653 = vmatpush3.xpose.msra.mxu1 %v18419_v56 }
 0x207   :  { %15631 = vmatprep.subr.mxu0 %v23594_v39  ;;  %15654 = vmatprep.subr.mxu1 %v23594_v39 }
 0x20a   :  { %15632 = vmatpush3.xpose.msra.mxu0 %v18398_v16  ;;  %15655 = vmatpush3.xpose.msra.mxu1 %v18444_v26 }
 0x20b   :  { %15633 = vmatprep.subr.mxu0 %v23594_v39  ;;  %15678 = vmatprep.subr.mxu1 %v23594_v39 }
 0x20d   :  { %15657 = vmatmul.mubr.f32.vlgmr.msra.gmra.mxu1 %v2177_v53 }
 0x20e   :  { %15634 = vmatpush3.xpose.msra.mxu0 %v18427_v1  ;;  %15679 = vmatpush3.xpose.msra.mxu1 %v17889_v57 }
 0x20f   :  { %15635 = vmatprep.subr.mxu0 %v23594_v39  ;;  %15680 = vmatprep.subr.mxu1 %v23594_v39 }
 0x210   :  { %15694 = vmatprep.mubr.msk.f32.mxu1 %vm17634_vm1, %v23594_v39 }
 0x212   :  { %15636 = vmatpush3.xpose.msra.mxu0 %v18449_v32  ;;  %15681 = vmatpush3.xpose.msra.mxu1 %v18054_v34 }
 0x213   :  { %15659 = vmatprep.subr.mxu0 %v23594_v39  ;;  %15682 = vmatprep.subr.mxu1 %v23594_v39 }
 0x215   :  { %15638 = vmatmul.mubr.f32.vlgmr.msra.gmra.mxu0 %v2176_v12 }
 0x216   :  { %15660 = vmatpush3.xpose.msra.mxu0 %v17897_v58  ;;  %15683 = vmatpush3.xpose.msra.mxu1 %v18103_v11 }
 0x217   :  { %15661 = vmatprep.subr.mxu0 %v23594_v39  ;;  %15684 = vmatprep.subr.mxu1 %v23594_v39 }
 0x218   :  { %15675 = vmatprep.mubr.msk.f32.mxu0 %vm17634_vm1, %v23594_v39 }
 0x21a   :  { %15662 = vmatpush3.xpose.msra.mxu0 %v18091_v8  ;;  %15685 = vmatpush3.xpose.msra.mxu1 %v18234_v61 }
 0x21b   :  { %15663 = vmatprep.subr.mxu0 %v23594_v39  ;;  %15686 = vmatprep.subr.mxu1 %v23594_v39 }
 0x21e   :  { %15664 = vmatpush3.xpose.msra.mxu0 %v18149_v44  ;;  %15687 = vmatpush3.xpose.msra.mxu1 %v18309_v62 }
 0x21f   :  { %15665 = vmatprep.subr.mxu0 %v23594_v39  ;;  %15688 = vmatprep.subr.mxu1 %v23594_v39 }
 0x222   :  { %15666 = vmatpush3.xpose.msra.mxu0 %v18290_v38  ;;  %15689 = vmatpush3.xpose.msra.mxu1 %v18388_v6 }
 0x223   :  { %15667 = vmatprep.subr.mxu0 %v23594_v39  ;;  %15690 = vmatprep.subr.mxu1 %v23594_v39 }
 0x226   :  { %15668 = vmatpush3.xpose.msra.mxu0 %v18359_v43  ;;  %15691 = vmatpush3.xpose.msra.mxu1 %v18419_v56 }
 0x227   :  { %15669 = vmatprep.subr.mxu0 %v23594_v39  ;;  %15692 = vmatprep.subr.mxu1 %v23594_v39 }
 0x22a   :  { %15670 = vmatpush3.xpose.msra.mxu0 %v18408_v47  ;;  %15693 = vmatpush3.xpose.msra.mxu1 %v18444_v26 }
 0x22b   :  { %15671 = vmatprep.subr.mxu0 %v23594_v39  ;;  %15716 = vmatprep.subr.mxu1 %v23594_v39 }
 0x22d   :  { %15695 = vmatmul.mubr.f32.vlgmr.msra.gmra.mxu1 %v18650_v2 }
 0x22e   :  { %15672 = vmatpush3.xpose.msra.mxu0 %v18436_v10  ;;  %15717 = vmatpush3.xpose.msra.mxu1 %v17901_v60 }
 0x22f   :  { %15673 = vmatprep.subr.mxu0 %v23594_v39  ;;  %15718 = vmatprep.subr.mxu1 %v23594_v39 }
 0x230   :  { %15732 = vmatprep.mubr.msk.f32.mxu1 %vm17634_vm1, %v23594_v39 }
 0x232   :  { %15674 = vmatpush3.xpose.msra.mxu0 %v18456_v30  ;;  %15719 = vmatpush3.xpose.msra.mxu1 %v18144_v40 }
 0x233   :  { %15697 = vmatprep.subr.mxu0 %v23594_v39  ;;  %15720 = vmatprep.subr.mxu1 %v23594_v39 }
 0x235   :  { %15676 = vmatmul.mubr.f32.vlgmr.msra.gmra.mxu0 %v18650_v2 }
 0x236   :  { %15698 = vmatpush3.xpose.msra.mxu0 %v17889_v57  ;;  %15721 = vmatpush3.xpose.msra.mxu1 %v18190_v23 }
 0x237   :  { %15699 = vmatprep.subr.mxu0 %v23594_v39  ;;  %15722 = vmatprep.subr.mxu1 %v23594_v39 }
 0x238   :  { %15713 = vmatprep.mubr.msk.f32.mxu0 %vm17634_vm1, %v23594_v39 }
 0x23a   :  { %15700 = vmatpush3.xpose.msra.mxu0 %v18054_v34  ;;  %15723 = vmatpush3.xpose.msra.mxu1 %v18326_v17 }
 0x23b   :  { %15701 = vmatprep.subr.mxu0 %v23594_v39  ;;  %15724 = vmatprep.subr.mxu1 %v23594_v39 }
 0x23e   :  { %15702 = vmatpush3.xpose.msra.mxu0 %v18103_v11  ;;  %15725 = vmatpush3.xpose.msra.mxu1 %v18386_v33 }
 0x23f   :  { %15703 = vmatprep.subr.mxu0 %v23594_v39  ;;  %15726 = vmatprep.subr.mxu1 %v23594_v39 }
 0x242   :  { %15704 = vmatpush3.xpose.msra.mxu0 %v18234_v61  ;;  %15727 = vmatpush3.xpose.msra.mxu1 %v18424_v3 }
 0x243   :  { %15705 = vmatprep.subr.mxu0 %v23594_v39  ;;  %15728 = vmatprep.subr.mxu1 %v23594_v39 }
 0x246   :  { %15706 = vmatpush3.xpose.msra.mxu0 %v18309_v62  ;;  %15729 = vmatpush3.xpose.msra.mxu1 %v23599_v0 }
 0x247   :  { %15707 = vmatprep.subr.mxu0 %v23594_v39  ;;  %15730 = vmatprep.subr.mxu1 %v23594_v39 }
 0x24a   :  { %15708 = vmatpush3.xpose.msra.mxu0 %v18388_v6  ;;  %15731 = vmatpush3.xpose.msra.mxu1 %v23600_v35 }
 0x24b   :  { %15709 = vmatprep.subr.mxu0 %v23594_v39  ;;  %15754 = vmatprep.subr.mxu1 %v23594_v39 }
 0x24d   :  { %15733 = vmatmul.mubr.f32.vlgmr.msra.gmra.mxu1 %v18768_v22  ;;  %v18780_v5 = vpop.f32.mrf.mxu1 }
 0x24e   :  { %15710 = vmatpush3.xpose.msra.mxu0 %v18419_v56  ;;  %15755 = vmatpush3.xpose.msra.mxu1 %v17889_v57 }
 0x24f   :  { %v15506_v21 = vpop.f32.mrf.mxu1  ;;  %15711 = vmatprep.subr.mxu0 %v23594_v39  ;;  %15756 = vmatprep.subr.mxu1 %v23594_v39 }
 0x250   :  { %15770 = vmatprep.mubr.msk.f32.mxu1 %vm17634_vm1, %v23594_v39 }
 0x252   :  { %15712 = vmatpush3.xpose.msra.mxu0 %v18444_v26  ;;  %15757 = vmatpush3.xpose.msra.mxu1 %v18054_v34 }
 0x253   :  { %15735 = vmatprep.subr.mxu0 %v23594_v39  ;;  %15758 = vmatprep.subr.mxu1 %v23594_v39 }
 0x255   :  { %15714 = vmatmul.mubr.f32.vlgmr.msra.gmra.mxu0 %v2719_v28  ;;  %v18792_v45 = vpop.f32.mrf.mxu0  ;;  %v23606_v28 = vld [vmem:[#allocation10_spill] sm:$0xff] }
 0x256   :  { %15736 = vmatpush3.xpose.msra.mxu0 %v17892_v14  ;;  %15759 = vmatpush3.xpose.msra.mxu1 %v18103_v11  ;;  %v1753_v53 = vadd.f32 %v18780_v5, %v18792_v45 }
 0x257   :  { %v15487_v52 = vpop.f32.mrf.mxu0  ;;  %15737 = vmatprep.subr.mxu0 %v23594_v39  ;;  %15760 = vmatprep.subr.mxu1 %v23594_v39 }
 0x258   :  { %15751 = vmatprep.mubr.msk.f32.mxu0 %vm17634_vm1, %v23594_v39 }
 0x25a   :  { %15738 = vmatpush3.xpose.msra.mxu0 %v18075_v50  ;;  %15761 = vmatpush3.xpose.msra.mxu1 %v18234_v61 }
 0x25b   :  { %15739 = vmatprep.subr.mxu0 %v23594_v39  ;;  %15762 = vmatprep.subr.mxu1 %v23594_v39 }
 0x25e   :  { %15740 = vmatpush3.xpose.msra.mxu0 %v18132_v31  ;;  %15763 = vmatpush3.xpose.msra.mxu1 %v18309_v62 }
 0x25f   :  { %15741 = vmatprep.subr.mxu0 %v23594_v39  ;;  %15764 = vmatprep.subr.mxu1 %v23594_v39 }
 0x262   :  { %15742 = vmatpush3.xpose.msra.mxu0 %v18262_v15  ;;  %15765 = vmatpush3.xpose.msra.mxu1 %v18388_v6 }
 0x263   :  { %15743 = vmatprep.subr.mxu0 %v23594_v39  ;;  %15766 = vmatprep.subr.mxu1 %v23594_v39 }
 0x266   :  { %15744 = vmatpush3.xpose.msra.mxu0 %v18329_v24  ;;  %15767 = vmatpush3.xpose.msra.mxu1 %v18419_v56 }
 0x267   :  { %15745 = vmatprep.subr.mxu0 %v23594_v39  ;;  %15768 = vmatprep.subr.mxu1 %v23594_v39 }
 0x26a   :  { %15746 = vmatpush3.xpose.msra.mxu0 %v18398_v16  ;;  %15769 = vmatpush3.xpose.msra.mxu1 %v18444_v26 }
 0x26b   :  { %15747 = vmatprep.subr.mxu0 %v23594_v39  ;;  %15792 = vmatprep.subr.mxu1 %v23594_v39 }
 0x26d   :  { %v1921_v46 = vpop.f32.mrf.mxu1  ;;  %15771 = vmatmul.mubr.f32.vlgmr.msra.gmra.mxu1 %v2717_v20 }
 0x26e   :  { %15748 = vmatpush3.xpose.msra.mxu0 %v18427_v1  ;;  %15793 = vmatpush3.xpose.msra.mxu1 %v17889_v57 }
 0x26f   :  { %v15544_v29 = vpop.f32.mrf.mxu1  ;;  %15749 = vmatprep.subr.mxu0 %v23594_v39  ;;  %15794 = vmatprep.subr.mxu1 %v23594_v39 }
 0x270   :  { %15808 = vmatprep.mubr.msk.f32.mxu1 %vm17634_vm1, %v23594_v39 }
 0x272   :  { %15750 = vmatpush3.xpose.msra.mxu0 %v18449_v32  ;;  %15795 = vmatpush3.xpose.msra.mxu1 %v18054_v34 }
 0x273   :  { %15773 = vmatprep.subr.mxu0 %v23594_v39  ;;  %15796 = vmatprep.subr.mxu1 %v23594_v39 }
 0x275   :  { %v1840_v55 = vpop.f32.mrf.mxu0  ;;  %15752 = vmatmul.mubr.f32.vlgmr.msra.gmra.mxu0 %v2716_v27 }
 0x276   :  { %15774 = vmatpush3.xpose.msra.mxu0 %v17897_v58  ;;  %15797 = vmatpush3.xpose.msra.mxu1 %v18103_v11  ;;  %v1841_v7 = vadd.f32 %v1840_v55, %v1753_v53  ;;  %v23609_v53 = vld [vmem:[#allocation15_spill] sm:$0xff] }
 0x277   :  { %v15525_v2 = vpop.f32.mrf.mxu0  ;;  %15775 = vmatprep.subr.mxu0 %v23594_v39  ;;  %15798 = vmatprep.subr.mxu1 %v23594_v39 }
 0x278   :  { %15789 = vmatprep.mubr.msk.f32.mxu0 %vm17634_vm1, %v23594_v39  ;;  %v1922_v59 = vadd.f32 %v1921_v46, %v1841_v7 }
 0x27a   :  { %15776 = vmatpush3.xpose.msra.mxu0 %v18091_v8  ;;  %15799 = vmatpush3.xpose.msra.mxu1 %v18234_v61 }
 0x27b   :  { %15777 = vmatprep.subr.mxu0 %v23594_v39  ;;  %15800 = vmatprep.subr.mxu1 %v23594_v39 }
 0x27e   :  { %15778 = vmatpush3.xpose.msra.mxu0 %v18149_v44  ;;  %15801 = vmatpush3.xpose.msra.mxu1 %v18309_v62 }
 0x27f   :  { %15779 = vmatprep.subr.mxu0 %v23594_v39  ;;  %15802 = vmatprep.subr.mxu1 %v23594_v39 }
 0x282   :  { %15780 = vmatpush3.xpose.msra.mxu0 %v18290_v38  ;;  %15803 = vmatpush3.xpose.msra.mxu1 %v18388_v6 }
 0x283   :  { %15781 = vmatprep.subr.mxu0 %v23594_v39  ;;  %15804 = vmatprep.subr.mxu1 %v23594_v39 }
 0x286   :  { %15782 = vmatpush3.xpose.msra.mxu0 %v18359_v43  ;;  %15805 = vmatpush3.xpose.msra.mxu1 %v18419_v56 }
 0x287   :  { %15783 = vmatprep.subr.mxu0 %v23594_v39  ;;  %15806 = vmatprep.subr.mxu1 %v23594_v39 }
 0x28a   :  { %15784 = vmatpush3.xpose.msra.mxu0 %v18408_v47  ;;  %15807 = vmatpush3.xpose.msra.mxu1 %v18444_v26 }
 0x28b   :  { %15785 = vmatprep.subr.mxu0 %v23594_v39  ;;  %15830 = vmatprep.subr.mxu1 %v23594_v39 }
 0x28d   :  { %v2095_v12 = vpop.f32.mrf.mxu1  ;;  %15809 = vmatmul.mubr.f32.vlgmr.msra.gmra.mxu1 %v18768_v22 }
 0x28e   :  { %15786 = vmatpush3.xpose.msra.mxu0 %v18436_v10  ;;  %15831 = vmatpush3.xpose.msra.mxu1 %v17901_v60 }
 0x28f   :  { %v15582_v63 = vpop.f32.mrf.mxu1  ;;  %15787 = vmatprep.subr.mxu0 %v23594_v39  ;;  %15832 = vmatprep.subr.mxu1 %v23594_v39 }
 0x290   :  { %15846 = vmatprep.mubr.msk.f32.mxu1 %vm17634_vm1, %v23594_v39  ;;  %v23610_v63 = vld [vmem:[#allocation14_spill] sm:$0xff] }
 0x291   :  { %v1334_v7 = vcombine.high %v23610_v63, %v23609_v53 }
 0x292   :  { %15788 = vmatpush3.xpose.msra.mxu0 %v18456_v30  ;;  %15833 = vmatpush3.xpose.msra.mxu1 %v18144_v40 }
 0x293   :  { %15811 = vmatprep.subr.mxu0 %v23594_v39  ;;  %15834 = vmatprep.subr.mxu1 %v23594_v39 }
 0x295   :  { %v2016_v27 = vpop.f32.mrf.mxu0  ;;  %15790 = vmatmul.mubr.f32.vlgmr.msra.gmra.mxu0 %v18768_v22 }
 0x296   :  { %v2017_v60 = vadd.f32 %v2016_v27, %v1922_v59  ;;  %15812 = vmatpush3.xpose.msra.mxu0 %v17889_v57  ;;  %15835 = vmatpush3.xpose.msra.mxu1 %v18190_v23  ;;  %v3180_v23 = vsel %vm294_vm0, %v1066_v9, 0 }
 0x297   :  { %v15563_v20 = vpop.f32.mrf.mxu0  ;;  %15813 = vmatprep.subr.mxu0 %v23594_v39  ;;  %15836 = vmatprep.subr.mxu1 %v23594_v39 }
 0x298   :  { %v18874_v40 = vadd.f32 %v2095_v12, %v2017_v60  ;;  %15827 = vmatprep.mubr.msk.f32.mxu0 %vm17634_vm1, %v23594_v39  ;;  %v3732_v60 = vsel %vm294_vm0, %v1334_v7, 0  ;;  %v23611_v20 = vld [vmem:[#allocation17_spill] sm:$0xff] }
 0x29a   :  { %15814 = vmatpush3.xpose.msra.mxu0 %v18054_v34  ;;  %15837 = vmatpush3.xpose.msra.mxu1 %v18326_v17  ;;  %v5904_v22 = vsel %vm5903_vm2, %v18874_v40, -inf  ;;  %v18896_v17 = vand.u32 4294901760, %v3180_v23 }
 0x29b   :  { %5905 = vmax.xlane.f32.xlu0 %v5904_v22  ;;  %15815 = vmatprep.subr.mxu0 %v23594_v39  ;;  %v23612_v22 = vld [vmem:[#allocation16_spill] sm:$0xff] }
 0x29c   :  { %15838 = vmatprep.subr.mxu1 %v23594_v39 }
 0x29e   :  { %15816 = vmatpush3.xpose.msra.mxu0 %v18103_v11  ;;  %15839 = vmatpush3.xpose.msra.mxu1 %v18386_v33  ;;  %v3256_v33 = vsub.f32 %v3180_v23, %v18896_v17  ;;  %v19029_v23 = vand.u32 4294901760, %v3732_v60 }
 0x29f   :  { %15817 = vmatprep.subr.mxu0 %v23594_v39  ;;  %15840 = vmatprep.subr.mxu1 %v23594_v39 }
 0x2a2   :  { %15818 = vmatpush3.xpose.msra.mxu0 %v18234_v61  ;;  %15841 = vmatpush3.xpose.msra.mxu1 %v18424_v3  ;;  %v3257_v3 = vand.u32 4294901760, %v3256_v33 }
 0x2a3   :  { %15819 = vmatprep.subr.mxu0 %v23594_v39  ;;  %15842 = vmatprep.subr.mxu1 %v23594_v39 }
 0x2a4   :  { %v3258_v9 = vsub.f32 %v3256_v33, %v3257_v3 }
 0x2a6   :  { %15820 = vmatpush3.xpose.msra.mxu0 %v18309_v62  ;;  %15843 = vmatpush3.xpose.msra.mxu1 %v23599_v0  ;;  %v3259_v0 = vand.u32 4294901760, %v3258_v9 }
 0x2a7   :  { %15821 = vmatprep.subr.mxu0 %v23594_v39  ;;  %15844 = vmatprep.subr.mxu1 %v23594_v39 }
 0x2aa   :  { %15822 = vmatpush3.xpose.msra.mxu0 %v18388_v6  ;;  %15845 = vmatpush3.xpose.msra.mxu1 %v23600_v35 }
 0x2ab   :  { %15823 = vmatprep.subr.mxu0 %v23594_v39  ;;  %15868 = vmatprep.subr.mxu1 %v23594_v39 }
 0x2ad   :  { %v18907_v54 = vpop.f32.mrf.mxu1  ;;  %15847 = vmatmul.mubr.f32.vlgmr.msra.gmra.mxu1 %v18896_v17 }
 0x2ae   :  { %15824 = vmatpush3.xpose.msra.mxu0 %v18419_v56  ;;  %15869 = vmatpush3.xpose.msra.mxu1 %v17889_v57 }
 0x2af   :  { %v15620_v13 = vpop.f32.mrf.mxu1  ;;  %15825 = vmatprep.subr.mxu0 %v23594_v39  ;;  %15870 = vmatprep.subr.mxu1 %v23594_v39 }
 0x2b0   :  { %15884 = vmatprep.mubr.msk.f32.mxu1 %vm17634_vm1, %v23594_v39 }
 0x2b2   :  { %15826 = vmatpush3.xpose.msra.mxu0 %v18444_v26  ;;  %15871 = vmatpush3.xpose.msra.mxu1 %v18054_v34 }
 0x2b3   :  { %15849 = vmatprep.subr.mxu0 %v23594_v39  ;;  %15872 = vmatprep.subr.mxu1 %v23594_v39 }
 0x2b5   :  { %v18920_v35 = vpop.f32.mrf.mxu0  ;;  %15828 = vmatmul.mubr.f32.vlgmr.msra.gmra.mxu0 %v3259_v0  ;;  %v23613_v0 = vld [vmem:[#allocation19_spill] sm:$0xff] }
 0x2b6   :  { %15850 = vmatpush3.xpose.msra.mxu0 %v17892_v14  ;;  %15873 = vmatpush3.xpose.msra.mxu1 %v18103_v11 }
 0x2b7   :  { %v15601_v5 = vpop.f32.mrf.mxu0  ;;  %15851 = vmatprep.subr.mxu0 %v23594_v39  ;;  %15874 = vmatprep.subr.mxu1 %v23594_v39 }
 0x2b8   :  { %15865 = vmatprep.mubr.msk.f32.mxu0 %vm17634_vm1, %v23594_v39  ;;  %v23614_v5 = vld [vmem:[#allocation18_spill] sm:$0xff] }
 0x2ba   :  { %15852 = vmatpush3.xpose.msra.mxu0 %v18075_v50  ;;  %15875 = vmatpush3.xpose.msra.mxu1 %v18234_v61 }
 0x2bb   :  { %15853 = vmatprep.subr.mxu0 %v23594_v39  ;;  %15876 = vmatprep.subr.mxu1 %v23594_v39 }
 0x2be   :  { %15854 = vmatpush3.xpose.msra.mxu0 %v18132_v31  ;;  %15877 = vmatpush3.xpose.msra.mxu1 %v18309_v62  ;;  %v23601_v31 = vld [vmem:[#allocation7_spill] sm:$0xff] }
 0x2bf   :  { %15855 = vmatprep.subr.mxu0 %v23594_v39  ;;  %15878 = vmatprep.subr.mxu1 %v23594_v39 }
 0x2c2   :  { %15856 = vmatpush3.xpose.msra.mxu0 %v18262_v15  ;;  %15879 = vmatpush3.xpose.msra.mxu1 %v18388_v6  ;;  %v23602_v15 = vld [vmem:[#allocation6_spill] sm:$0xff] }
 0x2c3   :  { %15857 = vmatprep.subr.mxu0 %v23594_v39  ;;  %15880 = vmatprep.subr.mxu1 %v23594_v39 }
 0x2c6   :  { %15858 = vmatpush3.xpose.msra.mxu0 %v18329_v24  ;;  %15881 = vmatpush3.xpose.msra.mxu1 %v18419_v56  ;;  %v1534_v24 = vcombine.high %v23602_v15, %v23601_v31  ;;  %v19050_v31 = vsub.f32 %v3732_v60, %v19029_v23  ;;  %v2293_v15 = vadd.f32 %v18907_v54, %v18920_v35  ;;  %v23616_v54 = vld [vmem:[#allocation20_spill] sm:$0xff] }
 0x2c7   :  { %15859 = vmatprep.subr.mxu0 %v23594_v39  ;;  %15882 = vmatprep.subr.mxu1 %v23594_v39 }
 0x2ca   :  { %15860 = vmatpush3.xpose.msra.mxu0 %v18398_v16  ;;  %15883 = vmatpush3.xpose.msra.mxu1 %v18444_v26  ;;  %v3744_v16 = vsel %vm294_vm0, %v1534_v24, 0 }
 0x2cb   :  { %15861 = vmatprep.subr.mxu0 %v23594_v39  ;;  %15906 = vmatprep.subr.mxu1 %v23594_v39  ;;  %v18973_v37 = vand.u32 4294901760, %v3744_v16 }
 0x2cd   :  { %v18948_v14 = vpop.f32.mrf.mxu1  ;;  %15885 = vmatmul.mubr.f32.vlgmr.msra.gmra.mxu1 %v3257_v3  ;;  %v18983_v52 = vsub.f32 %v3744_v16, %v18973_v37 }
 0x2ce   :  { %15862 = vmatpush3.xpose.msra.mxu0 %v18427_v1  ;;  %15907 = vmatpush3.xpose.msra.mxu1 %v17889_v57 }
 0x2cf   :  { %v15658_v50 = vpop.f32.mrf.mxu1  ;;  %15863 = vmatprep.subr.mxu0 %v23594_v39  ;;  %15908 = vmatprep.subr.mxu1 %v23594_v39  ;;  %v18995_v2 = vand.u32 4294901760, %v18983_v52 }
 0x2d0   :  { %15922 = vmatprep.mubr.msk.f32.mxu1 %vm17634_vm1, %v23594_v39  ;;  %v1234_v50 = vcombine.high %v23614_v5, %v23613_v0  ;;  %v3720_v5 = vsel %vm294_vm0, %v1131_v25, 0 }
 0x2d2   :  { %15864 = vmatpush3.xpose.msra.mxu0 %v18449_v32  ;;  %15909 = vmatpush3.xpose.msra.mxu1 %v18054_v34  ;;  %v23603_v34 = vld [vmem:[#allocation9_spill] sm:$0xff]  ;;  %v23604_v32 = vld [vmem:[#allocation8_spill] sm:$0xff] }
 0x2d3   :  { %15887 = vmatprep.subr.mxu0 %v23594_v39  ;;  %15910 = vmatprep.subr.mxu1 %v23594_v39  ;;  %v1484_v21 = vcombine.high %v23604_v32, %v23603_v34  ;;  %v3726_v32 = vsel %vm294_vm0, %v1234_v50, 0 }
 0x2d5   :  { %v18962_v57 = vpop.f32.mrf.mxu0  ;;  %15866 = vmatmul.mubr.f32.vlgmr.msra.gmra.mxu0 %v3256_v33 }
 0x2d6   :  { %15888 = vmatpush3.xpose.msra.mxu0 %v17897_v58  ;;  %15911 = vmatpush3.xpose.msra.mxu1 %v18103_v11  ;;  %v3741_v58 = vsel %vm294_vm0, %v1484_v21, 0  ;;  %v23605_v11 = vld [vmem:[#allocation11_spill] sm:$0xff]  ;;  %v23615_v21 = vld [vmem:[#allocation21_spill] sm:$0xff] }
 0x2d7   :  { %v15639_v1 = vpop.f32.mrf.mxu0  ;;  %15889 = vmatprep.subr.mxu0 %v23594_v39  ;;  %15912 = vmatprep.subr.mxu1 %v23594_v39  ;;  %v1434_v45 = vcombine.high %v23606_v28, %v23605_v11  ;;  %v18987_v46 = vand.u32 4294901760, %v3741_v58  ;;  %v1184_v35 = vcombine.high %v23616_v54, %v23615_v21  ;;  %v19073_v11 = vand.u32 4294901760, %v19050_v31 }
 0x2d8   :  { %15903 = vmatprep.mubr.msk.f32.mxu0 %vm17634_vm1, %v23594_v39 }
 0x2d9   :  { %v3738_v55 = vsel %vm294_vm0, %v1434_v45, 0 }
 0x2da   :  { %15890 = vmatpush3.xpose.msra.mxu0 %v18091_v8  ;;  %15913 = vmatpush3.xpose.msra.mxu1 %v18234_v61  ;;  %v23607_v8 = vld [vmem:[#allocation13_spill] sm:$0xff]  ;;  %v23608_v61 = vld [vmem:[#allocation12_spill] sm:$0xff] }
 0x2db   :  { %15891 = vmatprep.subr.mxu0 %v23594_v39  ;;  %15914 = vmatprep.subr.mxu1 %v23594_v39  ;;  %v1384_v29 = vcombine.high %v23608_v61, %v23607_v8  ;;  %v19082_v8 = vand.u32 4294901760, %v3726_v32 }
 0x2dd   :  { %v3735_v12 = vsel %vm294_vm0, %v1384_v29, 0  ;;  %v19099_v63 = vsub.f32 %v3726_v32, %v19082_v8 }
 0x2de   :  { %15892 = vmatpush3.xpose.msra.mxu0 %v18149_v44  ;;  %15915 = vmatpush3.xpose.msra.mxu1 %v18309_v62  ;;  %v19000_v44 = vsub.f32 %v3741_v58, %v18987_v46  ;;  %v19002_v62 = vand.u32 4294901760, %v3738_v55  ;;  %v19009_v59 = vand.u32 4294901760, %v3735_v12 }
 0x2df   :  { %15893 = vmatprep.subr.mxu0 %v23594_v39  ;;  %15916 = vmatprep.subr.mxu1 %v23594_v39 }
 0x2e0   :  { %v19019_v27 = vsub.f32 %v3738_v55, %v19002_v62  ;;  %v3877_v55 = vsub.f32 %v19050_v31, %v19073_v11 }
 0x2e2   :  { %15894 = vmatpush3.xpose.msra.mxu0 %v18290_v38  ;;  %15917 = vmatpush3.xpose.msra.mxu1 %v18388_v6  ;;  %v3849_v6 = vsub.f32 %v18983_v52, %v18995_v2  ;;  %v19016_v38 = vand.u32 4294901760, %v19000_v44  ;;  %v19038_v13 = vand.u32 4294901760, %v19019_v27 }
 0x2e3   :  { %15895 = vmatprep.subr.mxu0 %v23594_v39  ;;  %15918 = vmatprep.subr.mxu1 %v23594_v39 }
 0x2e4   :  { %v19033_v33 = vand.u32 4294901760, %v3849_v6  ;;  %v3856_v3 = vsub.f32 %v19000_v44, %v19016_v38  ;;  %v3863_v16 = vsub.f32 %v19019_v27, %v19038_v13  ;;  %v19109_v6 = vand.u32 4294901760, %v3877_v55 }
 0x2e6   :  { %15896 = vmatpush3.xpose.msra.mxu0 %v18359_v43  ;;  %15919 = vmatpush3.xpose.msra.mxu1 %v18419_v56  ;;  %v1284_v43 = vcombine.high %v23612_v22, %v23611_v20  ;;  %v19027_v56 = vsub.f32 %v3735_v12, %v19009_v59  ;;  %v19056_v24 = vand.u32 4294901760, %v3856_v3  ;;  %v19077_v28 = vand.u32 4294901760, %v3863_v16 }
 0x2e7   :  { %15897 = vmatprep.subr.mxu0 %v23594_v39  ;;  %15920 = vmatprep.subr.mxu1 %v23594_v39  ;;  %v19118_v22 = vand.u32 4294901760, %v19099_v63 }
 0x2e8   :  { %v3729_v9 = vsel %vm294_vm0, %v1284_v43, 0 }
 0x2e9   :  { %v19060_v1 = vand.u32 4294901760, %v3729_v9 }
 0x2ea   :  { %15898 = vmatpush3.xpose.msra.mxu0 %v18408_v47  ;;  %15921 = vmatpush3.xpose.msra.mxu1 %v18444_v26  ;;  %v19047_v26 = vand.u32 4294901760, %v19027_v56 }
 0x2eb   :  { %15899 = vmatprep.subr.mxu0 %v23594_v39  ;;  %15944 = vmatprep.subr.mxu1 %v23594_v39  ;;  %v19080_v45 = vsub.f32 %v3729_v9, %v19060_v1  ;;  %v3891_v9 = vsub.f32 %v19099_v63, %v19118_v22 }
 0x2ec   :  { %v3870_v58 = vsub.f32 %v19027_v56, %v19047_v26 }
 0x2ed   :  { %v2635_v47 = vpop.f32.mrf.mxu1  ;;  %15923 = vmatmul.mubr.f32.vlgmr.msra.gmra.mxu1 %v18896_v17  ;;  %v19096_v53 = vand.u32 4294901760, %v19080_v45  ;;  %v19142_v50 = vand.u32 4294901760, %v3891_v9 }
 0x2ee   :  { %15900 = vmatpush3.xpose.msra.mxu0 %v18436_v10  ;;  %15945 = vmatpush3.xpose.msra.mxu1 %v19033_v33  ;;  %v2381_v10 = vadd.f32 %v18962_v57, %v2293_v15  ;;  %v3723_v57 = vsel %vm294_vm0, %v1184_v35, 0  ;;  %v19148_v15 = vand.u32 4294901760, %v3720_v5 }
 0x2ef   :  { %v15696_v34 = vpop.f32.mrf.mxu1  ;;  %15901 = vmatprep.subr.mxu0 %v23594_v39  ;;  %15946 = vmatprep.subr.mxu1 %v23594_v39  ;;  %v3884_v20 = vsub.f32 %v19080_v45, %v19096_v53 }
 0x2f0   :  { %15960 = vmatprep.mubr.msk.f32.mxu1 %vm17634_vm1, %v23594_v39  ;;  %v2462_v61 = vadd.f32 %v18948_v14, %v2381_v10  ;;  %v19101_v14 = vand.u32 4294901760, %v3723_v57  ;;  %v19157_v16 = vsub.f32 %v3720_v5, %v19148_v15 }
 0x2f1   :  { %v19127_v3 = vand.u32 4294901760, %v3884_v20 }
 0x2f2   :  { %15902 = vmatpush3.xpose.msra.mxu0 %v18456_v30  ;;  %15947 = vmatpush3.xpose.msra.mxu1 %v19056_v24  ;;  %v19089_v30 = vand.u32 4294901760, %v3870_v58  ;;  %v19121_v43 = vsub.f32 %v3723_v57, %v19101_v14  ;;  %v3821_v34 = vand.u32 4294901760, %v19157_v16 }
 0x2f3   :  { %15925 = vmatprep.subr.mxu0 %v23594_v39  ;;  %15948 = vmatprep.subr.mxu1 %v23594_v39 }
 0x2f4   :  { %v19132_v0 = vand.u32 4294901760, %v19121_v43  ;;  %v3822_v54 = vsub.f32 %v19157_v16, %v3821_v34 }
 0x2f5   :  { %v2556_v29 = vpop.f32.mrf.mxu0  ;;  %15904 = vmatmul.mubr.f32.vlgmr.msra.gmra.mxu0 %v18896_v17 }
 0x2f6   :  { %v2557_v12 = vadd.f32 %v2556_v29, %v2462_v61  ;;  %15926 = vmatpush3.xpose.msra.mxu0 %v18973_v37  ;;  %15949 = vmatpush3.xpose.msra.mxu1 %v19077_v28  ;;  %v3823_v35 = vand.u32 4294901760, %v3822_v54 }
 0x2f7   :  { %v15677_v7 = vpop.f32.mrf.mxu0  ;;  %15927 = vmatprep.subr.mxu0 %v23594_v39  ;;  %15950 = vmatprep.subr.mxu1 %v23594_v39 }
 0x2f8   :  { %v19105_v17 = vadd.f32 %v2635_v47, %v2557_v12  ;;  %15941 = vmatprep.mubr.msk.f32.mxu0 %vm17634_vm1, %v23594_v39  ;;  %v3898_v47 = vsub.f32 %v19121_v43, %v19132_v0 }
 0x2fa   :  { %15928 = vmatpush3.xpose.msra.mxu0 %v18987_v46  ;;  %15951 = vmatpush3.xpose.msra.mxu1 %v19089_v30  ;;  %v5907_v60 = vsel %vm5903_vm2, %v19105_v17, -inf  ;;  %v19152_v25 = vand.u32 4294901760, %v3898_v47 }
 0x2fb   :  { %5908 = vmax.xlane.f32.xlu1 %v5907_v60  ;;  %15929 = vmatprep.subr.mxu0 %v23594_v39 }
 0x2fc   :  { %15952 = vmatprep.subr.mxu1 %v23594_v39 }
 0x2fe   :  { %15930 = vmatpush3.xpose.msra.mxu0 %v19002_v62  ;;  %15953 = vmatpush3.xpose.msra.mxu1 %v19109_v6 }
 0x2ff   :  { %15931 = vmatprep.subr.mxu0 %v23594_v39  ;;  %15954 = vmatprep.subr.mxu1 %v23594_v39 }
 0x302   :  { %15932 = vmatpush3.xpose.msra.mxu0 %v19009_v59  ;;  %15955 = vmatpush3.xpose.msra.mxu1 %v19127_v3 }
 0x303   :  { %15933 = vmatprep.subr.mxu0 %v23594_v39  ;;  %15956 = vmatprep.subr.mxu1 %v23594_v39 }
 0x306   :  { %15934 = vmatpush3.xpose.msra.mxu0 %v19029_v23  ;;  %15957 = vmatpush3.xpose.msra.mxu1 %v19142_v50 }
 0x307   :  { %15935 = vmatprep.subr.mxu0 %v23594_v39  ;;  %15958 = vmatprep.subr.mxu1 %v23594_v39 }
 0x30a   :  { %15936 = vmatpush3.xpose.msra.mxu0 %v19060_v1  ;;  %15959 = vmatpush3.xpose.msra.mxu1 %v19152_v25 }
 0x30b   :  { %15937 = vmatprep.subr.mxu0 %v23594_v39  ;;  %15982 = vmatprep.subr.mxu1 %v23594_v39 }
 0x30d   :  { %v2832_v32 = vpop.f32.mrf.mxu1  ;;  %15961 = vmatmul.mubr.f32.vlgmr.msra.gmra.mxu1 %v19148_v15 }
 0x30e   :  { %15938 = vmatpush3.xpose.msra.mxu0 %v19082_v8  ;;  %15983 = vmatpush3.xpose.msra.mxu1 %v18973_v37 }
 0x30f   :  { %v15734_v21 = vpop.f32.mrf.mxu1  ;;  %15939 = vmatprep.subr.mxu0 %v23594_v39  ;;  %15984 = vmatprep.subr.mxu1 %v23594_v39 }
 0x310   :  { %15998 = vmatprep.mubr.msk.f32.mxu1 %vm17634_vm1, %v23594_v39 }
 0x312   :  { %15940 = vmatpush3.xpose.msra.mxu0 %v19101_v14  ;;  %15985 = vmatpush3.xpose.msra.mxu1 %v18987_v46 }
 0x313   :  { %15963 = vmatprep.subr.mxu0 %v23594_v39  ;;  %15986 = vmatprep.subr.mxu1 %v23594_v39 }
 0x315   :  { %v2721_v10 = vpop.f32.mrf.mxu0  ;;  %15942 = vmatmul.mubr.f32.vlgmr.msra.gmra.mxu0 %v3823_v35 }
 0x316   :  { %v2833_v58 = vadd.f32 %v2832_v32, %v2721_v10  ;;  %15964 = vmatpush3.xpose.msra.mxu0 %v18983_v52  ;;  %15987 = vmatpush3.xpose.msra.mxu1 %v19002_v62 }
 0x317   :  { %v15715_v57 = vpop.f32.mrf.mxu0  ;;  %15965 = vmatprep.subr.mxu0 %v23594_v39  ;;  %15988 = vmatprep.subr.mxu1 %v23594_v39 }
 0x318   :  { %15979 = vmatprep.mubr.msk.f32.mxu0 %vm17634_vm1, %v23594_v39 }
 0x31a   :  { %15966 = vmatpush3.xpose.msra.mxu0 %v19000_v44  ;;  %15989 = vmatpush3.xpose.msra.mxu1 %v19009_v59 }
 0x31b   :  { %15967 = vmatprep.subr.mxu0 %v23594_v39  ;;  %15990 = vmatprep.subr.mxu1 %v23594_v39 }
 0x31e   :  { %15968 = vmatpush3.xpose.msra.mxu0 %v19019_v27  ;;  %15991 = vmatpush3.xpose.msra.mxu1 %v19029_v23 }
 0x31f   :  { %15969 = vmatprep.subr.mxu0 %v23594_v39  ;;  %15992 = vmatprep.subr.mxu1 %v23594_v39 }
 0x322   :  { %15970 = vmatpush3.xpose.msra.mxu0 %v19027_v56  ;;  %15993 = vmatpush3.xpose.msra.mxu1 %v19060_v1 }
 0x323   :  { %15971 = vmatprep.subr.mxu0 %v23594_v39  ;;  %15994 = vmatprep.subr.mxu1 %v23594_v39 }
 0x324   :  { %v5906_v61 = vpop.xlane.xlu0 %5905 }
 0x325   :  { %v5928_v29 = vsub.f32 %v18874_v40, %v5906_v61 }
 0x326   :  { %15972 = vmatpush3.xpose.msra.mxu0 %v19050_v31  ;;  %15995 = vmatpush3.xpose.msra.mxu1 %v19082_v8 }
 0x327   :  { %v5936_v55 = vmul.f32 1.442695, %v5928_v29  ;;  %15973 = vmatprep.subr.mxu0 %v23594_v39  ;;  %15996 = vmatprep.subr.mxu1 %v23594_v39 }
 0x329   :  { %17498 = vpow2.f32 %v5936_v55 }
 0x32a   :  { %15974 = vmatpush3.xpose.msra.mxu0 %v19080_v45  ;;  %15997 = vmatpush3.xpose.msra.mxu1 %v19101_v14 }
 0x32b   :  { %15975 = vmatprep.subr.mxu0 %v23594_v39  ;;  %16020 = vmatprep.subr.mxu1 %v23594_v39 }
 0x32d   :  { %v3001_v12 = vpop.f32.mrf.mxu1  ;;  %15999 = vmatmul.mubr.f32.vlgmr.msra.gmra.mxu1 %v3821_v34 }
 0x32e   :  { %15976 = vmatpush3.xpose.msra.mxu0 %v19099_v63  ;;  %16021 = vmatpush3.xpose.msra.mxu1 %v18973_v37 }
 0x32f   :  { %v15772_v40 = vpop.f32.mrf.mxu1  ;;  %15977 = vmatprep.subr.mxu0 %v23594_v39  ;;  %16022 = vmatprep.subr.mxu1 %v23594_v39 }
 0x330   :  { %16036 = vmatprep.mubr.msk.f32.mxu1 %vm17634_vm1, %v23594_v39 }
 0x332   :  { %15978 = vmatpush3.xpose.msra.mxu0 %v19121_v43  ;;  %16023 = vmatpush3.xpose.msra.mxu1 %v18987_v46 }
 0x333   :  { %16001 = vmatprep.subr.mxu0 %v23594_v39  ;;  %16024 = vmatprep.subr.mxu1 %v23594_v39 }
 0x335   :  { %v2920_v7 = vpop.f32.mrf.mxu0  ;;  %15980 = vmatmul.mubr.f32.vlgmr.msra.gmra.mxu0 %v19157_v16 }
 0x336   :  { %v19214_v60 = vpop.eup %17498  ;;  %v2921_v20 = vadd.f32 %v2920_v7, %v2833_v58  ;;  %16002 = vmatpush3.xpose.msra.mxu0 %v18995_v2  ;;  %16025 = vmatpush3.xpose.msra.mxu1 %v19002_v62 }
 0x337   :  { %23617 = vst [vmem:[#allocation22_spill] sm:$0xff] %v19214_v60  ;;  %v15753_v9 = vpop.f32.mrf.mxu0  ;;  %v5952_v5 = vsel %vm5903_vm2, %v19214_v60, 0.0  ;;  %16003 = vmatprep.subr.mxu0 %v23594_v39  ;;  %16026 = vmatprep.subr.mxu1 %v23594_v39 }
 0x338   :  { %5953 = vadd.xlane.f32.xlu0 %v5952_v5  ;;  %16017 = vmatprep.mubr.msk.f32.mxu0 %vm17634_vm1, %v23594_v39  ;;  %v3002_v47 = vadd.f32 %v3001_v12, %v2921_v20 }
 0x33a   :  { %16004 = vmatpush3.xpose.msra.mxu0 %v19016_v38  ;;  %16027 = vmatpush3.xpose.msra.mxu1 %v19009_v59 }
 0x33b   :  { %16005 = vmatprep.subr.mxu0 %v23594_v39  ;;  %16028 = vmatprep.subr.mxu1 %v23594_v39 }
 0x33e   :  { %16006 = vmatpush3.xpose.msra.mxu0 %v19038_v13  ;;  %16029 = vmatpush3.xpose.msra.mxu1 %v19029_v23 }
 0x33f   :  { %16007 = vmatprep.subr.mxu0 %v23594_v39  ;;  %16030 = vmatprep.subr.mxu1 %v23594_v39 }
 0x342   :  { %16008 = vmatpush3.xpose.msra.mxu0 %v19047_v26  ;;  %16031 = vmatpush3.xpose.msra.mxu1 %v19060_v1 }
 0x343   :  { %16009 = vmatprep.subr.mxu0 %v23594_v39  ;;  %16032 = vmatprep.subr.mxu1 %v23594_v39 }
 0x346   :  { %16010 = vmatpush3.xpose.msra.mxu0 %v19073_v11  ;;  %16033 = vmatpush3.xpose.msra.mxu1 %v19082_v8 }
 0x347   :  { %16011 = vmatprep.subr.mxu0 %v23594_v39  ;;  %16034 = vmatprep.subr.mxu1 %v23594_v39 }
 0x34a   :  { %16012 = vmatpush3.xpose.msra.mxu0 %v19096_v53  ;;  %16035 = vmatpush3.xpose.msra.mxu1 %v19101_v14 }
 0x34b   :  { %16013 = vmatprep.subr.mxu0 %v23594_v39  ;;  %16058 = vmatprep.subr.mxu1 %v23594_v39 }
 0x34d   :  { %v3175_v16 = vpop.f32.mrf.mxu1  ;;  %16037 = vmatmul.mubr.f32.vlgmr.msra.gmra.mxu1 %v19148_v15 }
 0x34e   :  { %16014 = vmatpush3.xpose.msra.mxu0 %v19118_v22  ;;  %16059 = vmatpush3.xpose.msra.mxu1 %v19033_v33 }
 0x34f   :  { %v15810_v34 = vpop.f32.mrf.mxu1  ;;  %16015 = vmatprep.subr.mxu0 %v23594_v39  ;;  %16060 = vmatprep.subr.mxu1 %v23594_v39 }
 0x350   :  { %16074 = vmatprep.mubr.msk.f32.mxu1 %vm17634_vm1, %v23594_v39 }
 0x352   :  { %16016 = vmatpush3.xpose.msra.mxu0 %v19132_v0  ;;  %16061 = vmatpush3.xpose.msra.mxu1 %v19056_v24 }
 0x353   :  { %16039 = vmatprep.subr.mxu0 %v23594_v39  ;;  %16062 = vmatprep.subr.mxu1 %v23594_v39 }
 0x355   :  { %v3096_v32 = vpop.f32.mrf.mxu0  ;;  %16018 = vmatmul.mubr.f32.vlgmr.msra.gmra.mxu0 %v19148_v15  ;;  %v4284_v15 = vsel %vm294_vm0, %v1132_v41, 0 }
 0x356   :  { %v3097_v21 = vadd.f32 %v3096_v32, %v3002_v47  ;;  %16040 = vmatpush3.xpose.msra.mxu0 %v18973_v37  ;;  %16063 = vmatpush3.xpose.msra.mxu1 %v19077_v28  ;;  %v19280_v10 = vand.u32 4294901760, %v4284_v15 }
 0x357   :  { %v15791_v54 = vpop.f32.mrf.mxu0  ;;  %16041 = vmatprep.subr.mxu0 %v23594_v39  ;;  %16064 = vmatprep.subr.mxu1 %v23594_v39 }
 0x358   :  { %16055 = vmatprep.mubr.msk.f32.mxu0 %vm17634_vm1, %v23594_v39  ;;  %v19262_v35 = vadd.f32 %v3175_v16, %v3097_v21  ;;  %v4360_v49 = vsub.f32 %v4284_v15, %v19280_v10 }
 0x35a   :  { %16042 = vmatpush3.xpose.msra.mxu0 %v18987_v46  ;;  %16065 = vmatpush3.xpose.msra.mxu1 %v19089_v30  ;;  %v4361_v4 = vand.u32 4294901760, %v4360_v49 }
 0x35b   :  { %16043 = vmatprep.subr.mxu0 %v23594_v39  ;;  %16066 = vmatprep.subr.mxu1 %v23594_v39 }
 0x35c   :  { %v4362_v57 = vsub.f32 %v4360_v49, %v4361_v4 }
 0x35e   :  { %16044 = vmatpush3.xpose.msra.mxu0 %v19002_v62  ;;  %16067 = vmatpush3.xpose.msra.mxu1 %v19109_v6  ;;  %v4363_v61 = vand.u32 4294901760, %v4362_v57 }
 0x35f   :  { %16045 = vmatprep.subr.mxu0 %v23594_v39  ;;  %16068 = vmatprep.subr.mxu1 %v23594_v39 }
 0x362   :  { %16046 = vmatpush3.xpose.msra.mxu0 %v19009_v59  ;;  %16069 = vmatpush3.xpose.msra.mxu1 %v19127_v3 }
 0x363   :  { %16047 = vmatprep.subr.mxu0 %v23594_v39  ;;  %16070 = vmatprep.subr.mxu1 %v23594_v39 }
 0x366   :  { %16048 = vmatpush3.xpose.msra.mxu0 %v19029_v23  ;;  %16071 = vmatpush3.xpose.msra.mxu1 %v19142_v50 }
 0x367   :  { %16049 = vmatprep.subr.mxu0 %v23594_v39  ;;  %16072 = vmatprep.subr.mxu1 %v23594_v39 }
 0x36a   :  { %16050 = vmatpush3.xpose.msra.mxu0 %v19060_v1  ;;  %16073 = vmatpush3.xpose.msra.mxu1 %v19152_v25 }
 0x36b   :  { %16051 = vmatprep.subr.mxu0 %v23594_v39  ;;  %16096 = vmatprep.subr.mxu1 %v23594_v39 }
 0x36d   :  { %v3372_v41 = vpop.f32.mrf.mxu1  ;;  %16075 = vmatmul.mubr.f32.vlgmr.msra.gmra.mxu1 %v19280_v10 }
 0x36e   :  { %16052 = vmatpush3.xpose.msra.mxu0 %v19082_v8  ;;  %16097 = vmatpush3.xpose.msra.mxu1 %v18973_v37 }
 0x36f   :  { %v15848_v58 = vpop.f32.mrf.mxu1  ;;  %16053 = vmatprep.subr.mxu0 %v23594_v39  ;;  %16098 = vmatprep.subr.mxu1 %v23594_v39 }
 0x370   :  { %16112 = vmatprep.mubr.msk.f32.mxu1 %vm17634_vm1, %v23594_v39 }
 0x372   :  { %16054 = vmatpush3.xpose.msra.mxu0 %v19101_v14  ;;  %16099 = vmatpush3.xpose.msra.mxu1 %v18987_v46 }
 0x373   :  { %16077 = vmatprep.subr.mxu0 %v23594_v39  ;;  %16100 = vmatprep.subr.mxu1 %v23594_v39 }
 0x375   :  { %v3261_v29 = vpop.f32.mrf.mxu0  ;;  %16056 = vmatmul.mubr.f32.vlgmr.msra.gmra.mxu0 %v4363_v61 }
 0x376   :  { %v3373_v55 = vadd.f32 %v3372_v41, %v3261_v29  ;;  %16078 = vmatpush3.xpose.msra.mxu0 %v18983_v52  ;;  %16101 = vmatpush3.xpose.msra.mxu1 %v19002_v62 }
 0x377   :  { %v15829_v12 = vpop.f32.mrf.mxu0  ;;  %16079 = vmatprep.subr.mxu0 %v23594_v39  ;;  %16102 = vmatprep.subr.mxu1 %v23594_v39 }
 0x378   :  { %16093 = vmatprep.mubr.msk.f32.mxu0 %vm17634_vm1, %v23594_v39 }
 0x37a   :  { %16080 = vmatpush3.xpose.msra.mxu0 %v19000_v44  ;;  %16103 = vmatpush3.xpose.msra.mxu1 %v19009_v59 }
 0x37b   :  { %16081 = vmatprep.subr.mxu0 %v23594_v39  ;;  %16104 = vmatprep.subr.mxu1 %v23594_v39 }
 0x37e   :  { %16082 = vmatpush3.xpose.msra.mxu0 %v19019_v27  ;;  %16105 = vmatpush3.xpose.msra.mxu1 %v19029_v23 }
 0x37f   :  { %16083 = vmatprep.subr.mxu0 %v23594_v39  ;;  %16106 = vmatprep.subr.mxu1 %v23594_v39 }
 0x382   :  { %16084 = vmatpush3.xpose.msra.mxu0 %v19027_v56  ;;  %16107 = vmatpush3.xpose.msra.mxu1 %v19060_v1 }
 0x383   :  { %16085 = vmatprep.subr.mxu0 %v23594_v39  ;;  %16108 = vmatprep.subr.mxu1 %v23594_v39 }
 0x386   :  { %16086 = vmatpush3.xpose.msra.mxu0 %v19050_v31  ;;  %16109 = vmatpush3.xpose.msra.mxu1 %v19082_v8 }
 0x387   :  { %16087 = vmatprep.subr.mxu0 %v23594_v39  ;;  %16110 = vmatprep.subr.mxu1 %v23594_v39 }
 0x38a   :  { %16088 = vmatpush3.xpose.msra.mxu0 %v19080_v45  ;;  %16111 = vmatpush3.xpose.msra.mxu1 %v19101_v14 }
 0x38b   :  { %16089 = vmatprep.subr.mxu0 %v23594_v39  ;;  %16134 = vmatprep.subr.mxu1 %v23594_v39 }
 0x38d   :  { %v3541_v40 = vpop.f32.mrf.mxu1  ;;  %16113 = vmatmul.mubr.f32.vlgmr.msra.gmra.mxu1 %v4361_v4 }
 0x38e   :  { %16090 = vmatpush3.xpose.msra.mxu0 %v19099_v63  ;;  %16135 = vmatpush3.xpose.msra.mxu1 %v18973_v37 }
 0x38f   :  { %v15886_v7 = vpop.f32.mrf.mxu1  ;;  %16091 = vmatprep.subr.mxu0 %v23594_v39  ;;  %16136 = vmatprep.subr.mxu1 %v23594_v39 }
 0x390   :  { %16150 = vmatprep.mubr.msk.f32.mxu1 %vm17634_vm1, %v23594_v39 }
 0x392   :  { %16092 = vmatpush3.xpose.msra.mxu0 %v19121_v43  ;;  %16137 = vmatpush3.xpose.msra.mxu1 %v18987_v46 }
 0x393   :  { %16115 = vmatprep.subr.mxu0 %v23594_v39  ;;  %16138 = vmatprep.subr.mxu1 %v23594_v39 }
 0x395   :  { %v3460_v20 = vpop.f32.mrf.mxu0  ;;  %16094 = vmatmul.mubr.f32.vlgmr.msra.gmra.mxu0 %v4360_v49 }
 0x396   :  { %v3461_v9 = vadd.f32 %v3460_v20, %v3373_v55  ;;  %16116 = vmatpush3.xpose.msra.mxu0 %v18995_v2  ;;  %16139 = vmatpush3.xpose.msra.mxu1 %v19002_v62 }
 0x397   :  { %v15867_v5 = vpop.f32.mrf.mxu0  ;;  %16117 = vmatprep.subr.mxu0 %v23594_v39  ;;  %16140 = vmatprep.subr.mxu1 %v23594_v39 }
 0x398   :  { %16131 = vmatprep.mubr.msk.f32.mxu0 %vm17634_vm1, %v23594_v39  ;;  %v3542_v47 = vadd.f32 %v3541_v40, %v3461_v9 }
 0x39a   :  { %16118 = vmatpush3.xpose.msra.mxu0 %v19016_v38  ;;  %16141 = vmatpush3.xpose.msra.mxu1 %v19009_v59 }
 0x39b   :  { %16119 = vmatprep.subr.mxu0 %v23594_v39  ;;  %16142 = vmatprep.subr.mxu1 %v23594_v39 }
 0x39e   :  { %16120 = vmatpush3.xpose.msra.mxu0 %v19038_v13  ;;  %16143 = vmatpush3.xpose.msra.mxu1 %v19029_v23 }
 0x39f   :  { %16121 = vmatprep.subr.mxu0 %v23594_v39  ;;  %16144 = vmatprep.subr.mxu1 %v23594_v39 }
 0x3a2   :  { %16122 = vmatpush3.xpose.msra.mxu0 %v19047_v26  ;;  %16145 = vmatpush3.xpose.msra.mxu1 %v19060_v1 }
 0x3a3   :  { %16123 = vmatprep.subr.mxu0 %v23594_v39  ;;  %16146 = vmatprep.subr.mxu1 %v23594_v39 }
 0x3a6   :  { %16124 = vmatpush3.xpose.msra.mxu0 %v19073_v11  ;;  %16147 = vmatpush3.xpose.msra.mxu1 %v19082_v8 }
 0x3a7   :  { %16125 = vmatprep.subr.mxu0 %v23594_v39  ;;  %16148 = vmatprep.subr.mxu1 %v23594_v39 }
 0x3aa   :  { %16126 = vmatpush3.xpose.msra.mxu0 %v19096_v53  ;;  %16149 = vmatpush3.xpose.msra.mxu1 %v19101_v14 }
 0x3ab   :  { %16127 = vmatprep.subr.mxu0 %v23594_v39  ;;  %16172 = vmatprep.subr.mxu1 %v23594_v39 }
 0x3ad   :  { %v3715_v16 = vpop.f32.mrf.mxu1  ;;  %16151 = vmatmul.mubr.f32.vlgmr.msra.gmra.mxu1 %v19280_v10 }
 0x3ae   :  { %16128 = vmatpush3.xpose.msra.mxu0 %v19118_v22  ;;  %16173 = vmatpush3.xpose.msra.mxu1 %v19033_v33 }
 0x3af   :  { %v15924_v34 = vpop.f32.mrf.mxu1  ;;  %16129 = vmatprep.subr.mxu0 %v23594_v39  ;;  %16174 = vmatprep.subr.mxu1 %v23594_v39 }
 0x3b0   :  { %16188 = vmatprep.mubr.msk.f32.mxu1 %vm17634_vm1, %v23594_v39 }
 0x3b2   :  { %16130 = vmatpush3.xpose.msra.mxu0 %v19132_v0  ;;  %16175 = vmatpush3.xpose.msra.mxu1 %v19056_v24 }
 0x3b3   :  { %16153 = vmatprep.subr.mxu0 %v23594_v39  ;;  %16176 = vmatprep.subr.mxu1 %v23594_v39 }
 0x3b5   :  { %v3636_v32 = vpop.f32.mrf.mxu0  ;;  %16132 = vmatmul.mubr.f32.vlgmr.msra.gmra.mxu0 %v19280_v10  ;;  %v4824_v10 = vsel %vm294_vm0, %v1133_v42, 0 }
 0x3b6   :  { %v3637_v21 = vadd.f32 %v3636_v32, %v3542_v47  ;;  %16154 = vmatpush3.xpose.msra.mxu0 %v18973_v37  ;;  %16177 = vmatpush3.xpose.msra.mxu1 %v19077_v28  ;;  %v19400_v49 = vand.u32 4294901760, %v4824_v10 }
 0x3b7   :  { %v15905_v54 = vpop.f32.mrf.mxu0  ;;  %16155 = vmatprep.subr.mxu0 %v23594_v39  ;;  %16178 = vmatprep.subr.mxu1 %v23594_v39 }
 0x3b8   :  { %16169 = vmatprep.mubr.msk.f32.mxu0 %vm17634_vm1, %v23594_v39  ;;  %v19382_v15 = vadd.f32 %v3715_v16, %v3637_v21  ;;  %v4900_v42 = vsub.f32 %v4824_v10, %v19400_v49 }
 0x3ba   :  { %23618 = vst [vmem:[#allocation23_spill] sm:$0xff] %v19382_v15  ;;  %16156 = vmatpush3.xpose.msra.mxu0 %v18987_v46  ;;  %16179 = vmatpush3.xpose.msra.mxu1 %v19089_v30  ;;  %v4901_v4 = vand.u32 4294901760, %v4900_v42 }
 0x3bb   :  { %16157 = vmatprep.subr.mxu0 %v23594_v39  ;;  %16180 = vmatprep.subr.mxu1 %v23594_v39 }
 0x3bc   :  { %v4902_v57 = vsub.f32 %v4900_v42, %v4901_v4 }
 0x3be   :  { %16158 = vmatpush3.xpose.msra.mxu0 %v19002_v62  ;;  %16181 = vmatpush3.xpose.msra.mxu1 %v19109_v6  ;;  %v4903_v61 = vand.u32 4294901760, %v4902_v57  ;;  %v17541_v57 = vld [vmem:[%s23400_s1 + $0xe] sm:$0x3] }
 0x3bf   :  { %16159 = vmatprep.subr.mxu0 %v23594_v39  ;;  %16182 = vmatprep.subr.mxu1 %v23594_v39 }
 0x3c2   :  { %16160 = vmatpush3.xpose.msra.mxu0 %v19009_v59  ;;  %16183 = vmatpush3.xpose.msra.mxu1 %v19127_v3 }
 0x3c3   :  { %16161 = vmatprep.subr.mxu0 %v23594_v39  ;;  %16184 = vmatprep.subr.mxu1 %v23594_v39 }
 0x3c6   :  { %16162 = vmatpush3.xpose.msra.mxu0 %v19029_v23  ;;  %16185 = vmatpush3.xpose.msra.mxu1 %v19142_v50 }
 0x3c7   :  { %16163 = vmatprep.subr.mxu0 %v23594_v39  ;;  %16186 = vmatprep.subr.mxu1 %v23594_v39 }
 0x3ca   :  { %16164 = vmatpush3.xpose.msra.mxu0 %v19060_v1  ;;  %16187 = vmatpush3.xpose.msra.mxu1 %v19152_v25 }
 0x3cb   :  { %16165 = vmatprep.subr.mxu0 %v23594_v39  ;;  %16210 = vmatprep.subr.mxu1 %v23594_v39 }
 0x3cd   :  { %v3936_v41 = vpop.f32.mrf.mxu1  ;;  %16189 = vmatmul.mubr.f32.vlgmr.msra.gmra.mxu1 %v19400_v49 }
 0x3ce   :  { %16166 = vmatpush3.xpose.msra.mxu0 %v19082_v8  ;;  %16211 = vmatpush3.xpose.msra.mxu1 %v18973_v37 }
 0x3cf   :  { %v15962_v58 = vpop.f32.mrf.mxu1  ;;  %16167 = vmatprep.subr.mxu0 %v23594_v39  ;;  %16212 = vmatprep.subr.mxu1 %v23594_v39 }
 0x3d0   :  { %16226 = vmatprep.mubr.msk.f32.mxu1 %vm17634_vm1, %v23594_v39  ;;  %v17540_v58 = vld [vmem:[%s23400_s1 + $0xc] sm:$0x3] }
 0x3d2   :  { %16168 = vmatpush3.xpose.msra.mxu0 %v19101_v14  ;;  %16213 = vmatpush3.xpose.msra.mxu1 %v18987_v46 }
 0x3d3   :  { %16191 = vmatprep.subr.mxu0 %v23594_v39  ;;  %16214 = vmatprep.subr.mxu1 %v23594_v39 }
 0x3d5   :  { %v3825_v29 = vpop.f32.mrf.mxu0  ;;  %16170 = vmatmul.mubr.f32.vlgmr.msra.gmra.mxu0 %v4903_v61 }
 0x3d6   :  { %v3937_v55 = vadd.f32 %v3936_v41, %v3825_v29  ;;  %16192 = vmatpush3.xpose.msra.mxu0 %v18983_v52  ;;  %16215 = vmatpush3.xpose.msra.mxu1 %v19002_v62 }
 0x3d7   :  { %v15943_v12 = vpop.f32.mrf.mxu0  ;;  %16193 = vmatprep.subr.mxu0 %v23594_v39  ;;  %16216 = vmatprep.subr.mxu1 %v23594_v39 }
 0x3d8   :  { %16207 = vmatprep.mubr.msk.f32.mxu0 %vm17634_vm1, %v23594_v39 }
 0x3da   :  { %16194 = vmatpush3.xpose.msra.mxu0 %v19000_v44  ;;  %16217 = vmatpush3.xpose.msra.mxu1 %v19009_v59 }
 0x3db   :  { %16195 = vmatprep.subr.mxu0 %v23594_v39  ;;  %16218 = vmatprep.subr.mxu1 %v23594_v39 }
 0x3de   :  { %16196 = vmatpush3.xpose.msra.mxu0 %v19019_v27  ;;  %16219 = vmatpush3.xpose.msra.mxu1 %v19029_v23 }
 0x3df   :  { %16197 = vmatprep.subr.mxu0 %v23594_v39  ;;  %16220 = vmatprep.subr.mxu1 %v23594_v39 }
 0x3e2   :  { %16198 = vmatpush3.xpose.msra.mxu0 %v19027_v56  ;;  %16221 = vmatpush3.xpose.msra.mxu1 %v19060_v1 }
 0x3e3   :  { %16199 = vmatprep.subr.mxu0 %v23594_v39  ;;  %16222 = vmatprep.subr.mxu1 %v23594_v39 }
 0x3e6   :  { %16200 = vmatpush3.xpose.msra.mxu0 %v19050_v31  ;;  %16223 = vmatpush3.xpose.msra.mxu1 %v19082_v8 }
 0x3e7   :  { %16201 = vmatprep.subr.mxu0 %v23594_v39  ;;  %16224 = vmatprep.subr.mxu1 %v23594_v39 }
 0x3ea   :  { %16202 = vmatpush3.xpose.msra.mxu0 %v19080_v45  ;;  %16225 = vmatpush3.xpose.msra.mxu1 %v19101_v14 }
 0x3eb   :  { %16203 = vmatprep.subr.mxu0 %v23594_v39  ;;  %16248 = vmatprep.subr.mxu1 %v23594_v39 }
 0x3ed   :  { %v4105_v40 = vpop.f32.mrf.mxu1  ;;  %16227 = vmatmul.mubr.f32.vlgmr.msra.gmra.mxu1 %v4901_v4  ;;  %v17539_v4 = vld [vmem:[%s23400_s1 + $0xa] sm:$0x3] }
 0x3ee   :  { %16204 = vmatpush3.xpose.msra.mxu0 %v19099_v63  ;;  %16249 = vmatpush3.xpose.msra.mxu1 %v18973_v37 }
 0x3ef   :  { %v16000_v7 = vpop.f32.mrf.mxu1  ;;  %16205 = vmatprep.subr.mxu0 %v23594_v39  ;;  %16250 = vmatprep.subr.mxu1 %v23594_v39 }
 0x3f0   :  { %16264 = vmatprep.mubr.msk.f32.mxu1 %vm17634_vm1, %v23594_v39  ;;  %v17542_v7 = vld [vmem:[%s23400_s1 + $0x10] sm:$0x3] }
 0x3f2   :  { %16206 = vmatpush3.xpose.msra.mxu0 %v19121_v43  ;;  %16251 = vmatpush3.xpose.msra.mxu1 %v18987_v46 }
 0x3f3   :  { %16229 = vmatprep.subr.mxu0 %v23594_v39  ;;  %16252 = vmatprep.subr.mxu1 %v23594_v39 }
 0x3f5   :  { %v4024_v20 = vpop.f32.mrf.mxu0  ;;  %16208 = vmatmul.mubr.f32.vlgmr.msra.gmra.mxu0 %v4900_v42  ;;  %v17538_v42 = vld [vmem:[%s23400_s1 + $0x8] sm:$0x3] }
 0x3f6   :  { %v4025_v9 = vadd.f32 %v4024_v20, %v3937_v55  ;;  %16230 = vmatpush3.xpose.msra.mxu0 %v18995_v2  ;;  %16253 = vmatpush3.xpose.msra.mxu1 %v19002_v62  ;;  %v6073_v41 = vcombine.low %v17538_v42, %v17539_v4  ;;  %v17543_v20 = vld [vmem:[%s23400_s1 + $0x12] sm:$0x3]  ;;  %v17552_v4 = vld [vmem:[%s23400_s1 + $0x24] sm:$0x3] }
 0x3f7   :  { %v15981_v5 = vpop.f32.mrf.mxu0  ;;  %16231 = vmatprep.subr.mxu0 %v23594_v39  ;;  %16254 = vmatprep.subr.mxu1 %v23594_v39 }
 0x3f8   :  { %16245 = vmatprep.mubr.msk.f32.mxu0 %vm17634_vm1, %v23594_v39  ;;  %v4106_v47 = vadd.f32 %v4105_v40, %v4025_v9  ;;  %v6081_v12 = vrot.slane %v6073_v41, %v17753_v36  ;;  %v6090_v9 = vcombine.low %v17542_v7, %v17543_v20 }
 0x3fa   :  { %16232 = vmatpush3.xpose.msra.mxu0 %v19016_v38  ;;  %16255 = vmatpush3.xpose.msra.mxu1 %v19009_v59 }
 0x3fb   :  { %16233 = vmatprep.subr.mxu0 %v23594_v39  ;;  %16256 = vmatprep.subr.mxu1 %v23594_v39 }
 0x3fe   :  { %16234 = vmatpush3.xpose.msra.mxu0 %v19038_v13  ;;  %16257 = vmatpush3.xpose.msra.mxu1 %v19029_v23 }
 0x3ff   :  { %16235 = vmatprep.subr.mxu0 %v23594_v39  ;;  %16258 = vmatprep.subr.mxu1 %v23594_v39 }
 0x402   :  { %16236 = vmatpush3.xpose.msra.mxu0 %v19047_v26  ;;  %16259 = vmatpush3.xpose.msra.mxu1 %v19060_v1 }
 0x403   :  { %16237 = vmatprep.subr.mxu0 %v23594_v39  ;;  %16260 = vmatprep.subr.mxu1 %v23594_v39 }
 0x406   :  { %16238 = vmatpush3.xpose.msra.mxu0 %v19073_v11  ;;  %16261 = vmatpush3.xpose.msra.mxu1 %v19082_v8 }
 0x407   :  { %16239 = vmatprep.subr.mxu0 %v23594_v39  ;;  %16262 = vmatprep.subr.mxu1 %v23594_v39 }
 0x40a   :  { %16240 = vmatpush3.xpose.msra.mxu0 %v19096_v53  ;;  %16263 = vmatpush3.xpose.msra.mxu1 %v19101_v14 }
 0x40b   :  { %16241 = vmatprep.subr.mxu0 %v23594_v39  ;;  %16286 = vmatprep.subr.mxu1 %v23594_v39 }
 0x40d   :  { %v4279_v16 = vpop.f32.mrf.mxu1  ;;  %16265 = vmatmul.mubr.f32.vlgmr.msra.gmra.mxu1 %v19400_v49 }
 0x40e   :  { %16242 = vmatpush3.xpose.msra.mxu0 %v19118_v22  ;;  %16287 = vmatpush3.xpose.msra.mxu1 %v19033_v33 }
 0x40f   :  { %v16038_v34 = vpop.f32.mrf.mxu1  ;;  %16243 = vmatprep.subr.mxu0 %v23594_v39  ;;  %16288 = vmatprep.subr.mxu1 %v23594_v39 }
 0x410   :  { %16302 = vmatprep.mubr.msk.f32.mxu1 %vm17634_vm1, %v23594_v39  ;;  %v246_v34 = vld [vmem:[%s23403_s4 + $0x28] sm:$0xff] }
 0x412   :  { %16244 = vmatpush3.xpose.msra.mxu0 %v19132_v0  ;;  %16289 = vmatpush3.xpose.msra.mxu1 %v19056_v24 }
 0x413   :  { %16267 = vmatprep.subr.mxu0 %v23594_v39  ;;  %16290 = vmatprep.subr.mxu1 %v23594_v39 }
 0x415   :  { %v4200_v32 = vpop.f32.mrf.mxu0  ;;  %16246 = vmatmul.mubr.f32.vlgmr.msra.gmra.mxu0 %v19400_v49 }
 0x416   :  { %v4201_v33 = vadd.f32 %v4200_v32, %v4106_v47  ;;  %16268 = vmatpush3.xpose.msra.mxu0 %v18973_v37  ;;  %16291 = vmatpush3.xpose.msra.mxu1 %v19077_v28  ;;  %v5364_v28 = vsel %vm294_vm0, %v1134_v18, 0  ;;  %v245_v32 = vld [vmem:[%s23403_s4 + $0x18] sm:$0xff] }
 0x417   :  { %v16019_v21 = vpop.f32.mrf.mxu0  ;;  %16269 = vmatprep.subr.mxu0 %v23594_v39  ;;  %16292 = vmatprep.subr.mxu1 %v23594_v39 }
 0x418   :  { %16283 = vmatprep.mubr.msk.f32.mxu0 %vm17634_vm1, %v23594_v39  ;;  %v19502_v24 = vadd.f32 %v4279_v16, %v4201_v33 }
 0x41a   :  { %23619 = vst [vmem:[#allocation7_spill] sm:$0xff] %v19502_v24  ;;  %16270 = vmatpush3.xpose.msra.mxu0 %v18987_v46  ;;  %16293 = vmatpush3.xpose.msra.mxu1 %v19089_v30  ;;  %v19520_v30 = vand.u32 4294901760, %v5364_v28 }
 0x41b   :  { %16271 = vmatprep.subr.mxu0 %v23594_v39  ;;  %16294 = vmatprep.subr.mxu1 %v23594_v39 }
 0x41c   :  { %v19527_v19 = vsub.f32 %v5364_v28, %v19520_v30  ;;  %v244_v28 = vld [vmem:[%s23403_s4 + $0x8] sm:$0xff] }
 0x41e   :  { %16272 = vmatpush3.xpose.msra.mxu0 %v19002_v62  ;;  %16295 = vmatpush3.xpose.msra.mxu1 %v19109_v6  ;;  %v5441_v51 = vand.u32 4294901760, %v19527_v19 }
 0x41f   :  { %16273 = vmatprep.subr.mxu0 %v23594_v39  ;;  %16296 = vmatprep.subr.mxu1 %v23594_v39 }
 0x422   :  { %16274 = vmatpush3.xpose.msra.mxu0 %v19009_v59  ;;  %16297 = vmatpush3.xpose.msra.mxu1 %v19127_v3  ;;  %v5442_v3 = vsub.f32 %v19527_v19, %v5441_v51 }
 0x423   :  { %16275 = vmatprep.subr.mxu0 %v23594_v39  ;;  %16298 = vmatprep.subr.mxu1 %v23594_v39 }
 0x426   :  { %16276 = vmatpush3.xpose.msra.mxu0 %v19029_v23  ;;  %16299 = vmatpush3.xpose.msra.mxu1 %v19142_v50  ;;  %v5443_v50 = vand.u32 4294901760, %v5442_v3 }
 0x427   :  { %16277 = vmatprep.subr.mxu0 %v23594_v39  ;;  %16300 = vmatprep.subr.mxu1 %v23594_v39 }
 0x42a   :  { %16278 = vmatpush3.xpose.msra.mxu0 %v19060_v1  ;;  %16301 = vmatpush3.xpose.msra.mxu1 %v19152_v25 }
 0x42b   :  { %16279 = vmatprep.subr.mxu0 %v23594_v39  ;;  %16324 = vmatprep.subr.mxu1 %v23594_v39 }
 0x42d   :  { %v4476_v18 = vpop.f32.mrf.mxu1  ;;  %16303 = vmatmul.mubr.f32.vlgmr.msra.gmra.mxu1 %v19520_v30 }
 0x42e   :  { %16280 = vmatpush3.xpose.msra.mxu0 %v19082_v8  ;;  %16325 = vmatpush3.xpose.msra.mxu1 %v18973_v37 }
 0x42f   :  { %v16076_v6 = vpop.f32.mrf.mxu1  ;;  %16281 = vmatprep.subr.mxu0 %v23594_v39  ;;  %16326 = vmatprep.subr.mxu1 %v23594_v39 }
 0x430   :  { %16340 = vmatprep.mubr.msk.f32.mxu1 %vm17634_vm1, %v23594_v39 }
 0x432   :  { %16282 = vmatpush3.xpose.msra.mxu0 %v19101_v14  ;;  %16327 = vmatpush3.xpose.msra.mxu1 %v18987_v46 }
 0x433   :  { %16305 = vmatprep.subr.mxu0 %v23594_v39  ;;  %16328 = vmatprep.subr.mxu1 %v23594_v39 }
 0x435   :  { %v4365_v25 = vpop.f32.mrf.mxu0  ;;  %16284 = vmatmul.mubr.f32.vlgmr.msra.gmra.mxu0 %v5443_v50  ;;  %v17548_v50 = vld [vmem:[%s23400_s1 + $0x1c] sm:$0x3] }
 0x436   :  { %v19546_v54 = vadd.f32 %v4476_v18, %v4365_v25  ;;  %16306 = vmatpush3.xpose.msra.mxu0 %v18983_v52  ;;  %16329 = vmatpush3.xpose.msra.mxu1 %v19002_v62  ;;  %v17547_v18 = vld [vmem:[%s23400_s1 + $0x1a] sm:$0x3]  ;;  %v17549_v25 = vld [vmem:[%s23400_s1 + $0x1e] sm:$0x3] }
 0x437   :  { %v16057_v10 = vpop.f32.mrf.mxu0  ;;  %16307 = vmatprep.subr.mxu0 %v23594_v39  ;;  %16330 = vmatprep.subr.mxu1 %v23594_v39 }
 0x438   :  { %16321 = vmatprep.mubr.msk.f32.mxu0 %vm17634_vm1, %v23594_v39 }
 0x43a   :  { %16308 = vmatpush3.xpose.msra.mxu0 %v19000_v44  ;;  %16331 = vmatpush3.xpose.msra.mxu1 %v19009_v59  ;;  %v17534_v44 = vld [vmem:[%s23400_s1] sm:$0x3] }
 0x43b   :  { %16309 = vmatprep.subr.mxu0 %v23594_v39  ;;  %16332 = vmatprep.subr.mxu1 %v23594_v39 }
 0x43e   :  { %16310 = vmatpush3.xpose.msra.mxu0 %v19019_v27  ;;  %16333 = vmatpush3.xpose.msra.mxu1 %v19029_v23  ;;  %v17535_v27 = vld [vmem:[%s23400_s1 + $0x2] sm:$0x3] }
 0x43f   :  { %16311 = vmatprep.subr.mxu0 %v23594_v39  ;;  %16334 = vmatprep.subr.mxu1 %v23594_v39 }
 0x442   :  { %16312 = vmatpush3.xpose.msra.mxu0 %v19027_v56  ;;  %16335 = vmatpush3.xpose.msra.mxu1 %v19060_v1  ;;  %v6056_v56 = vcombine.low %v17534_v44, %v17535_v27  ;;  %v19665_v27 = vand.u32 4294901760, %v246_v34 }
 0x443   :  { %16313 = vmatprep.subr.mxu0 %v23594_v39  ;;  %16336 = vmatprep.subr.mxu1 %v23594_v39 }
 0x444   :  { %v6064_v29 = vrot.slane %v6056_v56, %v17753_v36  ;;  %v19667_v56 = vand.u32 4294901760, %v245_v32 }
 0x446   :  { %16314 = vmatpush3.xpose.msra.mxu0 %v19050_v31  ;;  %16337 = vmatpush3.xpose.msra.mxu1 %v19082_v8  ;;  %v17536_v31 = vld [vmem:[%s23400_s1 + $0x4] sm:$0x3] }
 0x447   :  { %16315 = vmatprep.subr.mxu0 %v23594_v39  ;;  %16338 = vmatprep.subr.mxu1 %v23594_v39 }
 0x44a   :  { %16316 = vmatpush3.xpose.msra.mxu0 %v19080_v45  ;;  %16339 = vmatpush3.xpose.msra.mxu1 %v19101_v14  ;;  %v17537_v45 = vld [vmem:[%s23400_s1 + $0x6] sm:$0x3] }
 0x44b   :  { %16317 = vmatprep.subr.mxu0 %v23594_v39  ;;  %16362 = vmatprep.subr.mxu1 %v23594_v39  ;;  %v6057_v49 = vcombine.low %v17536_v31, %v17537_v45  ;;  %v19669_v31 = vand.u32 4294901760, %v244_v28 }
 0x44d   :  { %v4645_v52 = vpop.f32.mrf.mxu1  ;;  %16341 = vmatmul.mubr.f32.vlgmr.msra.gmra.mxu1 %v5441_v51  ;;  %v6071_v55 = vrot.slane %v6057_v49, %v17753_v36  ;;  %v17546_v51 = vld [vmem:[%s23400_s1 + $0x18] sm:$0x3]  ;;  %v17551_v49 = vld [vmem:[%s23400_s1 + $0x22] sm:$0x3] }
 0x44e   :  { %16318 = vmatpush3.xpose.msra.mxu0 %v19099_v63  ;;  %16363 = vmatpush3.xpose.msra.mxu1 %v18973_v37  ;;  %v6074_v63 = vcombine.low %v17540_v58, %v17541_v57  ;;  %v247_v37 = vld [vmem:[%s23403_s4 + $0x38] sm:$0xff]  ;;  %v6107_v6 = vcombine.low %v17546_v51, %v17547_v18  ;;  %v17558_v51 = vld [vmem:[%s23400_s1 + $0x30] sm:$0x3]  ;;  %v17559_v18 = vld [vmem:[%s23400_s1 + $0x32] sm:$0x3] }
 0x44f   :  { %v16114_v61 = vpop.f32.mrf.mxu1  ;;  %16319 = vmatprep.subr.mxu0 %v23594_v39  ;;  %16364 = vmatprep.subr.mxu1 %v23594_v39  ;;  %v19627_v47 = vand.u32 4294901760, %v247_v37  ;;  %v6072_v33 = vcombine.low %v6064_v29, %v6071_v55  ;;  %v19698_v29 = vsub.f32 %v245_v32, %v19667_v56  ;;  %v19701_v55 = vsub.f32 %v244_v28, %v19669_v31 }
 0x450   :  { %16378 = vmatprep.mubr.msk.f32.mxu1 %vm17634_vm1, %v23594_v39  ;;  %v6088_v40 = vrot.slane %v6074_v63, %v17753_v36  ;;  %v6115_v57 = vrot.slane %v6107_v6, %v17753_v36  ;;  %v6158_v6 = vcombine.low %v17558_v51, %v17559_v18 }
 0x451   :  { %v19663_v44 = vsub.f32 %v247_v37, %v19627_v47  ;;  %v6328_v45 = vsel %vm294_vm0, %v6072_v33, 0  ;;  %v19695_v37 = vsub.f32 %v246_v34, %v19665_v27  ;;  %v19735_v28 = vand.u32 4294901760, %v19701_v55 }
 0x452   :  { %16320 = vmatpush3.xpose.msra.mxu0 %v19121_v43  ;;  %16365 = vmatpush3.xpose.msra.mxu1 %v18987_v46  ;;  %v17544_v46 = vld [vmem:[%s23400_s1 + $0x14] sm:$0x3]  ;;  %v17545_v43 = vld [vmem:[%s23400_s1 + $0x16] sm:$0x3] }
 0x453   :  { %16343 = vmatprep.subr.mxu0 %v23594_v39  ;;  %16366 = vmatprep.subr.mxu1 %v23594_v39  ;;  %v6091_v5 = vcombine.low %v17544_v46, %v17545_v43  ;;  %v19692_v61 = vand.u32 4294901760, %v19663_v44  ;;  %v17555_v46 = vld [vmem:[%s23400_s1 + $0x2a] sm:$0x3]  ;;  %v19729_v33 = vand.u32 4294901760, %v19695_v37 }
 0x455   :  { %v4564_v16 = vpop.f32.mrf.mxu0  ;;  %16322 = vmatmul.mubr.f32.vlgmr.msra.gmra.mxu0 %v19527_v19  ;;  %v6089_v19 = vcombine.low %v6081_v12, %v6088_v40  ;;  %v19703_v12 = vand.u32 4294901760, %v6328_v45  ;;  %v6617_v32 = vsub.f32 %v19663_v44, %v19692_v61 }
 0x456   :  { %v4565_v21 = vadd.f32 %v4564_v16, %v19546_v54  ;;  %16344 = vmatpush3.xpose.msra.mxu0 %v18995_v2  ;;  %16367 = vmatpush3.xpose.msra.mxu1 %v19002_v62  ;;  %v6098_v2 = vrot.slane %v6090_v9, %v17753_v36  ;;  %v6105_v62 = vrot.slane %v6091_v5, %v17753_v36  ;;  %v17554_v9 = vld [vmem:[%s23400_s1 + $0x28] sm:$0x3]  ;;  %v17556_v5 = vld [vmem:[%s23400_s1 + $0x2c] sm:$0x3]  ;;  %v17557_v16 = vld [vmem:[%s23400_s1 + $0x2e] sm:$0x3] }
 0x457   :  { %v16095_v3 = vpop.f32.mrf.mxu0  ;;  %16345 = vmatprep.subr.mxu0 %v23594_v39  ;;  %16368 = vmatprep.subr.mxu1 %v23594_v39  ;;  %v6108_v54 = vcombine.low %v17548_v50, %v17549_v25  ;;  %v6330_v41 = vsel %vm294_vm0, %v6089_v19, 0  ;;  %v6141_v43 = vcombine.low %v17554_v9, %v17555_v46  ;;  %v6142_v34 = vcombine.low %v17556_v5, %v17557_v16  ;;  %v17569_v9 = vld [vmem:[%s23400_s1 + $0x46] sm:$0x3] }
 0x458   :  { %16359 = vmatprep.mubr.msk.f32.mxu0 %vm17634_vm1, %v23594_v39  ;;  %v19660_v10 = vadd.f32 %v4645_v52, %v4565_v21  ;;  %v17550_v52 = vld [vmem:[%s23400_s1 + $0x20] sm:$0x3]  ;;  %v6106_v58 = vcombine.low %v6098_v2, %v6105_v62  ;;  %v19707_v40 = vand.u32 4294901760, %v6330_v41  ;;  %v19732_v21 = vand.u32 4294901760, %v19698_v29  ;;  %v17560_v3 = vld [vmem:[%s23400_s1 + $0x34] sm:$0x3] }
 0x459   :  { %v6124_v42 = vcombine.low %v17550_v52, %v17551_v49  ;;  %v6122_v63 = vrot.slane %v6108_v54, %v17753_v36  ;;  %v19738_v19 = vsub.f32 %v6328_v45, %v19703_v12  ;;  %v17561_v2 = vld [vmem:[%s23400_s1 + $0x36] sm:$0x3]  ;;  %v19760_v45 = vrot.slane %v6141_v43, %v17753_v36 }
 0x45a   :  { %16346 = vmatpush3.xpose.msra.mxu0 %v19016_v38  ;;  %16369 = vmatpush3.xpose.msra.mxu1 %v19009_v59  ;;  %v17553_v38 = vld [vmem:[%s23400_s1 + $0x26] sm:$0x3]  ;;  %v6159_v62 = vcombine.low %v17560_v3, %v17561_v2  ;;  %v19755_v50 = vsub.f32 %v6330_v41, %v19707_v40  ;;  %v6156_v49 = vrot.slane %v6142_v34, %v17753_v36  ;;  %v19778_v41 = vand.u32 4294901760, %v6617_v32 }
 0x45b   :  { %v6125_v59 = vcombine.low %v17552_v4, %v17553_v38  ;;  %16347 = vmatprep.subr.mxu0 %v23594_v39  ;;  %16370 = vmatprep.subr.mxu1 %v23594_v39  ;;  %v6132_v7 = vrot.slane %v6124_v42, %v17753_v36  ;;  %v17564_v4 = vld [vmem:[%s23400_s1 + $0x3c] sm:$0x3]  ;;  %v17565_v38 = vld [vmem:[%s23400_s1 + $0x3e] sm:$0x3]  ;;  %v6631_v43 = vsub.f32 %v19698_v29, %v19732_v21 }
 0x45c   :  { %v6166_v5 = vrot.slane %v6158_v6, %v17753_v36  ;;  %v6173_v16 = vrot.slane %v6159_v62, %v17753_v36  ;;  %v6638_v34 = vsub.f32 %v19701_v55, %v19735_v28  ;;  %v23430_v32 = vand.u32 4294901760, %v19755_v50  ;;  %v17570_v62 = vld [vmem:[%s23400_s1 + $0x48] sm:$0x3] }
 0x45d   :  { %v6139_v20 = vrot.slane %v6125_v59, %v17753_v36  ;;  %v6176_v59 = vcombine.low %v17564_v4, %v17565_v38  ;;  %v19837_v4 = vand.u32 4294901760, %v6631_v43 }
 0x45e   :  { %16348 = vmatpush3.xpose.msra.mxu0 %v19038_v13  ;;  %16371 = vmatpush3.xpose.msra.mxu1 %v19029_v23  ;;  %v6332_v23 = vsel %vm294_vm0, %v6106_v58, 0  ;;  %v6123_v13 = vcombine.low %v6115_v57, %v6122_v63  ;;  %v6624_v58 = vsub.f32 %v19695_v37, %v19729_v33  ;;  %v17566_v57 = vld [vmem:[%s23400_s1 + $0x40] sm:$0x3]  ;;  %v17567_v63 = vld [vmem:[%s23400_s1 + $0x42] sm:$0x3] }
 0x45f   :  { %16349 = vmatprep.subr.mxu0 %v23594_v39  ;;  %16372 = vmatprep.subr.mxu1 %v23594_v39  ;;  %v19757_v25 = vand.u32 4294901760, %v6332_v23  ;;  %v6140_v54 = vcombine.low %v6132_v7, %v6139_v20  ;;  %v6192_v7 = vcombine.low %v17566_v57, %v17567_v63  ;;  %v17568_v20 = vld [vmem:[%s23400_s1 + $0x44] sm:$0x3]  ;;  %v19817_v3 = vrot.slane %v6176_v59, %v17753_v36 }
 0x460   :  { %v6334_v52 = vsel %vm294_vm0, %v6123_v13, 0  ;;  %v6193_v46 = vcombine.low %v17568_v20, %v17569_v9  ;;  %v23431_v13 = vand.u32 4294901760, %v19738_v19  ;;  %v6174_v59 = vcombine.low %v6166_v5, %v6173_v16 }
 0x461   :  { %v19805_v51 = vsub.f32 %v6332_v23, %v19757_v25  ;;  %v19807_v18 = vand.u32 4294901760, %v6334_v52  ;;  %v6336_v6 = vsel %vm294_vm0, %v6140_v54, 0  ;;  %v19820_v2 = vrot.slane %v6192_v7, %v17753_v36  ;;  %v17571_v54 = vld [vmem:[%s23400_s1 + $0x4a] sm:$0x3]  ;;  %v17575_v7 = vld [vmem:[%s23400_s1 + $0x52] sm:$0x3] }
 0x462   :  { %16350 = vmatpush3.xpose.msra.mxu0 %v19047_v26  ;;  %16373 = vmatpush3.xpose.msra.mxu1 %v19060_v1  ;;  %v17562_v26 = vld [vmem:[%s23400_s1 + $0x38] sm:$0x3]  ;;  %v17563_v1 = vld [vmem:[%s23400_s1 + $0x3a] sm:$0x3]  ;;  %v19823_v23 = vrot.slane %v6193_v46, %v17753_v36  ;;  %v19842_v38 = vsub.f32 %v19738_v19, %v23431_v13  ;;  %v19846_v57 = vand.u32 4294901760, %v6638_v34  ;;  %v19871_v43 = vand.u32 4294901760, %v6336_v6 }
 0x463   :  { %16351 = vmatprep.subr.mxu0 %v23594_v39  ;;  %16374 = vmatprep.subr.mxu1 %v23594_v39  ;;  %v6175_v42 = vcombine.low %v17562_v26, %v17563_v1  ;;  %v17573_v26 = vld [vmem:[%s23400_s1 + $0x4e] sm:$0x3]  ;;  %v19849_v63 = vsub.f32 %v6334_v52, %v19807_v18  ;;  %v19868_v52 = vsub.f32 %v19755_v50, %v23430_v32  ;;  %v23428_v46 = vand.u32 4294901760, %v19805_v51 }
 0x464   :  { %v6208_v34 = vcombine.low %v19820_v2, %v19823_v23  ;;  %v17580_v23 = vld [vmem:[%s23400_s1 + $0x5c] sm:$0x3] }
 0x466   :  { %16352 = vmatpush3.xpose.msra.mxu0 %v19073_v11  ;;  %16375 = vmatpush3.xpose.msra.mxu1 %v19082_v8  ;;  %v6157_v11 = vcombine.low %v19760_v45, %v6156_v49  ;;  %v19814_v8 = vrot.slane %v6175_v42, %v17753_v36  ;;  %v6209_v45 = vcombine.low %v17570_v62, %v17571_v54  ;;  %v17572_v49 = vld [vmem:[%s23400_s1 + $0x4c] sm:$0x3]  ;;  %v6625_v42 = vand.u32 4294901760, %v6624_v58  ;;  %v17574_v58 = vld [vmem:[%s23400_s1 + $0x50] sm:$0x3] }
 0x467   :  { %16353 = vmatprep.subr.mxu0 %v23594_v39  ;;  %16376 = vmatprep.subr.mxu1 %v23594_v39  ;;  %v6210_v1 = vcombine.low %v17572_v49, %v17573_v26  ;;  %v6226_v20 = vcombine.low %v17574_v58, %v17575_v7  ;;  %v6433_v26 = vand.u32 4294901760, %v19842_v38  ;;  %v17597_v38 = vld [vmem:[%s23400_s1 + $0x7e] sm:$0x3] }
 0x468   :  { %v19874_v5 = vsel %vm294_vm0, %v6157_v11, 0  ;;  %v6191_v16 = vcombine.low %v19814_v8, %v19817_v3  ;;  %v19881_v62 = vrot.slane %v6209_v45, %v17753_v36  ;;  %v6340_v11 = vsel %vm294_vm0, %v6174_v59, 0  ;;  %v17578_v8 = vld [vmem:[%s23400_s1 + $0x58] sm:$0x3]  ;;  %v17579_v3 = vld [vmem:[%s23400_s1 + $0x5a] sm:$0x3] }
 0x469   :  { %v19884_v54 = vrot.slane %v6210_v1, %v17753_v36  ;;  %v6243_v2 = vcombine.low %v17578_v8, %v17579_v3  ;;  %v17581_v45 = vld [vmem:[%s23400_s1 + $0x5e] sm:$0x3]  ;;  %v23429_v59 = vand.u32 4294901760, %v19849_v63  ;;  %v6234_v58 = vrot.slane %v6226_v20, %v17753_v36 }
 0x46a   :  { %16354 = vmatpush3.xpose.msra.mxu0 %v19096_v53  ;;  %16377 = vmatpush3.xpose.msra.mxu1 %v19101_v14  ;;  %v17576_v53 = vld [vmem:[%s23400_s1 + $0x54] sm:$0x3]  ;;  %v17577_v14 = vld [vmem:[%s23400_s1 + $0x56] sm:$0x3]  ;;  %v6244_v1 = vcombine.low %v17580_v23, %v17581_v45  ;;  %v19924_v20 = vand.u32 4294901760, %v19874_v5 }
 0x46b   :  { %v6227_v9 = vcombine.low %v17576_v53, %v17577_v14  ;;  %16355 = vmatprep.subr.mxu0 %v23594_v39  ;;  %16413 = vmatprep.subr.mxu1 %v19778_v41  ;;  %v17582_v53 = vld [vmem:[%s23400_s1 + $0x60] sm:$0x3]  ;;  %v17583_v14 = vld [vmem:[%s23400_s1 + $0x62] sm:$0x3]  ;;  %v17585_v23 = vld [vmem:[%s23400_s1 + $0x66] sm:$0x3] }
 0x46c   :  { %v6260_v8 = vcombine.low %v17582_v53, %v17583_v14  ;;  %v19933_v53 = vand.u32 4294901760, %v6340_v11  ;;  %v19937_v14 = vsel %vm294_vm0, %v6208_v34, 0 }
 0x46d   :  { %v19886_v49 = vpop.f32.mrf.mxu1  ;;  %16379 = vmatmul.mubr.f32.vlgmr.msra.gmra.mxu1 %v19520_v30  ;;  %v6241_v7 = vrot.slane %v6227_v9, %v17753_v36  ;;  %v17584_v9 = vld [vmem:[%s23400_s1 + $0x64] sm:$0x3] }
 0x46e   :  { %16356 = vmatpush3.xpose.msra.mxu0 %v19118_v22  ;;  %16414 = vmatpush3.msra.mxu1 %v19778_v41  ;;  %v19918_v22 = vsub.f32 %v19805_v51, %v23428_v46  ;;  %v19921_v41 = vsub.f32 %v6336_v6, %v19871_v43  ;;  %v6261_v45 = vcombine.low %v17584_v9, %v17585_v23  ;;  %v6342_v6 = vsel %vm294_vm0, %v6191_v16, 0  ;;  %v17587_v16 = vld [vmem:[%s23400_s1 + $0x6a] sm:$0x3] }
 0x46f   :  { %v16152_v3 = vpop.f32.mrf.mxu1  ;;  %16357 = vmatprep.subr.mxu0 %v23594_v39  ;;  %16415 = vmatprep.subr.mxu1 %v6625_v42  ;;  %v19943_v46 = vrot.slane %v6243_v2, %v17753_v36  ;;  %v19946_v9 = vrot.slane %v6244_v1, %v17753_v36  ;;  %v19966_v23 = vsub.f32 %v19849_v63, %v23429_v59  ;;  %v19993_v13 = vand.u32 4294901760, %v6342_v6 }
 0x470   :  { %16416 = vmatpush3.msra.mxu1 %v6625_v42  ;;  %16421 = vmatprep.mubr.f32.mxu1 %v19703_v12  ;;  %v6225_v3 = vcombine.low %v19881_v62, %v19884_v54  ;;  %v17586_v42 = vld [vmem:[%s23400_s1 + $0x68] sm:$0x3]  ;;  %v17588_v62 = vld [vmem:[%s23400_s1 + $0x6c] sm:$0x3]  ;;  %v17589_v54 = vld [vmem:[%s23400_s1 + $0x6e] sm:$0x3]  ;;  %v19991_v32 = vsub.f32 %v6340_v11, %v19933_v53 }
 0x471   :  { %16417 = vmatprep.subr.mxu1 %v19837_v4  ;;  %v6277_v34 = vcombine.low %v17586_v42, %v17587_v16  ;;  %v6278_v2 = vcombine.low %v17588_v62, %v17589_v54  ;;  %v6242_v42 = vcombine.low %v6234_v58, %v6241_v7  ;;  %v6268_v16 = vrot.slane %v6260_v8, %v17753_v36  ;;  %v17591_v54 = vld [vmem:[%s23400_s1 + $0x72] sm:$0x3]  ;;  %v17592_v58 = vld [vmem:[%s23400_s1 + $0x74] sm:$0x3]  ;;  %v17593_v7 = vld [vmem:[%s23400_s1 + $0x76] sm:$0x3] }
 0x472   :  { %16358 = vmatpush3.xpose.msra.mxu0 %v19132_v0  ;;  %16418 = vmatpush3.msra.mxu1 %v19837_v4  ;;  %v23432_v62 = vand.u32 4294901760, %v19921_v41  ;;  %v6275_v0 = vrot.slane %v6261_v45, %v17753_v36  ;;  %v17590_v4 = vld [vmem:[%s23400_s1 + $0x70] sm:$0x3]  ;;  %v6295_v8 = vcombine.low %v17592_v58, %v17593_v7  ;;  %v19988_v45 = vsub.f32 %v19874_v5, %v19924_v20 }
 0x473   :  { %16381 = vmatprep.subr.mxu0 %v19627_v47  ;;  %16419 = vmatprep.subr.mxu1 %v19846_v57  ;;  %v6294_v59 = vcombine.low %v17590_v4, %v17591_v54  ;;  %v19996_v4 = vand.u32 4294901760, %v19937_v14  ;;  %v6346_v58 = vsel %vm294_vm0, %v6225_v3, 0  ;;  %v6285_v5 = vrot.slane %v6277_v34, %v17753_v36  ;;  %v17594_v3 = vld [vmem:[%s23400_s1 + $0x78] sm:$0x3] }
 0x474   :  { %16420 = vmatpush3.msra.mxu1 %v19846_v57  ;;  %v6259_v57 = vcombine.low %v19943_v46, %v19946_v9  ;;  %v6292_v11 = vrot.slane %v6278_v2, %v17753_v36  ;;  %v17595_v46 = vld [vmem:[%s23400_s1 + $0x7a] sm:$0x3]  ;;  %v6453_v2 = vand.u32 4294901760, %v19918_v22  ;;  %v6463_v1 = vand.u32 4294901760, %v19966_v23 }
 0x475   :  { %v4740_v54 = vpop.f32.mrf.mxu0  ;;  %16360 = vmatmul.mubr.f32.vlgmr.msra.gmra.mxu0 %v19520_v30  ;;  %16422 = vmatmul.mubr.f32.vlgmr.msra.gmra.mxu1 %v19707_v40  ;;  %v6348_v30 = vsel %vm294_vm0, %v6242_v42, 0  ;;  %v6311_v9 = vcombine.low %v17594_v3, %v17595_v46  ;;  %v6276_v42 = vcombine.low %v6268_v16, %v6275_v0  ;;  %v6309_v3 = vrot.slane %v6295_v8, %v17753_v36 }
 0x476   :  { %v4741_v7 = vadd.f32 %v4740_v54, %v19660_v10  ;;  %16382 = vmatpush3.msra.mxu0 %v19627_v47  ;;  %16389 = vmatprep.mubr.f32.mxu0 %v6433_v26  ;;  %v17596_v10 = vld [vmem:[%s23400_s1 + $0x7c] sm:$0x3]  ;;  %v6302_v54 = vrot.slane %v6294_v59, %v17753_v36  ;;  %v23434_v46 = vand.u32 4294901760, %v19988_v45  ;;  %v6472_v59 = vsub.f32 %v19921_v41, %v23432_v62 }
 0x477   :  { %v6312_v26 = vcombine.low %v17596_v10, %v17597_v38  ;;  %v16133_v34 = vpop.f32.mrf.mxu0  ;;  %16383 = vmatprep.subr.mxu0 %v19665_v27  ;;  %16477 = vmatprep.subr.mxu1 %v19627_v47  ;;  %v23433_v10 = vand.u32 4294901760, %v19991_v32  ;;  %v20032_v38 = vsub.f32 %v6342_v6, %v19993_v13  ;;  %v20044_v22 = vsub.f32 %v19937_v14, %v19996_v4 }
 0x478   :  { %16384 = vmatpush3.msra.mxu0 %v19665_v27  ;;  %16424 = vmatprep.mubr.f32.mxu1 %v19757_v25  ;;  %v20035_v34 = vadd.f32 %v19886_v49, %v4741_v7  ;;  %v20046_v16 = vand.u32 4294901760, %v6346_v58  ;;  %v20048_v0 = vand.u32 4294901760, %v6348_v30  ;;  %v6350_v49 = vsel %vm294_vm0, %v6259_v57, 0 }
 0x479   :  { %16385 = vmatprep.subr.mxu0 %v19667_v56  ;;  %16478 = vmatpush3.msra.mxu1 %v19627_v47  ;;  %v6293_v6 = vcombine.low %v6285_v5, %v6292_v11  ;;  %v6319_v8 = vrot.slane %v6311_v9, %v17753_v36  ;;  %v6326_v7 = vrot.slane %v6312_v26, %v17753_v36  ;;  %v6352_v14 = vsel %vm294_vm0, %v6276_v42, 0 }
 0x47a   :  { %23620 = vst [vmem:[#allocation6_spill] sm:$0xff] %v20035_v34  ;;  %16386 = vmatpush3.msra.mxu0 %v19667_v56  ;;  %16425 = vmatmul.mubr.f32.gmra.mxu1 %v19807_v18  ;;  %v6310_v62 = vcombine.low %v6302_v54, %v6309_v3  ;;  %v6482_v57 = vsub.f32 %v19988_v45, %v23434_v46  ;;  %v6501_v11 = vand.u32 4294901760, %v20032_v38  ;;  %v23621_v9 = vand.u32 4294901760, %v19868_v52 }
 0x47b   :  { %16387 = vmatprep.subr.mxu0 %v19669_v31  ;;  %16427 = vmatprep.mubr.f32.mxu1 %v19871_v43  ;;  %v6492_v5 = vsub.f32 %v19991_v32, %v23433_v10  ;;  %v6473_v26 = vand.u32 4294901760, %v6472_v59  ;;  %v23441_v23 = vand.u32 4294901760, %v20044_v22  ;;  %v20073_v42 = vsub.f32 %v6346_v58, %v20046_v16 }
 0x47c   :  { %16388 = vmatpush3.msra.mxu0 %v19669_v31  ;;  %16479 = vmatprep.subr.mxu1 %v19665_v27  ;;  %v20075_v54 = vand.u32 4294901760, %v6350_v49  ;;  %v20079_v3 = vsub.f32 %v6348_v30, %v20048_v0  ;;  %v20081_v10 = vand.u32 4294901760, %v6352_v14  ;;  %v6354_v52 = vsel %vm294_vm0, %v6293_v6, 0 }
 0x47d   :  { %16390 = vmatmul.mubr.f32.vlgmr.msra.gmra.mxu0 %v23621_v9  ;;  %16445 = vmatprep.subr.mxu0 %v19663_v44  ;;  %v6327_v9 = vcombine.low %v6319_v8, %v6326_v7  ;;  %v6356_v58 = vsel %vm294_vm0, %v6310_v62, 0  ;;  %v6483_v59 = vand.u32 4294901760, %v6482_v57  ;;  %v6493_v46 = vand.u32 4294901760, %v6492_v5 }
 0x47e   :  { %16446 = vmatpush3.msra.mxu0 %v19663_v44  ;;  %16392 = vmatprep.mubr.f32.mxu0 %v6453_v2  ;;  %v6502_v44 = vsub.f32 %v20032_v38, %v6501_v11  ;;  %v6512_v30 = vsub.f32 %v20044_v22, %v23441_v23  ;;  %v23438_v2 = vand.u32 4294901760, %v20073_v42  ;;  %v20098_v62 = vsub.f32 %v6350_v49, %v20075_v54 }
 0x47f   :  { %16428 = vmatmul.mubr.f32.gmra.mxu1 %v19924_v20  ;;  %16447 = vmatprep.subr.mxu0 %v19695_v37  ;;  %v23435_v6 = vand.u32 4294901760, %v20079_v3  ;;  %v20107_v8 = vand.u32 4294901760, %v6356_v58  ;;  %v6358_v7 = vsel %vm294_vm0, %v6327_v9, 0 }
 0x480   :  { %16448 = vmatpush3.msra.mxu0 %v19695_v37  ;;  %16430 = vmatprep.mubr.f32.mxu1 %v19933_v53  ;;  %v20100_v37 = vand.u32 4294901760, %v6354_v52  ;;  %v6503_v49 = vand.u32 4294901760, %v6502_v44  ;;  %v6522_v57 = vsub.f32 %v20073_v42, %v23438_v2 }
 0x481   :  { %16393 = vmatmul.mubr.f32.gmra.mxu0 %v6463_v1  ;;  %16480 = vmatpush3.msra.mxu1 %v19665_v27  ;;  %v20105_v1 = vsub.f32 %v6352_v14, %v20081_v10  ;;  %v23437_v14 = vand.u32 4294901760, %v20098_v62  ;;  %v6532_v9 = vsub.f32 %v20079_v3, %v23435_v6  ;;  %v20130_v44 = vsub.f32 %v6356_v58, %v20107_v8 }
 0x482   :  { %16395 = vmatprep.mubr.f32.mxu0 %v6473_v26  ;;  %16449 = vmatprep.subr.mxu0 %v19698_v29  ;;  %v20120_v5 = vsub.f32 %v6354_v52, %v20100_v37  ;;  %v20122_v26 = vand.u32 4294901760, %v6358_v7 }
 0x483   :  { %16431 = vmatmul.mubr.f32.gmra.mxu1 %v19993_v13  ;;  %16450 = vmatpush3.msra.mxu0 %v19698_v29  ;;  %v6513_v29 = vand.u32 4294901760, %v6512_v30  ;;  %v6542_v52 = vsub.f32 %v20098_v62, %v23437_v14  ;;  %v6533_v6 = vand.u32 4294901760, %v6532_v9 }
 0x484   :  { %16433 = vmatprep.mubr.f32.mxu1 %v19996_v4  ;;  %16481 = vmatprep.subr.mxu1 %v19667_v56  ;;  %v23439_v30 = vand.u32 4294901760, %v20120_v5  ;;  %v20142_v58 = vsub.f32 %v6358_v7, %v20122_v26 }
 0x485   :  { %16396 = vmatmul.mubr.f32.gmra.mxu0 %v6483_v59  ;;  %16482 = vmatpush3.msra.mxu1 %v19667_v56  ;;  %v23436_v59 = vand.u32 4294901760, %v20105_v1  ;;  %v6543_v7 = vand.u32 4294901760, %v6542_v52 }
 0x486   :  { %16398 = vmatprep.mubr.f32.mxu0 %v6493_v46  ;;  %16451 = vmatprep.subr.mxu0 %v19701_v55  ;;  %v6523_v46 = vand.u32 4294901760, %v6522_v57  ;;  %v6581_v9 = vand.u32 4294901760, %v20142_v58 }
 0x487   :  { %16434 = vmatmul.mubr.f32.gmra.mxu1 %v20046_v16  ;;  %16452 = vmatpush3.msra.mxu0 %v19701_v55  ;;  %v6552_v55 = vsub.f32 %v20105_v1, %v23436_v59 }
 0x488   :  { %16436 = vmatprep.mubr.f32.mxu1 %v20048_v0  ;;  %16483 = vmatprep.subr.mxu1 %v19669_v31  ;;  %v6582_v52 = vsub.f32 %v20142_v58, %v6581_v9 }
 0x489   :  { %16399 = vmatmul.mubr.f32.gmra.mxu0 %v6503_v49  ;;  %16484 = vmatpush3.msra.mxu1 %v19669_v31  ;;  %v23440_v49 = vand.u32 4294901760, %v20130_v44  ;;  %v6553_v59 = vand.u32 4294901760, %v6552_v55 }
 0x48a   :  { %16401 = vmatprep.mubr.f32.mxu0 %v6513_v29  ;;  %16509 = vmatprep.subr.mxu0 %v19692_v61  ;;  %v6562_v29 = vsub.f32 %v20120_v5, %v23439_v30 }
 0x48b   :  { %16437 = vmatmul.mubr.f32.gmra.mxu1 %v20075_v54  ;;  %16541 = vmatprep.subr.mxu1 %v19627_v47  ;;  %v6572_v14 = vsub.f32 %v20130_v44, %v23440_v49 }
 0x48c   :  { %16439 = vmatprep.mubr.f32.mxu1 %v20081_v10 }
 0x48d   :  { %v5016_v57 = vpop.f32.mrf.mxu1  ;;  %16402 = vmatmul.mubr.f32.gmra.mxu0 %v6523_v46  ;;  %v6563_v46 = vand.u32 4294901760, %v6562_v29  ;;  %v6573_v30 = vand.u32 4294901760, %v6572_v14  ;;  %v23624_v29 = vand.u32 4294901760, %v19805_v51  ;;  %v23625_v14 = vand.u32 4294901760, %v19849_v63 }
 0x48e   :  { %16404 = vmatprep.mubr.f32.mxu0 %v6533_v6  ;;  %v23622_v6 = vand.u32 4294901760, %v19738_v19 }
 0x48f   :  { %v16190_v2 = vpop.f32.mrf.mxu1  ;;  %16440 = vmatmul.mubr.f32.gmra.mxu1 %v20100_v37 }
 0x490   :  { %16442 = vmatprep.mubr.f32.mxu1 %v20107_v8  ;;  %v6583_v2 = vand.u32 4294901760, %v6582_v52 }
 0x491   :  { %16405 = vmatmul.mubr.f32.gmra.mxu0 %v6543_v7  ;;  %v23623_v7 = vand.u32 4294901760, %v19755_v50 }
 0x492   :  { %16407 = vmatprep.mubr.f32.mxu0 %v6553_v59 }
 0x493   :  { %16443 = vmatmul.mubr.f32.gmra.mxu1 %v20122_v26 }
 0x494   :  { %16485 = vmatprep.mubr.f32.mxu1 %v23622_v6 }
 0x495   :  { %v4905_v55 = vpop.f32.mrf.mxu0  ;;  %16408 = vmatmul.mubr.f32.gmra.mxu0 %v6563_v46 }
 0x496   :  { %v5017_v49 = vadd.f32 %v5016_v57, %v4905_v55  ;;  %16410 = vmatprep.mubr.f32.mxu0 %v6573_v30 }
 0x497   :  { %v16171_v23 = vpop.f32.mrf.mxu0  ;;  %16486 = vmatmul.mubr.f32.vlgmr.msra.gmra.mxu1 %v23623_v7 }
 0x498   :  { %16542 = vmatpush3.msra.mxu1 %v19627_v47  ;;  %16488 = vmatprep.mubr.f32.mxu1 %v23624_v29  ;;  %v23626_v23 = vand.u32 4294901760, %v19921_v41  ;;  %v23627_v47 = vand.u32 4294901760, %v19988_v45 }
 0x499   :  { %16411 = vmatmul.mubr.f32.gmra.mxu0 %v6583_v2  ;;  %16543 = vmatprep.subr.mxu1 %v19665_v27 }
 0x49a   :  { %16453 = vmatprep.mubr.f32.mxu0 %v19738_v19  ;;  %16544 = vmatpush3.msra.mxu1 %v19665_v27  ;;  %v23628_v27 = vand.u32 4294901760, %v19991_v32 }
 0x49b   :  { %16489 = vmatmul.mubr.f32.gmra.mxu1 %v23625_v14  ;;  %16545 = vmatprep.subr.mxu1 %v19667_v56 }
 0x49c   :  { %16491 = vmatprep.mubr.f32.mxu1 %v23626_v23  ;;  %16546 = vmatpush3.msra.mxu1 %v19667_v56  ;;  %v23629_v56 = vand.u32 4294901760, %v20044_v22 }
 0x49d   :  { %16454 = vmatmul.mubr.f32.vlgmr.msra.gmra.mxu0 %v19755_v50  ;;  %16547 = vmatprep.subr.mxu1 %v19669_v31  ;;  %v23634_v50 = vand.u32 4294901760, %v20120_v5 }
 0x49e   :  { %16510 = vmatpush3.msra.mxu0 %v19692_v61  ;;  %16456 = vmatprep.mubr.f32.mxu0 %v19805_v51  ;;  %v23630_v61 = vand.u32 4294901760, %v20073_v42 }
 0x49f   :  { %16511 = vmatprep.subr.mxu0 %v19729_v33  ;;  %16492 = vmatmul.mubr.f32.gmra.mxu1 %v23627_v47 }
 0x4a0   :  { %16512 = vmatpush3.msra.mxu0 %v19729_v33  ;;  %16494 = vmatprep.mubr.f32.mxu1 %v23628_v27  ;;  %v23631_v33 = vand.u32 4294901760, %v20079_v3 }
 0x4a1   :  { %16457 = vmatmul.mubr.f32.gmra.mxu0 %v19849_v63  ;;  %16513 = vmatprep.subr.mxu0 %v19732_v21 }
 0x4a2   :  { %16459 = vmatprep.mubr.f32.mxu0 %v19921_v41  ;;  %16514 = vmatpush3.msra.mxu0 %v19732_v21  ;;  %v23632_v21 = vand.u32 4294901760, %v20098_v62 }
 0x4a3   :  { %16495 = vmatmul.mubr.f32.gmra.mxu1 %v6501_v11  ;;  %16515 = vmatprep.subr.mxu0 %v19735_v28 }
 0x4a4   :  { %16497 = vmatprep.mubr.f32.mxu1 %v23629_v56  ;;  %16516 = vmatpush3.msra.mxu0 %v19735_v28 }
 0x4a5   :  { %16460 = vmatmul.mubr.f32.gmra.mxu0 %v19988_v45  ;;  %16548 = vmatpush3.msra.mxu1 %v19669_v31  ;;  %v23633_v31 = vand.u32 4294901760, %v20105_v1 }
 0x4a6   :  { %16462 = vmatprep.mubr.f32.mxu0 %v19991_v32  ;;  %16573 = vmatprep.subr.mxu0 %v23594_v39  ;;  %v23635_v32 = vand.u32 4294901760, %v20130_v44 }
 0x4a7   :  { %16498 = vmatmul.mubr.f32.gmra.mxu1 %v23630_v61  ;;  %16592 = vmatprep.subr.mxu1 %v23594_v39 }
 0x4a8   :  { %16500 = vmatprep.mubr.f32.mxu1 %v23631_v33 }
 0x4a9   :  { %16463 = vmatmul.mubr.f32.gmra.mxu0 %v20032_v38 }
 0x4aa   :  { %16465 = vmatprep.mubr.f32.mxu0 %v20044_v22 }
 0x4ab   :  { %16501 = vmatmul.mubr.f32.gmra.mxu1 %v23632_v21 }
 0x4ac   :  { %16503 = vmatprep.mubr.f32.mxu1 %v23633_v31 }
 0x4ad   :  { %v5185_v28 = vpop.f32.mrf.mxu1  ;;  %16466 = vmatmul.mubr.f32.gmra.mxu0 %v20073_v42 }
 0x4ae   :  { %16468 = vmatprep.mubr.f32.mxu0 %v20079_v3 }
 0x4af   :  { %v16228_v19 = vpop.f32.mrf.mxu1  ;;  %16504 = vmatmul.mubr.f32.gmra.mxu1 %v23634_v50 }
 0x4b0   :  { %16506 = vmatprep.mubr.f32.mxu1 %v23635_v32 }
 0x4b1   :  { %16469 = vmatmul.mubr.f32.gmra.mxu0 %v20098_v62 }
 0x4b2   :  { %16471 = vmatprep.mubr.f32.mxu0 %v20105_v1 }
 0x4b3   :  { %16507 = vmatmul.mubr.f32.gmra.mxu1 %v6581_v9 }
 0x4b4   :  { %16549 = vmatprep.mubr.f32.mxu1 %v19703_v12 }
 0x4b5   :  { %v5104_v51 = vpop.f32.mrf.mxu0  ;;  %16472 = vmatmul.mubr.f32.gmra.mxu0 %v20120_v5 }
 0x4b6   :  { %v5105_v63 = vadd.f32 %v5104_v51, %v5017_v49  ;;  %16474 = vmatprep.mubr.f32.mxu0 %v20130_v44 }
 0x4b7   :  { %v16209_v41 = vpop.f32.mrf.mxu0  ;;  %16550 = vmatmul.mubr.f32.vlgmr.msra.gmra.mxu1 %v19707_v40 }
 0x4b8   :  { %16552 = vmatprep.mubr.f32.mxu1 %v19757_v25  ;;  %v5186_v45 = vadd.f32 %v5185_v28, %v5105_v63 }
 0x4b9   :  { %16475 = vmatmul.mubr.f32.gmra.mxu0 %v20142_v58 }
 0x4ba   :  { %16517 = vmatprep.mubr.f32.mxu0 %v19703_v12 }
 0x4bb   :  { %16553 = vmatmul.mubr.f32.gmra.mxu1 %v19807_v18 }
 0x4bc   :  { %16555 = vmatprep.mubr.f32.mxu1 %v19871_v43 }
 0x4bd   :  { %16518 = vmatmul.mubr.f32.vlgmr.msra.gmra.mxu0 %v19707_v40 }
 0x4be   :  { %16520 = vmatprep.mubr.f32.mxu0 %v19757_v25 }
 0x4bf   :  { %16556 = vmatmul.mubr.f32.gmra.mxu1 %v19924_v20 }
 0x4c0   :  { %16558 = vmatprep.mubr.f32.mxu1 %v19933_v53 }
 0x4c1   :  { %16521 = vmatmul.mubr.f32.gmra.mxu0 %v19807_v18 }
 0x4c2   :  { %16523 = vmatprep.mubr.f32.mxu0 %v19871_v43 }
 0x4c3   :  { %16559 = vmatmul.mubr.f32.gmra.mxu1 %v19993_v13 }
 0x4c4   :  { %16561 = vmatprep.mubr.f32.mxu1 %v19996_v4 }
 0x4c5   :  { %16524 = vmatmul.mubr.f32.gmra.mxu0 %v19924_v20 }
 0x4c6   :  { %16526 = vmatprep.mubr.f32.mxu0 %v19933_v53 }
 0x4c7   :  { %16562 = vmatmul.mubr.f32.gmra.mxu1 %v20046_v16 }
 0x4c8   :  { %16564 = vmatprep.mubr.f32.mxu1 %v20048_v0 }
 0x4c9   :  { %16527 = vmatmul.mubr.f32.gmra.mxu0 %v19993_v13 }
 0x4ca   :  { %16529 = vmatprep.mubr.f32.mxu0 %v19996_v4 }
 0x4cb   :  { %16565 = vmatmul.mubr.f32.gmra.mxu1 %v20075_v54 }
 0x4cc   :  { %16567 = vmatprep.mubr.f32.mxu1 %v20081_v10 }
 0x4cd   :  { %v5359_v12 = vpop.f32.mrf.mxu1  ;;  %16530 = vmatmul.mubr.f32.gmra.mxu0 %v20046_v16 }
 0x4ce   :  { %16532 = vmatprep.mubr.f32.mxu0 %v20048_v0 }
 0x4cf   :  { %v16266_v40 = vpop.f32.mrf.mxu1  ;;  %16568 = vmatmul.mubr.f32.gmra.mxu1 %v20100_v37 }
 0x4d0   :  { %16570 = vmatprep.mubr.f32.mxu1 %v20107_v8 }
 0x4d1   :  { %16533 = vmatmul.mubr.f32.gmra.mxu0 %v20075_v54 }
 0x4d2   :  { %16535 = vmatprep.mubr.f32.mxu0 %v20081_v10 }
 0x4d3   :  { %16571 = vmatmul.mubr.f32.gmra.mxu1 %v20122_v26 }
 0x4d4   :  { %16608 = vmatprep.mubr.msk.f32.mxu1 %vm17634_vm1, %v23594_v39 }
 0x4d5   :  { %v5280_v25 = vpop.f32.mrf.mxu0  ;;  %16536 = vmatmul.mubr.f32.gmra.mxu0 %v20100_v37 }
 0x4d6   :  { %v5281_v13 = vadd.f32 %v5280_v25, %v5186_v45  ;;  %16538 = vmatprep.mubr.f32.mxu0 %v20107_v8 }
 0x4d7   :  { %v16247_v18 = vpop.f32.mrf.mxu0 }
 0x4d8   :  { %v20262_v43 = vadd.f32 %v5359_v12, %v5281_v13 }
 0x4d9   :  { %16539 = vmatmul.mubr.f32.gmra.mxu0 %v20122_v26 }
 0x4da   :  { %23636 = vst [vmem:[#allocation9_spill] sm:$0xff] %v20262_v43  ;;  %16589 = vmatprep.mubr.msk.f32.mxu0 %vm17634_vm1, %v23594_v39 }
 0x4ed   :  { %v5556_v20 = vpop.f32.mrf.mxu1 }
 0x4ef   :  { %v16304_v53 = vpop.f32.mrf.mxu1 }
 0x4f5   :  { %v5445_v4 = vpop.f32.mrf.mxu0 }
 0x4f6   :  { %v5557_v10 = vadd.f32 %v5556_v20, %v5445_v4 }
 0x4f7   :  { %v16285_v38 = vpop.f32.mrf.mxu0 }
 0x50d   :  { %v5725_v22 = vpop.f32.mrf.mxu1 }
 0x50f   :  { %v16342_v16 = vpop.f32.mrf.mxu1 }
 0x515   :  { %v5644_v0 = vpop.f32.mrf.mxu0 }
 0x516   :  { %v5645_v11 = vadd.f32 %v5644_v0, %v5557_v10 }
 0x517   :  { %v16323_v42 = vpop.f32.mrf.mxu0 }
 0x518   :  { %v5726_v54 = vadd.f32 %v5725_v22, %v5645_v11 }
 0x52d   :  { %v5899_v3 = vpop.f32.mrf.mxu1 }
 0x52f   :  { %v16380_v62 = vpop.f32.mrf.mxu1 }
 0x535   :  { %v5820_v37 = vpop.f32.mrf.mxu0  ;;  %v16423_v1 = vpop.f32.mrf.mxu1 }
 0x536   :  { %v5821_v8 = vadd.f32 %v5820_v37, %v5726_v54 }
 0x537   :  { %v16361_v5 = vpop.f32.mrf.mxu0  ;;  %v6676_v26 = vpop.f32.mrf.mxu1 }
 0x538   :  { %v20267_v59 = vadd.f32 %v5899_v3, %v5821_v8 }
 0x53a   :  { %23637 = vst [vmem:[#allocation8_spill] sm:$0xff] %v20267_v59  ;;  %v16426_v44 = vpop.f32.mrf.mxu1 }
 0x53c   :  { %v6688_v30 = vpop.f32.mrf.mxu1 }
 0x53d   :  { %v16391_v58 = vpop.f32.mrf.mxu0 }
 0x53e   :  { %v6683_v49 = vadd.f32 %v16423_v1, %v16391_v58 }
 0x53f   :  { %v6435_v57 = vpop.f32.mrf.mxu0  ;;  %v16429_v9 = vpop.f32.mrf.mxu1 }
 0x540   :  { %v6677_v46 = vadd.f32 %v6676_v26, %v6435_v57 }
 0x541   :  { %v16394_v52 = vpop.f32.mrf.mxu0  ;;  %v6700_v6 = vpop.f32.mrf.mxu1 }
 0x542   :  { %v6695_v55 = vadd.f32 %v16426_v44, %v16394_v52 }
 0x543   :  { %v6455_v2 = vpop.f32.mrf.mxu0  ;;  %v20269_v7 = vpop.f32.mrf.mxu1 }
 0x544   :  { %v6689_v29 = vadd.f32 %v6688_v30, %v6455_v2 }
 0x545   :  { %v16397_v14 = vpop.f32.mrf.mxu0  ;;  %v20271_v23 = vpop.f32.mrf.mxu1 }
 0x546   :  { %v20273_v47 = vadd.f32 %v16429_v9, %v16397_v14 }
 0x547   :  { %v6475_v27 = vpop.f32.mrf.mxu0  ;;  %v16435_v56 = vpop.f32.mrf.mxu1 }
 0x548   :  { %v20275_v61 = vadd.f32 %v6700_v6, %v6475_v27 }
 0x549   :  { %v20277_v33 = vpop.f32.mrf.mxu0  ;;  %v20279_v21 = vpop.f32.mrf.mxu1 }
 0x54b   :  { %v20281_v31 = vpop.f32.mrf.mxu0  ;;  %v16438_v28 = vpop.f32.mrf.mxu1 }
 0x54d   :  { %v16403_v19 = vpop.f32.mrf.mxu0  ;;  %v6736_v50 = vpop.f32.mrf.mxu1 }
 0x54e   :  { %v20283_v32 = vadd.f32 %v16435_v56, %v16403_v19 }
 0x54f   :  { %v20285_v51 = vpop.f32.mrf.mxu0  ;;  %v16441_v63 = vpop.f32.mrf.mxu1 }
 0x551   :  { %v16406_v41 = vpop.f32.mrf.mxu0  ;;  %v20287_v45 = vpop.f32.mrf.mxu1 }
 0x552   :  { %v20289_v12 = vadd.f32 %v16438_v28, %v16406_v41 }
 0x553   :  { %v6535_v40 = vpop.f32.mrf.mxu0  ;;  %v16444_v25 = vpop.f32.mrf.mxu1 }
 0x554   :  { %v6737_v13 = vadd.f32 %v6736_v50, %v6535_v40 }
 0x555   :  { %v16409_v18 = vpop.f32.mrf.mxu0  ;;  %v6760_v20 = vpop.f32.mrf.mxu1 }
 0x556   :  { %v6755_v53 = vadd.f32 %v16441_v63, %v16409_v18 }
 0x557   :  { %v20291_v4 = vpop.f32.mrf.mxu0  ;;  %v16487_v10 = vpop.f32.mrf.mxu1 }
 0x559   :  { %v16412_v38 = vpop.f32.mrf.mxu0  ;;  %v7028_v22 = vpop.f32.mrf.mxu1 }
 0x55a   :  { %v6767_v16 = vadd.f32 %v16444_v25, %v16412_v38 }
 0x55b   :  { %v6575_v0 = vpop.f32.mrf.mxu0  ;;  %v16490_v11 = vpop.f32.mrf.mxu1 }
 0x55c   :  { %v6761_v42 = vadd.f32 %v6760_v20, %v6575_v0 }
 0x55d   :  { %v16455_v54 = vpop.f32.mrf.mxu0  ;;  %v7044_v3 = vpop.f32.mrf.mxu1 }
 0x55e   :  { %v6854_v62 = vadd.f32 %v16455_v54, %v6683_v49 }
 0x55f   :  { %v6846_v37 = vpop.f32.mrf.mxu0  ;;  %v20293_v1 = vpop.f32.mrf.mxu1 }
 0x560   :  { %v7037_v8 = vadd.f32 %v16487_v10, %v6854_v62  ;;  %v6847_v5 = vadd.f32 %v6846_v37, %v6677_v46 }
 0x561   :  { %v16458_v26 = vpop.f32.mrf.mxu0  ;;  %v20295_v44 = vpop.f32.mrf.mxu1 }
 0x562   :  { %v7029_v30 = vadd.f32 %v7028_v22, %v6847_v5  ;;  %v6868_v58 = vadd.f32 %v16458_v26, %v6695_v55 }
 0x563   :  { %v6860_v57 = vpop.f32.mrf.mxu0  ;;  %v16496_v9 = vpop.f32.mrf.mxu1 }
 0x564   :  { %v20297_v52 = vadd.f32 %v16490_v11, %v6868_v58  ;;  %v6861_v6 = vadd.f32 %v6860_v57, %v6689_v29 }
 0x565   :  { %v20299_v2 = vpop.f32.mrf.mxu0  ;;  %v7076_v14 = vpop.f32.mrf.mxu1 }
 0x566   :  { %v20301_v27 = vadd.f32 %v7044_v3, %v6861_v6 }
 0x567   :  { %v20303_v49 = vpop.f32.mrf.mxu0  ;;  %v20305_v56 = vpop.f32.mrf.mxu1 }
 0x569   :  { %v16464_v46 = vpop.f32.mrf.mxu0  ;;  %v7092_v28 = vpop.f32.mrf.mxu1 }
 0x56b   :  { %v6888_v19 = vpop.f32.mrf.mxu0  ;;  %v20307_v50 = vpop.f32.mrf.mxu1 }
 0x56d   :  { %v20309_v55 = vpop.f32.mrf.mxu0  ;;  %v7108_v63 = vpop.f32.mrf.mxu1 }
 0x56f   :  { %v6902_v41 = vpop.f32.mrf.mxu0  ;;  %v16505_v40 = vpop.f32.mrf.mxu1 }
 0x571   :  { %v20311_v29 = vpop.f32.mrf.mxu0  ;;  %v20313_v25 = vpop.f32.mrf.mxu1 }
 0x573   :  { %v6916_v18 = vpop.f32.mrf.mxu0  ;;  %v16508_v20 = vpop.f32.mrf.mxu1 }
 0x574   :  { %v6917_v10 = vadd.f32 %v6916_v18, %v6737_v13 }
 0x575   :  { %v16473_v38 = vpop.f32.mrf.mxu0  ;;  %v7140_v22 = vpop.f32.mrf.mxu1 }
 0x576   :  { %v20315_v0 = vadd.f32 %v7108_v63, %v6917_v10  ;;  %v6938_v11 = vadd.f32 %v16473_v38, %v6755_v53 }
 0x577   :  { %v6930_v54 = vpop.f32.mrf.mxu0  ;;  %v16551_v3 = vpop.f32.mrf.mxu1 }
 0x578   :  { %v20317_v62 = vadd.f32 %v16505_v40, %v6938_v11 }
 0x579   :  { %v16476_v37 = vpop.f32.mrf.mxu0  ;;  %v7396_v5 = vpop.f32.mrf.mxu1 }
 0x57a   :  { %v6952_v26 = vadd.f32 %v16476_v37, %v6767_v16 }
 0x57b   :  { %v6944_v58 = vpop.f32.mrf.mxu0  ;;  %v20319_v57 = vpop.f32.mrf.mxu1 }
 0x57c   :  { %v20321_v6 = vadd.f32 %v16508_v20, %v6952_v26  ;;  %v6945_v59 = vadd.f32 %v6944_v58, %v6761_v42  ;;  %v6719_v20 = vadd.f32 %v20269_v7, %v20277_v33 }
 0x57d   :  { %v16519_v43 = vpop.f32.mrf.mxu0  ;;  %v20323_v13 = vpop.f32.mrf.mxu1 }
 0x57e   :  { %v20325_v18 = vadd.f32 %v7140_v22, %v6945_v59  ;;  %v7238_v63 = vadd.f32 %v16519_v43, %v7037_v8  ;;  %v6713_v43 = vadd.f32 %v20271_v23, %v20281_v31  ;;  %v6896_v8 = vadd.f32 %v16464_v46, %v6719_v20 }
 0x57f   :  { %v7231_v53 = vpop.f32.mrf.mxu0  ;;  %v20327_v10 = vpop.f32.mrf.mxu1 }
 0x580   :  { %v20329_v40 = vadd.f32 %v16551_v3, %v7238_v63  ;;  %v7232_v38 = vadd.f32 %v7231_v53, %v7029_v30  ;;  %v6889_v26 = vadd.f32 %v6888_v19, %v6713_v43  ;;  %v6725_v63 = vadd.f32 %v20279_v21, %v20285_v51 }
 0x581   :  { %v20331_v11 = vpop.f32.mrf.mxu0  ;;  %v20333_v16 = vpop.f32.mrf.mxu1  ;;  %v7085_v53 = vadd.f32 %v16496_v9, %v6896_v8  ;;  %v6749_v9 = vadd.f32 %v20287_v45, %v20291_v4 }
 0x582   :  { %23638 = vst [vmem:[#allocation11_spill] sm:$0xff] %v20329_v40  ;;  %v20337_v42 = vadd.f32 %v7396_v5, %v7232_v38  ;;  %v7077_v33 = vadd.f32 %v7076_v14, %v6889_v26  ;;  %v6903_v5 = vadd.f32 %v6902_v41, %v6725_v63 }
 0x583   :  { %v20339_v37 = vpop.f32.mrf.mxu0  ;;  %v16560_v59 = vpop.f32.mrf.mxu1  ;;  %v6931_v41 = vadd.f32 %v6930_v54, %v6749_v9 }
 0x584   :  { %v7093_v46 = vadd.f32 %v7092_v28, %v6903_v5  ;;  %v20491_v5 = vpop.xlane.xlu0 %5953 }
 0x585   :  { %v16525_v22 = vpop.f32.mrf.mxu0  ;;  %v7432_v3 = vpop.f32.mrf.mxu1  ;;  %v7125_v4 = vadd.f32 %v20313_v25, %v6931_v41  ;;  %v6882_v25 = vadd.f32 %v20299_v2, %v20273_v47 }
 0x587   :  { %v7255_v30 = vpop.f32.mrf.mxu0  ;;  %v16563_v58 = vpop.f32.mrf.mxu1 }
 0x589   :  { %v16528_v34 = vpop.f32.mrf.mxu0  ;;  %v7444_v7 = vpop.f32.mrf.mxu1 }
 0x58a   :  { %v7274_v38 = vadd.f32 %v16528_v34, %v7085_v53 }
 0x58b   :  { %v7267_v24 = vpop.f32.mrf.mxu0  ;;  %v16566_v60 = vpop.f32.mrf.mxu1 }
 0x58c   :  { %v20345_v39 = vadd.f32 %v16560_v59, %v7274_v38  ;;  %v7268_v23 = vadd.f32 %v7267_v24, %v7077_v33  ;;  %v6910_v24 = vadd.f32 %v20309_v55, %v20283_v32 }
 0x58d   :  { %v16531_v31 = vpop.f32.mrf.mxu0  ;;  %v7456_v51 = vpop.f32.mrf.mxu1 }
 0x58e   :  { %7568 = vrot.lane.b32.xlu0 %v20345_v39, %s17631_s25  ;;  %7520 = vrot.lane.b32.xlu1 %v20345_v39, %s17632_s26  ;;  %v20353_v14 = vadd.f32 %v7432_v3, %v7268_v23  ;;  %v7101_v45 = vadd.f32 %v20305_v56, %v6910_v24  ;;  %v6875_v56 = vadd.f32 %v20303_v49, %v20275_v61 }
 0x58f   :  { %v7279_v21 = vpop.f32.mrf.mxu0  ;;  %v16569_v20 = vpop.f32.mrf.mxu1  ;;  %v7069_v61 = vadd.f32 %v20293_v1, %v6882_v25  ;;  %v6924_v49 = vadd.f32 %v20311_v29, %v20289_v12 }
 0x590   :  { %v7280_v34 = vadd.f32 %v7279_v21, %v7093_v46  ;;  %v7286_v54 = vadd.f32 %v16531_v31, %v7101_v45  ;;  %v7061_v63 = vadd.f32 %v20295_v44, %v6875_v56  ;;  %v5910_v31 = vsel %vm5903_vm2, %v19262_v35, -inf }
 0x591   :  { %v16534_v19 = vpop.f32.mrf.mxu0  ;;  %v7468_v55 = vpop.f32.mrf.mxu1  ;;  %v7117_v44 = vadd.f32 %v20307_v50, %v6924_v49 }
 0x592   :  { %7616 = vrot.lane.b32.xlu0 %v20345_v39, %s17633_s15  ;;  %7518 = vrot.lane.b32.xlu1 %v20353_v14, %s17632_s26  ;;  %v20361_v59 = vadd.f32 %v7444_v7, %v7280_v34  ;;  %v20375_v26 = vadd.f32 %v16563_v58, %v7286_v54  ;;  %v7256_v53 = vadd.f32 %v7255_v30, %v7061_v63 }
 0x593   :  { %v7291_v28 = vpop.f32.mrf.mxu0  ;;  %v7262_v58 = vadd.f32 %v16525_v22, %v7069_v61  ;;  %v7298_v2 = vadd.f32 %v16534_v19, %v7117_v44 }
 0x594   :  { %v20394_v47 = vadd.f32 %v20333_v16, %v7256_v53  ;;  %v7292_v50 = vadd.f32 %v7291_v28, %v20315_v0 }
 0x595   :  { %v16537_v43 = vpop.f32.mrf.mxu0  ;;  %v20402_v1 = vadd.f32 %v20327_v10, %v7262_v58  ;;  %v20410_v12 = vadd.f32 %v16566_v60, %v7298_v2  ;;  %v7244_v60 = vadd.f32 %v20339_v37, %v20301_v27  ;;  %v7250_v10 = vadd.f32 %v20331_v11, %v20297_v52  ;;  %v16572_v11 = vpop.f32.mrf.mxu1 }
 0x596   :  { %7570 = vrot.lane.b32.xlu0 %v20361_v59, %s17631_s25  ;;  %7566 = vrot.lane.b32.xlu1 %v20353_v14, %s17631_s25  ;;  %v20427_v29 = vadd.f32 %v7456_v51, %v7292_v50  ;;  %v7310_v0 = vadd.f32 %v16537_v43, %v20317_v62 }
 0x597   :  { %v7303_v32 = vpop.f32.mrf.mxu0  ;;  %v20434_v16 = vadd.f32 %v20323_v13, %v7244_v60  ;;  %v20441_v27 = vadd.f32 %v20319_v57, %v7250_v10  ;;  %v7480_v37 = vpop.f32.mrf.mxu1 }
 0x598   :  { %v7304_v8 = vadd.f32 %v7303_v32, %v7125_v4  ;;  %v20450_v13 = vadd.f32 %v16569_v20, %v7310_v0 }
 0x599   :  { %v16540_v52 = vpop.f32.mrf.mxu0 }
 0x59a   :  { %v20369_v3 = vadd.f32 %v7468_v55, %v7304_v8  ;;  %7614 = vrot.lane.b32.xlu1 %v20353_v14, %s17633_s15  ;;  %v7322_v22 = vadd.f32 %v16540_v52, %v20321_v6  ;;  %v5909_v6 = vpop.xlane.xlu1 %5908 }
 0x59b   :  { %v7315_v57 = vpop.f32.mrf.mxu0 }
 0x59c   :  { %7530 = vrot.lane.b32.xlu0 %v20369_v3, %s17632_s26  ;;  %v7316_v62 = vadd.f32 %v7315_v57, %v20325_v18  ;;  %v20468_v7 = vadd.f32 %v16572_v11, %v7322_v22  ;;  %v5929_v18 = vsub.f32 %v19105_v17, %v5909_v6 }
 0x59e   :  { %7524 = vrot.lane.b32.xlu1 %v20375_v26, %s17632_s26  ;;  %v20464_v30 = vadd.f32 %v7480_v37, %v7316_v62  ;;  %v5938_v33 = vmul.f32 1.442695, %v5929_v18 }
 0x5a0   :  { %7578 = vrot.lane.b32.xlu0 %v20369_v3, %s17631_s25  ;;  %17500 = vpow2.f32 %v5938_v33 }
 0x5a1   :  { %17502 = vrcp.f32 %v20491_v5 }
 0x5a2   :  { %7572 = vrot.lane.b32.xlu1 %v20375_v26, %s17631_s25 }
 0x5a4   :  { %7626 = vrot.lane.b32.xlu0 %v20369_v3, %s17633_s15 }
 0x5a6   :  { %7620 = vrot.lane.b32.xlu1 %v20375_v26, %s17633_s15 }
 0x5a8   :  { %7514 = vrot.lane.b32.xlu0 %v20394_v47, %s17632_s26 }
 0x5aa   :  { %7522 = vrot.lane.b32.xlu1 %v20361_v59, %s17632_s26 }
 0x5ac   :  { %7516 = vrot.lane.b32.xlu0 %v20402_v1, %s17632_s26 }
 0x5ad   :  { %v20497_v24 = vpop.eup %17500 }
 0x5ae   :  { %7618 = vrot.lane.b32.xlu1 %v20361_v59, %s17633_s15  ;;  %23639 = vst [vmem:[#allocation10_spill] sm:$0xff] %v20497_v24  ;;  %v5955_v54 = vsel %vm5903_vm2, %v20497_v24, 0.0 }
 0x5b0   :  { %7562 = vrot.lane.b32.xlu0 %v20394_v47, %s17631_s25 }
 0x5b2   :  { %7528 = vrot.lane.b32.xlu1 %v20410_v12, %s17632_s26 }
 0x5b4   :  { %7564 = vrot.lane.b32.xlu0 %v20402_v1, %s17631_s25 }
 0x5b6   :  { %7576 = vrot.lane.b32.xlu1 %v20410_v12, %s17631_s25 }
 0x5b8   :  { %7610 = vrot.lane.b32.xlu0 %v20394_v47, %s17633_s15 }
 0x5ba   :  { %7624 = vrot.lane.b32.xlu1 %v20410_v12, %s17633_s15 }
 0x5bc   :  { %7612 = vrot.lane.b32.xlu0 %v20402_v1, %s17633_s15 }
 0x5be   :  { %7526 = vrot.lane.b32.xlu1 %v20427_v29, %s17632_s26 }
 0x5c0   :  { %7510 = vrot.lane.b32.xlu0 %v20434_v16, %s17632_s26 }
 0x5c2   :  { %7574 = vrot.lane.b32.xlu1 %v20427_v29, %s17631_s25 }
 0x5c4   :  { %7512 = vrot.lane.b32.xlu0 %v20441_v27, %s17632_s26 }
 0x5c6   :  { %7622 = vrot.lane.b32.xlu1 %v20427_v29, %s17633_s15 }
 0x5c8   :  { %7558 = vrot.lane.b32.xlu0 %v20434_v16, %s17631_s25 }
 0x5ca   :  { %7532 = vrot.lane.b32.xlu1 %v20450_v13, %s17632_s26 }
 0x5cc   :  { %7606 = vrot.lane.b32.xlu0 %v20434_v16, %s17633_s15 }
 0x5ce   :  { %7580 = vrot.lane.b32.xlu1 %v20450_v13, %s17631_s25 }
 0x5d0   :  { %7608 = vrot.lane.b32.xlu0 %v20441_v27, %s17633_s15 }
 0x5d2   :  { %7628 = vrot.lane.b32.xlu1 %v20450_v13, %s17633_s15 }
 0x5d4   :  { %7534 = vrot.lane.b32.xlu0 %v20464_v30, %s17632_s26 }
 0x5d6   :  { %7536 = vrot.lane.b32.xlu1 %v20468_v7, %s17632_s26 }
 0x5d8   :  { %7582 = vrot.lane.b32.xlu0 %v20464_v30, %s17631_s25 }
 0x5da   :  { %7584 = vrot.lane.b32.xlu1 %v20468_v7, %s17631_s25 }
 0x5dc   :  { %7630 = vrot.lane.b32.xlu0 %v20464_v30, %s17633_s15 }
 0x5de   :  { %7632 = vrot.lane.b32.xlu1 %v20468_v7, %s17633_s15 }
 0x5e0   :  { %7506 = vrot.lane.b32.xlu0 %v20337_v42, %s17632_s26 }
 0x5e4   :  { %7508 = vrot.lane.b32.xlu0 %v20329_v40, %s17632_s26 }
 0x5e8   :  { %7554 = vrot.lane.b32.xlu0 %v20337_v42, %s17631_s25 }
 0x5ec   :  { %7602 = vrot.lane.b32.xlu0 %v20337_v42, %s17633_s15 }
 0x600   :  { %v7569_v38 = vpop.permute.xlu0 %7568  ;;  %v7521_v23 = vpop.permute.xlu1 %7520 }
 0x601   :  { %v8126_v46 = vcombine.low %v20345_v39, %v7569_v38  ;;  %v8127_v21 = vcombine.high %v20345_v39, %v7569_v38 }
 0x602   :  { %5911 = vmax.xlane.f32.xlu1 %v5910_v31 }
 0x603   :  { %v8134_v17 = vrot.slane %v8126_v46, %v17753_v36  ;;  %v8141_v41 = vrot.slane %v8127_v21, %v17753_v36 }
 0x604   :  { %v7617_v51 = vpop.permute.xlu0 %7616  ;;  %v7519_v9 = vpop.permute.xlu1 %7518 }
 0x605   :  { %v8142_v34 = vcombine.low %v7521_v23, %v7617_v51  ;;  %v8143_v19 = vcombine.high %v7521_v23, %v7617_v51 }
 0x607   :  { %v8150_v28 = vrot.slane %v8142_v34, %v17753_v36  ;;  %v8157_v20 = vrot.slane %v8143_v19, %v17753_v36 }
 0x608   :  { %v7567_v43 = vpop.permute.xlu1 %7566  ;;  %v20503_v39 = vpop.permute.xlu0 %7570 }
 0x609   :  { %v8158_v45 = vcombine.low %v8134_v17, %v8150_v28  ;;  %v8159_v4 = vcombine.high %v8134_v17, %v8150_v28  ;;  %v8174_v32 = vcombine.low %v8141_v41, %v8157_v20  ;;  %v8175_v55 = vcombine.high %v8141_v41, %v8157_v20 }
 0x60a   :  { %v8058_v53 = vcombine.low %v20353_v14, %v7567_v43  ;;  %v8059_v61 = vcombine.high %v20353_v14, %v7567_v43 }
 0x60b   :  { %v8166_v8 = vrot.slane %v8158_v45, %v17876_v48  ;;  %v8173_v56 = vrot.slane %v8159_v4, %v17876_v48  ;;  %v8182_v25 = vrot.slane %v8174_v32, %v17876_v48  ;;  %v8189_v63 = vrot.slane %v8175_v55, %v17876_v48  ;;  %5956 = vadd.xlane.f32.xlu0 %v5955_v54 }
 0x60c   :  { %v7615_v49 = vpop.permute.xlu1 %7614  ;;  %v8066_v14 = vrot.slane %v8058_v53, %v17753_v36  ;;  %v8073_v37 = vrot.slane %v8059_v61, %v17753_v36 }
 0x60d   :  { %v8958_v58 = vcombine.low %v8166_v8, %v8182_v25  ;;  %v8966_v44 = vcombine.low %v8173_v56, %v8189_v63  ;;  %v14362_v2 = vcombine.high %v8166_v8, %v8182_v25  ;;  %v14363_v50 = vcombine.high %v8173_v56, %v8189_v63 }
 0x60e   :  { %v8074_v60 = vcombine.low %v7519_v9, %v7615_v49  ;;  %v8075_v10 = vcombine.high %v7519_v9, %v7615_v49  ;;  %v7531_v0 = vpop.permute.xlu0 %7530 }
 0x60f   :  { %v20514_v52 = vrot.slane %v8958_v58, %v17753_v36  ;;  %v20517_v57 = vrot.slane %v8966_v44, %v17753_v36  ;;  %v20520_v11 = vrot.slane %v14362_v2, %v17753_v36  ;;  %v20523_v62 = vrot.slane %v14363_v50, %v17753_v36 }
 0x610   :  { %v8082_v22 = vrot.slane %v8074_v60, %v17753_v36  ;;  %v8089_v6 = vrot.slane %v8075_v10, %v17753_v36  ;;  %v7525_v18 = vpop.permute.xlu1 %7524 }
 0x611   :  { %23640 = vst [vmem:[#allocation13_spill] sm:$0xff] %v20520_v11  ;;  %23641 = vst [vmem:[#allocation12_spill] sm:$0xff] %v20523_v62 }
 0x612   :  { %v8090_v46 = vcombine.low %v8066_v14, %v8082_v22  ;;  %v8091_v21 = vcombine.high %v8066_v14, %v8082_v22  ;;  %v8106_v51 = vcombine.low %v8073_v37, %v8089_v6  ;;  %v8107_v9 = vcombine.high %v8073_v37, %v8089_v6  ;;  %v7579_v34 = vpop.permute.xlu0 %7578 }
 0x613   :  { %v8466_v19 = vcombine.low %v20369_v3, %v7579_v34  ;;  %v8467_v17 = vcombine.high %v20369_v3, %v7579_v34  ;;  %7560 = vrot.lane.b32.xlu1 %v20441_v27, %s17631_s25 }
 0x614   :  { %v20542_v41 = vrot.slane %v8090_v46, %v17876_v48  ;;  %v20545_v28 = vrot.slane %v8091_v21, %v17876_v48  ;;  %v20548_v20 = vrot.slane %v8106_v51, %v17876_v48  ;;  %v20551_v43 = vrot.slane %v8107_v9, %v17876_v48  ;;  %v7573_v45 = vpop.permute.xlu1 %7572 }
 0x615   :  { %v8474_v8 = vrot.slane %v8466_v19, %v17753_v36  ;;  %v8481_v56 = vrot.slane %v8467_v17, %v17753_v36  ;;  %v8262_v49 = vcombine.low %v20375_v26, %v7573_v45  ;;  %v8263_v58 = vcombine.high %v20375_v26, %v7573_v45 }
 0x616   :  { %v14360_v32 = vcombine.high %v20542_v41, %v20548_v20  ;;  %v14361_v55 = vcombine.high %v20545_v28, %v20551_v43  ;;  %v7627_v54 = vpop.permute.xlu0 %7626 }
 0x617   :  { %v8482_v25 = vcombine.low %v7531_v0, %v7627_v54  ;;  %v8483_v63 = vcombine.high %v7531_v0, %v7627_v54  ;;  %7556 = vrot.lane.b32.xlu1 %v20329_v40, %s17631_s25  ;;  %v8270_v26 = vrot.slane %v8262_v49, %v17753_v36  ;;  %v8277_v51 = vrot.slane %v8263_v58, %v17753_v36 }
 0x618   :  { %v20566_v53 = vrot.slane %v14360_v32, %v17753_v36  ;;  %v20569_v61 = vrot.slane %v14361_v55, %v17753_v36  ;;  %v7621_v44 = vpop.permute.xlu1 %7620 }
 0x619   :  { %v8490_v2 = vrot.slane %v8482_v25, %v17753_v36  ;;  %v8497_v50 = vrot.slane %v8483_v63, %v17753_v36  ;;  %v8278_v60 = vcombine.low %v7525_v18, %v7621_v44  ;;  %v8279_v10 = vcombine.high %v7525_v18, %v7621_v44 }
 0x61a   :  { %23642 = vst [vmem:[#allocation15_spill] sm:$0xff] %v20566_v53  ;;  %23643 = vst [vmem:[#allocation14_spill] sm:$0xff] %v20569_v61  ;;  %v20579_v37 = vpop.permute.xlu0 %7514  ;;  %v23653_v61 = vcombine.low %v20545_v28, %v20551_v43 }
 0x61b   :  { %v8498_v22 = vcombine.low %v8474_v8, %v8490_v2  ;;  %v8499_v6 = vcombine.high %v8474_v8, %v8490_v2  ;;  %v8514_v46 = vcombine.low %v8481_v56, %v8497_v50  ;;  %v8515_v21 = vcombine.high %v8481_v56, %v8497_v50  ;;  %7604 = vrot.lane.b32.xlu1 %v20329_v40, %s17633_s15 }
 0x61c   :  { %v8286_v18 = vrot.slane %v8278_v60, %v17753_v36  ;;  %v8293_v9 = vrot.slane %v8279_v10, %v17753_v36  ;;  %v7523_v34 = vpop.permute.xlu1 %7522  ;;  %v8194_v10 = vcombine.low %v20361_v59, %v20503_v39 }
 0x61d   :  { %v20588_v19 = vrot.slane %v8498_v22, %v17876_v48  ;;  %v20591_v17 = vrot.slane %v8499_v6, %v17876_v48  ;;  %v20594_v45 = vrot.slane %v8514_v46, %v17876_v48  ;;  %v20597_v32 = vrot.slane %v8515_v21, %v17876_v48 }
 0x61e   :  { %v8294_v55 = vcombine.low %v8270_v26, %v8286_v18  ;;  %v8295_v54 = vcombine.high %v8270_v26, %v8286_v18  ;;  %v8310_v8 = vcombine.low %v8277_v51, %v8293_v9  ;;  %v8311_v56 = vcombine.high %v8277_v51, %v8293_v9  ;;  %v20599_v25 = vpop.permute.xlu0 %7516 }
 0x61f   :  { %v14372_v63 = vcombine.high %v20588_v19, %v20594_v45  ;;  %v14373_v49 = vcombine.high %v20591_v17, %v20597_v32  ;;  %v8195_v22 = vcombine.high %v20361_v59, %v20503_v39 }
 0x620   :  { %v20606_v58 = vrot.slane %v8294_v55, %v17876_v48  ;;  %v20609_v44 = vrot.slane %v8295_v54, %v17876_v48  ;;  %v20612_v2 = vrot.slane %v8310_v8, %v17876_v48  ;;  %v20615_v50 = vrot.slane %v8311_v56, %v17876_v48  ;;  %v7619_v60 = vpop.permute.xlu1 %7618 }
 0x621   :  { %v20622_v6 = vrot.slane %v14372_v63, %v17753_v36  ;;  %v20625_v46 = vrot.slane %v14373_v49, %v17753_v36  ;;  %v8210_v55 = vcombine.low %v7523_v34, %v7619_v60  ;;  %v8211_v54 = vcombine.high %v7523_v34, %v7619_v60 }
 0x622   :  { %v14366_v51 = vcombine.high %v20606_v58, %v20612_v2  ;;  %v14367_v18 = vcombine.high %v20609_v44, %v20615_v50  ;;  %v7563_v9 = vpop.permute.xlu0 %7562  ;;  %v8202_v49 = vrot.slane %v8194_v10, %v17753_v36  ;;  %v8209_v38 = vrot.slane %v8195_v22, %v17753_v36 }
 0x623   :  { %23644 = vst [vmem:[#allocation17_spill] sm:$0xff] %v20622_v6  ;;  %23645 = vst [vmem:[#allocation16_spill] sm:$0xff] %v20625_v46  ;;  %v8218_v14 = vrot.slane %v8210_v55, %v17753_v36  ;;  %v8225_v33 = vrot.slane %v8211_v54, %v17753_v36  ;;  %v7922_v10 = vcombine.low %v20394_v47, %v7563_v9 }
 0x624   :  { %v20640_v8 = vrot.slane %v14366_v51, %v17753_v36  ;;  %v20643_v56 = vrot.slane %v14367_v18, %v17753_v36  ;;  %v7529_v63 = vpop.permute.xlu1 %7528  ;;  %v7923_v22 = vcombine.high %v20394_v47, %v7563_v9 }
 0x625   :  { %v8226_v51 = vcombine.low %v8202_v49, %v8218_v14  ;;  %v8227_v18 = vcombine.high %v8202_v49, %v8218_v14  ;;  %v8242_v0 = vcombine.low %v8209_v38, %v8225_v33  ;;  %v8243_v59 = vcombine.high %v8209_v38, %v8225_v33 }
 0x626   :  { %23646 = vst [vmem:[#allocation19_spill] sm:$0xff] %v20640_v8  ;;  %23647 = vst [vmem:[#allocation18_spill] sm:$0xff] %v20643_v56  ;;  %v20653_v60 = vpop.permute.xlu0 %7564  ;;  %v7930_v38 = vrot.slane %v7922_v10, %v17753_v36  ;;  %v7937_v9 = vrot.slane %v7923_v22, %v17753_v36 }
 0x627   :  { %v20658_v55 = vrot.slane %v8226_v51, %v17876_v48  ;;  %v20661_v54 = vrot.slane %v8227_v18, %v17876_v48  ;;  %v20664_v39 = vrot.slane %v8242_v0, %v17876_v48  ;;  %v20667_v34 = vrot.slane %v8243_v59, %v17876_v48 }
 0x628   :  { %v7577_v31 = vpop.permute.xlu1 %7576  ;;  %v7991_v4 = vcombine.high %v20402_v1, %v20653_v60 }
 0x629   :  { %v14364_v33 = vcombine.high %v20658_v55, %v20664_v39  ;;  %v14365_v47 = vcombine.high %v20661_v54, %v20667_v34  ;;  %v8398_v59 = vcombine.low %v20410_v12, %v7577_v31  ;;  %v8399_v18 = vcombine.high %v20410_v12, %v7577_v31 }
 0x62a   :  { %v7611_v14 = vpop.permute.xlu0 %7610  ;;  %v8005_v53 = vrot.slane %v7991_v4, %v17753_v36 }
 0x62b   :  { %v20676_v51 = vrot.slane %v14364_v33, %v17753_v36  ;;  %v20679_v0 = vrot.slane %v14365_v47, %v17753_v36  ;;  %v7938_v26 = vcombine.low %v20579_v37, %v7611_v14  ;;  %v7939_v21 = vcombine.high %v20579_v37, %v7611_v14 }
 0x62c   :  { %v7625_v49 = vpop.permute.xlu1 %7624  ;;  %v7990_v47 = vcombine.low %v20402_v1, %v20653_v60  ;;  %v8413_v33 = vrot.slane %v8399_v18, %v17753_v36 }
 0x62d   :  { %23648 = vst [vmem:[#allocation21_spill] sm:$0xff] %v20676_v51  ;;  %23649 = vst [vmem:[#allocation20_spill] sm:$0xff] %v20679_v0  ;;  %v8414_v23 = vcombine.low %v7529_v63, %v7625_v49  ;;  %v8415_v3 = vcombine.high %v7529_v63, %v7625_v49  ;;  %v7946_v12 = vrot.slane %v7938_v26, %v17753_v36 }
 0x62e   :  { %v7613_v10 = vpop.permute.xlu0 %7612  ;;  %v7953_v31 = vrot.slane %v7939_v21, %v17753_v36  ;;  %v8406_v49 = vrot.slane %v8398_v59, %v17753_v36 }
 0x62f   :  { %v8422_v37 = vrot.slane %v8414_v23, %v17753_v36  ;;  %v8429_v63 = vrot.slane %v8415_v3, %v17753_v36  ;;  %v8006_v22 = vcombine.low %v20599_v25, %v7613_v10  ;;  %v8007_v24 = vcombine.high %v20599_v25, %v7613_v10 }
 0x630   :  { %v20697_v14 = vpop.permute.xlu1 %7526  ;;  %v7954_v62 = vcombine.low %v7930_v38, %v7946_v12  ;;  %v7955_v1 = vcombine.high %v7930_v38, %v7946_v12  ;;  %v7970_v60 = vcombine.low %v7937_v9, %v7953_v31  ;;  %v7971_v26 = vcombine.high %v7937_v9, %v7953_v31 }
 0x631   :  { %v8430_v21 = vcombine.low %v8406_v49, %v8422_v37  ;;  %v8431_v23 = vcombine.high %v8406_v49, %v8422_v37  ;;  %v8446_v56 = vcombine.low %v8413_v33, %v8429_v63  ;;  %v8447_v3 = vcombine.high %v8413_v33, %v8429_v63 }
 0x632   :  { %v20703_v11 = vpop.permute.xlu0 %7510  ;;  %v20706_v8 = vrot.slane %v7954_v62, %v17876_v48  ;;  %v20709_v59 = vrot.slane %v7955_v1, %v17876_v48  ;;  %v20712_v18 = vrot.slane %v7970_v60, %v17876_v48  ;;  %v20715_v25 = vrot.slane %v7971_v26, %v17876_v48 }
 0x633   :  { %v20718_v9 = vrot.slane %v8430_v21, %v17876_v48  ;;  %v20721_v10 = vrot.slane %v8431_v23, %v17876_v48  ;;  %v20724_v33 = vrot.slane %v8446_v56, %v17876_v48  ;;  %v20727_v62 = vrot.slane %v8447_v3, %v17876_v48 }
 0x634   :  { %v7575_v38 = vpop.permute.xlu1 %7574  ;;  %v14356_v12 = vcombine.high %v20706_v8, %v20712_v18  ;;  %v14357_v31 = vcombine.high %v20709_v59, %v20715_v25  ;;  %v8014_v37 = vrot.slane %v8006_v22, %v17753_v36  ;;  %v8021_v1 = vrot.slane %v8007_v24, %v17753_v36 }
 0x635   :  { %v14370_v49 = vcombine.high %v20718_v9, %v20724_v33  ;;  %v14371_v56 = vcombine.high %v20721_v10, %v20727_v62  ;;  %v23650_v60 = vcombine.low %v20542_v41, %v20548_v20  ;;  %v7998_v21 = vrot.slane %v7990_v47, %v17753_v36 }
 0x636   :  { %v20734_v63 = vpop.permute.xlu0 %7512  ;;  %v20749_v22 = vrot.slane %v14356_v12, %v17753_v36  ;;  %v20752_v23 = vrot.slane %v14357_v31, %v17753_v36  ;;  %v20758_v24 = vrot.slane %v23653_v61, %v17753_v36  ;;  %v8038_v4 = vcombine.low %v8005_v53, %v8021_v1 }
 0x637   :  { %v20745_v26 = vrot.slane %v23650_v60, %v17753_v36  ;;  %v20762_v41 = vrot.slane %v14370_v49, %v17753_v36  ;;  %v20765_v20 = vrot.slane %v14371_v56, %v17753_v36  ;;  %v8022_v31 = vcombine.low %v7998_v21, %v8014_v37 }
 0x638   :  { %23651 = vst [vmem:[#allocation24_spill] sm:$0xff] %v20749_v22  ;;  %23652 = vst [vmem:[#allocation25_spill] sm:$0xff] %v20752_v23  ;;  %v7623_v3 = vpop.permute.xlu1 %7622  ;;  %v8023_v60 = vcombine.high %v7998_v21, %v8014_v37  ;;  %v8039_v61 = vcombine.high %v8005_v53, %v8021_v1  ;;  %v5913_v37 = vsel %vm5903_vm2, %v19382_v15, -inf  ;;  %v20788_v21 = vrot.slane %v8038_v4, %v17876_v48 }
 0x639   :  { %23654 = vst [vmem:[#allocation26_spill] sm:$0xff] %v20762_v41  ;;  %23655 = vst [vmem:[#allocation27_spill] sm:$0xff] %v20765_v20  ;;  %v20778_v49 = vrot.slane %v8022_v31, %v17876_v48  ;;  %v23656_v1 = vcombine.low %v20514_v52, %v20517_v57  ;;  %v8331_v43 = vcombine.high %v20427_v29, %v7575_v38 }
 0x63a   :  { %v20771_v0 = vpop.permute.xlu0 %7558  ;;  %v20781_v56 = vrot.slane %v8023_v60, %v17876_v48  ;;  %v20791_v12 = vrot.slane %v8039_v61, %v17876_v48  ;;  %v8330_v60 = vcombine.low %v20427_v29, %v7575_v38  ;;  %v8346_v28 = vcombine.low %v20697_v14, %v7623_v3 }
 0x63b   :  { %v20799_v31 = vrot.slane %v23656_v1, %v17876_v48  ;;  %v8347_v4 = vcombine.high %v20697_v14, %v7623_v3  ;;  %v9146_v61 = vcombine.low %v20588_v19, %v20594_v45  ;;  %v9154_v53 = vcombine.low %v20591_v17, %v20597_v32 }
 0x63c   :  { %v20783_v47 = vpop.permute.xlu1 %7532  ;;  %v14358_v23 = vcombine.high %v20778_v49, %v20788_v21  ;;  %v14359_v1 = vcombine.high %v20781_v56, %v20791_v12  ;;  %v8338_v29 = vrot.slane %v8330_v60, %v17753_v36  ;;  %v8345_v38 = vrot.slane %v8331_v43, %v17753_v36 }
 0x63d   :  { %v8354_v14 = vrot.slane %v8346_v28, %v17753_v36  ;;  %v8361_v3 = vrot.slane %v8347_v4, %v17753_v36  ;;  %v9010_v19 = vcombine.low %v20658_v55, %v20664_v39  ;;  %v9018_v17 = vcombine.low %v20661_v54, %v20667_v34 }
 0x63e   :  { %v7607_v15 = vpop.permute.xlu0 %7606  ;;  %v20824_v45 = vrot.slane %v14358_v23, %v17753_v36  ;;  %v20827_v32 = vrot.slane %v14359_v1, %v17753_v36  ;;  %v20832_v4 = vrot.slane %v9146_v61, %v17753_v36  ;;  %v20835_v39 = vrot.slane %v9154_v53, %v17753_v36 }
 0x63f   :  { %5914 = vmax.xlane.f32.xlu1 %v5913_v37  ;;  %v8362_v37 = vcombine.low %v8338_v29, %v8354_v14  ;;  %v8363_v43 = vcombine.high %v8338_v29, %v8354_v14  ;;  %v8378_v60 = vcombine.low %v8345_v38, %v8361_v3  ;;  %v8379_v28 = vcombine.high %v8345_v38, %v8361_v3 }
 0x640   :  { %v20817_v22 = vpop.permute.xlu1 %7580  ;;  %23657 = vst [vmem:[#allocation28_spill] sm:$0xff] %v20824_v45  ;;  %23658 = vst [vmem:[#allocation29_spill] sm:$0xff] %v20827_v32  ;;  %v23659_v29 = vcombine.low %v20606_v58, %v20612_v2  ;;  %v23660_v14 = vcombine.low %v20609_v44, %v20615_v50  ;;  %v8874_v50 = vcombine.low %v20706_v8, %v20712_v18 }
 0x641   :  { %v20842_v54 = vrot.slane %v8362_v37, %v17876_v48  ;;  %v20845_v23 = vrot.slane %v8363_v43, %v17876_v48  ;;  %v20848_v1 = vrot.slane %v8378_v60, %v17876_v48  ;;  %v20851_v61 = vrot.slane %v8379_v28, %v17876_v48 }
 0x642   :  { %v20829_v20 = vpop.permute.xlu0 %7608  ;;  %v20857_v38 = vrot.slane %v23659_v29, %v17753_v36  ;;  %v20863_v3 = vrot.slane %v23660_v14, %v17753_v36  ;;  %v7786_v37 = vcombine.low %v20434_v16, %v20771_v0  ;;  %v7787_v43 = vcombine.high %v20434_v16, %v20771_v0 }
 0x643   :  { %v20870_v60 = vrot.slane %v9010_v19, %v17753_v36  ;;  %v20873_v28 = vrot.slane %v9018_v17, %v17753_v36  ;;  %v14368_v58 = vcombine.high %v20842_v54, %v20848_v1  ;;  %v14369_v44 = vcombine.high %v20845_v23, %v20851_v61 }
 0x644   :  { %v7629_v53 = vpop.permute.xlu1 %7628  ;;  %v8882_v16 = vcombine.low %v20709_v59, %v20715_v25  ;;  %v7802_v0 = vcombine.low %v20703_v11, %v7607_v15  ;;  %v7803_v19 = vcombine.high %v20703_v11, %v7607_v15  ;;  %v9094_v17 = vcombine.low %v20718_v9, %v20724_v33 }
 0x645   :  { %v9102_v29 = vcombine.low %v20721_v10, %v20727_v62  ;;  %v20892_v14 = vrot.slane %v14368_v58, %v17753_v36  ;;  %v20895_v55 = vrot.slane %v14369_v44, %v17753_v36  ;;  %v7794_v59 = vrot.slane %v7786_v37, %v17753_v36 }
 0x646   :  { %v20879_v2 = vpop.permute.xlu0 %7534  ;;  %v7801_v18 = vrot.slane %v7787_v43, %v17753_v36  ;;  %v7810_v15 = vrot.slane %v7802_v0, %v17753_v36  ;;  %v7817_v11 = vrot.slane %v7803_v19, %v17753_v36  ;;  %v20912_v0 = vrot.slane %v8874_v50, %v17753_v36 }
 0x647   :  { %23661 = vst [vmem:[#allocation30_spill] sm:$0xff] %v20892_v14  ;;  %23662 = vst [vmem:[#allocation31_spill] sm:$0xff] %v20895_v55  ;;  %v20915_v19 = vrot.slane %v8882_v16, %v17753_v36  ;;  %v8534_v9 = vcombine.low %v20450_v13, %v20817_v22  ;;  %v8535_v34 = vcombine.high %v20450_v13, %v20817_v22 }
 0x648   :  { %v20897_v8 = vpop.permute.xlu1 %7536  ;;  %v7818_v37 = vcombine.low %v7794_v59, %v7810_v15  ;;  %v7819_v58 = vcombine.high %v7794_v59, %v7810_v15  ;;  %v7834_v43 = vcombine.low %v7801_v18, %v7817_v11  ;;  %v7835_v44 = vcombine.high %v7801_v18, %v7817_v11 }
 0x649   :  { %v20934_v16 = vrot.slane %v9094_v17, %v17753_v36  ;;  %v9078_v18 = vcombine.low %v20842_v54, %v20848_v1  ;;  %v8550_v13 = vcombine.low %v20783_v47, %v7629_v53  ;;  %v8551_v22 = vcombine.high %v20783_v47, %v7629_v53 }
 0x64a   :  { %v7583_v62 = vpop.permute.xlu0 %7582  ;;  %v20922_v25 = vrot.slane %v7818_v37, %v17876_v48  ;;  %v20925_v33 = vrot.slane %v7819_v58, %v17876_v48  ;;  %v20928_v59 = vrot.slane %v7834_v43, %v17876_v48  ;;  %v20931_v50 = vrot.slane %v7835_v44, %v17876_v48 }
 0x64b   :  { %v8542_v54 = vrot.slane %v8534_v9, %v17753_v36  ;;  %v8549_v1 = vrot.slane %v8535_v34, %v17753_v36  ;;  %v8558_v47 = vrot.slane %v8550_v13, %v17753_v36  ;;  %v8565_v53 = vrot.slane %v8551_v22, %v17753_v36 }
 0x64c   :  { %v7585_v15 = vpop.permute.xlu1 %7584  ;;  %v14352_v43 = vcombine.high %v20922_v25, %v20928_v59  ;;  %v14353_v17 = vcombine.high %v20925_v33, %v20931_v50  ;;  %v8602_v58 = vcombine.low %v20464_v30, %v7583_v62  ;;  %v8603_v37 = vcombine.high %v20464_v30, %v7583_v62 }
 0x64d   :  { %v8566_v32 = vcombine.low %v8542_v54, %v8558_v47  ;;  %v8567_v45 = vcombine.high %v8542_v54, %v8558_v47  ;;  %v8582_v41 = vcombine.low %v8549_v1, %v8565_v53  ;;  %v8583_v9 = vcombine.high %v8549_v1, %v8565_v53 }
 0x64e   :  { %v7631_v11 = vpop.permute.xlu0 %7630  ;;  %v20953_v44 = vrot.slane %v14352_v43, %v17753_v36  ;;  %v20956_v10 = vrot.slane %v14353_v17, %v17753_v36  ;;  %v20963_v34 = vrot.slane %v9102_v29, %v17753_v36  ;;  %v20976_v29 = vrot.slane %v9078_v18, %v17753_v36 }
 0x64f   :  { %v8574_v30 = vrot.slane %v8566_v32, %v17876_v48  ;;  %v8581_v62 = vrot.slane %v8567_v45, %v17876_v48  ;;  %v8590_v17 = vrot.slane %v8582_v41, %v17876_v48  ;;  %v8597_v54 = vrot.slane %v8583_v9, %v17876_v48 }
 0x650   :  { %23663 = vst [vmem:[#allocation32_spill] sm:$0xff] %v20953_v44  ;;  %23664 = vst [vmem:[#allocation33_spill] sm:$0xff] %v20956_v10  ;;  %v7633_v1 = vpop.permute.xlu1 %7632  ;;  %v8610_v53 = vrot.slane %v8602_v58, %v17753_v36  ;;  %v8670_v22 = vcombine.low %v20468_v7, %v7585_v15  ;;  %v8617_v32 = vrot.slane %v8603_v37, %v17753_v36 }
 0x651   :  { %v14374_v43 = vcombine.high %v8574_v30, %v8590_v17  ;;  %v14375_v13 = vcombine.high %v8581_v62, %v8597_v54  ;;  %v8671_v45 = vcombine.high %v20468_v7, %v7585_v15  ;;  %v8618_v9 = vcombine.low %v20879_v2, %v7631_v11 }
 0x652   :  { %v20960_v51 = vpop.permute.xlu0 %7506  ;;  %v8619_v18 = vcombine.high %v20879_v2, %v7631_v11  ;;  %v8686_v10 = vcombine.low %v20897_v8, %v7633_v1  ;;  %v8687_v47 = vcombine.high %v20897_v8, %v7633_v1  ;;  %v9162_v44 = vcombine.low %v8574_v30, %v8590_v17 }
 0x653   :  { %v9170_v58 = vcombine.low %v8581_v62, %v8597_v54  ;;  %v20991_v46 = vrot.slane %v14374_v43, %v17753_v36  ;;  %v20994_v6 = vrot.slane %v14375_v13, %v17753_v36  ;;  %v8678_v7 = vrot.slane %v8670_v22, %v17753_v36 }
 0x654   :  { %v8626_v15 = vrot.slane %v8618_v9, %v17753_v36  ;;  %v8633_v37 = vrot.slane %v8619_v18, %v17753_v36  ;;  %v8694_v2 = vrot.slane %v8686_v10, %v17753_v36  ;;  %v8685_v43 = vrot.slane %v8671_v45, %v17753_v36 }
 0x655   :  { %23666 = vst [vmem:[#allocation35_spill] sm:$0xff] %v20991_v46  ;;  %23667 = vst [vmem:[#allocation36_spill] sm:$0xff] %v20994_v6  ;;  %v8701_v30 = vrot.slane %v8687_v47, %v17753_v36  ;;  %v21007_v54 = vrot.slane %v9162_v44, %v17753_v36  ;;  %v21010_v1 = vrot.slane %v9170_v58, %v17753_v36 }
 0x656   :  { %v20984_v41 = vpop.permute.xlu0 %7508  ;;  %v8634_v13 = vcombine.low %v8610_v53, %v8626_v15  ;;  %v8635_v62 = vcombine.high %v8610_v53, %v8626_v15  ;;  %v8650_v17 = vcombine.low %v8617_v32, %v8633_v37  ;;  %v8651_v22 = vcombine.high %v8617_v32, %v8633_v37 }
 0x657   :  { %23665 = vst [vmem:[#allocation34_spill] sm:$0xff] %v20984_v41  ;;  %v8702_v10 = vcombine.low %v8678_v7, %v8694_v2  ;;  %v8703_v9 = vcombine.high %v8678_v7, %v8694_v2  ;;  %v8718_v44 = vcombine.low %v8685_v43, %v8701_v30  ;;  %v8719_v15 = vcombine.high %v8685_v43, %v8701_v30 }
 0x658   :  { %v8642_v11 = vrot.slane %v8634_v13, %v17876_v48  ;;  %v8649_v8 = vrot.slane %v8635_v62, %v17876_v48  ;;  %v8658_v45 = vrot.slane %v8650_v17, %v17876_v48  ;;  %v8665_v47 = vrot.slane %v8651_v22, %v17876_v48 }
 0x659   :  { %v8710_v53 = vrot.slane %v8702_v10, %v17876_v48  ;;  %v8717_v32 = vrot.slane %v8703_v9, %v17876_v48  ;;  %v8726_v7 = vrot.slane %v8718_v44, %v17876_v48  ;;  %v8733_v2 = vrot.slane %v8719_v15, %v17876_v48 }
 0x65a   :  { %v7555_v18 = vpop.permute.xlu0 %7554  ;;  %v9214_v37 = vcombine.low %v8642_v11, %v8658_v45  ;;  %v9222_v58 = vcombine.low %v8649_v8, %v8665_v47  ;;  %v14376_v55 = vcombine.high %v8642_v11, %v8658_v45  ;;  %v14377_v14 = vcombine.high %v8649_v8, %v8665_v47 }
 0x65b   :  { %v7650_v13 = vcombine.low %v20337_v42, %v7555_v18  ;;  %v9178_v62 = vcombine.low %v20832_v4, %v20835_v39  ;;  %v9230_v8 = vcombine.low %v8710_v53, %v8726_v7  ;;  %v9238_v30 = vcombine.low %v8717_v32, %v8733_v2 }
 0x65c   :  { %v21024_v17 = vrot.slane %v9214_v37, %v17753_v36  ;;  %v21027_v22 = vrot.slane %v9222_v58, %v17753_v36  ;;  %v21030_v43 = vrot.slane %v14376_v55, %v17753_v36  ;;  %v21033_v11 = vrot.slane %v14377_v14, %v17753_v36 }
 0x65d   :  { %v14378_v10 = vcombine.high %v8710_v53, %v8726_v7  ;;  %v14379_v9 = vcombine.high %v8717_v32, %v8733_v2  ;;  %v7651_v15 = vcombine.high %v20337_v42, %v7555_v18  ;;  %v9194_v55 = vcombine.low %v21007_v54, %v21010_v1 }
 0x65e   :  { %23668 = vst [vmem:[#allocation37_spill] sm:$0xff] %v21030_v43  ;;  %23669 = vst [vmem:[#allocation38_spill] sm:$0xff] %v21033_v11  ;;  %v7603_v45 = vpop.permute.xlu0 %7602  ;;  %v21043_v37 = vrot.slane %v9230_v8, %v17753_v36  ;;  %v21046_v14 = vrot.slane %v9238_v30, %v17753_v36  ;;  %v23672_v58 = vcombine.low %v20845_v23, %v20851_v61 }
 0x65f   :  { %v21049_v53 = vrot.slane %v14378_v10, %v17753_v36  ;;  %v21052_v32 = vrot.slane %v14379_v9, %v17753_v36  ;;  %v7658_v18 = vrot.slane %v7650_v13, %v17753_v36  ;;  %v7666_v7 = vcombine.low %v20960_v51, %v7603_v45 }
 0x660   :  { %v21058_v42 = vrot.slane %v23672_v58, %v17753_v36  ;;  %v7667_v2 = vcombine.high %v20960_v51, %v7603_v45  ;;  %v9246_v10 = vcombine.low %v21024_v17, %v21027_v22  ;;  %v9262_v23 = vcombine.low %v21043_v37, %v21046_v14 }
 0x661   :  { %23670 = vst [vmem:[#allocation39_spill] sm:$0xff] %v21049_v53  ;;  %23671 = vst [vmem:[#allocation40_spill] sm:$0xff] %v21052_v32  ;;  %v7665_v61 = vrot.slane %v7651_v15, %v17753_v36  ;;  %v7674_v13 = vrot.slane %v7666_v7, %v17753_v36  ;;  %v21075_v51 = vrot.slane %v9194_v55, %v17876_v48 }
 0x662   :  { %v7681_v9 = vrot.slane %v7667_v2, %v17753_v36  ;;  %v8898_v45 = vcombine.low %v20781_v56, %v20791_v12  ;;  %v21080_v58 = vrot.slane %v9246_v10, %v17876_v48  ;;  %v21083_v44 = vrot.slane %v9262_v23, %v17876_v48 }
 0x663   :  { %v21086_v30 = vrot.slane %v9178_v62, %v17876_v48  ;;  %v7682_v15 = vcombine.low %v7658_v18, %v7674_v13  ;;  %v7683_v47 = vcombine.high %v7658_v18, %v7674_v13  ;;  %v9110_v12 = vcombine.low %v20976_v29, %v21058_v42 }
 0x664   :  { %v7698_v7 = vcombine.low %v7665_v61, %v7681_v9  ;;  %v7699_v8 = vcombine.high %v7665_v61, %v7681_v9  ;;  %v9278_v55 = vcombine.low %v21080_v58, %v21083_v44  ;;  %v9126_v56 = vcombine.low %v20934_v16, %v20963_v34 }
 0x665   :  { %v9210_v2 = vcombine.low %v21086_v30, %v21075_v51  ;;  %v21097_v10 = vrot.slane %v7682_v15, %v17876_v48  ;;  %v21100_v62 = vrot.slane %v7683_v47, %v17876_v48  ;;  %v9118_v9 = vrot.slane %v9110_v12, %v17876_v48 }
 0x666   :  { %v21103_v18 = vrot.slane %v7698_v7, %v17876_v48  ;;  %v21106_v23 = vrot.slane %v7699_v8, %v17876_v48  ;;  %v21108_v61 = vand.u32 4294901760, %v9278_v55  ;;  %v9134_v6 = vrot.slane %v9126_v56, %v17876_v48 }
 0x667   :  { %23673 = vst [vmem:[#allocation41_spill] sm:$0xff] %v21100_v62  ;;  %v21110_v13 = vand.u32 4294901760, %v9210_v2  ;;  %v23677_v15 = vcombine.low %v20778_v49, %v20788_v21  ;;  %v21121_v7 = vrot.slane %v8898_v45, %v17753_v36  ;;  %v23678_v12 = vcombine.low %v20922_v25, %v20928_v59 }
 0x668   :  { %23674 = vst [vmem:[#allocation42_spill] sm:$0xff] %v21106_v23  ;;  %23675 = vst [vmem:[#allocation43_spill] sm:$0xff] %v21108_v61  ;;  %v14348_v8 = vcombine.high %v21097_v10, %v21103_v18  ;;  %v14349_v46 = vcombine.high %v21100_v62, %v21106_v23  ;;  %16574 = vmatpush3.msra.mxu0 %v21108_v61  ;;  %v21135_v49 = vsub.f32 %v9278_v55, %v21108_v61  ;;  %v23683_v59 = vmov 0.0  }
 0x669   :  { %23676 = vst [vmem:[#allocation44_spill] sm:$0xff] %v21110_v13  ;;  %v21118_v47 = vrot.slane %v23677_v15, %v17753_v36  ;;  %v21131_v56 = vrot.slane %v23678_v12, %v17753_v36  ;;  %v9142_v21 = vcombine.low %v9118_v9, %v9134_v6  ;;  %v9042_v45 = vcombine.low %v20870_v60, %v20873_v28 }
 0x66a   :  { %23679 = vst [vmem:[#allocation45_spill] sm:$0xff] %v21135_v49  ;;  %v23680_v15 = vcombine.low %v20925_v33, %v20931_v50  ;;  %v21146_v43 = vrot.slane %v14348_v8, %v17753_v36  ;;  %v21149_v25 = vrot.slane %v14349_v46, %v17753_v36  ;;  %16575 = vmatprep.subr.mxu0 %v23683_v59 }
 0x66b   :  { %v21153_v55 = vsub.f32 %v9210_v2, %v21110_v13  ;;  %16576 = vmatpush3.msra.mxu0 %v21110_v13  ;;  %v21156_v12 = vand.u32 4294901760, %v9142_v21  ;;  %v9050_v61 = vrot.slane %v9042_v45, %v17876_v48  ;;  %v9058_v33 = vcombine.low %v20857_v38, %v20863_v3 }
 0x66c   :  { %v21143_v11 = vrot.slane %v23680_v15, %v17753_v36  ;;  %23681 = vst [vmem:[#allocation46_spill] sm:$0xff] %v21146_v43  ;;  %23682 = vst [vmem:[#allocation47_spill] sm:$0xff] %v21149_v25  ;;  %v23685_v50 = vcombine.low %v20745_v26, %v20758_v24  ;;  %16577 = vmatprep.subr.mxu0 %v23683_v59  ;;  %v23517_v15 = vand.u32 4294901760, %v21135_v49 }
 0x66d   :  { %23684 = vst [vmem:[#allocation48_spill] sm:$0xff] %v21156_v12  ;;  %v8906_v45 = vcombine.low %v20912_v0, %v20915_v19  ;;  %16578 = vmatpush3.msra.mxu0 %v21156_v12  ;;  %v21175_v13 = vsub.f32 %v9142_v21, %v21156_v12  ;;  %v8922_v8 = vcombine.low %v21118_v47, %v21121_v7 }
 0x66e   :  { %v8982_v46 = vrot.slane %v23685_v50, %v17876_v48  ;;  %v9066_v50 = vrot.slane %v9058_v33, %v17876_v48  ;;  %16579 = vmatprep.subr.mxu0 %v23683_v59  ;;  %v9932_v2 = vsub.f32 %v21135_v49, %v23517_v15  ;;  %v23521_v33 = vand.u32 4294901760, %v21153_v55 }
 0x66f   :  { %v8914_v25 = vrot.slane %v8906_v45, %v17876_v48  ;;  %v8930_v21 = vrot.slane %v8922_v8, %v17876_v48  ;;  %v23520_v41 = vand.u32 4294901760, %v21175_v13 }
 0x670   :  { %v9006_v32 = vcombine.low %v8982_v46, %v20799_v31  ;;  %v9074_v43 = vcombine.low %v9050_v61, %v9066_v50  ;;  %v9933_v12 = vand.u32 4294901760, %v9932_v2  ;;  %v9939_v45 = vsub.f32 %v21153_v55, %v23521_v33 }
 0x671   :  { %v8938_v15 = vcombine.low %v8914_v25, %v8930_v21  ;;  %v9946_v8 = vsub.f32 %v21175_v13, %v23520_v41  ;;  %v21206_v2 = vcombine.high %v21080_v58, %v21083_v44  ;;  %v21219_v41 = vcombine.high %v21086_v30, %v21075_v51 }
 0x672   :  { %v21186_v53 = vand.u32 4294901760, %v9006_v32  ;;  %v21193_v23 = vand.u32 4294901760, %v9074_v43  ;;  %16593 = vmatpush3.msra.mxu1 %v9933_v12  ;;  %v9940_v49 = vand.u32 4294901760, %v9939_v45  ;;  %v21221_v44 = vcombine.high %v9118_v9, %v9134_v6 }
 0x673   :  { %16594 = vmatprep.subr.mxu1 %v23683_v59  ;;  %v9947_v58 = vand.u32 4294901760, %v9946_v8  ;;  %v21228_v45 = vcombine.high %v9050_v61, %v9066_v50  ;;  %v21233_v30 = vcombine.high %v8982_v46, %v20799_v31  ;;  %v21249_v9 = vcombine.high %v8914_v25, %v8930_v21 }
 0x674   :  { %v21196_v40 = vsub.f32 %v9006_v32, %v21186_v53  ;;  %16580 = vmatpush3.msra.mxu0 %v21193_v23  ;;  %v21210_v62 = vsub.f32 %v9074_v43, %v21193_v23  ;;  %v21213_v32 = vand.u32 4294901760, %v8938_v15  ;;  %16595 = vmatpush3.msra.mxu1 %v9940_v49  ;;  %v9247_v46 = vcombine.high %v21024_v17, %v21027_v22 }
 0x675   :  { %16581 = vmatprep.subr.mxu0 %v23683_v59  ;;  %16596 = vmatprep.subr.mxu1 %v23683_v59  ;;  %23686 = vst [vmem:[#allocation49_spill] sm:$0xff] %v21233_v30  ;;  %23687 = vst [vmem:[#allocation50_spill] sm:$0xff] %v21249_v9  ;;  %v9263_v50 = vcombine.high %v21043_v37, %v21046_v14  ;;  %v9179_v8 = vcombine.high %v20832_v4, %v20835_v39 }
 0x676   :  { %v23523_v12 = vand.u32 4294901760, %v21196_v40  ;;  %16582 = vmatpush3.msra.mxu0 %v21186_v53  ;;  %v21225_v43 = vsub.f32 %v8938_v15, %v21213_v32  ;;  %v23526_v33 = vand.u32 4294901760, %v21210_v62  ;;  %16597 = vmatpush3.msra.mxu1 %v9947_v58  ;;  %v9261_v25 = vrot.slane %v9247_v46, %v17876_v48 }
 0x677   :  { %16583 = vmatprep.subr.mxu0 %v23683_v59  ;;  %16598 = vmatprep.subr.mxu1 %v23683_v59  ;;  %v9277_v21 = vrot.slane %v9263_v50, %v17876_v48  ;;  %v9195_v17 = vcombine.high %v21007_v54, %v21010_v1  ;;  %v9111_v22 = vcombine.high %v20976_v29, %v21058_v42 }
 0x678   :  { %16584 = vmatpush3.msra.mxu0 %v21213_v32  ;;  %v9953_v6 = vsub.f32 %v21210_v62, %v23526_v33  ;;  %v9960_v51 = vsub.f32 %v21196_v40, %v23523_v12  ;;  %v23522_v61 = vand.u32 4294901760, %v21225_v43  ;;  %v9127_v37 = vcombine.high %v20934_v16, %v20963_v34  ;;  %v17503_v16 = vpop.eup %17502 }
 0x679   :  { %16585 = vmatprep.subr.mxu0 %v23683_v59  ;;  %v21268_v14 = vcombine.low %v9261_v25, %v9277_v21  ;;  %v21270_v58 = vcombine.high %v9261_v25, %v9277_v21  ;;  %v9193_v4 = vrot.slane %v9179_v8, %v17876_v48  ;;  %v9209_v39 = vrot.slane %v9195_v17, %v17876_v48 }
 0x67a   :  { %v9954_v31 = vand.u32 4294901760, %v9953_v6  ;;  %v9967_v5 = vsub.f32 %v21225_v43, %v23522_v61  ;;  %v9961_v49 = vand.u32 4294901760, %v9960_v51  ;;  %v9125_v6 = vrot.slane %v9111_v22, %v17876_v48 }
 0x67b   :  { %23688 = vst [vmem:[#allocation51_spill] sm:$0xff] %v21268_v14  ;;  %23689 = vst [vmem:[#allocation52_spill] sm:$0xff] %v21270_v58  ;;  %v9141_v54 = vrot.slane %v9127_v37, %v17876_v48  ;;  %v9043_v1 = vcombine.high %v20870_v60, %v20873_v28  ;;  %v9059_v29 = vcombine.high %v20857_v38, %v20863_v3  ;;  %v23694_v28 = vld [vmem:[#allocation22_spill] sm:$0xff] }
 0x67c   :  { %16599 = vmatpush3.msra.mxu1 %v9954_v31  ;;  %v9968_v15 = vand.u32 4294901760, %v9967_v5  ;;  %v21280_v42 = vcombine.low %v9193_v4, %v9209_v39  ;;  %v21282_v34 = vcombine.high %v9193_v4, %v9209_v39  ;;  %v8975_v46 = vcombine.high %v20745_v26, %v20758_v24 }
 0x67d   :  { %16600 = vmatprep.subr.mxu1 %v23683_v59  ;;  %v21284_v51 = vcombine.low %v9125_v6, %v9141_v54  ;;  %v21286_v31 = vcombine.high %v9125_v6, %v9141_v54  ;;  %v9057_v5 = vrot.slane %v9043_v1, %v17876_v48  ;;  %v23698_v25 = vcombine.high %v20514_v52, %v20517_v57 }
 0x67e   :  { %16601 = vmatpush3.msra.mxu1 %v9961_v49  ;;  %23690 = vst [vmem:[#allocation53_spill] sm:$0xff] %v21280_v42  ;;  %23691 = vst [vmem:[#allocation54_spill] sm:$0xff] %v21282_v34  ;;  %v9073_v49 = vrot.slane %v9059_v29, %v17876_v48  ;;  %v21299_v8 = vrot.slane %v8975_v46, %v17876_v48  ;;  %v8907_v26 = vcombine.high %v20912_v0, %v20915_v19  ;;  %v23754_v42 = vld [vmem:[#allocation29_spill] sm:$0xff] }
 0x67f   :  { %16602 = vmatprep.subr.mxu1 %v23683_v59  ;;  %23692 = vst [vmem:[#allocation55_spill] sm:$0xff] %v21284_v51  ;;  %23693 = vst [vmem:[#allocation56_spill] sm:$0xff] %v21286_v31  ;;  %v21305_v21 = vrot.slane %v23698_v25, %v17876_v48  ;;  %v23701_v57 = vcombine.low %v20734_v63, %v20829_v20  ;;  %v23753_v51 = vld [vmem:[#allocation28_spill] sm:$0xff] }
 0x680   :  { %16603 = vmatpush3.msra.mxu1 %v9968_v15  ;;  %v5977_v15 = vmul.f32 %v17503_v16, %v23694_v28  ;;  %v21294_v3 = vcombine.low %v9057_v5, %v9073_v49  ;;  %v21296_v50 = vcombine.high %v9057_v5, %v9073_v49  ;;  %23697 = vst [vmem:[#allocation58_spill] sm:$0xff] %v21299_v8 }
 0x681   :  { %16604 = vmatprep.subr.mxu1 %v23683_v59  ;;  %23699 = vst [vmem:[#allocation59_spill] sm:$0xff] %v21305_v21  ;;  %v21313_v22 = vcombine.high %v21299_v8, %v21305_v21  ;;  %v7878_v0 = vrot.slane %v23701_v57, %v17753_v36  ;;  %v8921_v19 = vrot.slane %v8907_v26, %v17876_v48  ;;  %v23706_v26 = vld [vmem:[#allocation11_spill] sm:$0xff] }
 0x682   :  { %23695 = vst [vmem:[#allocation22_spill] sm:$0xff] %v21294_v3  ;;  %23696 = vst [vmem:[#allocation57_spill] sm:$0xff] %v21296_v50  ;;  %v9827_v37 = vsel %vm5903_vm2, %v5977_v15, 0  ;;  %v23751_v3 = vld [vmem:[#allocation18_spill] sm:$0xff]  ;;  %v23755_v14 = vcombine.low %v23753_v51, %v23754_v42 }
 0x683   :  { %23700 = vst [vmem:[#allocation60_spill] sm:$0xff] %v21313_v22  ;;  %v21332_v1 = vand.u32 4294901760, %v9827_v37 }
 0x685   :  { %23703 = vst [vmem:[#allocation61_spill] sm:$0xff] %v21332_v1 }
 0x68b   :  { %v5912_v60 = vpop.xlane.xlu1 %5911 }
 0x68c   :  { %v5930_v38 = vsub.f32 %v19262_v35, %v5912_v60  ;;  %v8923_v35 = vcombine.high %v21118_v47, %v21121_v7  ;;  %v23702_v7 = vcombine.high %v20734_v63, %v20829_v20  ;;  %v8738_v63 = vcombine.low %v21097_v10, %v21103_v18 }
 0x68e   :  { %v5940_v24 = vmul.f32 1.442695, %v5930_v38  ;;  %v8937_v47 = vrot.slane %v8923_v35, %v17876_v48  ;;  %v7885_v39 = vrot.slane %v23702_v7, %v17753_v36  ;;  %v21350_v18 = vrot.slane %v8738_v63, %v17753_v36 }
 0x68f   :  { %v7561_v17 = vpop.permute.xlu1 %7560 }
 0x690   :  { %17504 = vpow2.f32 %v5940_v24  ;;  %v7854_v4 = vcombine.low %v20441_v27, %v7561_v17  ;;  %v7855_v52 = vcombine.high %v20441_v27, %v7561_v17  ;;  %v8839_v27 = vcombine.high %v21131_v56, %v21143_v11 }
 0x691   :  { %v21334_v16 = vcombine.low %v8921_v19, %v8937_v47  ;;  %v21336_v5 = vcombine.high %v8921_v19, %v8937_v47  ;;  %v23707_v19 = vld [vmem:[#allocation42_spill] sm:$0xff]  ;;  %v23708_v47 = vld [vmem:[#allocation41_spill] sm:$0xff] }
 0x692   :  { %v7862_v6 = vrot.slane %v7854_v4, %v17753_v36  ;;  %v7869_v54 = vrot.slane %v7855_v52, %v17753_v36  ;;  %v21347_v4 = vsub.f32 %v9827_v37, %v21332_v1  ;;  %v8746_v7 = vcombine.low %v23708_v47, %v23707_v19 }
 0x693   :  { %v7557_v29 = vpop.permute.xlu1 %7556  ;;  %23704 = vst [vmem:[#allocation62_spill] sm:$0xff] %v21334_v16  ;;  %23705 = vst [vmem:[#allocation63_spill] sm:$0xff] %v21336_v5  ;;  %v23711_v19 = vcombine.low %v21131_v56, %v21143_v11  ;;  %v23734_v5 = vld [vmem:[#allocation30_spill] sm:$0xff] }
 0x694   :  { %v7886_v49 = vcombine.low %v7862_v6, %v7878_v0  ;;  %v7887_v46 = vcombine.high %v7862_v6, %v7878_v0  ;;  %v7902_v60 = vcombine.low %v7869_v54, %v7885_v39  ;;  %v7903_v28 = vcombine.high %v7869_v54, %v7885_v39  ;;  %v23709_v39 = vld [vmem:[#allocation34_spill] sm:$0xff] }
 0x695   :  { %v7718_v24 = vcombine.low %v23706_v26, %v7557_v29  ;;  %v7719_v35 = vcombine.high %v23706_v26, %v7557_v29  ;;  %v8846_v47 = vrot.slane %v23711_v19, %v17876_v48  ;;  %v23713_v19 = vld [vmem:[#allocation7_spill] sm:$0xff] }
 0x696   :  { %v7894_v20 = vrot.slane %v7886_v49, %v17876_v48  ;;  %v7901_v15 = vrot.slane %v7887_v46, %v17876_v48  ;;  %v7910_v38 = vrot.slane %v7902_v60, %v17876_v48  ;;  %v7917_v25 = vrot.slane %v7903_v28, %v17876_v48 }
 0x697   :  { %v7605_v17 = vpop.permute.xlu1 %7604  ;;  %v7726_v60 = vrot.slane %v7718_v24, %v17753_v36  ;;  %v7733_v28 = vrot.slane %v7719_v35, %v17753_v36  ;;  %v8753_v35 = vrot.slane %v8746_v7, %v17753_v36 }
 0x698   :  { %v8822_v52 = vcombine.low %v7894_v20, %v7910_v38  ;;  %v8830_v57 = vcombine.low %v7901_v15, %v7917_v25  ;;  %v14354_v0 = vcombine.high %v7894_v20, %v7910_v38  ;;  %v14355_v10 = vcombine.high %v7901_v15, %v7917_v25  ;;  %v23720_v38 = vld [vmem:[#allocation9_spill] sm:$0xff] }
 0x699   :  { %v7734_v6 = vcombine.low %v23709_v39, %v7605_v17  ;;  %v7735_v54 = vcombine.high %v23709_v39, %v7605_v17 }
 0x69a   :  { %v8829_v29 = vrot.slane %v8822_v52, %v17753_v36  ;;  %v8837_v49 = vrot.slane %v8830_v57, %v17753_v36  ;;  %v21359_v37 = vrot.slane %v14354_v0, %v17753_v36  ;;  %v21362_v46 = vrot.slane %v14355_v10, %v17753_v36 }
 0x69b   :  { %v7742_v63 = vrot.slane %v7734_v6, %v17753_v36  ;;  %v7749_v20 = vrot.slane %v7735_v54, %v17753_v36 }
 0x69c   :  { %v8854_v25 = vcombine.low %v8829_v29, %v8837_v49  ;;  %v8855_v26 = vcombine.high %v8829_v29, %v8837_v49 }
 0x69d   :  { %v21372_v17 = vpop.eup %17504  ;;  %v7750_v52 = vcombine.low %v7726_v60, %v7742_v63  ;;  %v7751_v57 = vcombine.high %v7726_v60, %v7742_v63  ;;  %v7766_v0 = vcombine.low %v7733_v28, %v7749_v20  ;;  %v7767_v24 = vcombine.high %v7733_v28, %v7749_v20 }
 0x69e   :  { %23710 = vst [vmem:[#allocation11_spill] sm:$0xff] %v21372_v17  ;;  %v5958_v10 = vsel %vm5903_vm2, %v21372_v17, 0.0  ;;  %v8862_v39 = vrot.slane %v8854_v25, %v17876_v48  ;;  %v8853_v28 = vrot.slane %v8839_v27, %v17876_v48  ;;  %v8869_v63 = vrot.slane %v8855_v26, %v17876_v48 }
 0x69f   :  { %v7758_v6 = vrot.slane %v7750_v52, %v17876_v48  ;;  %v7765_v54 = vrot.slane %v7751_v57, %v17876_v48  ;;  %v7774_v29 = vrot.slane %v7766_v0, %v17876_v48  ;;  %v7781_v49 = vrot.slane %v7767_v24, %v17876_v48  ;;  %5959 = vadd.xlane.f32.xlu0 %v5958_v10 }
 0x6a0   :  { %v8870_v7 = vcombine.low %v8846_v47, %v8862_v39  ;;  %v21386_v60 = vcombine.high %v8846_v47, %v8862_v39  ;;  %v5916_v52 = vsel %vm5903_vm2, %v23713_v19, -inf  ;;  %v21394_v0 = vcombine.low %v8853_v28, %v8869_v63 }
 0x6a1   :  { %v8754_v11 = vcombine.low %v7758_v6, %v7774_v29  ;;  %v8762_v56 = vcombine.low %v7765_v54, %v7781_v49  ;;  %v14350_v20 = vcombine.high %v7758_v6, %v7774_v29  ;;  %v14351_v25 = vcombine.high %v7765_v54, %v7781_v49 }
 0x6a2   :  { %23712 = vst [vmem:[#allocation42_spill] sm:$0xff] %v21386_v60  ;;  %v21392_v57 = vand.u32 4294901760, %v8870_v7  ;;  %23714 = vst [vmem:[#allocation41_spill] sm:$0xff] %v21394_v0  ;;  %v21396_v24 = vcombine.high %v8853_v28, %v8869_v63  ;;  %v8770_v26 = vcombine.low %v21350_v18, %v8753_v35  ;;  %v23525_v54 = vand.u32 4294901760, %v21347_v4  ;;  %v23756_v60 = vld [vmem:[#allocation43_spill] sm:$0xff] }
 0x6a3   :  { %v8761_v10 = vrot.slane %v8754_v11, %v17753_v36  ;;  %v8769_v47 = vrot.slane %v8762_v56, %v17753_v36  ;;  %v21401_v27 = vrot.slane %v14350_v20, %v17753_v36  ;;  %5917 = vmax.xlane.f32.xlu0 %v5916_v52  ;;  %v21405_v39 = vrot.slane %v14351_v25, %v17753_v36  ;;  %v23717_v11 = vld [vmem:[#allocation6_spill] sm:$0xff]  ;;  %v23731_v36 = vld [vmem:[#allocation35_spill] sm:$0xff] }
 0x6a4   :  { %23715 = vst [vmem:[#allocation34_spill] sm:$0xff] %v21396_v24  ;;  %16586 = vmatpush3.msra.mxu0 %v21392_v57  ;;  %v21409_v6 = vsub.f32 %v8870_v7, %v21392_v57  ;;  %v8771_v49 = vcombine.high %v21350_v18, %v8753_v35  ;;  %v5919_v56 = vsel %vm5903_vm2, %v23717_v11, -inf  ;;  %v21422_v7 = vrot.slane %v8770_v26, %v17876_v48 }
 0x6a5   :  { %23716 = vst [vmem:[#allocation64_spill] sm:$0xff] %v21405_v39  ;;  %16587 = vmatprep.subr.mxu0 %v23683_v59  ;;  %v8786_v29 = vcombine.low %v8761_v10, %v8769_v47  ;;  %v9905_v35 = vsub.f32 %v21347_v4, %v23525_v54  ;;  %v8787_v63 = vcombine.high %v8761_v10, %v8769_v47  ;;  %v23722_v47 = vld [vmem:[#allocation8_spill] sm:$0xff] }
 0x6a6   :  { %v23524_v20 = vand.u32 4294901760, %v21409_v6  ;;  %23718 = vst [vmem:[#allocation65_spill] sm:$0xff] %v21422_v7 }
 0x6a7   :  { %5920 = vmax.xlane.f32.xlu0 %v5919_v56  ;;  %v21425_v25 = vrot.slane %v8786_v29, %v17876_v48  ;;  %v5922_v56 = vsel %vm5903_vm2, %v23720_v38, -inf  ;;  %v8785_v29 = vrot.slane %v8771_v49, %v17876_v48  ;;  %v8801_v12 = vrot.slane %v8787_v63, %v17876_v48  ;;  %v23724_v63 = vld [vmem:[#allocation45_spill] sm:$0xff] }
 0x6a8   :  { %v9974_v18 = vsub.f32 %v21409_v6, %v23524_v20  ;;  %v9906_v20 = vand.u32 4294901760, %v9905_v35 }
 0x6a9   :  { %23719 = vst [vmem:[#allocation66_spill] sm:$0xff] %v21425_v25  ;;  %v8802_v52 = vcombine.low %v21422_v7, %v21425_v25  ;;  %v21446_v10 = vcombine.low %v8785_v29, %v8801_v12  ;;  %v21451_v49 = vcombine.high %v8785_v29, %v8801_v12  ;;  %v23728_v29 = vld [vmem:[#allocation37_spill] sm:$0xff]  ;;  %v23759_v25 = vld [vmem:[#allocation12_spill] sm:$0xff] }
 0x6aa   :  { %v9975_v26 = vand.u32 4294901760, %v9974_v18  ;;  %v5925_v18 = vsel %vm5903_vm2, %v23722_v47, -inf  ;;  %v23741_v47 = vld [vmem:[#allocation21_spill] sm:$0xff] }
 0x6ab   :  { %5923 = vmax.xlane.f32.xlu0 %v5922_v56  ;;  %v21437_v61 = vand.u32 4294901760, %v8802_v52  ;;  %23721 = vst [vmem:[#allocation67_spill] sm:$0xff] %v21446_v10  ;;  %23723 = vst [vmem:[#allocation68_spill] sm:$0xff] %v21451_v49  ;;  %v23732_v49 = vld [vmem:[#allocation36_spill] sm:$0xff]  ;;  %v23748_v10 = vld [vmem:[#allocation27_spill] sm:$0xff] }
 0x6ac   :  { %16605 = vmatpush3.msra.mxu1 %v9975_v26  ;;  %v23758_v7 = vld [vmem:[#allocation13_spill] sm:$0xff] }
 0x6ad   :  { %16588 = vmatpush3.msra.mxu0 %v21437_v61  ;;  %v21443_v54 = vsub.f32 %v8802_v52, %v21437_v61  ;;  %16606 = vmatprep.subr.mxu1 %v23683_v59  ;;  %v23725_v52 = vld [vmem:[#allocation39_spill] sm:$0xff]  ;;  %v23760_v9 = vcombine.low %v23758_v7, %v23759_v25 }
 0x6ae   :  { %16590 = vmatmul.mubr.f32.vlgmr.msra.gmra.mxu0 %v9906_v20  ;;  %16611 = vmatprep.subr.mxu0 %v23683_v59  ;;  %v23726_v20 = vld [vmem:[#allocation40_spill] sm:$0xff] }
 0x6af   :  { %16612 = vmatpush3.msra.mxu0 %v23724_v63  ;;  %5926 = vmax.xlane.f32.xlu0 %v5925_v18  ;;  %v23532_v35 = vand.u32 4294901760, %v21443_v54  ;;  %v23727_v56 = vcombine.low %v23725_v52, %v23726_v20  ;;  %v23729_v18 = vld [vmem:[#allocation38_spill] sm:$0xff]  ;;  %v9542_v30 = vrot.slane %v23760_v9, %v17876_v48  ;;  %v23767_v9 = vcombine.low %v21359_v37, %v21362_v46 }
 0x6b0   :  { %16613 = vmatprep.subr.mxu0 %v23683_v59  ;;  %16627 = vmatprep.mubr.msk.f32.mxu0 %vm17634_vm1, %v23683_v59  ;;  %v23730_v33 = vcombine.low %v23728_v29, %v23729_v18 }
 0x6b1   :  { %v9814_v26 = vrot.slane %v23727_v56, %v17876_v48  ;;  %16614 = vmatpush3.msra.mxu0 %v21153_v55  ;;  %v9981_v12 = vsub.f32 %v21443_v54, %v23532_v35  ;;  %v23733_v56 = vcombine.low %v23731_v36, %v23732_v49  ;;  %v23735_v35 = vld [vmem:[#allocation31_spill] sm:$0xff]  ;;  %v9406_v25 = vrot.slane %v23767_v9, %v17876_v48 }
 0x6b2   :  { %16615 = vmatprep.subr.mxu0 %v23683_v59  ;;  %v9798_v28 = vrot.slane %v23730_v33, %v17876_v48  ;;  %v23736_v22 = vcombine.low %v23734_v5, %v23735_v35  ;;  %v23738_v33 = vld [vmem:[#allocation17_spill] sm:$0xff] }
 0x6b3   :  { %16616 = vmatpush3.msra.mxu0 %v21175_v13  ;;  %v9982_v15 = vand.u32 4294901760, %v9981_v12  ;;  %v9746_v24 = vrot.slane %v23733_v56, %v17876_v48  ;;  %v23739_v12 = vld [vmem:[#allocation16_spill] sm:$0xff] }
 0x6b4   :  { %16617 = vmatprep.subr.mxu0 %v23683_v59  ;;  %v9662_v50 = vrot.slane %v23736_v22, %v17876_v48  ;;  %v21482_v31 = vcombine.low %v9798_v28, %v9814_v26  ;;  %v23740_v34 = vcombine.low %v23738_v33, %v23739_v12  ;;  %v23742_v56 = vld [vmem:[#allocation20_spill] sm:$0xff]  ;;  %v23744_v22 = vld [vmem:[#allocation15_spill] sm:$0xff]  ;;  %v21550_v9 = vcombine.high %v9798_v28, %v9814_v26 }
 0x6b5   :  { %16607 = vmatpush3.msra.mxu1 %v9982_v15  ;;  %16618 = vmatpush3.msra.mxu0 %v21210_v62  ;;  %v23743_v17 = vcombine.low %v23741_v47, %v23742_v56  ;;  %v23745_v15 = vld [vmem:[#allocation14_spill] sm:$0xff]  ;;  %v23777_v28 = vcombine.low %v21401_v27, %v21405_v39 }
 0x6b6   :  { %23737 = vst [vmem:[#allocation45_spill] sm:$0xff] %v21482_v31  ;;  %v9730_v58 = vrot.slane %v23740_v34, %v17876_v48  ;;  %16609 = vmatmul.mubr.f32.vlgmr.msra.gmra.mxu1 %v21332_v1  ;;  %16619 = vmatprep.subr.mxu0 %v23683_v59  ;;  %v23746_v11 = vcombine.low %v23744_v22, %v23745_v15  ;;  %v23747_v31 = vld [vmem:[#allocation26_spill] sm:$0xff]  ;;  %v5957_v34 = vpop.xlane.xlu0 %5956  ;;  %v23762_v1 = vld [vmem:[#allocation24_spill] sm:$0xff]  ;;  %23774 = vst [vmem:[#allocation36_spill] sm:$0xff] %v21550_v9  ;;  %v23778_v9 = vand.u32 4294901760, %v21153_v55 }
 0x6b7   :  { %v9594_v38 = vrot.slane %v23743_v17, %v17876_v48  ;;  %v23749_v0 = vcombine.low %v23747_v31, %v23748_v10  ;;  %16630 = vmatprep.subr.mxu1 %v23683_v59  ;;  %16620 = vmatpush3.msra.mxu0 %v21196_v40  ;;  %v23750_v17 = vld [vmem:[#allocation19_spill] sm:$0xff]  ;;  %17506 = vrcp.f32 %v5957_v34  ;;  %v23771_v34 = vld [vmem:[#allocation32_spill] sm:$0xff]  ;;  %v21567_v26 = vrot.slane %v23777_v28, %v17876_v48 }
 0x6b8   :  { %v9526_v19 = vrot.slane %v23746_v11, %v17876_v48  ;;  %v23752_v8 = vcombine.low %v23750_v17, %v23751_v3  ;;  %v9474_v11 = vrot.slane %v23755_v14, %v17876_v48  ;;  %16631 = vmatpush3.msra.mxu1 %v23756_v60  ;;  %16621 = vmatprep.subr.mxu0 %v23683_v59  ;;  %v23763_v14 = vld [vmem:[#allocation25_spill] sm:$0xff]  ;;  %v23765_v3 = vld [vmem:[#allocation44_spill] sm:$0xff]  ;;  %v23782_v28 = vand.u32 4294901760, %v21175_v13 }
 0x6b9   :  { %v9678_v16 = vrot.slane %v23749_v0, %v17876_v48  ;;  %v21514_v0 = vcombine.low %v9730_v58, %v9746_v24  ;;  %16632 = vmatprep.subr.mxu1 %v23683_v59  ;;  %16622 = vmatpush3.msra.mxu0 %v21225_v43  ;;  %v23764_v42 = vcombine.low %v23762_v1, %v23763_v14  ;;  %v23769_v14 = vld [vmem:[#allocation48_spill] sm:$0xff]  ;;  %v23784_v13 = vand.u32 4294901760, %v21210_v62  ;;  %v23787_v62 = vld [vmem:[#allocation23_spill] sm:$0xff] }
 0x6ba   :  { %v9610_v21 = vrot.slane %v23752_v8, %v17876_v48  ;;  %16633 = vmatpush3.msra.mxu1 %v23765_v3  ;;  %16623 = vmatprep.subr.mxu0 %v23683_v59  ;;  %v21583_v39 = vcombine.high %v9730_v58, %v9746_v24  ;;  %v23785_v58 = vand.u32 4294901760, %v21347_v4 }
 0x6bb   :  { %23757 = vst [vmem:[#allocation39_spill] sm:$0xff] %v21514_v0  ;;  %v21522_v8 = vcombine.low %v9662_v50, %v9678_v16  ;;  %v9458_v51 = vrot.slane %v23764_v42, %v17876_v48  ;;  %16634 = vmatprep.subr.mxu1 %v23683_v59  ;;  %16624 = vmatpush3.msra.mxu0 %v21409_v6 }
 0x6bc   :  { %v21530_v0 = vcombine.low %v9594_v38, %v9610_v21  ;;  %16635 = vmatpush3.msra.mxu1 %v23769_v14  ;;  %16625 = vmatprep.subr.mxu0 %v23683_v59  ;;  %v21587_v55 = vcombine.high %v9662_v50, %v9678_v16  ;;  %v21600_v24 = vcombine.high %v9594_v38, %v9610_v21  ;;  %v23788_v21 = vld [vmem:[#allocation10_spill] sm:$0xff] }
 0x6bd   :  { %23761 = vst [vmem:[#allocation40_spill] sm:$0xff] %v21522_v8  ;;  %v21538_v8 = vcombine.low %v9526_v19, %v9542_v30  ;;  %v21542_v42 = vcombine.low %v9458_v51, %v9474_v11  ;;  %16636 = vmatprep.subr.mxu1 %v23683_v59  ;;  %16626 = vmatpush3.msra.mxu0 %v21443_v54 }
 0x6be   :  { %23766 = vst [vmem:[#allocation37_spill] sm:$0xff] %v21530_v0  ;;  %v23772_v0 = vld [vmem:[#allocation33_spill] sm:$0xff]  ;;  %16637 = vmatpush3.msra.mxu1 %v21193_v23  ;;  %16628 = vmatmul.mubr.f32.vlgmr.msra.gmra.mxu0 %v21347_v4  ;;  %23783 = vst [vmem:[#allocation31_spill] sm:$0xff] %v21587_v55  ;;  %v21602_v50 = vcombine.high %v9526_v19, %v9542_v30  ;;  %v23786_v55 = vand.u32 4294901760, %v21196_v40  ;;  %v21613_v4 = vand.u32 4294901760, %v21206_v2  ;;  %v21628_v19 = vand.u32 4294901760, %v21219_v41 }
 0x6bf   :  { %23768 = vst [vmem:[#allocation38_spill] sm:$0xff] %v21538_v8  ;;  %23770 = vst [vmem:[#allocation35_spill] sm:$0xff] %v21542_v42  ;;  %v23773_v1 = vcombine.low %v23771_v34, %v23772_v0  ;;  %16638 = vmatprep.subr.mxu1 %v23683_v59  ;;  %16649 = vmatprep.subr.mxu0 %v23683_v59 }
 0x6c0   :  { %16639 = vmatpush3.msra.mxu1 %v21186_v53  ;;  %16646 = vmatprep.mubr.msk.f32.mxu1 %vm17634_vm1, %v23683_v59 }
 0x6c1   :  { %v9390_v7 = vrot.slane %v23773_v1, %v17876_v48  ;;  %v23776_v1 = vand.u32 4294901760, %v23724_v63  ;;  %16640 = vmatprep.subr.mxu1 %v23683_v59  ;;  %v23779_v63 = vld [vmem:[#allocation46_spill] sm:$0xff]  ;;  %16665 = vmatprep.mubr.msk.f32.mxu0 %vm17634_vm1, %v23683_v59 }
 0x6c2   :  { %16641 = vmatpush3.msra.mxu1 %v21213_v32 }
 0x6c3   :  { %v21556_v42 = vcombine.low %v9390_v7, %v9406_v25  ;;  %16650 = vmatpush3.msra.mxu0 %v23776_v1  ;;  %16642 = vmatprep.subr.mxu1 %v23683_v59  ;;  %v23780_v1 = vld [vmem:[#allocation47_spill] sm:$0xff] }
 0x6c4   :  { %16651 = vmatprep.subr.mxu0 %v23683_v59  ;;  %16643 = vmatpush3.msra.mxu1 %v21392_v57 }
 0x6c5   :  { %23775 = vst [vmem:[#allocation30_spill] sm:$0xff] %v21556_v42  ;;  %16652 = vmatpush3.msra.mxu0 %v23778_v9  ;;  %v23781_v42 = vcombine.low %v23779_v63, %v23780_v1  ;;  %16644 = vmatprep.subr.mxu1 %v23683_v59  ;;  %v17507_v9 = vpop.eup %17506 }
 0x6c6   :  { %16653 = vmatprep.subr.mxu0 %v23683_v59  ;;  %16645 = vmatpush3.msra.mxu1 %v21437_v61  ;;  %v5979_v30 = vmul.f32 %v17507_v9, %v23788_v21 }
 0x6c7   :  { %v21578_v8 = vrot.slane %v23781_v42, %v17876_v48  ;;  %16654 = vmatpush3.msra.mxu0 %v23782_v28  ;;  %16647 = vmatmul.mubr.f32.vlgmr.msra.gmra.mxu1 %v23785_v58  ;;  %v21606_v28 = vcombine.high %v9458_v51, %v9474_v11  ;;  %v23789_v51 = vcombine.high %v23725_v52, %v23726_v20  ;;  %v23803_v58 = vld [vmem:[#allocation29_spill] sm:$0xff] }
 0x6c8   :  { %16655 = vmatprep.subr.mxu0 %v23683_v59  ;;  %16668 = vmatprep.subr.mxu1 %v23683_v59  ;;  %v5915_v16 = vpop.xlane.xlu1 %5914  ;;  %v23791_v11 = vcombine.high %v23744_v22, %v23745_v15  ;;  %v23792_v52 = vcombine.high %v23731_v36, %v23732_v49  ;;  %v23794_v22 = vcombine.high %v23728_v29, %v23729_v18  ;;  %v23795_v36 = vand.u32 4294901760, %v21409_v6 }
 0x6c9   :  { %v21594_v42 = vcombine.low %v21578_v8, %v21567_v26  ;;  %16656 = vmatpush3.msra.mxu0 %v23784_v13  ;;  %16669 = vmatpush3.msra.mxu1 %v23756_v60  ;;  %v5931_v13 = vsub.f32 %v23787_v62, %v5915_v16  ;;  %v21622_v38 = vrot.slane %v23789_v51, %v17876_v48  ;;  %v23790_v60 = vand.u32 4294901760, %v21225_v43  ;;  %v23806_v51 = vld [vmem:[#allocation13_spill] sm:$0xff] }
 0x6ca   :  { %16657 = vmatprep.subr.mxu0 %v23683_v59  ;;  %16670 = vmatprep.subr.mxu1 %v23683_v59  ;;  %v21640_v20 = vrot.slane %v23792_v52, %v17876_v48  ;;  %v21644_v43 = vcombine.high %v9390_v7, %v9406_v25  ;;  %v21656_v15 = vrot.slane %v23794_v22, %v17876_v48  ;;  %v21666_v25 = vand.u32 4294901760, %v21221_v44  ;;  %v23810_v22 = vld [vmem:[#allocation24_spill] sm:$0xff] }
 0x6cb   :  { %16658 = vmatpush3.msra.mxu0 %v23786_v55  ;;  %v5942_v40 = vmul.f32 1.442695, %v5931_v13  ;;  %16671 = vmatpush3.msra.mxu1 %v23765_v3  ;;  %v21634_v55 = vrot.slane %v23791_v11, %v17876_v48  ;;  %v23793_v3 = vcombine.high %v23734_v5, %v23735_v35  ;;  %v21663_v7 = vsub.f32 %v21206_v2, %v21613_v4 }
 0x6cc   :  { %16659 = vmatprep.subr.mxu0 %v23683_v59  ;;  %16672 = vmatprep.subr.mxu1 %v23683_v59  ;;  %v23796_v5 = vcombine.high %v23738_v33, %v23739_v12  ;;  %v23797_v6 = vcombine.high %v23741_v47, %v23742_v56  ;;  %v10367_v2 = vsel %vm5903_vm2, %v5979_v30, 0  ;;  %v23798_v29 = vcombine.high %v23747_v31, %v23748_v10  ;;  %v23800_v31 = vld [vmem:[#allocation18_spill] sm:$0xff] }
 0x6cd   :  { %16660 = vmatpush3.msra.mxu0 %v23790_v60  ;;  %v21650_v9 = vrot.slane %v23793_v3, %v17876_v48  ;;  %16673 = vmatpush3.msra.mxu1 %v23769_v14  ;;  %17508 = vpow2.f32 %v5942_v40  ;;  %v23799_v33 = vand.u32 4294901760, %v21443_v54  ;;  %v21695_v47 = vsub.f32 %v21219_v41, %v21628_v19  ;;  %v23802_v14 = vld [vmem:[#allocation28_spill] sm:$0xff]  ;;  %v23805_v41 = vld [vmem:[#allocation61_spill] sm:$0xff] }
 0x6ce   :  { %16661 = vmatprep.subr.mxu0 %v23683_v59  ;;  %v21672_v49 = vrot.slane %v23796_v5, %v17876_v48  ;;  %v21678_v35 = vrot.slane %v23797_v6, %v17876_v48  ;;  %16674 = vmatprep.subr.mxu1 %v23683_v59  ;;  %v21687_v18 = vrot.slane %v23798_v29, %v17876_v48  ;;  %v21698_v12 = vand.u32 4294901760, %v21228_v45  ;;  %v23807_v40 = vld [vmem:[#allocation12_spill] sm:$0xff] }
 0x6cf   :  { %16662 = vmatpush3.msra.mxu0 %v23795_v36  ;;  %v21702_v56 = vcombine.low %v21656_v15, %v21622_v38  ;;  %v23801_v10 = vcombine.high %v23750_v17, %v23800_v31  ;;  %v23804_v16 = vcombine.high %v23802_v14, %v23803_v58  ;;  %16675 = vmatpush3.msra.mxu1 %v21193_v23  ;;  %v23567_v21 = vand.u32 4294901760, %v21663_v7  ;;  %v23811_v36 = vld [vmem:[#allocation25_spill] sm:$0xff]  ;;  %v23814_v14 = vld [vmem:[#allocation50_spill] sm:$0xff] }
 0x6d0   :  { %16663 = vmatprep.subr.mxu0 %v23683_v59  ;;  %v21720_v13 = vcombine.low %v21672_v49, %v21640_v20  ;;  %16676 = vmatprep.subr.mxu1 %v23683_v59  ;;  %v21726_v17 = vsub.f32 %v21221_v44, %v21666_v25  ;;  %v21729_v30 = vand.u32 4294901760, %v10367_v2  ;;  %v21733_v23 = vcombine.low %v21650_v9, %v21687_v18  ;;  %v23809_v44 = vld [vmem:[#allocation49_spill] sm:$0xff] }
 0x6d1   :  { %16664 = vmatpush3.msra.mxu0 %v23799_v33  ;;  %v21708_v54 = vrot.slane %v23801_v10, %v17876_v48  ;;  %v21714_v62 = vrot.slane %v23804_v16, %v17876_v48  ;;  %v23808_v60 = vcombine.high %v23806_v51, %v23807_v40  ;;  %16677 = vmatpush3.msra.mxu1 %v21186_v53  ;;  %v21744_v52 = vand.u32 4294901760, %v23809_v44  ;;  %v23816_v16 = vld [vmem:[#allocation65_spill] sm:$0xff] }
 0x6d2   :  { %16666 = vmatmul.mubr.f32.vlgmr.msra.gmra.mxu0 %v23805_v41  ;;  %16687 = vmatprep.subr.mxu0 %v23683_v59  ;;  %v23812_v5 = vcombine.high %v23810_v22, %v23811_v36  ;;  %v21760_v53 = vsub.f32 %v21228_v45, %v21698_v12  ;;  %v23566_v29 = vand.u32 4294901760, %v21695_v47  ;;  %v21765_v33 = vcombine.high %v21578_v8, %v21567_v26  ;;  %v23815_v45 = vld [vmem:[#allocation66_spill] sm:$0xff] }
 0x6d3   :  { %v21739_v11 = vrot.slane %v23808_v60, %v17876_v48  ;;  %16688 = vmatpush3.msra.mxu0 %v21613_v4  ;;  %v21748_v3 = vcombine.low %v21678_v35, %v21708_v54  ;;  %16678 = vmatprep.subr.mxu1 %v23683_v59  ;;  %v23813_v31 = vcombine.high %v21359_v37, %v21362_v46  ;;  %v21776_v58 = vand.u32 4294901760, %v23814_v14 }
 0x6d4   :  { %v21754_v6 = vrot.slane %v23812_v5, %v17876_v48  ;;  %16689 = vmatprep.subr.mxu0 %v23683_v59  ;;  %16679 = vmatpush3.msra.mxu1 %v21213_v32  ;;  %v8803_v51 = vcombine.high %v23816_v16, %v23815_v45  ;;  %v10472_v32 = vsub.f32 %v21663_v7, %v23567_v21  ;;  %v23565_v37 = vand.u32 4294901760, %v21726_v17 }
 0x6d5   :  { %v21771_v10 = vrot.slane %v23813_v31, %v17876_v48  ;;  %16690 = vmatpush3.msra.mxu0 %v21628_v19  ;;  %v21782_v8 = vcombine.low %v21634_v55, %v21739_v11  ;;  %16680 = vmatprep.subr.mxu1 %v23683_v59  ;;  %v21791_v46 = vsub.f32 %v10367_v2, %v21729_v30  ;;  %v23818_v2 = vld [vmem:[#allocation42_spill] sm:$0xff] }
 0x6d6   :  { %16691 = vmatprep.subr.mxu0 %v23683_v59  ;;  %v21795_v26 = vcombine.low %v21754_v6, %v21714_v62  ;;  %v23817_v40 = vcombine.high %v23771_v34, %v23772_v0  ;;  %16681 = vmatpush3.msra.mxu1 %v21392_v57  ;;  %v21807_v22 = vsub.f32 %v23809_v44, %v21744_v52  ;;  %v21810_v36 = vand.u32 4294901760, %v23818_v2 }
 0x6d7   :  { %16692 = vmatpush3.msra.mxu0 %v21666_v25  ;;  %16682 = vmatprep.subr.mxu1 %v23683_v59  ;;  %v10479_v0 = vsub.f32 %v21695_v47, %v23566_v29  ;;  %v21822_v57 = vsub.f32 %v23814_v14, %v21776_v58  ;;  %v21824_v34 = vand.u32 4294901760, %v8803_v51  ;;  %v10492_v44 = vand.u32 4294901760, %v21760_v53 }
 0x6d8   :  { %v21801_v60 = vrot.slane %v23817_v40, %v17876_v48  ;;  %16693 = vmatprep.subr.mxu0 %v23683_v59  ;;  %16683 = vmatpush3.msra.mxu1 %v21437_v61  ;;  %v10473_v61 = vand.u32 4294901760, %v10472_v32  ;;  %v10486_v31 = vsub.f32 %v21726_v17, %v23565_v37  ;;  %v10444_v14 = vand.u32 4294901760, %v21791_v46  ;;  %v23820_v37 = vld [vmem:[#allocation64_spill] sm:$0xff] }
 0x6d9   :  { %16684 = vmatprep.mubr.msk.f32.mxu1 %vm17634_vm1, %v23683_v59  ;;  %16694 = vmatpush3.msra.mxu0 %v21698_v12  ;;  %v21841_v45 = vsub.f32 %v23818_v2, %v21810_v36  ;;  %v23821_v29 = vcombine.high %v21401_v27, %v23820_v37  ;;  %v10480_v2 = vand.u32 4294901760, %v10479_v0  ;;  %v21860_v16 = vsub.f32 %v8803_v51, %v21824_v34 }
 0x6da   :  { %v21829_v5 = vcombine.low %v21801_v60, %v21771_v10  ;;  %16685 = vmatmul.mubr.f32.vlgmr.msra.gmra.mxu1 %v23805_v41  ;;  %16695 = vmatprep.subr.mxu0 %v23683_v59  ;;  %v21844_v40 = vpop.eup %17508  ;;  %v23819_v41 = vcombine.high %v23779_v63, %v23780_v1  ;;  %v10493_v63 = vsub.f32 %v21760_v53, %v10492_v44  ;;  %v10506_v1 = vand.u32 4294901760, %v21822_v57 }
 0x6db   :  { %16706 = vmatprep.subr.mxu1 %v23683_v59  ;;  %v9345_v21 = vrot.slane %v23821_v29, %v17876_v48  ;;  %16696 = vmatpush3.msra.mxu0 %v21744_v52  ;;  %v21868_v27 = vcombine.high %v21656_v15, %v21622_v38  ;;  %v10487_v29 = vand.u32 4294901760, %v10486_v31  ;;  %v10445_v37 = vsub.f32 %v21791_v46, %v10444_v14 }
 0x6dc   :  { %v21850_v32 = vrot.slane %v23819_v41, %v17876_v48  ;;  %16707 = vmatpush3.msra.mxu1 %v10473_v61  ;;  %16697 = vmatprep.subr.mxu0 %v23683_v59  ;;  %v21876_v51 = vcombine.high %v21672_v49, %v21640_v20  ;;  %v21880_v0 = vcombine.high %v21650_v9, %v21687_v18  ;;  %v5961_v38 = vsel %vm5903_vm2, %v21844_v40, 0.0 }
 0x6dd   :  { %16708 = vmatprep.subr.mxu1 %v23683_v59  ;;  %16698 = vmatpush3.msra.mxu0 %v21776_v58  ;;  %v23822_v15 = vand.u32 4294901760, %v21807_v22  ;;  %v10513_v31 = vand.u32 4294901760, %v21841_v45  ;;  %v21892_v20 = vcombine.high %v21678_v35, %v21708_v54  ;;  %v10494_v49 = vand.u32 4294901760, %v10493_v63 }
 0x6de   :  { %16709 = vmatpush3.msra.mxu1 %v10480_v2  ;;  %16699 = vmatprep.subr.mxu0 %v23683_v59  ;;  %v21896_v9 = vcombine.low %v21850_v32, %v9345_v21  ;;  %v10507_v18 = vsub.f32 %v21822_v57, %v10506_v1  ;;  %v10520_v41 = vand.u32 4294901760, %v21860_v16  ;;  %v21906_v35 = vcombine.high %v21634_v55, %v21739_v11 }
 0x6df   :  { %16710 = vmatprep.subr.mxu1 %v23683_v59  ;;  %v10500_v61 = vsub.f32 %v21807_v22, %v23822_v15  ;;  %16700 = vmatpush3.msra.mxu0 %v21810_v36  ;;  %v10446_v54 = vand.u32 4294901760, %v10445_v37  ;;  %v21911_v2 = vcombine.high %v21754_v6, %v21714_v62  ;;  %v21925_v11 = vcombine.high %v21801_v60, %v21771_v10 }
 0x6e0   :  { %16711 = vmatpush3.msra.mxu1 %v10487_v29  ;;  %16701 = vmatprep.subr.mxu0 %v23683_v59  ;;  %v10514_v29 = vsub.f32 %v21841_v45, %v10513_v31  ;;  %v10508_v55 = vand.u32 4294901760, %v10507_v18  ;;  %v10521_v62 = vsub.f32 %v21860_v16, %v10520_v41  ;;  %v21940_v10 = vcombine.high %v21850_v32, %v9345_v21  ;;  %v23834_v18 = vld [vmem:[#allocation41_spill] sm:$0xff] }
 0x6e1   :  { %16712 = vmatprep.subr.mxu1 %v23683_v59  ;;  %5962 = vadd.xlane.f32.xlu1 %v5961_v38  ;;  %v10501_v63 = vand.u32 4294901760, %v10500_v61  ;;  %v23823_v21 = vand.u32 4294901760, %v21663_v7  ;;  %v23824_v60 = vand.u32 4294901760, %v21695_v47  ;;  %v23825_v32 = vand.u32 4294901760, %v21726_v17 }
 0x6e2   :  { %16702 = vmatpush3.msra.mxu0 %v21824_v34  ;;  %16703 = vmatprep.mubr.msk.f32.mxu0 %vm17634_vm1, %v23683_v59  ;;  %v10515_v6 = vand.u32 4294901760, %v10514_v29  ;;  %v10522_v37 = vand.u32 4294901760, %v10521_v62  ;;  %v23835_v29 = vld [vmem:[#allocation67_spill] sm:$0xff] }
 0x6e3   :  { %16713 = vmatpush3.msra.mxu1 %v10494_v49  ;;  %16704 = vmatmul.mubr.f32.vlgmr.msra.gmra.mxu0 %v10446_v54 }
 0x6e4   :  { %16714 = vmatprep.subr.mxu1 %v23683_v59  ;;  %16725 = vmatprep.subr.mxu0 %v23683_v59 }
 0x6e5   :  { %16715 = vmatpush3.msra.mxu1 %v10501_v63  ;;  %16726 = vmatpush3.msra.mxu0 %v21663_v7  ;;  %v23826_v7 = vmov %v23822_v15 }
 0x6e6   :  { %16716 = vmatprep.subr.mxu1 %v23683_v59  ;;  %16727 = vmatprep.subr.mxu0 %v23683_v59 }
 0x6e7   :  { %16717 = vmatpush3.msra.mxu1 %v10508_v55  ;;  %16728 = vmatpush3.msra.mxu0 %v21695_v47  ;;  %v23827_v47 = vld [vmem:[#allocation51_spill] sm:$0xff]  ;;  %v22079_v55 = vand.u32 4294901760, %v23835_v29 }
 0x6e8   :  { %16718 = vmatprep.subr.mxu1 %v23683_v59  ;;  %16729 = vmatprep.subr.mxu0 %v23683_v59 }
 0x6e9   :  { %16719 = vmatpush3.msra.mxu1 %v10515_v6  ;;  %16730 = vmatpush3.msra.mxu0 %v21726_v17  ;;  %v21993_v17 = vand.u32 4294901760, %v23827_v47 }
 0x6ea   :  { %16720 = vmatprep.subr.mxu1 %v23683_v59  ;;  %16731 = vmatprep.subr.mxu0 %v23683_v59 }
 0x6eb   :  { %16721 = vmatpush3.msra.mxu1 %v10522_v37  ;;  %16722 = vmatprep.mubr.msk.f32.mxu1 %vm17634_vm1, %v23683_v59 }
 0x6ec   :  { %16732 = vmatpush3.msra.mxu0 %v21760_v53  ;;  %16723 = vmatmul.mubr.f32.vlgmr.msra.gmra.mxu1 %v21729_v30  ;;  %v23828_v53 = vld [vmem:[#allocation53_spill] sm:$0xff] }
 0x6ed   :  { %16733 = vmatprep.subr.mxu0 %v23683_v59  ;;  %16744 = vmatprep.subr.mxu1 %v23683_v59 }
 0x6ee   :  { %16734 = vmatpush3.msra.mxu0 %v21807_v22  ;;  %16745 = vmatpush3.msra.mxu1 %v21613_v4  ;;  %v23829_v22 = vld [vmem:[#allocation55_spill] sm:$0xff] }
 0x6ef   :  { %16735 = vmatprep.subr.mxu0 %v23683_v59  ;;  %16746 = vmatprep.subr.mxu1 %v23683_v59 }
 0x6f0   :  { %16736 = vmatpush3.msra.mxu0 %v21822_v57  ;;  %16747 = vmatpush3.msra.mxu1 %v21628_v19  ;;  %v23830_v57 = vld [vmem:[#allocation59_spill] sm:$0xff] }
 0x6f1   :  { %16737 = vmatprep.subr.mxu0 %v23683_v59  ;;  %16748 = vmatprep.subr.mxu1 %v23683_v59 }
 0x6f2   :  { %16738 = vmatpush3.msra.mxu0 %v21841_v45  ;;  %16749 = vmatpush3.msra.mxu1 %v21666_v25  ;;  %v23832_v45 = vld [vmem:[#allocation22_spill] sm:$0xff] }
 0x6f3   :  { %16739 = vmatprep.subr.mxu0 %v23683_v59  ;;  %16750 = vmatprep.subr.mxu1 %v23683_v59 }
 0x6f4   :  { %16740 = vmatpush3.msra.mxu0 %v21860_v16  ;;  %16741 = vmatprep.mubr.msk.f32.mxu0 %vm17634_vm1, %v23683_v59 }
 0x6f5   :  { %16751 = vmatpush3.msra.mxu1 %v21698_v12  ;;  %16742 = vmatmul.mubr.f32.vlgmr.msra.gmra.mxu0 %v21791_v46  ;;  %v22001_v46 = vand.u32 4294901760, %v23828_v53 }
 0x6f6   :  { %16752 = vmatprep.subr.mxu1 %v23683_v59  ;;  %16763 = vmatprep.subr.mxu0 %v23683_v59 }
 0x6f7   :  { %16753 = vmatpush3.msra.mxu1 %v21744_v52  ;;  %16764 = vmatpush3.msra.mxu0 %v23823_v21 }
 0x6f8   :  { %16754 = vmatprep.subr.mxu1 %v23683_v59  ;;  %16765 = vmatprep.subr.mxu0 %v23683_v59 }
 0x6f9   :  { %16755 = vmatpush3.msra.mxu1 %v21776_v58  ;;  %16766 = vmatpush3.msra.mxu0 %v23824_v60  ;;  %v22100_v60 = vsub.f32 %v23835_v29, %v22079_v55 }
 0x6fa   :  { %16756 = vmatprep.subr.mxu1 %v23683_v59  ;;  %16767 = vmatprep.subr.mxu0 %v23683_v59 }
 0x6fb   :  { %16757 = vmatpush3.msra.mxu1 %v21810_v36  ;;  %16768 = vmatpush3.msra.mxu0 %v23825_v32 }
 0x6fc   :  { %16758 = vmatprep.subr.mxu1 %v23683_v59  ;;  %16769 = vmatprep.subr.mxu0 %v23683_v59 }
 0x6fd   :  { %16759 = vmatpush3.msra.mxu1 %v21824_v34  ;;  %16760 = vmatprep.mubr.msk.f32.mxu1 %vm17634_vm1, %v23683_v59 }
 0x6fe   :  { %16770 = vmatpush3.msra.mxu0 %v10492_v44  ;;  %16761 = vmatmul.mubr.f32.vlgmr.msra.gmra.mxu1 %v10444_v14  ;;  %v23831_v44 = vld [vmem:[#allocation58_spill] sm:$0xff] }
 0x6ff   :  { %16771 = vmatprep.subr.mxu0 %v23683_v59  ;;  %16782 = vmatprep.subr.mxu1 %v23683_v59  ;;  %v9008_v14 = vcombine.low %v23831_v44, %v23830_v57 }
 0x700   :  { %16772 = vmatpush3.msra.mxu0 %v23826_v7  ;;  %16783 = vmatpush3.msra.mxu1 %v21613_v4  ;;  %v22010_v4 = vsub.f32 %v23827_v47, %v21993_v17 }
 0x701   :  { %16773 = vmatprep.subr.mxu0 %v23683_v59  ;;  %16784 = vmatprep.subr.mxu1 %v23683_v59 }
 0x702   :  { %16774 = vmatpush3.msra.mxu0 %v10506_v1  ;;  %16785 = vmatpush3.msra.mxu1 %v21628_v19  ;;  %v22013_v19 = vand.u32 4294901760, %v23829_v22  ;;  %v22028_v1 = vand.u32 4294901760, %v23832_v45  ;;  %v11011_v38 = vand.u32 4294901760, %v22010_v4 }
 0x703   :  { %16775 = vmatprep.subr.mxu0 %v23683_v59  ;;  %16786 = vmatprep.subr.mxu1 %v23683_v59 }
 0x704   :  { %16776 = vmatpush3.msra.mxu0 %v10513_v31  ;;  %16787 = vmatpush3.msra.mxu1 %v21666_v25  ;;  %v22025_v25 = vsub.f32 %v23828_v53, %v22001_v46  ;;  %v22036_v16 = vsub.f32 %v23829_v22, %v22013_v19  ;;  %v22047_v15 = vsub.f32 %v23832_v45, %v22028_v1 }
 0x705   :  { %16777 = vmatprep.subr.mxu0 %v23683_v59  ;;  %16788 = vmatprep.subr.mxu1 %v23683_v59 }
 0x706   :  { %16778 = vmatpush3.msra.mxu0 %v10520_v41  ;;  %16779 = vmatprep.mubr.msk.f32.mxu0 %vm17634_vm1, %v23683_v59  ;;  %v11018_v31 = vand.u32 4294901760, %v22025_v25  ;;  %v22064_v41 = vand.u32 4294901760, %v23834_v18  ;;  %v11025_v54 = vand.u32 4294901760, %v22036_v16  ;;  %v11032_v62 = vand.u32 4294901760, %v22047_v15 }
 0x707   :  { %16789 = vmatpush3.msra.mxu1 %v21698_v12  ;;  %16780 = vmatmul.mubr.f32.vlgmr.msra.gmra.mxu0 %v21729_v30  ;;  %v22038_v12 = vand.u32 4294901760, %v9008_v14 }
 0x708   :  { %16790 = vmatprep.subr.mxu1 %v23683_v59  ;;  %16801 = vmatprep.subr.mxu0 %v23683_v59  ;;  %v11019_v63 = vsub.f32 %v22025_v25, %v11018_v31  ;;  %v22089_v6 = vsub.f32 %v23834_v18, %v22064_v41  ;;  %v11026_v37 = vsub.f32 %v22036_v16, %v11025_v54 }
 0x709   :  { %16791 = vmatpush3.msra.mxu1 %v21744_v52  ;;  %16802 = vmatpush3.msra.mxu0 %v21993_v17  ;;  %v23833_v52 = vld [vmem:[#allocation62_spill] sm:$0xff]  ;;  %v22058_v49 = vsub.f32 %v9008_v14, %v22038_v12  ;;  %v11033_v32 = vsub.f32 %v22047_v15, %v11032_v62  ;;  %v23568_v14 = vand.u32 4294901760, %v22100_v60 }
 0x70a   :  { %16792 = vmatprep.subr.mxu1 %v23683_v59  ;;  %16803 = vmatprep.subr.mxu0 %v23683_v59  ;;  %v22050_v61 = vand.u32 4294901760, %v23833_v52  ;;  %v11027_v47 = vand.u32 4294901760, %v11026_v37  ;;  %v23569_v22 = vand.u32 4294901760, %v22089_v6 }
 0x70b   :  { %16793 = vmatpush3.msra.mxu1 %v21776_v58  ;;  %16804 = vmatpush3.msra.mxu0 %v22001_v46  ;;  %v11012_v58 = vsub.f32 %v22010_v4, %v11011_v38  ;;  %v23571_v21 = vand.u32 4294901760, %v22058_v49  ;;  %v11034_v57 = vand.u32 4294901760, %v11033_v32  ;;  %v11061_v18 = vsub.f32 %v22100_v60, %v23568_v14  ;;  %v23839_v14 = vld [vmem:[#allocation11_spill] sm:$0xff] }
 0x70c   :  { %16794 = vmatprep.subr.mxu1 %v23683_v59  ;;  %16805 = vmatprep.subr.mxu0 %v23683_v59 }
 0x70d   :  { %16795 = vmatpush3.msra.mxu1 %v21810_v36  ;;  %16806 = vmatpush3.msra.mxu0 %v22013_v19  ;;  %v22073_v36 = vsub.f32 %v23833_v52, %v22050_v61  ;;  %v11040_v53 = vsub.f32 %v22058_v49, %v23571_v21  ;;  %v11054_v52 = vsub.f32 %v22089_v6, %v23569_v22  ;;  %v11062_v29 = vand.u32 4294901760, %v11061_v18 }
 0x70e   :  { %16796 = vmatprep.subr.mxu1 %v23683_v59  ;;  %16807 = vmatprep.subr.mxu0 %v23683_v59 }
 0x70f   :  { %16797 = vmatpush3.msra.mxu1 %v21824_v34  ;;  %16798 = vmatprep.mubr.msk.f32.mxu1 %vm17634_vm1, %v23683_v59  ;;  %v11013_v34 = vand.u32 4294901760, %v11012_v58  ;;  %v23570_v7 = vand.u32 4294901760, %v22073_v36  ;;  %v11041_v45 = vand.u32 4294901760, %v11040_v53 }
 0x710   :  { %16808 = vmatpush3.msra.mxu0 %v22028_v1  ;;  %16799 = vmatmul.mubr.f32.vlgmr.msra.gmra.mxu1 %v21729_v30  ;;  %v11020_v30 = vand.u32 4294901760, %v11019_v63  ;;  %v11055_v63 = vand.u32 4294901760, %v11054_v52 }
 0x711   :  { %16809 = vmatprep.subr.mxu0 %v23683_v59  ;;  %16820 = vmatprep.subr.mxu1 %v23683_v59  ;;  %v11047_v44 = vsub.f32 %v22073_v36, %v23570_v7 }
 0x712   :  { %16810 = vmatpush3.msra.mxu0 %v22038_v12  ;;  %16821 = vmatpush3.msra.mxu1 %v11013_v34 }
 0x713   :  { %16811 = vmatprep.subr.mxu0 %v23683_v59  ;;  %16822 = vmatprep.subr.mxu1 %v23683_v59  ;;  %v11048_v58 = vand.u32 4294901760, %v11047_v44 }
 0x714   :  { %16812 = vmatpush3.msra.mxu0 %v22050_v61  ;;  %16823 = vmatpush3.msra.mxu1 %v11020_v30  ;;  %v23836_v30 = vld [vmem:[#allocation7_spill] sm:$0xff] }
 0x715   :  { %16813 = vmatprep.subr.mxu0 %v23683_v59  ;;  %16824 = vmatprep.subr.mxu1 %v23683_v59 }
 0x716   :  { %16814 = vmatpush3.msra.mxu0 %v22064_v41  ;;  %16825 = vmatpush3.msra.mxu1 %v11027_v47 }
 0x717   :  { %16815 = vmatprep.subr.mxu0 %v23683_v59  ;;  %16826 = vmatprep.subr.mxu1 %v23683_v59 }
 0x718   :  { %16816 = vmatpush3.msra.mxu0 %v22079_v55  ;;  %16827 = vmatpush3.msra.mxu1 %v11034_v57  ;;  %v23837_v57 = vld [vmem:[#allocation6_spill] sm:$0xff] }
 0x719   :  { %16836 = vmatprep.mubr.msk.f32.mxu1 %vm17634_vm1, %v23683_v59  ;;  %16828 = vmatprep.subr.mxu1 %v23683_v59 }
 0x71a   :  { %16817 = vmatprep.mubr.msk.f32.mxu0 %vm17634_vm1, %v23683_v59  ;;  %16829 = vmatpush3.msra.mxu1 %v11041_v45 }
 0x71b   :  { %16839 = vmatprep.subr.mxu0 %v23683_v59  ;;  %16830 = vmatprep.subr.mxu1 %v23683_v59 }
 0x71c   :  { %16831 = vmatpush3.msra.mxu1 %v11048_v58  ;;  %v23838_v58 = vld [vmem:[#allocation9_spill] sm:$0xff] }
 0x71d   :  { %16832 = vmatprep.subr.mxu1 %v23683_v59 }
 0x71e   :  { %16833 = vmatpush3.msra.mxu1 %v11055_v63 }
 0x71f   :  { %16834 = vmatprep.subr.mxu1 %v23683_v59 }
 0x720   :  { %16835 = vmatpush3.msra.mxu1 %v11062_v29 }
 0x721   :  { %16858 = vmatprep.subr.mxu1 %v23683_v59 }
 0x728   :  { %v5960_v34 = vpop.xlane.xlu0 %5959 }
 0x729   :  { %17510 = vrcp.f32 %v5960_v34  ;;  %v23840_v34 = vld [vmem:[#allocation8_spill] sm:$0xff] }
 0x72c   :  { %v5918_v37 = vpop.xlane.xlu0 %5917 }
 0x72d   :  { %v5932_v32 = vsub.f32 %v23836_v30, %v5918_v37 }
 0x72f   :  { %v5944_v47 = vmul.f32 1.442695, %v5932_v32 }
 0x730   :  { %v5921_v53 = vpop.xlane.xlu0 %5920 }
 0x731   :  { %17512 = vpow2.f32 %v5944_v47  ;;  %v5933_v44 = vsub.f32 %v23837_v57, %v5921_v53 }
 0x733   :  { %v5946_v45 = vmul.f32 1.442695, %v5933_v44 }
 0x734   :  { %v5924_v52 = vpop.xlane.xlu0 %5923 }
 0x735   :  { %17514 = vpow2.f32 %v5946_v45  ;;  %v5934_v18 = vsub.f32 %v23838_v58, %v5924_v52 }
 0x736   :  { %v17511_v63 = vpop.eup %17510 }
 0x737   :  { %v5981_v29 = vmul.f32 %v17511_v63, %v23839_v14  ;;  %v5948_v22 = vmul.f32 1.442695, %v5934_v18  ;;  %v23841_v63 = vld [vmem:[#allocation52_spill] sm:$0xff] }
 0x738   :  { %v5927_v7 = vpop.xlane.xlu0 %5926 }
 0x739   :  { %17516 = vpow2.f32 %v5948_v22  ;;  %v5935_v21 = vsub.f32 %v23840_v34, %v5927_v7  ;;  %v10907_v37 = vsel %vm5903_vm2, %v5981_v29, 0  ;;  %v22196_v29 = vand.u32 4294901760, %v23841_v63  ;;  %v23842_v34 = vld [vmem:[#allocation54_spill] sm:$0xff] }
 0x73a   :  { %v22144_v30 = vand.u32 4294901760, %v10907_v37 }
 0x73b   :  { %v5950_v32 = vmul.f32 1.442695, %v5935_v21 }
 0x73c   :  { %v22147_v47 = vsub.f32 %v10907_v37, %v22144_v30  ;;  %16837 = vmatmul.mubr.f32.vlgmr.msra.gmra.mxu1 %v22144_v30  ;;  %v22202_v37 = vand.u32 4294901760, %v23842_v34 }
 0x73d   :  { %17518 = vpow2.f32 %v5950_v32  ;;  %16859 = vmatpush3.msra.mxu1 %v21993_v17  ;;  %16874 = vmatprep.mubr.msk.f32.mxu1 %vm17634_vm1, %v23683_v59  ;;  %v23843_v32 = vld [vmem:[#allocation56_spill] sm:$0xff] }
 0x73e   :  { %v22153_v14 = vpop.eup %17512  ;;  %16860 = vmatprep.subr.mxu1 %v23683_v59  ;;  %v10984_v7 = vand.u32 4294901760, %v22147_v47 }
 0x73f   :  { %16861 = vmatpush3.msra.mxu1 %v22001_v46  ;;  %v5964_v21 = vsel %vm5903_vm2, %v22153_v14, 0.0 }
 0x740   :  { %16862 = vmatprep.subr.mxu1 %v23683_v59  ;;  %5965 = vadd.xlane.f32.xlu1 %v5964_v21  ;;  %v10985_v22 = vsub.f32 %v22147_v47, %v10984_v7  ;;  %v23844_v21 = vld [vmem:[#allocation57_spill] sm:$0xff] }
 0x741   :  { %16863 = vmatpush3.msra.mxu1 %v22013_v19 }
 0x742   :  { %v22163_v53 = vpop.eup %17514  ;;  %16864 = vmatprep.subr.mxu1 %v23683_v59  ;;  %v10986_v57 = vand.u32 4294901760, %v10985_v22  ;;  %v22227_v22 = vand.u32 4294901760, %v23844_v21 }
 0x743   :  { %16865 = vmatpush3.msra.mxu1 %v22028_v1  ;;  %v5967_v44 = vsel %vm5903_vm2, %v22163_v53, 0.0 }
 0x744   :  { %16866 = vmatprep.subr.mxu1 %v23683_v59  ;;  %16818 = vmatmul.mubr.f32.vlgmr.msra.gmra.mxu0 %v10986_v57 }
 0x745   :  { %16840 = vmatpush3.msra.mxu0 %v22010_v4  ;;  %16867 = vmatpush3.msra.mxu1 %v22038_v12  ;;  %v22255_v4 = vsub.f32 %v23844_v21, %v22227_v22 }
 0x746   :  { %v22172_v45 = vpop.eup %17516  ;;  %5968 = vadd.xlane.f32.xlu1 %v5967_v44  ;;  %16841 = vmatprep.subr.mxu0 %v23683_v59  ;;  %v23845_v44 = vld [vmem:[#allocation60_spill] sm:$0xff] }
 0x747   :  { %16868 = vmatprep.subr.mxu1 %v23683_v59  ;;  %16842 = vmatpush3.msra.mxu0 %v22025_v25  ;;  %v5970_v52 = vsel %vm5903_vm2, %v22172_v45, 0.0 }
 0x748   :  { %16869 = vmatpush3.msra.mxu1 %v22050_v61  ;;  %16843 = vmatprep.subr.mxu0 %v23683_v59 }
 0x749   :  { %16870 = vmatprep.subr.mxu1 %v23683_v59  ;;  %16844 = vmatpush3.msra.mxu0 %v22036_v16  ;;  %v11572_v16 = vand.u32 4294901760, %v22255_v4 }
 0x74a   :  { %v22183_v58 = vpop.eup %17518  ;;  %16871 = vmatpush3.msra.mxu1 %v22064_v41  ;;  %5971 = vadd.xlane.f32.xlu1 %v5970_v52  ;;  %v22239_v52 = vand.u32 4294901760, %v23845_v44 }
 0x74b   :  { %16845 = vmatprep.subr.mxu0 %v23683_v59  ;;  %16872 = vmatprep.subr.mxu1 %v23683_v59  ;;  %v5973_v18 = vsel %vm5903_vm2, %v22183_v58, 0.0 }
 0x74c   :  { %16846 = vmatpush3.msra.mxu0 %v22047_v15  ;;  %16873 = vmatpush3.msra.mxu1 %v22079_v55  ;;  %v22271_v25 = vsub.f32 %v23845_v44, %v22239_v52 }
 0x74d   :  { %16847 = vmatprep.subr.mxu0 %v23683_v59  ;;  %16875 = vmatmul.mubr.f32.vlgmr.msra.gmra.mxu1 %v10984_v7  ;;  %v22209_v7 = vand.u32 4294901760, %v23843_v32 }
 0x74e   :  { %16896 = vmatprep.subr.mxu1 %v23683_v59  ;;  %16848 = vmatpush3.msra.mxu0 %v22058_v49  ;;  %v11579_v15 = vand.u32 4294901760, %v22271_v25 }
 0x74f   :  { %16897 = vmatpush3.msra.mxu1 %v21993_v17  ;;  %5974 = vadd.xlane.f32.xlu0 %v5973_v18  ;;  %v22215_v17 = vsub.f32 %v23841_v63, %v22196_v29  ;;  %v22236_v57 = vsub.f32 %v23843_v32, %v22209_v7  ;;  %v23847_v63 = vld [vmem:[#allocation34_spill] sm:$0xff] }
 0x750   :  { %16849 = vmatprep.subr.mxu0 %v23683_v59  ;;  %16898 = vmatprep.subr.mxu1 %v23683_v59 }
 0x751   :  { %16850 = vmatpush3.msra.mxu0 %v22073_v36  ;;  %16899 = vmatpush3.msra.mxu1 %v22001_v46  ;;  %v22224_v46 = vsub.f32 %v23842_v34, %v22202_v37  ;;  %v22264_v34 = vand.u32 4294901760, %v23847_v63 }
 0x752   :  { %16851 = vmatprep.subr.mxu0 %v23683_v59  ;;  %16900 = vmatprep.subr.mxu1 %v23683_v59 }
 0x753   :  { %16852 = vmatpush3.msra.mxu0 %v22089_v6  ;;  %16901 = vmatpush3.msra.mxu1 %v22013_v19  ;;  %v11551_v19 = vand.u32 4294901760, %v22215_v17 }
 0x754   :  { %16853 = vmatprep.subr.mxu0 %v23683_v59  ;;  %16902 = vmatprep.subr.mxu1 %v23683_v59 }
 0x755   :  { %16854 = vmatpush3.msra.mxu0 %v22100_v60  ;;  %16855 = vmatprep.mubr.msk.f32.mxu0 %vm17634_vm1, %v23683_v59 }
 0x756   :  { %16903 = vmatpush3.msra.mxu1 %v22028_v1  ;;  %16856 = vmatmul.mubr.f32.vlgmr.msra.gmra.mxu0 %v22147_v47  ;;  %v11558_v1 = vand.u32 4294901760, %v22224_v46  ;;  %v23846_v47 = vld [vmem:[#allocation63_spill] sm:$0xff] }
 0x757   :  { %16877 = vmatprep.subr.mxu0 %v23683_v59  ;;  %16904 = vmatprep.subr.mxu1 %v23683_v59  ;;  %v22248_v18 = vand.u32 4294901760, %v23846_v47 }
 0x758   :  { %16878 = vmatpush3.msra.mxu0 %v11011_v38  ;;  %16905 = vmatpush3.msra.mxu1 %v22038_v12  ;;  %v11552_v12 = vsub.f32 %v22215_v17, %v11551_v19  ;;  %v23572_v38 = vand.u32 4294901760, %v22236_v57 }
 0x759   :  { %16879 = vmatprep.subr.mxu0 %v23683_v59  ;;  %16906 = vmatprep.subr.mxu1 %v23683_v59 }
 0x75a   :  { %16880 = vmatpush3.msra.mxu0 %v11018_v31  ;;  %16907 = vmatpush3.msra.mxu1 %v22050_v61  ;;  %v11559_v61 = vsub.f32 %v22224_v46, %v11558_v1  ;;  %v23848_v31 = vld [vmem:[#allocation68_spill] sm:$0xff]  ;;  %v11566_v21 = vsub.f32 %v22236_v57, %v23572_v38 }
 0x75b   :  { %16881 = vmatprep.subr.mxu0 %v23683_v59  ;;  %16908 = vmatprep.subr.mxu1 %v23683_v59  ;;  %v22279_v32 = vand.u32 4294901760, %v23848_v31 }
 0x75c   :  { %16882 = vmatpush3.msra.mxu0 %v11025_v54  ;;  %16909 = vmatpush3.msra.mxu1 %v22064_v41  ;;  %v22287_v41 = vsub.f32 %v23846_v47, %v22248_v18  ;;  %v11553_v54 = vand.u32 4294901760, %v11552_v12  ;;  %v11560_v44 = vand.u32 4294901760, %v11559_v61  ;;  %v11573_v47 = vsub.f32 %v22255_v4, %v11572_v16 }
 0x75d   :  { %16883 = vmatprep.subr.mxu0 %v23683_v59  ;;  %16910 = vmatprep.subr.mxu1 %v23683_v59  ;;  %v22312_v38 = vsub.f32 %v23848_v31, %v22279_v32  ;;  %v11580_v61 = vsub.f32 %v22271_v25, %v11579_v15 }
 0x75e   :  { %16884 = vmatpush3.msra.mxu0 %v11032_v62  ;;  %16911 = vmatpush3.msra.mxu1 %v22079_v55  ;;  %v22300_v55 = vsub.f32 %v23847_v63, %v22264_v34  ;;  %v23849_v62 = vand.u32 4294901760, %v22058_v49  ;;  %v11586_v12 = vand.u32 4294901760, %v22287_v41  ;;  %v23850_v63 = vand.u32 4294901760, %v22073_v36 }
 0x75f   :  { %16912 = vmatprep.mubr.msk.f32.mxu1 %vm17634_vm1, %v23683_v59  ;;  %16885 = vmatprep.subr.mxu0 %v23683_v59  ;;  %v11567_v49 = vand.u32 4294901760, %v11566_v21  ;;  %v11574_v36 = vand.u32 4294901760, %v11573_v47  ;;  %v23573_v21 = vand.u32 4294901760, %v22312_v38 }
 0x760   :  { %16913 = vmatmul.mubr.f32.vlgmr.msra.gmra.mxu1 %v22144_v30  ;;  %16934 = vmatprep.subr.mxu1 %v23683_v59  ;;  %v11587_v31 = vsub.f32 %v22287_v41, %v11586_v12 }
 0x761   :  { %16886 = vmatpush3.msra.mxu0 %v23849_v62  ;;  %16935 = vmatpush3.msra.mxu1 %v11553_v54  ;;  %v11593_v54 = vand.u32 4294901760, %v22300_v55  ;;  %v23851_v62 = vand.u32 4294901760, %v22089_v6  ;;  %v11581_v6 = vand.u32 4294901760, %v11580_v61 }
 0x762   :  { %16887 = vmatprep.subr.mxu0 %v23683_v59  ;;  %16936 = vmatprep.subr.mxu1 %v23683_v59 }
 0x763   :  { %16888 = vmatpush3.msra.mxu0 %v23850_v63  ;;  %16937 = vmatpush3.msra.mxu1 %v11560_v44  ;;  %v23852_v44 = vand.u32 4294901760, %v22100_v60  ;;  %v11594_v47 = vsub.f32 %v22300_v55, %v11593_v54  ;;  %v11588_v63 = vand.u32 4294901760, %v11587_v31 }
 0x764   :  { %16889 = vmatprep.subr.mxu0 %v23683_v59  ;;  %16938 = vmatprep.subr.mxu1 %v23683_v59 }
 0x765   :  { %16890 = vmatpush3.msra.mxu0 %v23851_v62  ;;  %16939 = vmatpush3.msra.mxu1 %v11567_v49  ;;  %v11601_v49 = vsub.f32 %v22312_v38, %v23573_v21 }
 0x766   :  { %16891 = vmatprep.subr.mxu0 %v23683_v59  ;;  %16940 = vmatprep.subr.mxu1 %v23683_v59 }
 0x767   :  { %16892 = vmatpush3.msra.mxu0 %v23852_v44  ;;  %16893 = vmatprep.mubr.msk.f32.mxu0 %vm17634_vm1, %v23683_v59  ;;  %v11602_v61 = vand.u32 4294901760, %v11601_v49 }
 0x768   :  { %16941 = vmatpush3.msra.mxu1 %v11574_v36  ;;  %16894 = vmatmul.mubr.f32.vlgmr.msra.gmra.mxu0 %v22144_v30  ;;  %v11595_v30 = vand.u32 4294901760, %v11594_v47 }
 0x769   :  { %16915 = vmatprep.subr.mxu0 %v23683_v59  ;;  %16942 = vmatprep.subr.mxu1 %v23683_v59 }
 0x76a   :  { %16916 = vmatpush3.msra.mxu0 %v22196_v29  ;;  %16943 = vmatpush3.msra.mxu1 %v11581_v6  ;;  %v5963_v60 = vpop.xlane.xlu1 %5962 }
 0x76b   :  { %17520 = vrcp.f32 %v5963_v60  ;;  %16917 = vmatprep.subr.mxu0 %v23683_v59  ;;  %16944 = vmatprep.subr.mxu1 %v23683_v59 }
 0x76c   :  { %16918 = vmatpush3.msra.mxu0 %v22202_v37  ;;  %16945 = vmatpush3.msra.mxu1 %v11588_v63 }
 0x76d   :  { %16919 = vmatprep.subr.mxu0 %v23683_v59  ;;  %16946 = vmatprep.subr.mxu1 %v23683_v59 }
 0x76e   :  { %16920 = vmatpush3.msra.mxu0 %v22209_v7  ;;  %16947 = vmatpush3.msra.mxu1 %v11595_v30  ;;  %v9908_v62 = vpop.f32.mrf.mxu0 }
 0x76f   :  { %16921 = vmatprep.subr.mxu0 %v23683_v59  ;;  %16948 = vmatprep.subr.mxu1 %v23683_v59 }
 0x770   :  { %16922 = vmatpush3.msra.mxu0 %v22227_v22  ;;  %16949 = vmatpush3.msra.mxu1 %v11602_v61  ;;  %v16591_v36 = vpop.f32.mrf.mxu0 }
 0x771   :  { %16923 = vmatprep.subr.mxu0 %v23683_v59  ;;  %16950 = vmatprep.mubr.msk.f32.mxu1 %vm17634_vm1, %v23683_v59 }
 0x772   :  { %16924 = vmatpush3.msra.mxu0 %v22239_v52  ;;  %16972 = vmatprep.subr.mxu1 %v23683_v59 }
 0x773   :  { %16925 = vmatprep.subr.mxu0 %v23683_v59  ;;  %16931 = vmatprep.mubr.msk.f32.mxu0 %vm17634_vm1, %v23683_v59 }
 0x774   :  { %16926 = vmatpush3.msra.mxu0 %v22248_v18 }
 0x775   :  { %16927 = vmatprep.subr.mxu0 %v23683_v59 }
 0x776   :  { %16928 = vmatpush3.msra.mxu0 %v22264_v34  ;;  %v10019_v31 = vpop.f32.mrf.mxu1 }
 0x777   :  { %16929 = vmatprep.subr.mxu0 %v23683_v59  ;;  %v10020_v44 = vadd.f32 %v10019_v31, %v9908_v62 }
 0x778   :  { %v17521_v6 = vpop.eup %17520  ;;  %16930 = vmatpush3.msra.mxu0 %v22279_v32  ;;  %v16610_v47 = vpop.f32.mrf.mxu1 }
 0x779   :  { %v5983_v60 = vmul.f32 %v17521_v6, %v21844_v40  ;;  %16953 = vmatprep.subr.mxu0 %v23683_v59 }
 0x77b   :  { %v11447_v63 = vsel %vm5903_vm2, %v5983_v60, 0 }
 0x77c   :  { %v22369_v49 = vand.u32 4294901760, %v11447_v63 }
 0x77e   :  { %v11523_v30 = vsub.f32 %v11447_v63, %v22369_v49  ;;  %16951 = vmatmul.mubr.f32.vlgmr.msra.gmra.mxu1 %v22369_v49  ;;  %v10107_v61 = vpop.f32.mrf.mxu0 }
 0x77f   :  { %16973 = vmatpush3.msra.mxu1 %v22196_v29  ;;  %v10108_v62 = vadd.f32 %v10107_v61, %v10020_v44  ;;  %16988 = vmatprep.mubr.msk.f32.mxu1 %vm17634_vm1, %v23683_v59  ;;  %v23853_v61 = vld [vmem:[#allocation45_spill] sm:$0xff] }
 0x780   :  { %16974 = vmatprep.subr.mxu1 %v23683_v59  ;;  %v16629_v40 = vpop.f32.mrf.mxu0  ;;  %v11524_v36 = vand.u32 4294901760, %v11523_v30 }
 0x781   :  { %16975 = vmatpush3.msra.mxu1 %v22202_v37 }
 0x782   :  { %16976 = vmatprep.subr.mxu1 %v23683_v59  ;;  %v11525_v31 = vsub.f32 %v11523_v30, %v11524_v36 }
 0x783   :  { %16977 = vmatpush3.msra.mxu1 %v22209_v7 }
 0x784   :  { %16978 = vmatprep.subr.mxu1 %v23683_v59  ;;  %v11526_v6 = vand.u32 4294901760, %v11525_v31  ;;  %v23854_v31 = vld [vmem:[#allocation39_spill] sm:$0xff] }
 0x785   :  { %16979 = vmatpush3.msra.mxu1 %v22227_v22 }
 0x786   :  { %16980 = vmatprep.subr.mxu1 %v23683_v59  ;;  %16932 = vmatmul.mubr.f32.vlgmr.msra.gmra.mxu0 %v11526_v6  ;;  %v22410_v6 = vand.u32 4294901760, %v23854_v31 }
 0x787   :  { %16954 = vmatpush3.msra.mxu0 %v22215_v17  ;;  %16981 = vmatpush3.msra.mxu1 %v22239_v52  ;;  %v10188_v44 = vpop.f32.mrf.mxu1 }
 0x788   :  { %16955 = vmatprep.subr.mxu0 %v23683_v59  ;;  %16982 = vmatprep.subr.mxu1 %v23683_v59  ;;  %v10189_v47 = vadd.f32 %v10188_v44, %v10108_v62  ;;  %v22403_v62 = vand.u32 4294901760, %v23853_v61  ;;  %v23855_v44 = vld [vmem:[#allocation40_spill] sm:$0xff] }
 0x789   :  { %16956 = vmatpush3.msra.mxu0 %v22224_v46  ;;  %16983 = vmatpush3.msra.mxu1 %v22248_v18  ;;  %v16648_v60 = vpop.f32.mrf.mxu1  ;;  %v23859_v46 = vand.u32 4294901760, %v22236_v57 }
 0x78a   :  { %16957 = vmatprep.subr.mxu0 %v23683_v59  ;;  %16984 = vmatprep.subr.mxu1 %v23683_v59 }
 0x78b   :  { %16958 = vmatpush3.msra.mxu0 %v22236_v57  ;;  %16985 = vmatpush3.msra.mxu1 %v22264_v34 }
 0x78c   :  { %16959 = vmatprep.subr.mxu0 %v23683_v59  ;;  %16986 = vmatprep.subr.mxu1 %v23683_v59 }
 0x78d   :  { %16960 = vmatpush3.msra.mxu0 %v22255_v4  ;;  %16987 = vmatpush3.msra.mxu1 %v22279_v32 }
 0x78e   :  { %16961 = vmatprep.subr.mxu0 %v23683_v59  ;;  %16989 = vmatmul.mubr.f32.vlgmr.msra.gmra.mxu1 %v11524_v36 }
 0x78f   :  { %17010 = vmatprep.subr.mxu1 %v23683_v59  ;;  %16962 = vmatpush3.msra.mxu0 %v22271_v25 }
 0x790   :  { %17011 = vmatpush3.msra.mxu1 %v22196_v29  ;;  %16963 = vmatprep.subr.mxu0 %v23683_v59  ;;  %v22418_v29 = vsub.f32 %v23853_v61, %v22403_v62 }
 0x791   :  { %17012 = vmatprep.subr.mxu1 %v23683_v59  ;;  %16964 = vmatpush3.msra.mxu0 %v22287_v41 }
 0x792   :  { %v10283_v63 = vpop.f32.mrf.mxu0  ;;  %17013 = vmatpush3.msra.mxu1 %v22202_v37  ;;  %16965 = vmatprep.subr.mxu0 %v23683_v59  ;;  %v22421_v37 = vand.u32 4294901760, %v23855_v44 }
 0x793   :  { %v10284_v40 = vadd.f32 %v10283_v63, %v10189_v47  ;;  %17014 = vmatprep.subr.mxu1 %v23683_v59  ;;  %16966 = vmatpush3.msra.mxu0 %v22300_v55  ;;  %v23856_v47 = vld [vmem:[#allocation37_spill] sm:$0xff]  ;;  %v12091_v63 = vand.u32 4294901760, %v22418_v29 }
 0x794   :  { %v16667_v36 = vpop.f32.mrf.mxu0  ;;  %17015 = vmatpush3.msra.mxu1 %v22209_v7  ;;  %16967 = vmatprep.subr.mxu0 %v23683_v59  ;;  %v22430_v7 = vsub.f32 %v23854_v31, %v22410_v6  ;;  %v22433_v60 = vand.u32 4294901760, %v23856_v47 }
 0x795   :  { %17016 = vmatprep.subr.mxu1 %v23683_v59  ;;  %16968 = vmatpush3.msra.mxu0 %v22312_v38  ;;  %v23857_v36 = vld [vmem:[#allocation38_spill] sm:$0xff] }
 0x796   :  { %16969 = vmatprep.mubr.msk.f32.mxu0 %vm17634_vm1, %v23683_v59  ;;  %17017 = vmatpush3.msra.mxu1 %v22227_v22  ;;  %v22442_v22 = vsub.f32 %v23855_v44, %v22421_v37  ;;  %v22457_v31 = vsub.f32 %v23856_v47, %v22433_v60  ;;  %v23858_v44 = vld [vmem:[#allocation35_spill] sm:$0xff]  ;;  %v23860_v47 = vld [vmem:[#allocation30_spill] sm:$0xff] }
 0x797   :  { %16970 = vmatmul.mubr.f32.vlgmr.msra.gmra.mxu0 %v11523_v30  ;;  %16991 = vmatprep.subr.mxu0 %v23683_v59  ;;  %v22447_v30 = vand.u32 4294901760, %v23857_v36  ;;  %v22462_v21 = vand.u32 4294901760, %v23858_v44 }
 0x798   :  { %17018 = vmatprep.subr.mxu1 %v23683_v59  ;;  %16992 = vmatpush3.msra.mxu0 %v11551_v19  ;;  %v12098_v19 = vand.u32 4294901760, %v22430_v7 }
 0x799   :  { %17019 = vmatpush3.msra.mxu1 %v22239_v52  ;;  %16993 = vmatprep.subr.mxu0 %v23683_v59 }
 0x79a   :  { %v10362_v61 = vpop.f32.mrf.mxu1  ;;  %17020 = vmatprep.subr.mxu1 %v23683_v59  ;;  %16994 = vmatpush3.msra.mxu0 %v11558_v1  ;;  %v12092_v1 = vsub.f32 %v22418_v29, %v12091_v63  ;;  %v12099_v57 = vsub.f32 %v22430_v7, %v12098_v19 }
 0x79b   :  { %v22452_v17 = vadd.f32 %v10362_v61, %v10284_v40  ;;  %17021 = vmatpush3.msra.mxu1 %v22248_v18  ;;  %16995 = vmatprep.subr.mxu0 %v23683_v59  ;;  %v12105_v40 = vand.u32 4294901760, %v22442_v22  ;;  %v22475_v18 = vsub.f32 %v23857_v36, %v22447_v30  ;;  %v22478_v61 = vand.u32 4294901760, %v23860_v47 }
 0x79c   :  { %v16686_v52 = vpop.f32.mrf.mxu1  ;;  %17022 = vmatprep.subr.mxu1 %v23683_v59  ;;  %16996 = vmatpush3.msra.mxu0 %v23859_v46  ;;  %v22492_v36 = vsub.f32 %v23858_v44, %v22462_v21  ;;  %v12093_v4 = vand.u32 4294901760, %v12092_v1  ;;  %v12100_v46 = vand.u32 4294901760, %v12099_v57 }
 0x79d   :  { %17023 = vmatpush3.msra.mxu1 %v22264_v34  ;;  %16997 = vmatprep.subr.mxu0 %v23683_v59  ;;  %v23578_v34 = vand.u32 4294901760, %v22457_v31  ;;  %v22495_v52 = vand.u32 4294901760, %v21594_v42  ;;  %v22508_v44 = vsub.f32 %v23860_v47, %v22478_v61 }
 0x79e   :  { %17024 = vmatprep.subr.mxu1 %v23683_v59  ;;  %16998 = vmatpush3.msra.mxu0 %v11572_v16  ;;  %v12106_v16 = vsub.f32 %v22442_v22, %v12105_v40 }
 0x79f   :  { %17025 = vmatpush3.msra.mxu1 %v22279_v32  ;;  %17026 = vmatprep.mubr.msk.f32.mxu1 %vm17634_vm1, %v23683_v59  ;;  %v23577_v32 = vand.u32 4294901760, %v22475_v18  ;;  %v12113_v1 = vsub.f32 %v22457_v31, %v23578_v34  ;;  %v22520_v47 = vsub.f32 %v21594_v42, %v22495_v52 }
 0x7a0   :  { %16999 = vmatprep.subr.mxu0 %v23683_v59  ;;  %17027 = vmatmul.mubr.f32.vlgmr.msra.gmra.mxu1 %v22369_v49  ;;  %v12107_v57 = vand.u32 4294901760, %v12106_v16  ;;  %v23861_v16 = vand.u32 4294901760, %v22312_v38 }
 0x7a1   :  { %17048 = vmatprep.subr.mxu1 %v23683_v59  ;;  %17000 = vmatpush3.msra.mxu0 %v11579_v15  ;;  %v23576_v15 = vand.u32 4294901760, %v22492_v36  ;;  %v12120_v41 = vsub.f32 %v22475_v18, %v23577_v32  ;;  %v12114_v42 = vand.u32 4294901760, %v12113_v1 }
 0x7a2   :  { %17049 = vmatpush3.msra.mxu1 %v12093_v4  ;;  %17001 = vmatprep.subr.mxu0 %v23683_v59 }
 0x7a3   :  { %17050 = vmatprep.subr.mxu1 %v23683_v59  ;;  %17002 = vmatpush3.msra.mxu0 %v11586_v12  ;;  %v10448_v25 = vpop.f32.mrf.mxu0  ;;  %v23575_v12 = vand.u32 4294901760, %v22508_v44  ;;  %v12127_v55 = vsub.f32 %v22492_v36, %v23576_v15 }
 0x7a4   :  { %17051 = vmatpush3.msra.mxu1 %v12100_v46  ;;  %17003 = vmatprep.subr.mxu0 %v23683_v59  ;;  %v12121_v46 = vand.u32 4294901760, %v12120_v41 }
 0x7a5   :  { %17052 = vmatprep.subr.mxu1 %v23683_v59  ;;  %17004 = vmatpush3.msra.mxu0 %v11593_v54  ;;  %v16705_v4 = vpop.f32.mrf.mxu0  ;;  %v23574_v54 = vand.u32 4294901760, %v22520_v47  ;;  %v12134_v38 = vsub.f32 %v22508_v44, %v23575_v12  ;;  %v12128_v1 = vand.u32 4294901760, %v12127_v55 }
 0x7a6   :  { %17053 = vmatpush3.msra.mxu1 %v12107_v57  ;;  %17005 = vmatprep.subr.mxu0 %v23683_v59 }
 0x7a7   :  { %17054 = vmatprep.subr.mxu1 %v23683_v59  ;;  %17006 = vmatpush3.msra.mxu0 %v23861_v16  ;;  %v12141_v57 = vsub.f32 %v22520_v47, %v23574_v54  ;;  %v12135_v41 = vand.u32 4294901760, %v12134_v38 }
 0x7a8   :  { %17007 = vmatprep.mubr.msk.f32.mxu0 %vm17634_vm1, %v23683_v59  ;;  %17055 = vmatpush3.msra.mxu1 %v12114_v42 }
 0x7a9   :  { %17008 = vmatmul.mubr.f32.vlgmr.msra.gmra.mxu0 %v22369_v49  ;;  %17029 = vmatprep.subr.mxu0 %v23683_v59  ;;  %v12142_v16 = vand.u32 4294901760, %v12141_v57 }
 0x7aa   :  { %17056 = vmatprep.subr.mxu1 %v23683_v59  ;;  %17030 = vmatpush3.msra.mxu0 %v22403_v62 }
 0x7ab   :  { %17057 = vmatpush3.msra.mxu1 %v12121_v46  ;;  %17031 = vmatprep.subr.mxu0 %v23683_v59 }
 0x7ac   :  { %17058 = vmatprep.subr.mxu1 %v23683_v59  ;;  %17032 = vmatpush3.msra.mxu0 %v22410_v6  ;;  %v10559_v49 = vpop.f32.mrf.mxu1 }
 0x7ad   :  { %17059 = vmatpush3.msra.mxu1 %v12128_v1  ;;  %17033 = vmatprep.subr.mxu0 %v23683_v59  ;;  %v10560_v4 = vadd.f32 %v10559_v49, %v10448_v25 }
 0x7ae   :  { %17060 = vmatprep.subr.mxu1 %v23683_v59  ;;  %17034 = vmatpush3.msra.mxu0 %v22421_v37  ;;  %v16724_v42 = vpop.f32.mrf.mxu1 }
 0x7af   :  { %17061 = vmatpush3.msra.mxu1 %v12135_v41  ;;  %17035 = vmatprep.subr.mxu0 %v23683_v59 }
 0x7b0   :  { %17062 = vmatprep.subr.mxu1 %v23683_v59  ;;  %17036 = vmatpush3.msra.mxu0 %v22433_v60 }
 0x7b1   :  { %17063 = vmatpush3.msra.mxu1 %v12142_v16  ;;  %17037 = vmatprep.subr.mxu0 %v23683_v59 }
 0x7b2   :  { %17038 = vmatpush3.msra.mxu0 %v22447_v30  ;;  %17064 = vmatprep.mubr.msk.f32.mxu1 %vm17634_vm1, %v23683_v59 }
 0x7b3   :  { %17039 = vmatprep.subr.mxu0 %v23683_v59  ;;  %17086 = vmatprep.subr.mxu1 %v23683_v59 }
 0x7b4   :  { %17040 = vmatpush3.msra.mxu0 %v22462_v21  ;;  %17045 = vmatprep.mubr.msk.f32.mxu0 %vm17634_vm1, %v23683_v59 }
 0x7b5   :  { %17041 = vmatprep.subr.mxu0 %v23683_v59  ;;  %v10647_v25 = vpop.f32.mrf.mxu0 }
 0x7b6   :  { %v10648_v55 = vadd.f32 %v10647_v25, %v10560_v4  ;;  %17042 = vmatpush3.msra.mxu0 %v22478_v61  ;;  %v14146_v25 = vsel %vm294_vm0, %v22452_v17, 0.0 }
 0x7b7   :  { %17043 = vmatprep.subr.mxu0 %v23683_v59  ;;  %v16743_v46 = vpop.f32.mrf.mxu0 }
 0x7b8   :  { %17044 = vmatpush3.msra.mxu0 %v22495_v52 }
 0x7b9   :  { %17067 = vmatprep.subr.mxu0 %v23683_v59 }
 0x7be   :  { %v10728_v38 = vpop.f32.mrf.mxu1 }
 0x7bf   :  { %v10729_v1 = vadd.f32 %v10728_v38, %v10648_v55 }
 0x7c0   :  { %v16762_v57 = vpop.f32.mrf.mxu1 }
 0x7c1   :  { %v22621_v57 = vand.u32 4294901760, %v21583_v39 }
 0x7c7   :  { %v10823_v49 = vpop.f32.mrf.mxu0 }
 0x7c8   :  { %v10824_v41 = vadd.f32 %v10823_v49, %v10729_v1  ;;  %v23863_v49 = vld [vmem:[#allocation31_spill] sm:$0xff] }
 0x7c9   :  { %v16781_v42 = vpop.f32.mrf.mxu0  ;;  %v5966_v16 = vpop.xlane.xlu1 %5965 }
 0x7ca   :  { %17522 = vrcp.f32 %v5966_v16  ;;  %v22687_v16 = vand.u32 4294901760, %v21644_v43 }
 0x7d0   :  { %v10902_v54 = vpop.f32.mrf.mxu1 }
 0x7d1   :  { %v10903_v12 = vadd.f32 %v10902_v54, %v10824_v41  ;;  %v22632_v41 = vand.u32 4294901760, %v23863_v49 }
 0x7d2   :  { %v16800_v4 = vpop.f32.mrf.mxu1 }
 0x7d3   :  { %v14147_v46 = vsel %vm294_vm0, %v10903_v12, 0.0  ;;  %v23862_v12 = vld [vmem:[#allocation36_spill] sm:$0xff] }
 0x7d4   :  { %v22576_v15 = vadd.f32 %v14147_v46, %v14146_v25  ;;  %v22614_v54 = vand.u32 4294901760, %v23862_v12 }
 0x7d7   :  { %v17523_v32 = vpop.eup %17522 }
 0x7d8   :  { %v5985_v34 = vmul.f32 %v17523_v32, %v22153_v14  ;;  %v5969_v32 = vpop.xlane.xlu1 %5968 }
 0x7d9   :  { %17524 = vrcp.f32 %v5969_v32 }
 0x7da   :  { %v11987_v55 = vsel %vm5903_vm2, %v5985_v34, 0 }
 0x7db   :  { %v22580_v38 = vand.u32 4294901760, %v11987_v55 }
 0x7dd   :  { %v12063_v1 = vsub.f32 %v11987_v55, %v22580_v38  ;;  %17065 = vmatmul.mubr.f32.vlgmr.msra.gmra.mxu1 %v22580_v38  ;;  %v23865_v55 = vand.u32 4294901760, %v22475_v18 }
 0x7de   :  { %17087 = vmatpush3.msra.mxu1 %v22403_v62  ;;  %17102 = vmatprep.mubr.msk.f32.mxu1 %vm17634_vm1, %v23683_v59 }
 0x7df   :  { %17088 = vmatprep.subr.mxu1 %v23683_v59  ;;  %v12064_v17 = vand.u32 4294901760, %v12063_v1 }
 0x7e0   :  { %17089 = vmatpush3.msra.mxu1 %v22410_v6 }
 0x7e1   :  { %17090 = vmatprep.subr.mxu1 %v23683_v59  ;;  %v12065_v14 = vsub.f32 %v12063_v1, %v12064_v17 }
 0x7e2   :  { %17091 = vmatpush3.msra.mxu1 %v22421_v37 }
 0x7e3   :  { %17092 = vmatprep.subr.mxu1 %v23683_v59  ;;  %v12066_v34 = vand.u32 4294901760, %v12065_v14 }
 0x7e4   :  { %17093 = vmatpush3.msra.mxu1 %v22433_v60 }
 0x7e5   :  { %17094 = vmatprep.subr.mxu1 %v23683_v59  ;;  %17046 = vmatmul.mubr.f32.vlgmr.msra.gmra.mxu0 %v12066_v34 }
 0x7e6   :  { %17068 = vmatpush3.msra.mxu0 %v22418_v29  ;;  %17095 = vmatpush3.msra.mxu1 %v22447_v30  ;;  %v17525_v4 = vpop.eup %17524 }
 0x7e7   :  { %17069 = vmatprep.subr.mxu0 %v23683_v59  ;;  %17096 = vmatprep.subr.mxu1 %v23683_v59 }
 0x7e8   :  { %17070 = vmatpush3.msra.mxu0 %v22430_v7  ;;  %17097 = vmatpush3.msra.mxu1 %v22462_v21 }
 0x7e9   :  { %17071 = vmatprep.subr.mxu0 %v23683_v59  ;;  %17098 = vmatprep.subr.mxu1 %v23683_v59 }
 0x7ea   :  { %17072 = vmatpush3.msra.mxu0 %v22442_v22  ;;  %17099 = vmatpush3.msra.mxu1 %v22478_v61  ;;  %v23864_v22 = vand.u32 4294901760, %v22457_v31 }
 0x7eb   :  { %17073 = vmatprep.subr.mxu0 %v23683_v59  ;;  %17100 = vmatprep.subr.mxu1 %v23683_v59 }
 0x7ec   :  { %17074 = vmatpush3.msra.mxu0 %v22457_v31  ;;  %17101 = vmatpush3.msra.mxu1 %v22495_v52  ;;  %v22704_v31 = vand.u32 4294901760, %v21765_v33 }
 0x7ed   :  { %17075 = vmatprep.subr.mxu0 %v23683_v59  ;;  %17103 = vmatmul.mubr.f32.vlgmr.msra.gmra.mxu1 %v12064_v17  ;;  %v5987_v17 = vmul.f32 %v17525_v4, %v22163_v53  ;;  %v23868_v4 = vand.u32 4294901760, %v22520_v47 }
 0x7ee   :  { %17124 = vmatprep.subr.mxu1 %v23683_v59  ;;  %17076 = vmatpush3.msra.mxu0 %v22475_v18  ;;  %v23866_v18 = vand.u32 4294901760, %v22492_v36 }
 0x7ef   :  { %17125 = vmatpush3.msra.mxu1 %v22403_v62  ;;  %17077 = vmatprep.subr.mxu0 %v23683_v59  ;;  %v22629_v62 = vsub.f32 %v23862_v12, %v22614_v54  ;;  %v23867_v12 = vand.u32 4294901760, %v22508_v44 }
 0x7f0   :  { %17126 = vmatprep.subr.mxu1 %v23683_v59  ;;  %17078 = vmatpush3.msra.mxu0 %v22492_v36 }
 0x7f1   :  { %17127 = vmatpush3.msra.mxu1 %v22410_v6  ;;  %17079 = vmatprep.subr.mxu0 %v23683_v59  ;;  %v22641_v6 = vsub.f32 %v21583_v39, %v22621_v57  ;;  %v12631_v42 = vand.u32 4294901760, %v22629_v62  ;;  %v22658_v39 = vand.u32 4294901760, %v21602_v50 }
 0x7f2   :  { %17128 = vmatprep.subr.mxu1 %v23683_v59  ;;  %17080 = vmatpush3.msra.mxu0 %v22508_v44 }
 0x7f3   :  { %17129 = vmatpush3.msra.mxu1 %v22421_v37  ;;  %17081 = vmatprep.subr.mxu0 %v23683_v59  ;;  %v22644_v37 = vand.u32 4294901760, %v21600_v24  ;;  %v12638_v29 = vand.u32 4294901760, %v22641_v6  ;;  %v12632_v7 = vsub.f32 %v22629_v62, %v12631_v42 }
 0x7f4   :  { %17130 = vmatprep.subr.mxu1 %v23683_v59  ;;  %17082 = vmatpush3.msra.mxu0 %v22520_v47 }
 0x7f5   :  { %17083 = vmatprep.mubr.msk.f32.mxu0 %vm17634_vm1, %v23683_v59  ;;  %17131 = vmatpush3.msra.mxu1 %v22433_v60  ;;  %v22653_v60 = vsub.f32 %v23863_v49, %v22632_v41  ;;  %v12633_v46 = vand.u32 4294901760, %v12632_v7 }
 0x7f6   :  { %17084 = vmatmul.mubr.f32.vlgmr.msra.gmra.mxu0 %v12063_v1  ;;  %17105 = vmatprep.subr.mxu0 %v23683_v59  ;;  %v22717_v1 = vsub.f32 %v21644_v43, %v22687_v16  ;;  %v22730_v43 = vsub.f32 %v21765_v33, %v22704_v31 }
 0x7f7   :  { %17132 = vmatprep.subr.mxu1 %v23683_v59  ;;  %17106 = vmatpush3.msra.mxu0 %v12091_v63  ;;  %v22666_v63 = vsub.f32 %v21600_v24, %v22644_v37 }
 0x7f8   :  { %17133 = vmatpush3.msra.mxu1 %v22447_v30  ;;  %17107 = vmatprep.subr.mxu0 %v23683_v59  ;;  %v22671_v30 = vand.u32 4294901760, %v21606_v28  ;;  %v12673_v7 = vand.u32 4294901760, %v22717_v1 }
 0x7f9   :  { %17134 = vmatprep.subr.mxu1 %v23683_v59  ;;  %17108 = vmatpush3.msra.mxu0 %v12098_v19  ;;  %v12645_v19 = vand.u32 4294901760, %v22653_v60 }
 0x7fa   :  { %17135 = vmatpush3.msra.mxu1 %v22462_v21  ;;  %17109 = vmatprep.subr.mxu0 %v23683_v59  ;;  %v22684_v21 = vsub.f32 %v21602_v50, %v22658_v39  ;;  %v22701_v25 = vsub.f32 %v21606_v28, %v22671_v30  ;;  %v12674_v47 = vsub.f32 %v22717_v1, %v12673_v7 }
 0x7fb   :  { %17136 = vmatprep.subr.mxu1 %v23683_v59  ;;  %17110 = vmatpush3.msra.mxu0 %v12105_v40  ;;  %v12639_v40 = vsub.f32 %v22641_v6, %v12638_v29 }
 0x7fc   :  { %17137 = vmatpush3.msra.mxu1 %v22478_v61  ;;  %17111 = vmatprep.subr.mxu0 %v23683_v59  ;;  %v11099_v24 = vpop.f32.mrf.mxu1  ;;  %v12652_v61 = vand.u32 4294901760, %v22666_v63  ;;  %v12659_v28 = vand.u32 4294901760, %v22684_v21  ;;  %v12666_v32 = vand.u32 4294901760, %v22701_v25 }
 0x7fd   :  { %17138 = vmatprep.subr.mxu1 %v23683_v59  ;;  %17112 = vmatpush3.msra.mxu0 %v23864_v22  ;;  %v12640_v14 = vand.u32 4294901760, %v12639_v40  ;;  %v12527_v40 = vsel %vm5903_vm2, %v5987_v17, 0  ;;  %v12675_v17 = vand.u32 4294901760, %v12674_v47  ;;  %v22822_v47 = vand.u32 4294901760, %v21702_v56 }
 0x7fe   :  { %17139 = vmatpush3.msra.mxu1 %v22495_v52  ;;  %17140 = vmatprep.mubr.msk.f32.mxu1 %vm17634_vm1, %v23683_v59  ;;  %v16838_v50 = vpop.f32.mrf.mxu1  ;;  %v12646_v52 = vsub.f32 %v22653_v60, %v12645_v19  ;;  %v12653_v34 = vsub.f32 %v22666_v63, %v12652_v61  ;;  %v12660_v36 = vsub.f32 %v22684_v21, %v12659_v28 }
 0x7ff   :  { %17113 = vmatprep.subr.mxu0 %v23683_v59  ;;  %17141 = vmatmul.mubr.f32.vlgmr.msra.gmra.mxu1 %v22580_v38  ;;  %v12667_v50 = vsub.f32 %v22701_v25, %v12666_v32 }
 0x800   :  { %17162 = vmatprep.subr.mxu1 %v23683_v59  ;;  %17114 = vmatpush3.msra.mxu0 %v23865_v55  ;;  %v12647_v53 = vand.u32 4294901760, %v12646_v52  ;;  %v12654_v33 = vand.u32 4294901760, %v12653_v34  ;;  %v22756_v52 = vand.u32 4294901760, %v12527_v40 }
 0x801   :  { %17163 = vmatpush3.msra.mxu1 %v12633_v46  ;;  %17115 = vmatprep.subr.mxu0 %v23683_v59  ;;  %v12680_v46 = vand.u32 4294901760, %v22730_v43  ;;  %v12668_v55 = vand.u32 4294901760, %v12667_v50 }
 0x802   :  { %17164 = vmatprep.subr.mxu1 %v23683_v59  ;;  %17116 = vmatpush3.msra.mxu0 %v23866_v18 }
 0x803   :  { %17165 = vmatpush3.msra.mxu1 %v12640_v14  ;;  %17117 = vmatprep.subr.mxu0 %v23683_v59  ;;  %v22768_v14 = vsub.f32 %v12527_v40, %v22756_v52 }
 0x804   :  { %17166 = vmatprep.subr.mxu1 %v23683_v59  ;;  %17118 = vmatpush3.msra.mxu0 %v23867_v12  ;;  %v10988_v49 = vpop.f32.mrf.mxu0 }
 0x805   :  { %17167 = vmatpush3.msra.mxu1 %v12647_v53  ;;  %17119 = vmatprep.subr.mxu0 %v23683_v59  ;;  %v11100_v22 = vadd.f32 %v11099_v24, %v10988_v49  ;;  %v12661_v24 = vand.u32 4294901760, %v12660_v36  ;;  %v12604_v12 = vand.u32 4294901760, %v22768_v14 }
 0x806   :  { %17168 = vmatprep.subr.mxu1 %v23683_v59  ;;  %17120 = vmatpush3.msra.mxu0 %v23868_v4  ;;  %v16819_v44 = vpop.f32.mrf.mxu0 }
 0x807   :  { %17121 = vmatprep.mubr.msk.f32.mxu0 %vm17634_vm1, %v23683_v59  ;;  %17169 = vmatpush3.msra.mxu1 %v12654_v33  ;;  %v12605_v49 = vsub.f32 %v22768_v14, %v12604_v12 }
 0x808   :  { %17122 = vmatmul.mubr.f32.vlgmr.msra.gmra.mxu0 %v22580_v38  ;;  %17143 = vmatprep.subr.mxu0 %v23683_v59  ;;  %v12681_v38 = vsub.f32 %v22730_v43, %v12680_v46 }
 0x809   :  { %17170 = vmatprep.subr.mxu1 %v23683_v59  ;;  %17144 = vmatpush3.msra.mxu0 %v22614_v54  ;;  %v12606_v40 = vand.u32 4294901760, %v12605_v49 }
 0x80a   :  { %17171 = vmatpush3.msra.mxu1 %v12661_v24  ;;  %17145 = vmatprep.subr.mxu0 %v23683_v59  ;;  %v12682_v18 = vand.u32 4294901760, %v12681_v38  ;;  %v5972_v24 = vpop.xlane.xlu1 %5971 }
 0x80b   :  { %17172 = vmatprep.subr.mxu1 %v23683_v59  ;;  %17146 = vmatpush3.msra.mxu0 %v22621_v57  ;;  %17526 = vrcp.f32 %v5972_v24 }
 0x80c   :  { %17173 = vmatpush3.msra.mxu1 %v12668_v55  ;;  %17147 = vmatprep.subr.mxu0 %v23683_v59  ;;  %v22829_v55 = vand.u32 4294901760, %v21720_v13 }
 0x80d   :  { %17174 = vmatprep.subr.mxu1 %v23683_v59  ;;  %17148 = vmatpush3.msra.mxu0 %v22632_v41  ;;  %v11268_v34 = vpop.f32.mrf.mxu1 }
 0x80e   :  { %17175 = vmatpush3.msra.mxu1 %v12675_v17  ;;  %17149 = vmatprep.subr.mxu0 %v23683_v59  ;;  %v22837_v17 = vsub.f32 %v21702_v56, %v22822_v47  ;;  %v22852_v56 = vand.u32 4294901760, %v21748_v3 }
 0x80f   :  { %17176 = vmatprep.subr.mxu1 %v23683_v59  ;;  %17150 = vmatpush3.msra.mxu0 %v22644_v37  ;;  %v16876_v53 = vpop.f32.mrf.mxu1 }
 0x810   :  { %17177 = vmatpush3.msra.mxu1 %v12682_v18  ;;  %17178 = vmatprep.mubr.msk.f32.mxu1 %vm17634_vm1, %v23683_v59 }
 0x811   :  { %17151 = vmatprep.subr.mxu0 %v23683_v59  ;;  %17179 = vmatmul.mubr.f32.vlgmr.msra.gmra.mxu1 %v22756_v52 }
 0x812   :  { %17200 = vmatprep.subr.mxu1 %v23683_v59  ;;  %17152 = vmatpush3.msra.mxu0 %v22658_v39 }
 0x813   :  { %17201 = vmatpush3.msra.mxu1 %v22614_v54  ;;  %17153 = vmatprep.subr.mxu0 %v23683_v59 }
 0x814   :  { %17202 = vmatprep.subr.mxu1 %v23683_v59  ;;  %17154 = vmatpush3.msra.mxu0 %v22671_v30 }
 0x815   :  { %17203 = vmatpush3.msra.mxu1 %v22621_v57  ;;  %17155 = vmatprep.subr.mxu0 %v23683_v59 }
 0x816   :  { %17204 = vmatprep.subr.mxu1 %v23683_v59  ;;  %17156 = vmatpush3.msra.mxu0 %v22687_v16  ;;  %v11187_v36 = vpop.f32.mrf.mxu0 }
 0x817   :  { %17205 = vmatpush3.msra.mxu1 %v22632_v41  ;;  %17157 = vmatprep.subr.mxu0 %v23683_v59  ;;  %v11188_v33 = vadd.f32 %v11187_v36, %v11100_v22 }
 0x818   :  { %17206 = vmatprep.subr.mxu1 %v23683_v59  ;;  %17158 = vmatpush3.msra.mxu0 %v22704_v31  ;;  %v16857_v4 = vpop.f32.mrf.mxu0 }
 0x819   :  { %17159 = vmatprep.mubr.msk.f32.mxu0 %vm17634_vm1, %v23683_v59  ;;  %17207 = vmatpush3.msra.mxu1 %v22644_v37  ;;  %v11269_v44 = vadd.f32 %v11268_v34, %v11188_v33 }
 0x81a   :  { %17160 = vmatmul.mubr.f32.vlgmr.msra.gmra.mxu0 %v12606_v40  ;;  %17181 = vmatprep.subr.mxu0 %v23683_v59 }
 0x81b   :  { %17208 = vmatprep.subr.mxu1 %v23683_v59  ;;  %17182 = vmatpush3.msra.mxu0 %v22629_v62 }
 0x81c   :  { %17209 = vmatpush3.msra.mxu1 %v22658_v39  ;;  %17183 = vmatprep.subr.mxu0 %v23683_v59 }
 0x81d   :  { %17210 = vmatprep.subr.mxu1 %v23683_v59  ;;  %17184 = vmatpush3.msra.mxu0 %v22641_v6 }
 0x81e   :  { %17211 = vmatpush3.msra.mxu1 %v22671_v30  ;;  %17185 = vmatprep.subr.mxu0 %v23683_v59 }
 0x81f   :  { %17212 = vmatprep.subr.mxu1 %v23683_v59  ;;  %17186 = vmatpush3.msra.mxu0 %v22653_v60 }
 0x820   :  { %17213 = vmatpush3.msra.mxu1 %v22687_v16  ;;  %17187 = vmatprep.subr.mxu0 %v23683_v59  ;;  %v11442_v22 = vpop.f32.mrf.mxu1 }
 0x821   :  { %17214 = vmatprep.subr.mxu1 %v23683_v59  ;;  %17188 = vmatpush3.msra.mxu0 %v22666_v63 }
 0x822   :  { %17215 = vmatpush3.msra.mxu1 %v22704_v31  ;;  %17216 = vmatprep.mubr.msk.f32.mxu1 %vm17634_vm1, %v23683_v59  ;;  %v16914_v50 = vpop.f32.mrf.mxu1 }
 0x823   :  { %17189 = vmatprep.subr.mxu0 %v23683_v59  ;;  %17217 = vmatmul.mubr.f32.vlgmr.msra.gmra.mxu1 %v12604_v12 }
 0x824   :  { %17238 = vmatprep.subr.mxu1 %v23683_v59  ;;  %17190 = vmatpush3.msra.mxu0 %v22684_v21 }
 0x825   :  { %17239 = vmatpush3.msra.mxu1 %v22614_v54  ;;  %17191 = vmatprep.subr.mxu0 %v23683_v59 }
 0x826   :  { %17240 = vmatprep.subr.mxu1 %v23683_v59  ;;  %17192 = vmatpush3.msra.mxu0 %v22701_v25 }
 0x827   :  { %17241 = vmatpush3.msra.mxu1 %v22621_v57  ;;  %17193 = vmatprep.subr.mxu0 %v23683_v59  ;;  %v22840_v57 = vand.u32 4294901760, %v21733_v23 }
 0x828   :  { %17242 = vmatprep.subr.mxu1 %v23683_v59  ;;  %17194 = vmatpush3.msra.mxu0 %v22717_v1  ;;  %v11363_v54 = vpop.f32.mrf.mxu0 }
 0x829   :  { %17243 = vmatpush3.msra.mxu1 %v22632_v41  ;;  %17195 = vmatprep.subr.mxu0 %v23683_v59  ;;  %v11364_v38 = vadd.f32 %v11363_v54, %v11269_v44  ;;  %v22849_v41 = vsub.f32 %v21720_v13, %v22829_v55  ;;  %v22863_v13 = vsub.f32 %v21733_v23, %v22840_v57 }
 0x82a   :  { %17244 = vmatprep.subr.mxu1 %v23683_v59  ;;  %17196 = vmatpush3.msra.mxu0 %v22730_v43  ;;  %v16895_v34 = vpop.f32.mrf.mxu0  ;;  %v22879_v23 = vsub.f32 %v21748_v3, %v22852_v56 }
 0x82b   :  { %v11443_v18 = vadd.f32 %v11442_v22, %v11364_v38  ;;  %17197 = vmatprep.mubr.msk.f32.mxu0 %vm17634_vm1, %v23683_v59  ;;  %17245 = vmatpush3.msra.mxu1 %v22644_v37  ;;  %v13171_v37 = vand.u32 4294901760, %v22837_v17  ;;  %v13178_v62 = vand.u32 4294901760, %v22849_v41 }
 0x82c   :  { %17198 = vmatmul.mubr.f32.vlgmr.msra.gmra.mxu0 %v22768_v14  ;;  %17219 = vmatprep.subr.mxu0 %v23683_v59  ;;  %v22871_v14 = vand.u32 4294901760, %v21782_v8 }
 0x82d   :  { %v14149_v53 = vsel %vm294_vm0, %v11443_v18, 0.0  ;;  %17246 = vmatprep.subr.mxu1 %v23683_v59  ;;  %17220 = vmatpush3.msra.mxu0 %v12631_v42  ;;  %v13172_v6 = vsub.f32 %v22837_v17, %v13171_v37  ;;  %v13185_v42 = vand.u32 4294901760, %v22863_v13  ;;  %v13179_v60 = vsub.f32 %v22849_v41, %v13178_v62 }
 0x82e   :  { %v22866_v12 = vadd.f32 %v14149_v53, %v22576_v15  ;;  %17247 = vmatpush3.msra.mxu1 %v22658_v39  ;;  %17221 = vmatprep.subr.mxu0 %v23683_v59  ;;  %v22884_v15 = vand.u32 4294901760, %v21795_v26  ;;  %v22897_v3 = vsub.f32 %v21782_v8, %v22871_v14  ;;  %v22900_v39 = vand.u32 4294901760, %v21829_v5 }
 0x82f   :  { %17248 = vmatprep.subr.mxu1 %v23683_v59  ;;  %17222 = vmatpush3.msra.mxu0 %v12638_v29  ;;  %v13192_v29 = vand.u32 4294901760, %v22879_v23  ;;  %v13173_v63 = vand.u32 4294901760, %v13172_v6  ;;  %v13180_v49 = vand.u32 4294901760, %v13179_v60 }
 0x830   :  { %17249 = vmatpush3.msra.mxu1 %v22671_v30  ;;  %17223 = vmatprep.subr.mxu0 %v23683_v59  ;;  %v17527_v30 = vpop.eup %17526  ;;  %v22914_v8 = vsub.f32 %v21795_v26, %v22884_v15  ;;  %v13199_v26 = vand.u32 4294901760, %v22897_v3 }
 0x831   :  { %17250 = vmatprep.subr.mxu1 %v23683_v59  ;;  %17224 = vmatpush3.msra.mxu0 %v12645_v19  ;;  %v22917_v19 = vand.u32 4294901760, %v21896_v9  ;;  %v13193_v36 = vsub.f32 %v22879_v23, %v13192_v29 }
 0x832   :  { %17251 = vmatpush3.msra.mxu1 %v22687_v16  ;;  %17225 = vmatprep.subr.mxu0 %v23683_v59  ;;  %v13186_v16 = vsub.f32 %v22863_v13, %v13185_v42  ;;  %v13206_v21 = vand.u32 4294901760, %v22914_v8  ;;  %v13200_v25 = vsub.f32 %v22897_v3, %v13199_v26 }
 0x833   :  { %17252 = vmatprep.subr.mxu1 %v23683_v59  ;;  %17226 = vmatpush3.msra.mxu0 %v12652_v61  ;;  %v22930_v61 = vsub.f32 %v21829_v5, %v22900_v39  ;;  %v22943_v5 = vsub.f32 %v21896_v9, %v22917_v19  ;;  %v13194_v9 = vand.u32 4294901760, %v13193_v36  ;;  %v23057_v36 = vand.u32 4294901760, %v21880_v0 }
 0x834   :  { %17253 = vmatpush3.msra.mxu1 %v22704_v31  ;;  %17254 = vmatprep.mubr.msk.f32.mxu1 %vm17634_vm1, %v23683_v59  ;;  %v5989_v31 = vmul.f32 %v17527_v30, %v22172_v45  ;;  %v13187_v45 = vand.u32 4294901760, %v13186_v16  ;;  %v13207_v1 = vsub.f32 %v22914_v8, %v13206_v21  ;;  %v13201_v33 = vand.u32 4294901760, %v13200_v25  ;;  %v5975_v16 = vpop.xlane.xlu0 %5974 }
 0x835   :  { %17227 = vmatprep.subr.mxu0 %v23683_v59  ;;  %17255 = vmatmul.mubr.f32.vlgmr.msra.gmra.mxu1 %v22756_v52  ;;  %17528 = vrcp.f32 %v5975_v16 }
 0x836   :  { %17276 = vmatprep.subr.mxu1 %v23683_v59  ;;  %17228 = vmatpush3.msra.mxu0 %v12659_v28  ;;  %v13213_v28 = vand.u32 4294901760, %v22930_v61  ;;  %v13208_v4 = vand.u32 4294901760, %v13207_v1 }
 0x837   :  { %17277 = vmatpush3.msra.mxu1 %v13173_v63  ;;  %17229 = vmatprep.subr.mxu0 %v23683_v59 }
 0x838   :  { %17278 = vmatprep.subr.mxu1 %v23683_v59  ;;  %17230 = vmatpush3.msra.mxu0 %v12666_v32  ;;  %v13067_v32 = vsel %vm5903_vm2, %v5989_v31, 0  ;;  %v13214_v43 = vsub.f32 %v22930_v61, %v13213_v28  ;;  %v23039_v31 = vand.u32 4294901760, %v21868_v27 }
 0x839   :  { %17279 = vmatpush3.msra.mxu1 %v13180_v49  ;;  %17231 = vmatprep.subr.mxu0 %v23683_v59  ;;  %v23048_v49 = vand.u32 4294901760, %v21876_v51 }
 0x83a   :  { %17280 = vmatprep.subr.mxu1 %v23683_v59  ;;  %17232 = vmatpush3.msra.mxu0 %v12673_v7  ;;  %v13220_v7 = vand.u32 4294901760, %v22943_v5  ;;  %v13215_v22 = vand.u32 4294901760, %v13214_v43  ;;  %v17602_v43 = vld [vmem:[%s23399_s0 + $0x8] sm:$0x3] }
 0x83b   :  { %17281 = vmatpush3.msra.mxu1 %v13187_v45  ;;  %17233 = vmatprep.subr.mxu0 %v23683_v59  ;;  %v23073_v45 = vand.u32 4294901760, %v21892_v20 }
 0x83c   :  { %17282 = vmatprep.subr.mxu1 %v23683_v59  ;;  %17234 = vmatpush3.msra.mxu0 %v12680_v46  ;;  %v22971_v46 = vand.u32 4294901760, %v13067_v32  ;;  %v13221_v44 = vsub.f32 %v22943_v5, %v13220_v7 }
 0x83d   :  { %17235 = vmatprep.mubr.msk.f32.mxu0 %vm17634_vm1, %v23683_v59  ;;  %17283 = vmatpush3.msra.mxu1 %v13194_v9 }
 0x83e   :  { %17236 = vmatmul.mubr.f32.vlgmr.msra.gmra.mxu0 %v22756_v52  ;;  %17257 = vmatprep.subr.mxu0 %v23683_v59  ;;  %v22966_v40 = vpop.f32.mrf.mxu1  ;;  %v22983_v50 = vsub.f32 %v13067_v32, %v22971_v46  ;;  %v13222_v24 = vand.u32 4294901760, %v13221_v44  ;;  %v17599_v32 = vld [vmem:[%s23399_s0 + $0x4] sm:$0x3] }
 0x83f   :  { %17284 = vmatprep.subr.mxu1 %v23683_v59  ;;  %17258 = vmatpush3.msra.mxu0 %v22822_v47 }
 0x840   :  { %17285 = vmatpush3.msra.mxu1 %v13201_v33  ;;  %17259 = vmatprep.subr.mxu0 %v23683_v59  ;;  %v16952_v52 = vpop.f32.mrf.mxu1  ;;  %v13144_v38 = vand.u32 4294901760, %v22983_v50  ;;  %v17600_v33 = vld [vmem:[%s23399_s0 + $0x2] sm:$0x3] }
 0x841   :  { %17286 = vmatprep.subr.mxu1 %v23683_v59  ;;  %17260 = vmatpush3.msra.mxu0 %v22829_v55 }
 0x842   :  { %17287 = vmatpush3.msra.mxu1 %v13208_v4  ;;  %17261 = vmatprep.subr.mxu0 %v23683_v59  ;;  %v13145_v18 = vsub.f32 %v22983_v50, %v13144_v38  ;;  %v17603_v4 = vld [vmem:[%s23399_s0 + $0xc] sm:$0x3] }
 0x843   :  { %17288 = vmatprep.subr.mxu1 %v23683_v59  ;;  %17262 = vmatpush3.msra.mxu0 %v22840_v57  ;;  %v14182_v52 = vcombine.low %v17602_v43, %v17603_v4 }
 0x844   :  { %17289 = vmatpush3.msra.mxu1 %v13215_v22  ;;  %17263 = vmatprep.subr.mxu0 %v23683_v59  ;;  %v13146_v53 = vand.u32 4294901760, %v13145_v18 }
 0x845   :  { %17290 = vmatprep.subr.mxu1 %v23683_v59  ;;  %17264 = vmatpush3.msra.mxu0 %v22852_v56 }
 0x846   :  { %17291 = vmatpush3.msra.mxu1 %v13222_v24  ;;  %17292 = vmatprep.mubr.msk.f32.mxu1 %vm17634_vm1, %v23683_v59  ;;  %v22992_v54 = vpop.f32.mrf.mxu0 }
 0x847   :  { %17265 = vmatprep.subr.mxu0 %v23683_v59  ;;  %17293 = vmatmul.mubr.f32.vlgmr.msra.gmra.mxu1 %v22971_v46 }
 0x848   :  { %17314 = vmatprep.subr.mxu1 %v23683_v59  ;;  %17266 = vmatpush3.msra.mxu0 %v22871_v14  ;;  %v16933_v34 = vpop.f32.mrf.mxu0 }
 0x849   :  { %17315 = vmatpush3.msra.mxu1 %v22822_v47  ;;  %17267 = vmatprep.subr.mxu0 %v23683_v59  ;;  %v23869_v34 = vld [vmem:[#allocation5_spill] sm:$0xff] }
 0x84a   :  { %17316 = vmatprep.subr.mxu1 %v23683_v59  ;;  %17268 = vmatpush3.msra.mxu0 %v22884_v15 }
 0x84b   :  { %17317 = vmatpush3.msra.mxu1 %v22829_v55  ;;  %17269 = vmatprep.subr.mxu0 %v23683_v59 }
 0x84c   :  { %17318 = vmatprep.subr.mxu1 %v23683_v59  ;;  %17270 = vmatpush3.msra.mxu0 %v22900_v39 }
 0x84d   :  { %17319 = vmatpush3.msra.mxu1 %v22840_v57  ;;  %17271 = vmatprep.subr.mxu0 %v23683_v59 }
 0x84e   :  { %17320 = vmatprep.subr.mxu1 %v23683_v59  ;;  %17272 = vmatpush3.msra.mxu0 %v22917_v19  ;;  %v23012_v6 = vpop.f32.mrf.mxu1 }
 0x84f   :  { %17273 = vmatprep.mubr.msk.f32.mxu0 %vm17634_vm1, %v23683_v59  ;;  %17321 = vmatpush3.msra.mxu1 %v22852_v56 }
 0x850   :  { %17274 = vmatmul.mubr.f32.vlgmr.msra.gmra.mxu0 %v13146_v53  ;;  %17295 = vmatprep.subr.mxu0 %v23683_v59  ;;  %v16990_v60 = vpop.f32.mrf.mxu1 }
 0x851   :  { %17322 = vmatprep.subr.mxu1 %v23683_v59  ;;  %17296 = vmatpush3.msra.mxu0 %v22837_v17  ;;  %v17604_v17 = vld [vmem:[%s23399_s0 + $0xa] sm:$0x3] }
 0x852   :  { %17323 = vmatpush3.msra.mxu1 %v22871_v14  ;;  %17297 = vmatprep.subr.mxu0 %v23683_v59 }
 0x853   :  { %17324 = vmatprep.subr.mxu1 %v23683_v59  ;;  %17298 = vmatpush3.msra.mxu0 %v22849_v41 }
 0x854   :  { %17325 = vmatpush3.msra.mxu1 %v22884_v15  ;;  %17299 = vmatprep.subr.mxu0 %v23683_v59 }
 0x855   :  { %17326 = vmatprep.subr.mxu1 %v23683_v59  ;;  %17300 = vmatpush3.msra.mxu0 %v22863_v13  ;;  %v23148_v13 = vand.u32 4294901760, %v21925_v11 }
 0x856   :  { %17327 = vmatpush3.msra.mxu1 %v22900_v39  ;;  %17301 = vmatprep.subr.mxu0 %v23683_v59 }
 0x857   :  { %17328 = vmatprep.subr.mxu1 %v23683_v59  ;;  %17302 = vmatpush3.msra.mxu0 %v22879_v23  ;;  %v11727_v30 = vpop.f32.mrf.mxu0  ;;  %v23165_v23 = vand.u32 4294901760, %v21940_v10 }
 0x858   :  { %17329 = vmatpush3.msra.mxu1 %v22917_v19  ;;  %17330 = vmatprep.mubr.msk.f32.mxu1 %vm17634_vm1, %v23683_v59 }
 0x859   :  { %17303 = vmatprep.subr.mxu0 %v23683_v59  ;;  %17331 = vmatmul.mubr.f32.vlgmr.msra.gmra.mxu1 %v13144_v38  ;;  %v16971_v63 = vpop.f32.mrf.mxu0  ;;  %v23130_v38 = vand.u32 4294901760, %v21911_v2 }
 0x85a   :  { %17352 = vmatprep.subr.mxu1 %v23683_v59  ;;  %17304 = vmatpush3.msra.mxu0 %v22897_v3 }
 0x85b   :  { %17353 = vmatpush3.msra.mxu1 %v22822_v47  ;;  %17305 = vmatprep.subr.mxu0 %v23683_v59  ;;  %v23054_v47 = vsub.f32 %v21868_v27, %v23039_v31  ;;  %v23070_v27 = vsub.f32 %v21876_v51, %v23048_v49  ;;  %v17598_v51 = vld [vmem:[%s23399_s0] sm:$0x3]  ;;  %v23162_v63 = vsub.f32 %v21911_v2, %v23130_v38 }
 0x85c   :  { %17354 = vmatprep.subr.mxu1 %v23683_v59  ;;  %17306 = vmatpush3.msra.mxu0 %v22914_v8  ;;  %v14166_v1 = vcombine.low %v17598_v51, %v17599_v32  ;;  %v23179_v32 = vsub.f32 %v21925_v11, %v23148_v13 }
 0x85d   :  { %17355 = vmatpush3.msra.mxu1 %v22829_v55  ;;  %17307 = vmatprep.subr.mxu0 %v23683_v59  ;;  %v13711_v9 = vand.u32 4294901760, %v23054_v47  ;;  %v13718_v24 = vand.u32 4294901760, %v23070_v27  ;;  %v13746_v11 = vand.u32 4294901760, %v23162_v63 }
 0x85e   :  { %17356 = vmatprep.subr.mxu1 %v23683_v59  ;;  %17308 = vmatpush3.msra.mxu0 %v22930_v61  ;;  %v14173_v41 = vrot.slane %v14166_v1, %v23869_v34 }
 0x85f   :  { %17357 = vmatpush3.msra.mxu1 %v22840_v57  ;;  %17309 = vmatprep.subr.mxu0 %v23683_v59  ;;  %v11640_v57 = vadd.f32 %v22966_v40, %v22992_v54  ;;  %v23122_v54 = vsub.f32 %v21892_v20, %v23073_v45  ;;  %v13747_v61 = vsub.f32 %v23162_v63, %v13746_v11 }
 0x860   :  { %17358 = vmatprep.subr.mxu1 %v23683_v59  ;;  %17310 = vmatpush3.msra.mxu0 %v22943_v5  ;;  %v23063_v55 = vpop.f32.mrf.mxu1 }
 0x861   :  { %17311 = vmatprep.mubr.msk.f32.mxu0 %vm17634_vm1, %v23683_v59  ;;  %17359 = vmatpush3.msra.mxu1 %v22852_v56  ;;  %v23082_v56 = vsub.f32 %v21880_v0, %v23057_v36  ;;  %v17601_v0 = vld [vmem:[%s23399_s0 + $0x6] sm:$0x3]  ;;  %v11728_v22 = vadd.f32 %v11727_v30, %v11640_v57  ;;  %v13732_v30 = vand.u32 4294901760, %v23122_v54 }
 0x862   :  { %17312 = vmatmul.mubr.f32.vlgmr.msra.gmra.mxu0 %v22983_v50  ;;  %17333 = vmatprep.subr.mxu0 %v23683_v59  ;;  %v17028_v25 = vpop.f32.mrf.mxu1  ;;  %v14174_v40 = vcombine.low %v17600_v33, %v17601_v0  ;;  %v23114_v50 = vand.u32 4294901760, %v21906_v35 }
 0x863   :  { %17360 = vmatprep.subr.mxu1 %v23683_v59  ;;  %17334 = vmatpush3.msra.mxu0 %v13171_v37  ;;  %v17605_v37 = vld [vmem:[%s23399_s0 + $0xe] sm:$0x3]  ;;  %v13725_v20 = vand.u32 4294901760, %v23082_v56  ;;  %v11809_v53 = vadd.f32 %v23012_v6, %v11728_v22  ;;  %v17529_v6 = vpop.eup %17528  ;;  %v13733_v0 = vsub.f32 %v23122_v54, %v13732_v30 }
 0x864   :  { %v14190_v44 = vcombine.low %v17604_v17, %v17605_v37  ;;  %17361 = vmatpush3.msra.mxu1 %v22871_v14  ;;  %17335 = vmatprep.subr.mxu0 %v23683_v59  ;;  %v13712_v14 = vsub.f32 %v23054_v47, %v13711_v9  ;;  %v23145_v60 = vsub.f32 %v21906_v35, %v23114_v50 }
 0x865   :  { %17362 = vmatprep.subr.mxu1 %v23683_v59  ;;  %17336 = vmatpush3.msra.mxu0 %v13178_v62  ;;  %v14181_v62 = vrot.slane %v14174_v40, %v23869_v34  ;;  %v5991_v1 = vmul.f32 %v17529_v6, %v22183_v58  ;;  %v23193_v58 = vsub.f32 %v21940_v10, %v23165_v23  ;;  %v13734_v43 = vand.u32 4294901760, %v13733_v0 }
 0x866   :  { %17363 = vmatpush3.msra.mxu1 %v22884_v15  ;;  %17337 = vmatprep.subr.mxu0 %v23683_v59  ;;  %v14189_v15 = vrot.slane %v14182_v52, %v23869_v34  ;;  %v14197_v18 = vrot.slane %v14190_v44, %v23869_v34  ;;  %v13739_v51 = vand.u32 4294901760, %v23145_v60  ;;  %v13748_v44 = vand.u32 4294901760, %v13747_v61 }
 0x867   :  { %17364 = vmatprep.subr.mxu1 %v23683_v59  ;;  %17338 = vmatpush3.msra.mxu0 %v13185_v42  ;;  %v13719_v42 = vsub.f32 %v23070_v27, %v13718_v24  ;;  %v14198_v57 = vcombine.low %v14173_v41, %v14181_v62  ;;  %v13607_v4 = vsel %vm5903_vm2, %v5991_v1, 0 }
 0x868   :  { %17365 = vmatpush3.msra.mxu1 %v22900_v39  ;;  %17339 = vmatprep.subr.mxu0 %v23683_v59  ;;  %v14206_v25 = vcombine.low %v14189_v15, %v14197_v18  ;;  %v13740_v10 = vsub.f32 %v23145_v60, %v13739_v51  ;;  %v23234_v37 = vand.u32 4294901760, %v13607_v4 }
 0x869   :  { %17366 = vmatprep.subr.mxu1 %v23683_v59  ;;  %17340 = vmatpush3.msra.mxu0 %v13192_v29  ;;  %v11903_v39 = vpop.f32.mrf.mxu0  ;;  %v13713_v29 = vand.u32 4294901760, %v13712_v14  ;;  %v13720_v33 = vand.u32 4294901760, %v13719_v42  ;;  %v23198_v40 = vrot.slane %v14198_v57, %v17876_v48 }
 0x86a   :  { %17367 = vmatpush3.msra.mxu1 %v22917_v19  ;;  %17368 = vmatprep.mubr.msk.f32.mxu1 %vm17634_vm1, %v23683_v59  ;;  %v11904_v35 = vadd.f32 %v11903_v39, %v11809_v53  ;;  %v13726_v19 = vsub.f32 %v23082_v56, %v13725_v20  ;;  %v23201_v8 = vrot.slane %v14206_v25, %v17876_v48  ;;  %v13741_v5 = vand.u32 4294901760, %v13740_v10 }
 0x86b   :  { %17341 = vmatprep.subr.mxu0 %v23683_v59  ;;  %17369 = vmatmul.mubr.f32.vlgmr.msra.gmra.mxu1 %v22971_v46  ;;  %v17009_v16 = vpop.f32.mrf.mxu0  ;;  %v23248_v41 = vsub.f32 %v13607_v4, %v23234_v37 }
 0x86c   :  { %17390 = vmatprep.subr.mxu1 %v23683_v59  ;;  %17342 = vmatpush3.msra.mxu0 %v13199_v26  ;;  %v11983_v2 = vadd.f32 %v23063_v55, %v11904_v35  ;;  %v13727_v55 = vand.u32 4294901760, %v13726_v19  ;;  %v14214_v17 = vcombine.low %v23198_v40, %v23201_v8 }
 0x86d   :  { %17391 = vmatpush3.msra.mxu1 %v13713_v29  ;;  %17343 = vmatprep.subr.mxu0 %v23683_v59  ;;  %v13684_v18 = vand.u32 4294901760, %v23248_v41 }
 0x86e   :  { %17392 = vmatprep.subr.mxu1 %v23683_v59  ;;  %17344 = vmatpush3.msra.mxu0 %v13206_v21  ;;  %v14151_v3 = vsel %vm294_vm0, %v11983_v2, 0.0  ;;  %v23213_v21 = vld [vmem:[%s23404_s5 + $0x4] ss:$0 sm:$0xff] }
 0x86f   :  { %17393 = vmatpush3.msra.mxu1 %v13720_v33  ;;  %v14152_v26 = vadd.f32 %v14151_v3, %v22866_v12  ;;  %17345 = vmatprep.subr.mxu0 %v23683_v59  ;;  %v13753_v12 = vand.u32 4294901760, %v23179_v32  ;;  %v13685_v53 = vsub.f32 %v23248_v41, %v13684_v18 }
 0x870   :  { %17394 = vmatprep.subr.mxu1 %v23683_v59  ;;  %17346 = vmatpush3.msra.mxu0 %v13213_v28  ;;  %v13760_v28 = vand.u32 4294901760, %v23193_v58 }
 0x871   :  { %17395 = vmatpush3.msra.mxu1 %v13727_v55  ;;  %17347 = vmatprep.subr.mxu0 %v23683_v59  ;;  %v14164_v52 = vadd.f32 %v23213_v21, %v14152_v26  ;;  %v13686_v42 = vand.u32 4294901760, %v13685_v53 }
 0x872   :  { %17396 = vmatprep.subr.mxu1 %v23683_v59  ;;  %17348 = vmatpush3.msra.mxu0 %v13220_v7  ;;  %v13754_v7 = vsub.f32 %v23179_v32, %v13753_v12 }
 0x873   :  { %17349 = vmatprep.mubr.msk.f32.mxu0 %vm17634_vm1, %v23683_v59  ;;  %17397 = vmatpush3.msra.mxu1 %v13734_v43  ;;  %v23244_v22 = vadd.f32 %v14214_v17, %v14164_v52 }
 0x874   :  { %17350 = vmatmul.mubr.f32.vlgmr.msra.gmra.mxu0 %v22971_v46  ;;  %17371 = vmatprep.subr.mxu0 %v23683_v59  ;;  %v13761_v46 = vsub.f32 %v23193_v58, %v13760_v28  ;;  %v13755_v14 = vand.u32 4294901760, %v13754_v7 }
 0x875   :  { %17398 = vmatprep.subr.mxu1 %v23683_v59  ;;  %17372 = vmatpush3.msra.mxu0 %v23039_v31  ;;  %v14218_v15 = vsel %vm294_vm0, %v23244_v22, 0.0 }
 0x876   :  { %17399 = vmatpush3.msra.mxu1 %v13741_v5  ;;  %17373 = vmatprep.subr.mxu0 %v23683_v59  ;;  %v13762_v62 = vand.u32 4294901760, %v13761_v46 }
 0x877   :  { %17400 = vmatprep.subr.mxu1 %v23683_v59  ;;  %17374 = vmatpush3.msra.mxu0 %v23048_v49 }
 0x878   :  { %17401 = vmatpush3.msra.mxu1 %v13748_v44  ;;  %17375 = vmatprep.subr.mxu0 %v23683_v59 }
 0x879   :  { %17402 = vmatprep.subr.mxu1 %v23683_v59  ;;  %17376 = vmatpush3.msra.mxu0 %v23057_v36 }
 0x87a   :  { %17403 = vmatpush3.msra.mxu1 %v13755_v14  ;;  %17377 = vmatprep.subr.mxu0 %v23683_v59 }
 0x87b   :  { %17404 = vmatprep.subr.mxu1 %v23683_v59  ;;  %17378 = vmatpush3.msra.mxu0 %v23073_v45 }
 0x87c   :  { %17405 = vmatpush3.msra.mxu1 %v13762_v62  ;;  %17406 = vmatprep.mubr.msk.f32.mxu1 %vm17634_vm1, %v23683_v59 }
 0x87d   :  { %17379 = vmatprep.subr.mxu0 %v23683_v59  ;;  %17407 = vmatmul.mubr.f32.vlgmr.msra.gmra.mxu1 %v23234_v37 }
 0x87e   :  { %17428 = vmatprep.subr.mxu1 %v23683_v59  ;;  %14219 = vadd.xlane.f32.xlu1 %v14218_v15 }
 0x87f   :  { %17380 = vmatpush3.msra.mxu0 %v23114_v50  ;;  %17429 = vmatpush3.msra.mxu1 %v23039_v31 }
 0x880   :  { %17381 = vmatprep.subr.mxu0 %v23683_v59  ;;  %17430 = vmatprep.subr.mxu1 %v23683_v59 }
 0x881   :  { %17382 = vmatpush3.msra.mxu0 %v23130_v38  ;;  %17431 = vmatpush3.msra.mxu1 %v23048_v49 }
 0x882   :  { %17383 = vmatprep.subr.mxu0 %v23683_v59  ;;  %17432 = vmatprep.subr.mxu1 %v23683_v59 }
 0x883   :  { %17384 = vmatpush3.msra.mxu0 %v23148_v13  ;;  %17433 = vmatpush3.msra.mxu1 %v23057_v36 }
 0x884   :  { %17385 = vmatprep.subr.mxu0 %v23683_v59  ;;  %17434 = vmatprep.subr.mxu1 %v23683_v59 }
 0x885   :  { %17386 = vmatpush3.msra.mxu0 %v23165_v23  ;;  %17387 = vmatprep.mubr.msk.f32.mxu0 %vm17634_vm1, %v23683_v59 }
 0x886   :  { %17435 = vmatpush3.msra.mxu1 %v23073_v45  ;;  %17388 = vmatmul.mubr.f32.vlgmr.msra.gmra.mxu0 %v13686_v42 }
 0x887   :  { %17409 = vmatprep.subr.mxu0 %v23683_v59  ;;  %17436 = vmatprep.subr.mxu1 %v23683_v59 }
 0x888   :  { %17410 = vmatpush3.msra.mxu0 %v23054_v47  ;;  %17437 = vmatpush3.msra.mxu1 %v23114_v50 }
 0x889   :  { %17411 = vmatprep.subr.mxu0 %v23683_v59  ;;  %17438 = vmatprep.subr.mxu1 %v23683_v59 }
 0x88a   :  { %17412 = vmatpush3.msra.mxu0 %v23070_v27  ;;  %17439 = vmatpush3.msra.mxu1 %v23130_v38 }
 0x88b   :  { %17413 = vmatprep.subr.mxu0 %v23683_v59  ;;  %17440 = vmatprep.subr.mxu1 %v23683_v59 }
 0x88c   :  { %17414 = vmatpush3.msra.mxu0 %v23082_v56  ;;  %17441 = vmatpush3.msra.mxu1 %v23148_v13 }
 0x88d   :  { %17415 = vmatprep.subr.mxu0 %v23683_v59  ;;  %17442 = vmatprep.subr.mxu1 %v23683_v59 }
 0x88e   :  { %17416 = vmatpush3.msra.mxu0 %v23122_v54  ;;  %17443 = vmatpush3.msra.mxu1 %v23165_v23 }
 0x88f   :  { %17444 = vmatprep.mubr.msk.f32.mxu1 %vm17634_vm1, %v23683_v59  ;;  %17417 = vmatprep.subr.mxu0 %v23683_v59 }
 0x890   :  { %17445 = vmatmul.mubr.f32.vlgmr.msra.gmra.mxu1 %v13684_v18  ;;  %17466 = vmatprep.subr.mxu1 %v23683_v59 }
 0x891   :  { %17418 = vmatpush3.msra.mxu0 %v23145_v60  ;;  %17467 = vmatpush3.msra.mxu1 %v23039_v31 }
 0x892   :  { %17419 = vmatprep.subr.mxu0 %v23683_v59  ;;  %17468 = vmatprep.subr.mxu1 %v23683_v59 }
 0x893   :  { %17420 = vmatpush3.msra.mxu0 %v23162_v63  ;;  %17469 = vmatpush3.msra.mxu1 %v23048_v49 }
 0x894   :  { %17421 = vmatprep.subr.mxu0 %v23683_v59  ;;  %17470 = vmatprep.subr.mxu1 %v23683_v59 }
 0x895   :  { %17422 = vmatpush3.msra.mxu0 %v23179_v32  ;;  %17471 = vmatpush3.msra.mxu1 %v23057_v36 }
 0x896   :  { %17423 = vmatprep.subr.mxu0 %v23683_v59  ;;  %17472 = vmatprep.subr.mxu1 %v23683_v59 }
 0x897   :  { %17424 = vmatpush3.msra.mxu0 %v23193_v58  ;;  %17425 = vmatprep.mubr.msk.f32.mxu0 %vm17634_vm1, %v23683_v59 }
 0x898   :  { %17473 = vmatpush3.msra.mxu1 %v23073_v45  ;;  %17426 = vmatmul.mubr.f32.vlgmr.msra.gmra.mxu0 %v23248_v41 }
 0x899   :  { %17447 = vmatprep.subr.mxu0 %v23683_v59  ;;  %17474 = vmatprep.subr.mxu1 %v23683_v59 }
 0x89a   :  { %17448 = vmatpush3.msra.mxu0 %v13711_v9  ;;  %17475 = vmatpush3.msra.mxu1 %v23114_v50 }
 0x89b   :  { %17449 = vmatprep.subr.mxu0 %v23683_v59  ;;  %17476 = vmatprep.subr.mxu1 %v23683_v59 }
 0x89c   :  { %17450 = vmatpush3.msra.mxu0 %v13718_v24  ;;  %17477 = vmatpush3.msra.mxu1 %v23130_v38 }
 0x89d   :  { %17451 = vmatprep.subr.mxu0 %v23683_v59  ;;  %17478 = vmatprep.subr.mxu1 %v23683_v59  ;;  %v12179_v31 = vpop.f32.mrf.mxu1 }
 0x89e   :  { %17452 = vmatpush3.msra.mxu0 %v13725_v20  ;;  %17479 = vmatpush3.msra.mxu1 %v23148_v13 }
 0x89f   :  { %17453 = vmatprep.subr.mxu0 %v23683_v59  ;;  %17480 = vmatprep.subr.mxu1 %v23683_v59  ;;  %v17066_v49 = vpop.f32.mrf.mxu1 }
 0x8a0   :  { %17454 = vmatpush3.msra.mxu0 %v13732_v30  ;;  %17481 = vmatpush3.msra.mxu1 %v23165_v23 }
 0x8a1   :  { %17482 = vmatprep.mubr.msk.f32.mxu1 %vm17634_vm1, %v23683_v59  ;;  %17455 = vmatprep.subr.mxu0 %v23683_v59 }
 0x8a2   :  { %17483 = vmatmul.mubr.f32.vlgmr.msra.gmra.mxu1 %v23234_v37  ;;  %17456 = vmatpush3.msra.mxu0 %v13739_v51 }
 0x8a3   :  { %17457 = vmatprep.subr.mxu0 %v23683_v59  ;;  %17463 = vmatprep.mubr.msk.f32.mxu0 %vm17634_vm1, %v23683_v59 }
 0x8a4   :  { %17458 = vmatpush3.msra.mxu0 %v13746_v11 }
 0x8a5   :  { %17459 = vmatprep.subr.mxu0 %v23683_v59  ;;  %v12068_v47 = vpop.f32.mrf.mxu0 }
 0x8a6   :  { %17460 = vmatpush3.msra.mxu0 %v13753_v12  ;;  %v12180_v36 = vadd.f32 %v12179_v31, %v12068_v47 }
 0x8a7   :  { %17461 = vmatprep.subr.mxu0 %v23683_v59  ;;  %v17047_v27 = vpop.f32.mrf.mxu0 }
 0x8a8   :  { %17462 = vmatpush3.msra.mxu0 %v13760_v28 }
 0x8a9   :  { %17464 = vmatmul.mubr.f32.vlgmr.msra.gmra.mxu0 %v23234_v37 }
 0x8ad   :  { %v12348_v45 = vpop.f32.mrf.mxu1 }
 0x8af   :  { %v17104_v9 = vpop.f32.mrf.mxu1 }
 0x8b6   :  { %v12267_v56 = vpop.f32.mrf.mxu0 }
 0x8b7   :  { %v12268_v50 = vadd.f32 %v12267_v56, %v12180_v36 }
 0x8b8   :  { %v17085_v24 = vpop.f32.mrf.mxu0 }
 0x8b9   :  { %v12349_v54 = vadd.f32 %v12348_v45, %v12268_v50 }
 0x8bf   :  { %v12522_v38 = vpop.f32.mrf.mxu1 }
 0x8c1   :  { %v17142_v20 = vpop.f32.mrf.mxu1 }
 0x8c8   :  { %v12443_v60 = vpop.f32.mrf.mxu0 }
 0x8c9   :  { %v12444_v13 = vadd.f32 %v12443_v60, %v12349_v54 }
 0x8ca   :  { %v17123_v39 = vpop.f32.mrf.mxu0 }
 0x8cb   :  { %v12523_v30 = vadd.f32 %v12522_v38, %v12444_v13 }
 0x8cd   :  { %v14153_v58 = vsel %vm294_vm0, %v12523_v30, 0.0 }
 0x8d1   :  { %v12719_v6 = vpop.f32.mrf.mxu1 }
 0x8d3   :  { %v17180_v35 = vpop.f32.mrf.mxu1 }
 0x8da   :  { %v12608_v63 = vpop.f32.mrf.mxu0 }
 0x8db   :  { %v12720_v23 = vadd.f32 %v12719_v6, %v12608_v63 }
 0x8dc   :  { %v17161_v29 = vpop.f32.mrf.mxu0 }
 0x8e3   :  { %v12888_v19 = vpop.f32.mrf.mxu1 }
 0x8e5   :  { %v17218_v16 = vpop.f32.mrf.mxu1 }
 0x8ec   :  { %v12807_v57 = vpop.f32.mrf.mxu0 }
 0x8ed   :  { %v12808_v25 = vadd.f32 %v12807_v57, %v12720_v23 }
 0x8ee   :  { %v17199_v2 = vpop.f32.mrf.mxu0 }
 0x8ef   :  { %v12889_v51 = vadd.f32 %v12888_v19, %v12808_v25  ;;  %v14215_v19 = vcombine.high %v23198_v40, %v23201_v8 }
 0x8f5   :  { %v13062_v32 = vpop.f32.mrf.mxu1 }
 0x8f7   :  { %v17256_v1 = vpop.f32.mrf.mxu1 }
 0x8fe   :  { %v12983_v33 = vpop.f32.mrf.mxu0 }
 0x8ff   :  { %v12984_v0 = vadd.f32 %v12983_v33, %v12889_v51 }
 0x900   :  { %v17237_v3 = vpop.f32.mrf.mxu0 }
 0x901   :  { %v13063_v11 = vadd.f32 %v13062_v32, %v12984_v0 }
 0x903   :  { %v14154_v26 = vsel %vm294_vm0, %v13063_v11, 0.0 }
 0x904   :  { %v14155_v55 = vadd.f32 %v14154_v26, %v14153_v58 }
 0x907   :  { %v14220_v10 = vpop.xlane.xlu1 %14219  ;;  %v13259_v12 = vpop.f32.mrf.mxu1 }
 0x908   :  { %v14225_v43 = vmul.f32 0.03125, %v14220_v10 }
 0x909   :  { %v17294_v4 = vpop.f32.mrf.mxu1 }
 0x90a   :  { %v14227_v61 = vsub.f32 %v23244_v22, %v14225_v43 }
 0x90c   :  { %v14229_v28 = vmul.f32 %v14227_v61, %v14227_v61 }
 0x90e   :  { %v14231_v52 = vsel %vm294_vm0, %v14229_v28, 0.0 }
 0x90f   :  { %14232 = vadd.xlane.f32.xlu1 %v14231_v52 }
 0x910   :  { %v13148_v17 = vpop.f32.mrf.mxu0 }
 0x911   :  { %v13260_v5 = vadd.f32 %v13259_v12, %v13148_v17  ;;  %v14382_v12 = vld [vmem:[%s23404_s5 + $0x6] ss:$0 sm:$0xff] }
 0x912   :  { %v17275_v7 = vpop.f32.mrf.mxu0 }
 0x919   :  { %v13428_v37 = vpop.f32.mrf.mxu1 }
 0x91b   :  { %v17332_v44 = vpop.f32.mrf.mxu1 }
 0x922   :  { %v13347_v46 = vpop.f32.mrf.mxu0 }
 0x923   :  { %v13348_v14 = vadd.f32 %v13347_v46, %v13260_v5 }
 0x924   :  { %v17313_v41 = vpop.f32.mrf.mxu0 }
 0x925   :  { %v13429_v62 = vadd.f32 %v13428_v37, %v13348_v14 }
 0x92b   :  { %v13602_v15 = vpop.f32.mrf.mxu1 }
 0x92d   :  { %v17370_v18 = vpop.f32.mrf.mxu1 }
 0x934   :  { %v13523_v53 = vpop.f32.mrf.mxu0 }
 0x935   :  { %v13524_v42 = vadd.f32 %v13523_v53, %v13429_v62 }
 0x936   :  { %v17351_v31 = vpop.f32.mrf.mxu0 }
 0x937   :  { %v13603_v49 = vadd.f32 %v13602_v15, %v13524_v42 }
 0x939   :  { %v14156_v22 = vsel %vm294_vm0, %v13603_v49, 0.0 }
 0x93a   :  { %v14157_v47 = vadd.f32 %v14156_v22, %v14155_v55  ;;  %v14381_v55 = vld [vmem:[%s23404_s5 + $0x5] ss:$0 sm:$0xff]  ;;  %s17635_s5 = smov [#allocation2]  }
 0x93b   :  { %s14337_s16 = sshll.u32 %s17635_s5, 4  ;;  %s14338_s16 = int_to_ptr.vmem [resolvable:$true] %s14337_s16 }
 0x93c   :  { %s17606_s17 = scalar_lea.vmem %s14338_s16, 256  ;;  %p17611_p1 = scmp.lt.s32.totalorder %s14338_s16, %s14338_s16 }
 0x93d   :  { %v13799_v36 = vpop.f32.mrf.mxu1  ;;  %p17607_p0 = scmp.ne.s32.totalorder %s14338_s16, %s17606_s17  ;;  %p17612_p2 = scmp.lt.s32.totalorder %s17606_s17, %s17606_s17 }
 0x93f   :  { %v17408_v27 = vpop.f32.mrf.mxu1  ;;  %p17613_p3 = por %p17612_p2, %p17611_p1 }
 0x941   :  { %p17614_p4 = pnand %p17613_p3, %p17607_p0 }
 0x946   :  { %v13688_v45 = vpop.f32.mrf.mxu0 }
 0x947   :  { %v13800_v38 = vadd.f32 %v13799_v36, %v13688_v45 }
 0x948   :  { %v17389_v9 = vpop.f32.mrf.mxu0 }
 0x950   :  { %v13968_v56 = vpop.f32.mrf.mxu1 }
 0x952   :  { %v17446_v50 = vpop.f32.mrf.mxu1 }
 0x958   :  { %v13887_v24 = vpop.f32.mrf.mxu0 }
 0x959   :  { %v13888_v60 = vadd.f32 %v13887_v24, %v13800_v38 }
 0x95a   :  { %v17427_v54 = vpop.f32.mrf.mxu0 }
 0x95b   :  { %v13969_v39 = vadd.f32 %v13968_v56, %v13888_v60 }
 0x962   :  { %v14142_v20 = vpop.f32.mrf.mxu1 }
 0x964   :  { %v17484_v13 = vpop.f32.mrf.mxu1 }
 0x969   :  { %v14063_v30 = vpop.f32.mrf.mxu0 }
 0x96a   :  { %v14064_v6 = vadd.f32 %v14063_v30, %v13969_v39 }
 0x96b   :  { %v17465_v35 = vpop.f32.mrf.mxu0 }
 0x96c   :  { %v14143_v63 = vadd.f32 %v14142_v20, %v14064_v6 }
 0x96e   :  { %v14158_v23 = vsel %vm294_vm0, %v14143_v63, 0.0 }
 0x96f   :  { %v14159_v29 = vadd.f32 %v14158_v23, %v14157_v47 }
 0x971   :  { %v14165_v16 = vadd.f32 %v23213_v21, %v14159_v29 }
 0x973   :  { %v14217_v57 = vadd.f32 %v14215_v19, %v14165_v16 }
 0x975   :  { %v14221_v25 = vsel %vm294_vm0, %v14217_v57, 0.0 }
 0x976   :  { %14222 = vadd.xlane.f32.xlu0 %v14221_v25 }
 0x998   :  { %v14233_v0 = vpop.xlane.xlu1 %14232 }
 0x999   :  { %v14237_v3 = vmul.f32 0.03125, %v14233_v0 }
 0x99b   :  { %v14239_v11 = vadd.f32 1e-05, %v14237_v3 }
 0x99d   :  { %17530 = vrsqrt.f32 %v14239_v11 }
 0x9aa   :  { %v17531_v8 = vpop.eup %17530 }
 0x9ab   :  { %v14243_v21 = vmul.f32 %v17531_v8, %v14227_v61 }
 0x9ad   :  { %v14249_v10 = vmul.f32 %v14381_v55, %v14243_v21 }
 0x9af   :  { %v14255_v4 = vadd.f32 %v14382_v12, %v14249_v10 }
 0x9b1   :  { %v14257_v17 = vcombine.high %v14255_v4, %v23683_v59  ;;  %v14264_v7 = vrot.slane %v14255_v4, %v23869_v34 }
 0x9b3   :  { %v14271_v44 = vrot.slane %v14257_v17, %v23869_v34 }
 0x9ff   :  { %v14223_v2 = vpop.xlane.xlu0 %14222 }
 0xa00   :  { %v14226_v51 = vmul.f32 0.03125, %v14223_v2 }
 0xa02   :  { %v14228_v32 = vsub.f32 %v14217_v57, %v14226_v51 }
 0xa04   :  { %v14230_v1 = vmul.f32 %v14228_v32, %v14228_v32 }
 0xa06   :  { %v14234_v33 = vsel %vm294_vm0, %v14230_v1, 0.0 }
 0xa07   :  { %14235 = vadd.xlane.f32.xlu0 %v14234_v33 }
 0xa90   :  { %v14236_v58 = vpop.xlane.xlu0 %14235 }
 0xa91   :  { %v14238_v26 = vmul.f32 0.03125, %v14236_v58 }
 0xa93   :  { %v14240_v40 = vadd.f32 1e-05, %v14238_v26 }
 0xa95   :  { %17532 = vrsqrt.f32 %v14240_v40 }
 0xaa2   :  { %v17533_v43 = vpop.eup %17532 }
 0xaa3   :  { %v14244_v28 = vmul.f32 %v17533_v43, %v14228_v32 }
 0xaa5   :  { %v14250_v52 = vmul.f32 %v14381_v55, %v14244_v28 }
 0xaa7   :  { %v14256_v5 = vadd.f32 %v14382_v12, %v14250_v52 }
 0xaa9   :  { %v14272_v61 = vcombine.high %v14256_v5, %v23683_v59  ;;  %v14279_v37 = vrot.slane %v14256_v5, %v23869_v34 }
 0xaab   :  { %v14286_v46 = vrot.slane %v14272_v61, %v23869_v34  ;;  %v14287_v14 = vcombine.low %v14264_v7, %v14279_v37  ;;  %v14288_v41 = vcombine.high %v14264_v7, %v14279_v37 }
 0xaad   :  { %v14295_v62 = vrot.slane %v14287_v14, %v17876_v48  ;;  %v14302_v15 = vrot.slane %v14288_v41, %v17876_v48  ;;  %v14303_v18 = vcombine.low %v14271_v44, %v14286_v46  ;;  %v14304_v53 = vcombine.high %v14271_v44, %v14286_v46 }
 0xaaf   :  { %v14311_v42 = vrot.slane %v14303_v18, %v17876_v48  ;;  %v14318_v31 = vrot.slane %v14304_v53, %v17876_v48  ;;  %v14319_v49 = vcombine.high %v14295_v62, %v23683_v59  ;;  %v14320_v22 = vcombine.high %v14302_v15, %v23683_v59  ;;  %14324 = vst.msk [vmem:[#allocation2] sm:$0x3] %vm14323_vm3, %v14295_v62 }
 0xab0   :  { %14326 = vst.msk [vmem:[#allocation2 + $0x4] sm:$0x3] %vm14323_vm3, %v14302_v15 }
 0xab1   :  { %v14321_v34 = vcombine.high %v14311_v42, %v23683_v59  ;;  %v14322_v47 = vcombine.high %v14318_v31, %v23683_v59  ;;  %14325 = vst.msk [vmem:[#allocation2 + $0x2] sm:$0x3] %vm14323_vm3, %v14319_v49  ;;  %14327 = vst.msk [vmem:[#allocation2 + $0x6] sm:$0x3] %vm14323_vm3, %v14320_v22 }
 0xab2   :  { %14328 = vst.msk [vmem:[#allocation2 + $0x8] sm:$0x3] %vm14323_vm3, %v14311_v42  ;;  %14330 = vst.msk [vmem:[#allocation2 + $0xc] sm:$0x3] %vm14323_vm3, %v14318_v31 }
 0xab3   :  { %14329 = vst.msk [vmem:[#allocation2 + $0xa] sm:$0x3] %vm14323_vm3, %v14321_v34  ;;  %14331 = vst.msk [vmem:[#allocation2 + $0xe] sm:$0x3] %vm14323_vm3, %v14322_v47 }
 0xab4   :  { %17617 = shalt.err (!%p17614_p4)
}
 0xab5   :  { %s17636_s4 = smov 2  }
 0xab6   :  { %14343 = dma.vmem_to_hbm [thread:$0]  %s14338_s16, 256, %s23405_s6, [#allocation3], %s17633_s15, %s17633_s15, %s17636_s4  }
 0xab7   :  { %17626 = dma.done.wait [#allocation3], 256  }
 0xab8   :  { %17627 = vsyncadd [#allocation3], 4294967040 }
 0xab9   :  { %14347 = vsyncpa [#allocation3], 1 }

</bundles_post_ra>
